<compile_context>
chip_gen: v5e
topology: v5e:2x2
jax: 0.10.0
libtpu: 0.0.40
codegen_flags: <defaults>
</compile_context>

<pallas_src>
import jax
import jax.numpy as jnp
from jax.experimental import pallas as pl
from jax.experimental.pallas import tpu as pltpu

SELU_ALPHA = 1.6732632423543772848170429916717
SELU_SCALE = 1.0507009873554804934193349852946
BN_EPS = 1e-5


def _selu(v):
    # exp evaluated only on the clamped-negative side to avoid f32 overflow.
    neg = SELU_ALPHA * (jnp.exp(jnp.minimum(v, 0.0)) - 1.0)
    return SELU_SCALE * jnp.where(v > 0, v, neg)


# --------------------- fused per-layer Pallas kernels -----------------------

def _make_fused_kernel(m_real, use_bn):
    inv_m = 1.0 / float(m_real)  # static per layer

    if use_bn:
        def kernel(x_ref, w_ref, g_ref, b_ref, o_ref):
            # conv as matmul over im2col patches (MXU, f32 accumulation)
            y = jnp.dot(x_ref[...], w_ref[...],
                        preferred_element_type=jnp.float32)
            # training-mode BatchNorm batch stats (biased variance).  Padded
            # rows of X are zero => they contribute zero to the sums; divide
            # by the real row count.
            mean = jnp.sum(y, axis=0, keepdims=True) * inv_m
            var = jnp.sum(y * y, axis=0, keepdims=True) * inv_m - mean * mean
            scale = g_ref[...] * jax.lax.rsqrt(var + BN_EPS)
            shift = b_ref[...] - mean * scale
            o_ref[...] = _selu(y * scale + shift)
    else:
        def kernel(x_ref, w_ref, o_ref):
            y = jnp.dot(x_ref[...], w_ref[...],
                        preferred_element_type=jnp.float32)
            o_ref[...] = _selu(y)

    return kernel


def fused_conv_layer(Xp, Wm, gamma2d=None, beta2d=None, *, m_real):
    """Whole-array (grid=(1,)) fused matmul + (BN) + SELU."""
    Mp, K = Xp.shape
    C = Wm.shape[1]
    use_bn = gamma2d is not None
    kernel = _make_fused_kernel(m_real, use_bn)

    inputs = [Xp, Wm]
    in_specs = [pl.BlockSpec((Mp, K), lambda i: (0, 0)),
                pl.BlockSpec((K, C), lambda i: (0, 0))]
    if use_bn:
        inputs += [gamma2d, beta2d]
        in_specs += [pl.BlockSpec((1, C), lambda i: (0, 0)),
                     pl.BlockSpec((1, C), lambda i: (0, 0))]

    return pl.pallas_call(
        kernel,
        out_shape=jax.ShapeDtypeStruct((Mp, C), jnp.float32),
        grid=(1,),
        in_specs=in_specs,
        out_specs=pl.BlockSpec((Mp, C), lambda i: (0, 0)),
        compiler_params=pltpu.CompilerParams(
            dimension_semantics=("arbitrary",)),
    )(*inputs)


# ------------------------------- glue (JAX) ---------------------------------

def im2col(x_nchw, k, s, p):
    """NCHW -> (N*Ho*Wo, Cin*k*k) patch matrix, (Cin, kh, kw) flattening order."""
    N, C, H, W = x_nchw.shape
    xp = jnp.pad(x_nchw, ((0, 0), (0, 0), (p, p), (p, p)))
    Ho = (H + 2 * p - k) // s + 1
    Wo = (W + 2 * p - k) // s + 1
    cols = []
    for i in range(k):
        for j in range(k):
            cols.append(xp[:, :, i:i + Ho * s:s, j:j + Wo * s:s])  # (N,C,Ho,Wo)
    patches = jnp.stack(cols, axis=2)                 # (N, C, k*k, Ho, Wo)
    patches = patches.transpose(0, 3, 4, 1, 2)        # (N, Ho, Wo, C, k*k)
    return patches.reshape(N * Ho * Wo, C * k * k), Ho, Wo


def conv_block(x_nchw, wm, k, s, p, gamma2d=None, beta2d=None):
    N = x_nchw.shape[0]
    Cout = wm.shape[1]
    X, Ho, Wo = im2col(x_nchw, k, s, p)
    M = X.shape[0]
    Mp = ((M + 7) // 8) * 8          # sublane alignment only (no 128 padding)
    if Mp != M:
        X = jnp.pad(X, ((0, Mp - M), (0, 0)))
    Z = fused_conv_layer(X, wm, gamma2d, beta2d, m_real=M)
    return Z[:M].reshape(N, Ho, Wo, Cout).transpose(0, 3, 1, 2)  # back to NCHW


def prepare_params(params):
    """One-time (outside the forward path) reshape of weights to matmul form."""
    p = {}
    for name in ("w1", "w2", "w3", "w4", "w5"):
        w = params[name]
        p[name + "m"] = w.reshape(w.shape[0], -1).T.astype(jnp.float32)  # (K, Cout)
    for i in (2, 3, 4, 5):
        p[f"g{i}"] = params[f"g{i}"].reshape(1, -1).astype(jnp.float32)
        p[f"b{i}"] = params[f"b{i}"].reshape(1, -1).astype(jnp.float32)
    return p


def encoder_forward(x, p):
    x = conv_block(x, p["w1m"], 4, 2, 1)                          # conv + SELU
    x = conv_block(x, p["w2m"], 4, 2, 1, p["g2"], p["b2"])        # conv+BN+SELU
    x = conv_block(x, p["w3m"], 4, 2, 1, p["g3"], p["b3"])
    x = conv_block(x, p["w4m"], 4, 2, 1, p["g4"], p["b4"])
    x = conv_block(x, p["w5m"], 3, 1, 0, p["g5"], p["b5"])
    return x.reshape(x.shape[0], -1)  # Flatten: view(N, -1) on NCHW


# --------------------------- pure-JAX reference ------------------------------

def _ref_conv(x, w, s, p):
    return jax.lax.conv_general_dilated(
        x, w, (s, s), ((p, p), (p, p)),
        dimension_numbers=("NCHW", "OIHW", "NCHW"))


def _ref_selu(v):
    return SELU_SCALE * jnp.where(v > 0, v, SELU_ALPHA * jnp.expm1(v))


def _ref_bn(y, gamma, beta, eps=BN_EPS):
    mean = jnp.mean(y, axis=(0, 2, 3), keepdims=True)
    var = jnp.mean((y - mean) ** 2, axis=(0, 2, 3), keepdims=True)
    y = (y - mean) * jax.lax.rsqrt(var + eps)
    return y * gamma[None, :, None, None] + beta[None, :, None, None]


def reference_forward(x, params):
    y = _ref_selu(_ref_conv(x, params["w1"], 2, 1))
    y = _ref_selu(_ref_bn(_ref_conv(y, params["w2"], 2, 1), params["g2"], params["b2"]))
    y = _ref_selu(_ref_bn(_ref_conv(y, params["w3"], 2, 1), params["g3"], params["b3"]))
    y = _ref_selu(_ref_bn(_ref_conv(y, params["w4"], 2, 1), params["g4"], params["b4"]))
    y = _ref_selu(_ref_bn(_ref_conv(y, params["w5"], 1, 0), params["g5"], params["b5"]))
    return y.reshape(y.shape[0], -1)


# --------------------------------- main --------------------------------------

def init_params(key):
    ndf = 16
    shapes = {
        "w1": (ndf, 2, 4, 4),
        "w2": (ndf * 2, ndf, 4, 4),
        "w3": (ndf * 4, ndf * 2, 4, 4),
        "w4": (ndf * 8, ndf * 4, 4, 4),
        "w5": (ndf * 16, ndf * 8, 3, 3),
    }
    params = {}
    keys = jax.random.split(key, len(shapes))
    for k_, (name, shp) in zip(keys, shapes.items()):
        params[name] = (0.05 * jax.random.normal(k_, shp)).astype(jnp.float32)
    for i, c in zip((2, 3, 4, 5), (ndf * 2, ndf * 4, ndf * 8, ndf * 16)):
        params[f"g{i}"] = jnp.ones((c,), jnp.float32)   # BN weight init
        params[f"b{i}"] = jnp.zeros((c,), jnp.float32)  # BN bias init
    return params


if __name__ == "__main__":
    key = jax.random.PRNGKey(0)
    kx, kp = jax.random.split(key)
    # nc=2 input channels; spatial 48 -> 24 -> 12 -> 6 -> 3 -> 1 after the 3x3 conv
    x = jax.random.normal(kx, (2, 2, 48, 48), dtype=jnp.float32)
    params = init_params(kp)
    prepped = prepare_params(params)   # weight reshapes done once, not per call

    fwd = jax.jit(encoder_forward)
    out = jax.block_until_ready(fwd(x, prepped))

    ref = jax.block_until_ready(reference_forward(x, params))
    assert out.shape == (2, 256), out.shape
    if not jnp.allclose(out, ref, rtol=1e-2, atol=1e-2):
        err = float(jnp.max(jnp.abs(out - ref)))
        raise AssertionError(
            f"Pallas EncoderSelu output mismatch vs reference (max abs err {err})")
    print("KERNEL_OK")
</pallas_src>

<mosaic_0001>
module attributes {stable_mosaic.version = 11 : i64} {
  func.func @kernel(%arg0: i32, %arg1: memref<1152x32xf32, #tpu.memory_space<vmem>>, %arg2: memref<32x16xf32, #tpu.memory_space<vmem>>, %arg3: memref<1152x16xf32, #tpu.memory_space<vmem>>) attributes {dimension_semantics = [#tpu.dimension_semantics<arbitrary>], iteration_bounds = array<i64: 1>, scalar_prefetch = 0 : i64, scratch_operands = 0 : i64, tpu.core_type = #tpu.core_type<tc>, window_params = [{pipeline_mode = #tpu.pipeline_mode<synchronous>, transform_indices = @transform_0, window_bounds = array<i64: 1152, 32>}, {pipeline_mode = #tpu.pipeline_mode<synchronous>, transform_indices = @transform_1, window_bounds = array<i64: 32, 16>}, {pipeline_mode = #tpu.pipeline_mode<synchronous>, transform_indices = @transform_2, window_bounds = array<i64: 1152, 16>}]} {
    %c0 = arith.constant 0 : index
    %c0_0 = arith.constant 0 : index
    %0 = vector.load %arg1[%c0, %c0_0] : memref<1152x32xf32, #tpu.memory_space<vmem>>, vector<1152x32xf32>
    %c0_1 = arith.constant 0 : index
    %c0_2 = arith.constant 0 : index
    %1 = vector.load %arg2[%c0_1, %c0_2] : memref<32x16xf32, #tpu.memory_space<vmem>>, vector<32x16xf32>
    %cst = arith.constant dense<0.000000e+00> : vector<1152x16xf32>
    %2 = tpu.matmul %0, %1, %cst {dimension_numbers = #tpu.dot_dimension_numbers<[1], [0], [0], [1], [0, 0, 1, 1], [], []>} : vector<1152x32xf32>, vector<32x16xf32>, vector<1152x16xf32> -> vector<1152x16xf32>
    %cst_3 = arith.constant 0.000000e+00 : f32
    %3 = vector.broadcast %cst_3 : f32 to vector<1152x16xf32>
    %4 = arith.minimumf %2, %3 : vector<1152x16xf32>
    %5 = math.exp %4 : vector<1152x16xf32>
    %cst_4 = arith.constant 1.000000e+00 : f32
    %6 = vector.broadcast %cst_4 : f32 to vector<1152x16xf32>
    %7 = arith.subf %5, %6 : vector<1152x16xf32>
    %cst_5 = arith.constant 1.67326319 : f32
    %8 = vector.broadcast %cst_5 : f32 to vector<1152x16xf32>
    %9 = arith.mulf %8, %7 : vector<1152x16xf32>
    %cst_6 = arith.constant 0.000000e+00 : f32
    %10 = vector.broadcast %cst_6 : f32 to vector<1152x16xf32>
    %11 = arith.cmpf ogt, %2, %10 : vector<1152x16xf32>
    %12 = arith.select %11, %2, %9 : vector<1152x16xi1>, vector<1152x16xf32>
    %cst_7 = arith.constant 1.05070102 : f32
    %13 = vector.broadcast %cst_7 : f32 to vector<1152x16xf32>
    %14 = arith.mulf %13, %12 : vector<1152x16xf32>
    %c0_8 = arith.constant 0 : index
    %c0_9 = arith.constant 0 : index
    %15 = vector.load %arg3[%c0_8, %c0_9] : memref<1152x16xf32, #tpu.memory_space<vmem>>, vector<1152x16xf32>
    tpu.vector_store %arg3[%c0_8, %c0_9], %14 {strides = array<i32>} : memref<1152x16xf32, #tpu.memory_space<vmem>>, vector<1152x16xf32>,
    return
  }
  func.func @transform_0(%arg0: i32) -> (i32, i32) {
    %c0_i32 = arith.constant 0 : i32
    %c0_i32_0 = arith.constant 0 : i32
    %c0_i32_1 = arith.constant 0 : i32
    return %c0_i32, %c0_i32_0 : i32, i32
  }
  func.func @transform_1(%arg0: i32) -> (i32, i32) {
    %c0_i32 = arith.constant 0 : i32
    %c0_i32_0 = arith.constant 0 : i32
    %c0_i32_1 = arith.constant 0 : i32
    return %c0_i32, %c0_i32_0 : i32, i32
  }
  func.func @transform_2(%arg0: i32) -> (i32, i32) {
    %c0_i32 = arith.constant 0 : i32
    %c0_i32_0 = arith.constant 0 : i32
    %c0_i32_1 = arith.constant 0 : i32
    return %c0_i32, %c0_i32_0 : i32, i32
  }
}

module attributes {stable_mosaic.version = 11 : i64} {
  func.func @kernel(%arg0: i32, %arg1: memref<288x256xf32, #tpu.memory_space<vmem>>, %arg2: memref<256x32xf32, #tpu.memory_space<vmem>>, %arg3: memref<1x32xf32, #tpu.memory_space<vmem>>, %arg4: memref<1x32xf32, #tpu.memory_space<vmem>>, %arg5: memref<288x32xf32, #tpu.memory_space<vmem>>) attributes {dimension_semantics = [#tpu.dimension_semantics<arbitrary>], iteration_bounds = array<i64: 1>, scalar_prefetch = 0 : i64, scratch_operands = 0 : i64, tpu.core_type = #tpu.core_type<tc>, window_params = [{pipeline_mode = #tpu.pipeline_mode<synchronous>, transform_indices = @transform_0, window_bounds = array<i64: 288, 256>}, {pipeline_mode = #tpu.pipeline_mode<synchronous>, transform_indices = @transform_1, window_bounds = array<i64: 256, 32>}, {pipeline_mode = #tpu.pipeline_mode<synchronous>, transform_indices = @transform_2, window_bounds = array<i64: 1, 32>}, {pipeline_mode = #tpu.pipeline_mode<synchronous>, transform_indices = @transform_3, window_bounds = array<i64: 1, 32>}, {pipeline_mode = #tpu.pipeline_mode<synchronous>, transform_indices = @transform_4, window_bounds = array<i64: 288, 32>}]} {
    %c0 = arith.constant 0 : index
    %c0_0 = arith.constant 0 : index
    %0 = vector.load %arg1[%c0, %c0_0] : memref<288x256xf32, #tpu.memory_space<vmem>>, vector<288x256xf32>
    %c0_1 = arith.constant 0 : index
    %c0_2 = arith.constant 0 : index
    %1 = vector.load %arg2[%c0_1, %c0_2] : memref<256x32xf32, #tpu.memory_space<vmem>>, vector<256x32xf32>
    %cst = arith.constant dense<0.000000e+00> : vector<288x32xf32>
    %2 = tpu.matmul %0, %1, %cst {dimension_numbers = #tpu.dot_dimension_numbers<[1], [0], [0], [1], [0, 0, 1, 1], [], []>} : vector<288x256xf32>, vector<256x32xf32>, vector<288x32xf32> -> vector<288x32xf32>
    %cst_3 = arith.constant dense<0.000000e+00> : vector<32xf32>
    %3 = vector.multi_reduction <add>, %2, %cst_3 [0] : vector<288x32xf32> to vector<32xf32>
    %4 = vector.shape_cast %3 : vector<32xf32> to vector<1x32xf32>
    %cst_4 = arith.constant 0.00347222225 : f32
    %5 = vector.broadcast %cst_4 : f32 to vector<1x32xf32>
    %6 = arith.mulf %4, %5 : vector<1x32xf32>
    %7 = arith.mulf %2, %2 : vector<288x32xf32>
    %cst_5 = arith.constant dense<0.000000e+00> : vector<32xf32>
    %8 = vector.multi_reduction <add>, %7, %cst_5 [0] : vector<288x32xf32> to vector<32xf32>
    %9 = vector.shape_cast %8 : vector<32xf32> to vector<1x32xf32>
    %cst_6 = arith.constant 0.00347222225 : f32
    %10 = vector.broadcast %cst_6 : f32 to vector<1x32xf32>
    %11 = arith.mulf %9, %10 : vector<1x32xf32>
    %12 = arith.mulf %6, %6 : vector<1x32xf32>
    %13 = arith.subf %11, %12 : vector<1x32xf32>
    %c0_7 = arith.constant 0 : index
    %c0_8 = arith.constant 0 : index
    %14 = vector.load %arg3[%c0_7, %c0_8] : memref<1x32xf32, #tpu.memory_space<vmem>>, vector<1x32xf32>
    %cst_9 = arith.constant 9.99999974E-6 : f32
    %15 = vector.broadcast %cst_9 : f32 to vector<1x32xf32>
    %16 = arith.addf %13, %15 : vector<1x32xf32>
    %17 = math.rsqrt %16 : vector<1x32xf32>
    %18 = arith.mulf %14, %17 : vector<1x32xf32>
    %c0_10 = arith.constant 0 : index
    %c0_11 = arith.constant 0 : index
    %19 = vector.load %arg4[%c0_10, %c0_11] : memref<1x32xf32, #tpu.memory_space<vmem>>, vector<1x32xf32>
    %20 = arith.mulf %6, %18 : vector<1x32xf32>
    %21 = arith.subf %19, %20 : vector<1x32xf32>
    %22 = vector.broadcast %18 : vector<1x32xf32> to vector<288x32xf32>
    %23 = arith.mulf %2, %22 : vector<288x32xf32>
    %24 = vector.broadcast %21 : vector<1x32xf32> to vector<288x32xf32>
    %25 = arith.addf %23, %24 : vector<288x32xf32>
    %cst_12 = arith.constant 0.000000e+00 : f32
    %26 = vector.broadcast %cst_12 : f32 to vector<288x32xf32>
    %27 = arith.minimumf %25, %26 : vector<288x32xf32>
    %28 = math.exp %27 : vector<288x32xf32>
    %cst_13 = arith.constant 1.000000e+00 : f32
    %29 = vector.broadcast %cst_13 : f32 to vector<288x32xf32>
    %30 = arith.subf %28, %29 : vector<288x32xf32>
    %cst_14 = arith.constant 1.67326319 : f32
    %31 = vector.broadcast %cst_14 : f32 to vector<288x32xf32>
    %32 = arith.mulf %31, %30 : vector<288x32xf32>
    %cst_15 = arith.constant 0.000000e+00 : f32
    %33 = vector.broadcast %cst_15 : f32 to vector<288x32xf32>
    %34 = arith.cmpf ogt, %25, %33 : vector<288x32xf32>
    %35 = arith.select %34, %25, %32 : vector<288x32xi1>, vector<288x32xf32>
    %cst_16 = arith.constant 1.05070102 : f32
    %36 = vector.broadcast %cst_16 : f32 to vector<288x32xf32>
    %37 = arith.mulf %36, %35 : vector<288x32xf32>
    %c0_17 = arith.constant 0 : index
    %c0_18 = arith.constant 0 : index
    %38 = vector.load %arg5[%c0_17, %c0_18] : memref<288x32xf32, #tpu.memory_space<vmem>>, vector<288x32xf32>
    tpu.vector_store %arg5[%c0_17, %c0_18], %37 {strides = array<i32>} : memref<288x32xf32, #tpu.memory_space<vmem>>, vector<288x32xf32>,
    return
  }
  func.func @transform_0(%arg0: i32) -> (i32, i32) {
    %c0_i32 = arith.constant 0 : i32
    %c0_i32_0 = arith.constant 0 : i32
    %c0_i32_1 = arith.constant 0 : i32
    return %c0_i32, %c0_i32_0 : i32, i32
  }
  func.func @transform_1(%arg0: i32) -> (i32, i32) {
    %c0_i32 = arith.constant 0 : i32
    %c0_i32_0 = arith.constant 0 : i32
    %c0_i32_1 = arith.constant 0 : i32
    return %c0_i32, %c0_i32_0 : i32, i32
  }
  func.func @transform_2(%arg0: i32) -> (i32, i32) {
    %c0_i32 = arith.constant 0 : i32
    %c0_i32_0 = arith.constant 0 : i32
    %c0_i32_1 = arith.constant 0 : i32
    return %c0_i32, %c0_i32_0 : i32, i32
  }
  func.func @transform_3(%arg0: i32) -> (i32, i32) {
    %c0_i32 = arith.constant 0 : i32
    %c0_i32_0 = arith.constant 0 : i32
    %c0_i32_1 = arith.constant 0 : i32
    return %c0_i32, %c0_i32_0 : i32, i32
  }
  func.func @transform_4(%arg0: i32) -> (i32, i32) {
    %c0_i32 = arith.constant 0 : i32
    %c0_i32_0 = arith.constant 0 : i32
    %c0_i32_1 = arith.constant 0 : i32
    return %c0_i32, %c0_i32_0 : i32, i32
  }
}

module attributes {stable_mosaic.version = 11 : i64} {
  func.func @kernel(%arg0: i32, %arg1: memref<72x512xf32, #tpu.memory_space<vmem>>, %arg2: memref<512x64xf32, #tpu.memory_space<vmem>>, %arg3: memref<1x64xf32, #tpu.memory_space<vmem>>, %arg4: memref<1x64xf32, #tpu.memory_space<vmem>>, %arg5: memref<72x64xf32, #tpu.memory_space<vmem>>) attributes {dimension_semantics = [#tpu.dimension_semantics<arbitrary>], iteration_bounds = array<i64: 1>, scalar_prefetch = 0 : i64, scratch_operands = 0 : i64, tpu.core_type = #tpu.core_type<tc>, window_params = [{pipeline_mode = #tpu.pipeline_mode<synchronous>, transform_indices = @transform_0, window_bounds = array<i64: 72, 512>}, {pipeline_mode = #tpu.pipeline_mode<synchronous>, transform_indices = @transform_1, window_bounds = array<i64: 512, 64>}, {pipeline_mode = #tpu.pipeline_mode<synchronous>, transform_indices = @transform_2, window_bounds = array<i64: 1, 64>}, {pipeline_mode = #tpu.pipeline_mode<synchronous>, transform_indices = @transform_3, window_bounds = array<i64: 1, 64>}, {pipeline_mode = #tpu.pipeline_mode<synchronous>, transform_indices = @transform_4, window_bounds = array<i64: 72, 64>}]} {
    %c0 = arith.constant 0 : index
    %c0_0 = arith.constant 0 : index
    %0 = vector.load %arg1[%c0, %c0_0] : memref<72x512xf32, #tpu.memory_space<vmem>>, vector<72x512xf32>
    %c0_1 = arith.constant 0 : index
    %c0_2 = arith.constant 0 : index
    %1 = vector.load %arg2[%c0_1, %c0_2] : memref<512x64xf32, #tpu.memory_space<vmem>>, vector<512x64xf32>
    %cst = arith.constant dense<0.000000e+00> : vector<72x64xf32>
    %2 = tpu.matmul %0, %1, %cst {dimension_numbers = #tpu.dot_dimension_numbers<[1], [0], [0], [1], [0, 0, 1, 1], [], []>} : vector<72x512xf32>, vector<512x64xf32>, vector<72x64xf32> -> vector<72x64xf32>
    %cst_3 = arith.constant dense<0.000000e+00> : vector<64xf32>
    %3 = vector.multi_reduction <add>, %2, %cst_3 [0] : vector<72x64xf32> to vector<64xf32>
    %4 = vector.shape_cast %3 : vector<64xf32> to vector<1x64xf32>
    %cst_4 = arith.constant 0.013888889 : f32
    %5 = vector.broadcast %cst_4 : f32 to vector<1x64xf32>
    %6 = arith.mulf %4, %5 : vector<1x64xf32>
    %7 = arith.mulf %2, %2 : vector<72x64xf32>
    %cst_5 = arith.constant dense<0.000000e+00> : vector<64xf32>
    %8 = vector.multi_reduction <add>, %7, %cst_5 [0] : vector<72x64xf32> to vector<64xf32>
    %9 = vector.shape_cast %8 : vector<64xf32> to vector<1x64xf32>
    %cst_6 = arith.constant 0.013888889 : f32
    %10 = vector.broadcast %cst_6 : f32 to vector<1x64xf32>
    %11 = arith.mulf %9, %10 : vector<1x64xf32>
    %12 = arith.mulf %6, %6 : vector<1x64xf32>
    %13 = arith.subf %11, %12 : vector<1x64xf32>
    %c0_7 = arith.constant 0 : index
    %c0_8 = arith.constant 0 : index
    %14 = vector.load %arg3[%c0_7, %c0_8] : memref<1x64xf32, #tpu.memory_space<vmem>>, vector<1x64xf32>
    %cst_9 = arith.constant 9.99999974E-6 : f32
    %15 = vector.broadcast %cst_9 : f32 to vector<1x64xf32>
    %16 = arith.addf %13, %15 : vector<1x64xf32>
    %17 = math.rsqrt %16 : vector<1x64xf32>
    %18 = arith.mulf %14, %17 : vector<1x64xf32>
    %c0_10 = arith.constant 0 : index
    %c0_11 = arith.constant 0 : index
    %19 = vector.load %arg4[%c0_10, %c0_11] : memref<1x64xf32, #tpu.memory_space<vmem>>, vector<1x64xf32>
    %20 = arith.mulf %6, %18 : vector<1x64xf32>
    %21 = arith.subf %19, %20 : vector<1x64xf32>
    %22 = vector.broadcast %18 : vector<1x64xf32> to vector<72x64xf32>
    %23 = arith.mulf %2, %22 : vector<72x64xf32>
    %24 = vector.broadcast %21 : vector<1x64xf32> to vector<72x64xf32>
    %25 = arith.addf %23, %24 : vector<72x64xf32>
    %cst_12 = arith.constant 0.000000e+00 : f32
    %26 = vector.broadcast %cst_12 : f32 to vector<72x64xf32>
    %27 = arith.minimumf %25, %26 : vector<72x64xf32>
    %28 = math.exp %27 : vector<72x64xf32>
    %cst_13 = arith.constant 1.000000e+00 : f32
    %29 = vector.broadcast %cst_13 : f32 to vector<72x64xf32>
    %30 = arith.subf %28, %29 : vector<72x64xf32>
    %cst_14 = arith.constant 1.67326319 : f32
    %31 = vector.broadcast %cst_14 : f32 to vector<72x64xf32>
    %32 = arith.mulf %31, %30 : vector<72x64xf32>
    %cst_15 = arith.constant 0.000000e+00 : f32
    %33 = vector.broadcast %cst_15 : f32 to vector<72x64xf32>
    %34 = arith.cmpf ogt, %25, %33 : vector<72x64xf32>
    %35 = arith.select %34, %25, %32 : vector<72x64xi1>, vector<72x64xf32>
    %cst_16 = arith.constant 1.05070102 : f32
    %36 = vector.broadcast %cst_16 : f32 to vector<72x64xf32>
    %37 = arith.mulf %36, %35 : vector<72x64xf32>
    %c0_17 = arith.constant 0 : index
    %c0_18 = arith.constant 0 : index
    %38 = vector.load %arg5[%c0_17, %c0_18] : memref<72x64xf32, #tpu.memory_space<vmem>>, vector<72x64xf32>
    tpu.vector_store %arg5[%c0_17, %c0_18], %37 {strides = array<i32>} : memref<72x64xf32, #tpu.memory_space<vmem>>, vector<72x64xf32>,
    return
  }
  func.func @transform_0(%arg0: i32) -> (i32, i32) {
    %c0_i32 = arith.constant 0 : i32
    %c0_i32_0 = arith.constant 0 : i32
    %c0_i32_1 = arith.constant 0 : i32
    return %c0_i32, %c0_i32_0 : i32, i32
  }
  func.func @transform_1(%arg0: i32) -> (i32, i32) {
    %c0_i32 = arith.constant 0 : i32
    %c0_i32_0 = arith.constant 0 : i32
    %c0_i32_1 = arith.constant 0 : i32
    return %c0_i32, %c0_i32_0 : i32, i32
  }
  func.func @transform_2(%arg0: i32) -> (i32, i32) {
    %c0_i32 = arith.constant 0 : i32
    %c0_i32_0 = arith.constant 0 : i32
    %c0_i32_1 = arith.constant 0 : i32
    return %c0_i32, %c0_i32_0 : i32, i32
  }
  func.func @transform_3(%arg0: i32) -> (i32, i32) {
    %c0_i32 = arith.constant 0 : i32
    %c0_i32_0 = arith.constant 0 : i32
    %c0_i32_1 = arith.constant 0 : i32
    return %c0_i32, %c0_i32_0 : i32, i32
  }
  func.func @transform_4(%arg0: i32) -> (i32, i32) {
    %c0_i32 = arith.constant 0 : i32
    %c0_i32_0 = arith.constant 0 : i32
    %c0_i32_1 = arith.constant 0 : i32
    return %c0_i32, %c0_i32_0 : i32, i32
  }
}

module attributes {stable_mosaic.version = 11 : i64} {
  func.func @kernel(%arg0: i32, %arg1: memref<24x1024xf32, #tpu.memory_space<vmem>>, %arg2: memref<1024x128xf32, #tpu.memory_space<vmem>>, %arg3: memref<1x128xf32, #tpu.memory_space<vmem>>, %arg4: memref<1x128xf32, #tpu.memory_space<vmem>>, %arg5: memref<24x128xf32, #tpu.memory_space<vmem>>) attributes {dimension_semantics = [#tpu.dimension_semantics<arbitrary>], iteration_bounds = array<i64: 1>, scalar_prefetch = 0 : i64, scratch_operands = 0 : i64, tpu.core_type = #tpu.core_type<tc>, window_params = [{pipeline_mode = #tpu.pipeline_mode<synchronous>, transform_indices = @transform_0, window_bounds = array<i64: 24, 1024>}, {pipeline_mode = #tpu.pipeline_mode<synchronous>, transform_indices = @transform_1, window_bounds = array<i64: 1024, 128>}, {pipeline_mode = #tpu.pipeline_mode<synchronous>, transform_indices = @transform_2, window_bounds = array<i64: 1, 128>}, {pipeline_mode = #tpu.pipeline_mode<synchronous>, transform_indices = @transform_3, window_bounds = array<i64: 1, 128>}, {pipeline_mode = #tpu.pipeline_mode<synchronous>, transform_indices = @transform_4, window_bounds = array<i64: 24, 128>}]} {
    %c0 = arith.constant 0 : index
    %c0_0 = arith.constant 0 : index
    %0 = vector.load %arg1[%c0, %c0_0] : memref<24x1024xf32, #tpu.memory_space<vmem>>, vector<24x1024xf32>
    %c0_1 = arith.constant 0 : index
    %c0_2 = arith.constant 0 : index
    %1 = vector.load %arg2[%c0_1, %c0_2] : memref<1024x128xf32, #tpu.memory_space<vmem>>, vector<1024x128xf32>
    %cst = arith.constant dense<0.000000e+00> : vector<24x128xf32>
    %2 = tpu.matmul %0, %1, %cst {dimension_numbers = #tpu.dot_dimension_numbers<[1], [0], [0], [1], [0, 0, 1, 1], [], []>} : vector<24x1024xf32>, vector<1024x128xf32>, vector<24x128xf32> -> vector<24x128xf32>
    %cst_3 = arith.constant dense<0.000000e+00> : vector<128xf32>
    %3 = vector.multi_reduction <add>, %2, %cst_3 [0] : vector<24x128xf32> to vector<128xf32>
    %4 = vector.shape_cast %3 : vector<128xf32> to vector<1x128xf32>
    %cst_4 = arith.constant 0.055555556 : f32
    %5 = vector.broadcast %cst_4 : f32 to vector<1x128xf32>
    %6 = arith.mulf %4, %5 : vector<1x128xf32>
    %7 = arith.mulf %2, %2 : vector<24x128xf32>
    %cst_5 = arith.constant dense<0.000000e+00> : vector<128xf32>
    %8 = vector.multi_reduction <add>, %7, %cst_5 [0] : vector<24x128xf32> to vector<128xf32>
    %9 = vector.shape_cast %8 : vector<128xf32> to vector<1x128xf32>
    %cst_6 = arith.constant 0.055555556 : f32
    %10 = vector.broadcast %cst_6 : f32 to vector<1x128xf32>
    %11 = arith.mulf %9, %10 : vector<1x128xf32>
    %12 = arith.mulf %6, %6 : vector<1x128xf32>
    %13 = arith.subf %11, %12 : vector<1x128xf32>
    %c0_7 = arith.constant 0 : index
    %c0_8 = arith.constant 0 : index
    %14 = vector.load %arg3[%c0_7, %c0_8] : memref<1x128xf32, #tpu.memory_space<vmem>>, vector<1x128xf32>
    %cst_9 = arith.constant 9.99999974E-6 : f32
    %15 = vector.broadcast %cst_9 : f32 to vector<1x128xf32>
    %16 = arith.addf %13, %15 : vector<1x128xf32>
    %17 = math.rsqrt %16 : vector<1x128xf32>
    %18 = arith.mulf %14, %17 : vector<1x128xf32>
    %c0_10 = arith.constant 0 : index
    %c0_11 = arith.constant 0 : index
    %19 = vector.load %arg4[%c0_10, %c0_11] : memref<1x128xf32, #tpu.memory_space<vmem>>, vector<1x128xf32>
    %20 = arith.mulf %6, %18 : vector<1x128xf32>
    %21 = arith.subf %19, %20 : vector<1x128xf32>
    %22 = vector.broadcast %18 : vector<1x128xf32> to vector<24x128xf32>
    %23 = arith.mulf %2, %22 : vector<24x128xf32>
    %24 = vector.broadcast %21 : vector<1x128xf32> to vector<24x128xf32>
    %25 = arith.addf %23, %24 : vector<24x128xf32>
    %cst_12 = arith.constant 0.000000e+00 : f32
    %26 = vector.broadcast %cst_12 : f32 to vector<24x128xf32>
    %27 = arith.minimumf %25, %26 : vector<24x128xf32>
    %28 = math.exp %27 : vector<24x128xf32>
    %cst_13 = arith.constant 1.000000e+00 : f32
    %29 = vector.broadcast %cst_13 : f32 to vector<24x128xf32>
    %30 = arith.subf %28, %29 : vector<24x128xf32>
    %cst_14 = arith.constant 1.67326319 : f32
    %31 = vector.broadcast %cst_14 : f32 to vector<24x128xf32>
    %32 = arith.mulf %31, %30 : vector<24x128xf32>
    %cst_15 = arith.constant 0.000000e+00 : f32
    %33 = vector.broadcast %cst_15 : f32 to vector<24x128xf32>
    %34 = arith.cmpf ogt, %25, %33 : vector<24x128xf32>
    %35 = arith.select %34, %25, %32 : vector<24x128xi1>, vector<24x128xf32>
    %cst_16 = arith.constant 1.05070102 : f32
    %36 = vector.broadcast %cst_16 : f32 to vector<24x128xf32>
    %37 = arith.mulf %36, %35 : vector<24x128xf32>
    %c0_17 = arith.constant 0 : index
    %c0_18 = arith.constant 0 : index
    %38 = vector.load %arg5[%c0_17, %c0_18] : memref<24x128xf32, #tpu.memory_space<vmem>>, vector<24x128xf32>
    tpu.vector_store %arg5[%c0_17, %c0_18], %37 {strides = array<i32>} : memref<24x128xf32, #tpu.memory_space<vmem>>, vector<24x128xf32>,
    return
  }
  func.func @transform_0(%arg0: i32) -> (i32, i32) {
    %c0_i32 = arith.constant 0 : i32
    %c0_i32_0 = arith.constant 0 : i32
    %c0_i32_1 = arith.constant 0 : i32
    return %c0_i32, %c0_i32_0 : i32, i32
  }
  func.func @transform_1(%arg0: i32) -> (i32, i32) {
    %c0_i32 = arith.constant 0 : i32
    %c0_i32_0 = arith.constant 0 : i32
    %c0_i32_1 = arith.constant 0 : i32
    return %c0_i32, %c0_i32_0 : i32, i32
  }
  func.func @transform_2(%arg0: i32) -> (i32, i32) {
    %c0_i32 = arith.constant 0 : i32
    %c0_i32_0 = arith.constant 0 : i32
    %c0_i32_1 = arith.constant 0 : i32
    return %c0_i32, %c0_i32_0 : i32, i32
  }
  func.func @transform_3(%arg0: i32) -> (i32, i32) {
    %c0_i32 = arith.constant 0 : i32
    %c0_i32_0 = arith.constant 0 : i32
    %c0_i32_1 = arith.constant 0 : i32
    return %c0_i32, %c0_i32_0 : i32, i32
  }
  func.func @transform_4(%arg0: i32) -> (i32, i32) {
    %c0_i32 = arith.constant 0 : i32
    %c0_i32_0 = arith.constant 0 : i32
    %c0_i32_1 = arith.constant 0 : i32
    return %c0_i32, %c0_i32_0 : i32, i32
  }
}

module attributes {stable_mosaic.version = 11 : i64} {
  func.func @kernel(%arg0: i32, %arg1: memref<8x1152xf32, #tpu.memory_space<vmem>>, %arg2: memref<1152x256xf32, #tpu.memory_space<vmem>>, %arg3: memref<1x256xf32, #tpu.memory_space<vmem>>, %arg4: memref<1x256xf32, #tpu.memory_space<vmem>>, %arg5: memref<8x256xf32, #tpu.memory_space<vmem>>) attributes {dimension_semantics = [#tpu.dimension_semantics<arbitrary>], iteration_bounds = array<i64: 1>, scalar_prefetch = 0 : i64, scratch_operands = 0 : i64, tpu.core_type = #tpu.core_type<tc>, window_params = [{pipeline_mode = #tpu.pipeline_mode<synchronous>, transform_indices = @transform_0, window_bounds = array<i64: 8, 1152>}, {pipeline_mode = #tpu.pipeline_mode<synchronous>, transform_indices = @transform_1, window_bounds = array<i64: 1152, 256>}, {pipeline_mode = #tpu.pipeline_mode<synchronous>, transform_indices = @transform_2, window_bounds = array<i64: 1, 256>}, {pipeline_mode = #tpu.pipeline_mode<synchronous>, transform_indices = @transform_3, window_bounds = array<i64: 1, 256>}, {pipeline_mode = #tpu.pipeline_mode<synchronous>, transform_indices = @transform_4, window_bounds = array<i64: 8, 256>}]} {
    %c0 = arith.constant 0 : index
    %c0_0 = arith.constant 0 : index
    %0 = vector.load %arg1[%c0, %c0_0] : memref<8x1152xf32, #tpu.memory_space<vmem>>, vector<8x1152xf32>
    %c0_1 = arith.constant 0 : index
    %c0_2 = arith.constant 0 : index
    %1 = vector.load %arg2[%c0_1, %c0_2] : memref<1152x256xf32, #tpu.memory_space<vmem>>, vector<1152x256xf32>
    %cst = arith.constant dense<0.000000e+00> : vector<8x256xf32>
    %2 = tpu.matmul %0, %1, %cst {dimension_numbers = #tpu.dot_dimension_numbers<[1], [0], [0], [1], [0, 0, 1, 1], [], []>} : vector<8x1152xf32>, vector<1152x256xf32>, vector<8x256xf32> -> vector<8x256xf32>
    %cst_3 = arith.constant dense<0.000000e+00> : vector<256xf32>
    %3 = vector.multi_reduction <add>, %2, %cst_3 [0] : vector<8x256xf32> to vector<256xf32>
    %4 = vector.shape_cast %3 : vector<256xf32> to vector<1x256xf32>
    %cst_4 = arith.constant 5.000000e-01 : f32
    %5 = vector.broadcast %cst_4 : f32 to vector<1x256xf32>
    %6 = arith.mulf %4, %5 : vector<1x256xf32>
    %7 = arith.mulf %2, %2 : vector<8x256xf32>
    %cst_5 = arith.constant dense<0.000000e+00> : vector<256xf32>
    %8 = vector.multi_reduction <add>, %7, %cst_5 [0] : vector<8x256xf32> to vector<256xf32>
    %9 = vector.shape_cast %8 : vector<256xf32> to vector<1x256xf32>
    %cst_6 = arith.constant 5.000000e-01 : f32
    %10 = vector.broadcast %cst_6 : f32 to vector<1x256xf32>
    %11 = arith.mulf %9, %10 : vector<1x256xf32>
    %12 = arith.mulf %6, %6 : vector<1x256xf32>
    %13 = arith.subf %11, %12 : vector<1x256xf32>
    %c0_7 = arith.constant 0 : index
    %c0_8 = arith.constant 0 : index
    %14 = vector.load %arg3[%c0_7, %c0_8] : memref<1x256xf32, #tpu.memory_space<vmem>>, vector<1x256xf32>
    %cst_9 = arith.constant 9.99999974E-6 : f32
    %15 = vector.broadcast %cst_9 : f32 to vector<1x256xf32>
    %16 = arith.addf %13, %15 : vector<1x256xf32>
    %17 = math.rsqrt %16 : vector<1x256xf32>
    %18 = arith.mulf %14, %17 : vector<1x256xf32>
    %c0_10 = arith.constant 0 : index
    %c0_11 = arith.constant 0 : index
    %19 = vector.load %arg4[%c0_10, %c0_11] : memref<1x256xf32, #tpu.memory_space<vmem>>, vector<1x256xf32>
    %20 = arith.mulf %6, %18 : vector<1x256xf32>
    %21 = arith.subf %19, %20 : vector<1x256xf32>
    %22 = vector.broadcast %18 : vector<1x256xf32> to vector<8x256xf32>
    %23 = arith.mulf %2, %22 : vector<8x256xf32>
    %24 = vector.broadcast %21 : vector<1x256xf32> to vector<8x256xf32>
    %25 = arith.addf %23, %24 : vector<8x256xf32>
    %cst_12 = arith.constant 0.000000e+00 : f32
    %26 = vector.broadcast %cst_12 : f32 to vector<8x256xf32>
    %27 = arith.minimumf %25, %26 : vector<8x256xf32>
    %28 = math.exp %27 : vector<8x256xf32>
    %cst_13 = arith.constant 1.000000e+00 : f32
    %29 = vector.broadcast %cst_13 : f32 to vector<8x256xf32>
    %30 = arith.subf %28, %29 : vector<8x256xf32>
    %cst_14 = arith.constant 1.67326319 : f32
    %31 = vector.broadcast %cst_14 : f32 to vector<8x256xf32>
    %32 = arith.mulf %31, %30 : vector<8x256xf32>
    %cst_15 = arith.constant 0.000000e+00 : f32
    %33 = vector.broadcast %cst_15 : f32 to vector<8x256xf32>
    %34 = arith.cmpf ogt, %25, %33 : vector<8x256xf32>
    %35 = arith.select %34, %25, %32 : vector<8x256xi1>, vector<8x256xf32>
    %cst_16 = arith.constant 1.05070102 : f32
    %36 = vector.broadcast %cst_16 : f32 to vector<8x256xf32>
    %37 = arith.mulf %36, %35 : vector<8x256xf32>
    %c0_17 = arith.constant 0 : index
    %c0_18 = arith.constant 0 : index
    %38 = vector.load %arg5[%c0_17, %c0_18] : memref<8x256xf32, #tpu.memory_space<vmem>>, vector<8x256xf32>
    tpu.vector_store %arg5[%c0_17, %c0_18], %37 {strides = array<i32>} : memref<8x256xf32, #tpu.memory_space<vmem>>, vector<8x256xf32>,
    return
  }
  func.func @transform_0(%arg0: i32) -> (i32, i32) {
    %c0_i32 = arith.constant 0 : i32
    %c0_i32_0 = arith.constant 0 : i32
    %c0_i32_1 = arith.constant 0 : i32
    return %c0_i32, %c0_i32_0 : i32, i32
  }
  func.func @transform_1(%arg0: i32) -> (i32, i32) {
    %c0_i32 = arith.constant 0 : i32
    %c0_i32_0 = arith.constant 0 : i32
    %c0_i32_1 = arith.constant 0 : i32
    return %c0_i32, %c0_i32_0 : i32, i32
  }
  func.func @transform_2(%arg0: i32) -> (i32, i32) {
    %c0_i32 = arith.constant 0 : i32
    %c0_i32_0 = arith.constant 0 : i32
    %c0_i32_1 = arith.constant 0 : i32
    return %c0_i32, %c0_i32_0 : i32, i32
  }
  func.func @transform_3(%arg0: i32) -> (i32, i32) {
    %c0_i32 = arith.constant 0 : i32
    %c0_i32_0 = arith.constant 0 : i32
    %c0_i32_1 = arith.constant 0 : i32
    return %c0_i32, %c0_i32_0 : i32, i32
  }
  func.func @transform_4(%arg0: i32) -> (i32, i32) {
    %c0_i32 = arith.constant 0 : i32
    %c0_i32_0 = arith.constant 0 : i32
    %c0_i32_1 = arith.constant 0 : i32
    return %c0_i32, %c0_i32_0 : i32, i32
  }
}

</mosaic_0001>

<bundles_post_ra>
// kernel: encoder_forward.5
= control target key start
LH: loop header
LB: loop body
LE: loop exit
PB: predicated region body
PF: predicated region fallthrough
CT: control target
= control target key end

     0   :  { %vm159_vm0 = vcmask 261120   ;;  %vm2193_vm2 = vcmask 130048   ;;  %s5015_s1 = inlined_call_operand.vmem [shape: f32[32,16], index: 1, kind: input, shape index: {}]   ;;  %s5016_s0 = inlined_call_operand.vmem [shape: f32[1152,32], index: 0, kind: input, shape index: {}]   ;;  %s5017_s2 = inlined_call_operand.vmem [shape: f32[1152,16], index: 2, kind: output, shape index: {}]  }
   0x1   :  { %v158_v0 = vld [vmem:[%s5015_s1 + $0x18] sm:$0xff]  ;;  %v157_v1 = vld [vmem:[%s5015_s1 + $0x10] sm:$0xff]  ;;  %v156_v2 = vld [vmem:[%s5015_s1 + $0x8] sm:$0xff] }
   0x2   :  { %604 = vmatpush.msra.mxu0 %v158_v0  ;;  %2630 = vmatpush.msra.mxu1 %v158_v0  ;;  %v155_v3 = vld [vmem:[%s5015_s1] sm:$0xff]  ;;  %v12_v8 = vld [vmem:[%s5016_s0 + $0x8] sm:$0xff]  ;;  %v13_v12 = vld [vmem:[%s5016_s0 + $0x10] sm:$0xff] }
   0x3   :  { %2631 = vmatpush.msra.mxu2 %v158_v0  ;;  %2632 = vmatpush.msra.mxu3 %v158_v0  ;;  %v11_v4 = vld [vmem:[%s5016_s0] sm:$0xff]  ;;  %v48_v9 = vld [vmem:[%s5016_s0 + $0x128] sm:$0xff]  ;;  %v49_v13 = vld [vmem:[%s5016_s0 + $0x130] sm:$0xff] }
   0x4   :  { %605 = vmatpush.msra.mxu0 %v157_v1  ;;  %2633 = vmatpush.msra.mxu1 %v157_v1  ;;  %v47_v5 = vld [vmem:[%s5016_s0 + $0x120] sm:$0xff]  ;;  %v84_v10 = vld [vmem:[%s5016_s0 + $0x248] sm:$0xff]  ;;  %v85_v14 = vld [vmem:[%s5016_s0 + $0x250] sm:$0xff] }
   0x5   :  { %2634 = vmatpush.msra.mxu2 %v157_v1  ;;  %2635 = vmatpush.msra.mxu3 %v157_v1  ;;  %v83_v6 = vld [vmem:[%s5016_s0 + $0x240] sm:$0xff]  ;;  %v120_v11 = vld [vmem:[%s5016_s0 + $0x368] sm:$0xff]  ;;  %v121_v15 = vld [vmem:[%s5016_s0 + $0x370] sm:$0xff] }
   0x6   :  { %606 = vmatpush.msra.mxu0 %v156_v2  ;;  %2636 = vmatpush.msra.mxu1 %v156_v2  ;;  %v119_v7 = vld [vmem:[%s5016_s0 + $0x360] sm:$0xff]  ;;  %v14_v16 = vld [vmem:[%s5016_s0 + $0x18] sm:$0xff]  ;;  %v16_v24 = vld [vmem:[%s5016_s0 + $0x28] sm:$0xff] }
   0x7   :  { %2637 = vmatpush.msra.mxu2 %v156_v2  ;;  %2638 = vmatpush.msra.mxu3 %v156_v2  ;;  %v50_v17 = vld [vmem:[%s5016_s0 + $0x138] sm:$0xff]  ;;  %v15_v20 = vld [vmem:[%s5016_s0 + $0x20] sm:$0xff]  ;;  %v52_v25 = vld [vmem:[%s5016_s0 + $0x148] sm:$0xff] }
   0x8   :  { %607 = vmatpush.msra.mxu0 %v155_v3  ;;  %2639 = vmatpush.msra.mxu1 %v155_v3  ;;  %v86_v18 = vld [vmem:[%s5016_s0 + $0x258] sm:$0xff]  ;;  %v51_v21 = vld [vmem:[%s5016_s0 + $0x140] sm:$0xff]  ;;  %v88_v26 = vld [vmem:[%s5016_s0 + $0x268] sm:$0xff] }
   0x9   :  { %2640 = vmatpush.msra.mxu2 %v155_v3  ;;  %2641 = vmatpush.msra.mxu3 %v155_v3  ;;  %v122_v19 = vld [vmem:[%s5016_s0 + $0x378] sm:$0xff]  ;;  %v87_v22 = vld [vmem:[%s5016_s0 + $0x260] sm:$0xff]  ;;  %v124_v27 = vld [vmem:[%s5016_s0 + $0x388] sm:$0xff] }
   0xa   :  { %2342 = vmatmul.msk.f32.vlgmr.msra.gmra.mxu0 %vm159_vm0, %v11_v4  ;;  %2378 = vmatmul.msk.f32.vlgmr.msra.gmra.mxu1 %vm159_vm0, %v47_v5  ;;  %v123_v23 = vld [vmem:[%s5016_s0 + $0x380] sm:$0xff]  ;;  %v17_v28 = vld [vmem:[%s5016_s0 + $0x30] sm:$0xff]  ;;  %v18_v32 = vld [vmem:[%s5016_s0 + $0x38] sm:$0xff] }
   0xb   :  { %2414 = vmatmul.msk.f32.vlgmr.msra.gmra.mxu2 %vm159_vm0, %v83_v6  ;;  %2450 = vmatmul.msk.f32.vlgmr.msra.gmra.mxu3 %vm159_vm0, %v119_v7  ;;  %v53_v29 = vld [vmem:[%s5016_s0 + $0x150] sm:$0xff]  ;;  %v54_v33 = vld [vmem:[%s5016_s0 + $0x158] sm:$0xff]  ;;  %v19_v36 = vld [vmem:[%s5016_s0 + $0x40] sm:$0xff] }
   0xc   :  { %v89_v30 = vld [vmem:[%s5016_s0 + $0x270] sm:$0xff]  ;;  %v90_v34 = vld [vmem:[%s5016_s0 + $0x278] sm:$0xff]  ;;  %v55_v37 = vld [vmem:[%s5016_s0 + $0x160] sm:$0xff] }
   0xd   :  { %v125_v31 = vld [vmem:[%s5016_s0 + $0x390] sm:$0xff]  ;;  %v126_v35 = vld [vmem:[%s5016_s0 + $0x398] sm:$0xff]  ;;  %v91_v38 = vld [vmem:[%s5016_s0 + $0x280] sm:$0xff] }
   0xe   :  { %v127_v39 = vld [vmem:[%s5016_s0 + $0x3a0] sm:$0xff]  ;;  %v20_v40 = vld [vmem:[%s5016_s0 + $0x48] sm:$0xff]  ;;  %v21_v44 = vld [vmem:[%s5016_s0 + $0x50] sm:$0xff] }
   0xf   :  { %v56_v41 = vld [vmem:[%s5016_s0 + $0x168] sm:$0xff]  ;;  %v57_v45 = vld [vmem:[%s5016_s0 + $0x170] sm:$0xff]  ;;  %v22_v48 = vld [vmem:[%s5016_s0 + $0x58] sm:$0xff] }
  0x10   :  { %v92_v42 = vld [vmem:[%s5016_s0 + $0x288] sm:$0xff]  ;;  %v93_v46 = vld [vmem:[%s5016_s0 + $0x290] sm:$0xff]  ;;  %v58_v49 = vld [vmem:[%s5016_s0 + $0x178] sm:$0xff] }
  0x11   :  { %v128_v43 = vld [vmem:[%s5016_s0 + $0x3a8] sm:$0xff]  ;;  %v129_v47 = vld [vmem:[%s5016_s0 + $0x3b0] sm:$0xff]  ;;  %v94_v50 = vld [vmem:[%s5016_s0 + $0x298] sm:$0xff] }
  0x12   :  { %2343 = vmatmul.msk.f32.gmra.mxu0 %vm159_vm0, %v12_v8  ;;  %2379 = vmatmul.msk.f32.gmra.mxu1 %vm159_vm0, %v48_v9  ;;  %v130_v51 = vld [vmem:[%s5016_s0 + $0x3b8] sm:$0xff]  ;;  %v23_v52 = vld [vmem:[%s5016_s0 + $0x60] sm:$0xff]  ;;  %v24_v56 = vld [vmem:[%s5016_s0 + $0x68] sm:$0xff] }
  0x13   :  { %2415 = vmatmul.msk.f32.gmra.mxu2 %vm159_vm0, %v84_v10  ;;  %2451 = vmatmul.msk.f32.gmra.mxu3 %vm159_vm0, %v120_v11  ;;  %v59_v53 = vld [vmem:[%s5016_s0 + $0x180] sm:$0xff]  ;;  %v60_v57 = vld [vmem:[%s5016_s0 + $0x188] sm:$0xff]  ;;  %v25_v60 = vld [vmem:[%s5016_s0 + $0x70] sm:$0xff] }
  0x14   :  { %v95_v54 = vld [vmem:[%s5016_s0 + $0x2a0] sm:$0xff]  ;;  %v96_v58 = vld [vmem:[%s5016_s0 + $0x2a8] sm:$0xff]  ;;  %v61_v61 = vld [vmem:[%s5016_s0 + $0x190] sm:$0xff] }
  0x15   :  { %v131_v55 = vld [vmem:[%s5016_s0 + $0x3c0] sm:$0xff]  ;;  %v132_v59 = vld [vmem:[%s5016_s0 + $0x3c8] sm:$0xff]  ;;  %v97_v62 = vld [vmem:[%s5016_s0 + $0x2b0] sm:$0xff] }
  0x16   :  { %v133_v63 = vld [vmem:[%s5016_s0 + $0x3d0] sm:$0xff]  ;;  %v26_v0 = vld [vmem:[%s5016_s0 + $0x78] sm:$0xff]  ;;  %v27_v6 = vld [vmem:[%s5016_s0 + $0x80] sm:$0xff] }
  0x17   :  { %v62_v1 = vld [vmem:[%s5016_s0 + $0x198] sm:$0xff]  ;;  %v63_v7 = vld [vmem:[%s5016_s0 + $0x1a0] sm:$0xff] }
  0x18   :  { %v98_v2 = vld [vmem:[%s5016_s0 + $0x2b8] sm:$0xff]  ;;  %v99_v10 = vld [vmem:[%s5016_s0 + $0x2c0] sm:$0xff] }
  0x19   :  { %v134_v3 = vld [vmem:[%s5016_s0 + $0x3d8] sm:$0xff]  ;;  %v135_v11 = vld [vmem:[%s5016_s0 + $0x3e0] sm:$0xff] }
  0x1a   :  { %2344 = vmatmul.msk.f32.gmra.mxu0 %vm159_vm0, %v13_v12  ;;  %2380 = vmatmul.msk.f32.gmra.mxu1 %vm159_vm0, %v49_v13 }
  0x1b   :  { %2416 = vmatmul.msk.f32.gmra.mxu2 %vm159_vm0, %v85_v14  ;;  %2452 = vmatmul.msk.f32.gmra.mxu3 %vm159_vm0, %v121_v15 }
  0x22   :  { %2345 = vmatmul.msk.f32.gmra.mxu0 %vm159_vm0, %v14_v16  ;;  %2381 = vmatmul.msk.f32.gmra.mxu1 %vm159_vm0, %v50_v17 }
  0x23   :  { %2417 = vmatmul.msk.f32.gmra.mxu2 %vm159_vm0, %v86_v18  ;;  %2453 = vmatmul.msk.f32.gmra.mxu3 %vm159_vm0, %v122_v19 }
  0x2a   :  { %2346 = vmatmul.msk.f32.gmra.mxu0 %vm159_vm0, %v15_v20  ;;  %2382 = vmatmul.msk.f32.gmra.mxu1 %vm159_vm0, %v51_v21  ;;  %v28_v20 = vld [vmem:[%s5016_s0 + $0x88] sm:$0xff] }
  0x2b   :  { %2418 = vmatmul.msk.f32.gmra.mxu2 %vm159_vm0, %v87_v22  ;;  %2454 = vmatmul.msk.f32.gmra.mxu3 %vm159_vm0, %v123_v23  ;;  %v64_v21 = vld [vmem:[%s5016_s0 + $0x1a8] sm:$0xff] }
  0x32   :  { %2347 = vmatmul.msk.f32.gmra.mxu0 %vm159_vm0, %v16_v24  ;;  %2383 = vmatmul.msk.f32.gmra.mxu1 %vm159_vm0, %v52_v25  ;;  %v100_v24 = vld [vmem:[%s5016_s0 + $0x2c8] sm:$0xff] }
  0x33   :  { %2419 = vmatmul.msk.f32.gmra.mxu2 %vm159_vm0, %v88_v26  ;;  %2455 = vmatmul.msk.f32.gmra.mxu3 %vm159_vm0, %v124_v27  ;;  %v136_v25 = vld [vmem:[%s5016_s0 + $0x3e8] sm:$0xff] }
  0x3a   :  { %2348 = vmatmul.msk.f32.gmra.mxu0 %vm159_vm0, %v17_v28  ;;  %2384 = vmatmul.msk.f32.gmra.mxu1 %vm159_vm0, %v53_v29 }
  0x3b   :  { %2420 = vmatmul.msk.f32.gmra.mxu2 %vm159_vm0, %v89_v30  ;;  %2456 = vmatmul.msk.f32.gmra.mxu3 %vm159_vm0, %v125_v31 }
  0x42   :  { %2349 = vmatmul.msk.f32.gmra.mxu0 %vm159_vm0, %v18_v32  ;;  %2385 = vmatmul.msk.f32.gmra.mxu1 %vm159_vm0, %v54_v33 }
  0x43   :  { %2421 = vmatmul.msk.f32.gmra.mxu2 %vm159_vm0, %v90_v34  ;;  %2457 = vmatmul.msk.f32.gmra.mxu3 %vm159_vm0, %v126_v35 }
  0x4a   :  { %2350 = vmatmul.msk.f32.gmra.mxu0 %vm159_vm0, %v19_v36  ;;  %2386 = vmatmul.msk.f32.gmra.mxu1 %vm159_vm0, %v55_v37 }
  0x4b   :  { %2422 = vmatmul.msk.f32.gmra.mxu2 %vm159_vm0, %v91_v38  ;;  %2458 = vmatmul.msk.f32.gmra.mxu3 %vm159_vm0, %v127_v39 }
  0x52   :  { %2351 = vmatmul.msk.f32.gmra.mxu0 %vm159_vm0, %v20_v40  ;;  %2387 = vmatmul.msk.f32.gmra.mxu1 %vm159_vm0, %v56_v41 }
  0x53   :  { %2423 = vmatmul.msk.f32.gmra.mxu2 %vm159_vm0, %v92_v42  ;;  %2459 = vmatmul.msk.f32.gmra.mxu3 %vm159_vm0, %v128_v43  ;;  %v29_v43 = vld [vmem:[%s5016_s0 + $0x90] sm:$0xff] }
  0x5a   :  { %2352 = vmatmul.msk.f32.gmra.mxu0 %vm159_vm0, %v21_v44  ;;  %2388 = vmatmul.msk.f32.gmra.mxu1 %vm159_vm0, %v57_v45  ;;  %v65_v44 = vld [vmem:[%s5016_s0 + $0x1b0] sm:$0xff] }
  0x5b   :  { %2424 = vmatmul.msk.f32.gmra.mxu2 %vm159_vm0, %v93_v46  ;;  %2460 = vmatmul.msk.f32.gmra.mxu3 %vm159_vm0, %v129_v47 }
  0x62   :  { %2353 = vmatmul.msk.f32.gmra.mxu0 %vm159_vm0, %v22_v48  ;;  %2389 = vmatmul.msk.f32.gmra.mxu1 %vm159_vm0, %v58_v49  ;;  %v101_v48 = vld [vmem:[%s5016_s0 + $0x2d0] sm:$0xff] }
  0x63   :  { %2425 = vmatmul.msk.f32.gmra.mxu2 %vm159_vm0, %v94_v50  ;;  %2461 = vmatmul.msk.f32.gmra.mxu3 %vm159_vm0, %v130_v51  ;;  %v137_v49 = vld [vmem:[%s5016_s0 + $0x3f0] sm:$0xff] }
  0x6a   :  { %2354 = vmatmul.msk.f32.gmra.mxu0 %vm159_vm0, %v23_v52  ;;  %2390 = vmatmul.msk.f32.gmra.mxu1 %vm159_vm0, %v59_v53 }
  0x6b   :  { %2426 = vmatmul.msk.f32.gmra.mxu2 %vm159_vm0, %v95_v54  ;;  %2462 = vmatmul.msk.f32.gmra.mxu3 %vm159_vm0, %v131_v55 }
  0x72   :  { %2355 = vmatmul.msk.f32.gmra.mxu0 %vm159_vm0, %v24_v56  ;;  %2391 = vmatmul.msk.f32.gmra.mxu1 %vm159_vm0, %v60_v57 }
  0x73   :  { %2427 = vmatmul.msk.f32.gmra.mxu2 %vm159_vm0, %v96_v58  ;;  %2463 = vmatmul.msk.f32.gmra.mxu3 %vm159_vm0, %v132_v59 }
  0x7a   :  { %2356 = vmatmul.msk.f32.gmra.mxu0 %vm159_vm0, %v25_v60  ;;  %2392 = vmatmul.msk.f32.gmra.mxu1 %vm159_vm0, %v61_v61 }
  0x7b   :  { %2428 = vmatmul.msk.f32.gmra.mxu2 %vm159_vm0, %v97_v62  ;;  %2464 = vmatmul.msk.f32.gmra.mxu3 %vm159_vm0, %v133_v63 }
  0x82   :  { %2357 = vmatmul.msk.f32.gmra.mxu0 %vm159_vm0, %v26_v0  ;;  %2393 = vmatmul.msk.f32.gmra.mxu1 %vm159_vm0, %v62_v1 }
  0x83   :  { %2429 = vmatmul.msk.f32.gmra.mxu2 %vm159_vm0, %v98_v2  ;;  %2465 = vmatmul.msk.f32.gmra.mxu3 %vm159_vm0, %v134_v3 }
  0x87   :  { %v609_v4 = vpop.f32.mrf.mxu0  ;;  %v717_v5 = vpop.f32.mrf.mxu1 }
  0x88   :  { %v1041_v8 = vmin.f32 %v609_v4, 0.0  ;;  %v1077_v9 = vmin.f32 %v717_v5, 0.0  ;;  %vm1761_vm1 = vcmp.gt.f32.partialorder %v609_v4, 0.0  ;;  %vm1797_vm3 = vcmp.gt.f32.partialorder %v717_v5, 0.0 }
  0x8a   :  { %v1185_v12 = vmul.f32 1.442695, %v1041_v8  ;;  %v1257_v13 = vmul.f32 1.442695, %v1077_v9  ;;  %2358 = vmatmul.msk.f32.gmra.mxu0 %vm159_vm0, %v27_v6  ;;  %2394 = vmatmul.msk.f32.gmra.mxu1 %vm159_vm0, %v63_v7  ;;  %v30_v6 = vld [vmem:[%s5016_s0 + $0x98] sm:$0xff] }
  0x8b   :  { %2430 = vmatmul.msk.f32.gmra.mxu2 %vm159_vm0, %v99_v10  ;;  %2466 = vmatmul.msk.f32.gmra.mxu3 %vm159_vm0, %v135_v11 }
  0x8c   :  { %2642 = vpow2.f32 %v1185_v12 }
  0x8d   :  { %2644 = vpow2.f32 %v1257_v13  ;;  %v66_v13 = vld [vmem:[%s5016_s0 + $0x1b8] sm:$0xff] }
  0x8e   :  { %v3229_v14 = vpop.f32.mrf.mxu2  ;;  %v3231_v15 = vpop.f32.mrf.mxu3 }
  0x8f   :  { %v1113_v16 = vmin.f32 %v3229_v14, 0.0  ;;  %v1149_v17 = vmin.f32 %v3231_v15, 0.0  ;;  %v3235_v18 = vpop.f32.mrf.mxu0  ;;  %v3237_v19 = vpop.f32.mrf.mxu1  ;;  %vm1833_vm4 = vcmp.gt.f32.partialorder %v3229_v14, 0.0  ;;  %vm1869_vm5 = vcmp.gt.f32.partialorder %v3231_v15, 0.0 }
  0x90   :  { %v1042_v22 = vmin.f32 %v3235_v18, 0.0  ;;  %v1078_v23 = vmin.f32 %v3237_v19, 0.0  ;;  %vm1762_vm6 = vcmp.gt.f32.partialorder %v3235_v18, 0.0  ;;  %vm1798_vm7 = vcmp.gt.f32.partialorder %v3237_v19, 0.0 }
  0x91   :  { %v1329_v26 = vmul.f32 1.442695, %v1113_v16  ;;  %v1401_v27 = vmul.f32 1.442695, %v1149_v17 }
  0x92   :  { %v2643_v28 = vpop.eup %2642  ;;  %v1187_v29 = vmul.f32 1.442695, %v1042_v22  ;;  %v1259_v30 = vmul.f32 1.442695, %v1078_v23  ;;  %2359 = vmatmul.msk.f32.gmra.mxu0 %vm159_vm0, %v28_v20  ;;  %2395 = vmatmul.msk.f32.gmra.mxu1 %vm159_vm0, %v64_v21  ;;  %v138_v20 = vld [vmem:[%s5016_s0 + $0x3f8] sm:$0xff] }
  0x93   :  { %v2645_v31 = vpop.eup %2644  ;;  %v2486_v32 = vadd.f32 -1.0, %v2643_v28  ;;  %2646 = vpow2.f32 %v1329_v26  ;;  %2431 = vmatmul.msk.f32.gmra.mxu2 %vm159_vm0, %v100_v24  ;;  %2467 = vmatmul.msk.f32.gmra.mxu3 %vm159_vm0, %v136_v25 }
  0x94   :  { %v2522_v33 = vadd.f32 -1.0, %v2645_v31  ;;  %2648 = vpow2.f32 %v1401_v27 }
  0x95   :  { %v1617_v34 = vmul.f32 1.6732632, %v2486_v32  ;;  %2650 = vpow2.f32 %v1187_v29 }
  0x96   :  { %v1653_v35 = vmul.f32 1.6732632, %v2522_v33  ;;  %2652 = vpow2.f32 %v1259_v30  ;;  %v3257_v36 = vpop.f32.mrf.mxu2  ;;  %v3259_v37 = vpop.f32.mrf.mxu3 }
  0x97   :  { %v1905_v38 = vsel %vm1761_vm1, %v609_v4, %v1617_v34  ;;  %v1114_v39 = vmin.f32 %v3257_v36, 0.0  ;;  %v1150_v40 = vmin.f32 %v3259_v37, 0.0  ;;  %v3263_v41 = vpop.f32.mrf.mxu0  ;;  %v3265_v42 = vpop.f32.mrf.mxu1  ;;  %vm1834_vm8 = vcmp.gt.f32.partialorder %v3257_v36, 0.0 }
  0x98   :  { %v2049_v45 = vmul.f32 1.050701, %v1905_v38  ;;  %v1941_v46 = vsel %vm1797_vm3, %v717_v5, %v1653_v35  ;;  %v1043_v47 = vmin.f32 %v3263_v41, 0.0  ;;  %v1079_v57 = vmin.f32 %v3265_v42, 0.0 }
  0x99   :  { %v2647_v50 = vpop.eup %2646  ;;  %v2085_v51 = vmul.f32 1.050701, %v1941_v46  ;;  %v1331_v52 = vmul.f32 1.442695, %v1114_v39  ;;  %v1403_v53 = vmul.f32 1.442695, %v1150_v40 }
  0x9a   :  { %v2649_v54 = vpop.eup %2648  ;;  %2194 = vst.msk [vmem:[%s5017_s2] sm:$0xff] %vm2193_vm2, %v2049_v45  ;;  %v2558_v55 = vadd.f32 -1.0, %v2647_v50  ;;  %v1189_v56 = vmul.f32 1.442695, %v1043_v47  ;;  %2360 = vmatmul.msk.f32.gmra.mxu0 %vm159_vm0, %v29_v43  ;;  %2396 = vmatmul.msk.f32.gmra.mxu1 %vm159_vm0, %v65_v44  ;;  %v1261_v63 = vmul.f32 1.442695, %v1079_v57 }
  0x9b   :  { %v2651_v58 = vpop.eup %2650  ;;  %2230 = vst.msk [vmem:[%s5017_s2 + $0x120] sm:$0xff] %vm2193_vm2, %v2085_v51  ;;  %v2594_v59 = vadd.f32 -1.0, %v2649_v54  ;;  %2654 = vpow2.f32 %v1331_v52  ;;  %2432 = vmatmul.msk.f32.gmra.mxu2 %vm159_vm0, %v101_v48  ;;  %2468 = vmatmul.msk.f32.gmra.mxu3 %vm159_vm0, %v137_v49  ;;  %vm1870_vm9 = vcmp.gt.f32.partialorder %v3259_v37, 0.0  ;;  %vm1763_vm10 = vcmp.gt.f32.partialorder %v3263_v41, 0.0  ;;  %v67_v51 = vld [vmem:[%s5016_s0 + $0x1c0] sm:$0xff] }
  0x9c   :  { %v2653_v60 = vpop.eup %2652  ;;  %v1689_v61 = vmul.f32 1.6732632, %v2558_v55  ;;  %v2487_v62 = vadd.f32 -1.0, %v2651_v58  ;;  %2656 = vpow2.f32 %v1403_v53  ;;  %vm1799_vm11 = vcmp.gt.f32.partialorder %v3265_v42, 0.0  ;;  %v103_v54 = vld [vmem:[%s5016_s0 + $0x2e0] sm:$0xff] }
  0x9d   :  { %v1725_v0 = vmul.f32 1.6732632, %v2594_v59  ;;  %v2523_v1 = vadd.f32 -1.0, %v2653_v60  ;;  %2658 = vpow2.f32 %v1189_v56  ;;  %v139_v55 = vld [vmem:[%s5016_s0 + $0x400] sm:$0xff] }
  0x9e   :  { %v1977_v2 = vsel %vm1833_vm4, %v3229_v14, %v1689_v61  ;;  %v1618_v3 = vmul.f32 1.6732632, %v2487_v62  ;;  %2660 = vpow2.f32 %v1261_v63  ;;  %v3297_v4 = vpop.f32.mrf.mxu2  ;;  %v3299_v5 = vpop.f32.mrf.mxu3 }
  0x9f   :  { %v2121_v7 = vmul.f32 1.050701, %v1977_v2  ;;  %v2013_v8 = vsel %vm1869_vm5, %v3231_v15, %v1725_v0  ;;  %v1654_v9 = vmul.f32 1.6732632, %v2523_v1  ;;  %v1115_v10 = vmin.f32 %v3297_v4, 0.0  ;;  %v3306_v11 = vpop.f32.mrf.mxu0  ;;  %v3308_v12 = vpop.f32.mrf.mxu1  ;;  %v102_v15 = vld [vmem:[%s5016_s0 + $0x2d8] sm:$0xff] }
  0xa0   :  { %v2157_v14 = vmul.f32 1.050701, %v2013_v8  ;;  %v1906_v16 = vsel %vm1762_vm6, %v3235_v18, %v1618_v3  ;;  %v1151_v17 = vmin.f32 %v3299_v5, 0.0  ;;  %v1044_v29 = vmin.f32 %v3306_v11, 0.0 }
  0xa1   :  { %v2655_v21 = vpop.eup %2654  ;;  %2266 = vst.msk [vmem:[%s5017_s2 + $0x240] sm:$0xff] %vm2193_vm2, %v2121_v7  ;;  %v2050_v22 = vmul.f32 1.050701, %v1906_v16  ;;  %v1942_v18 = vsel %vm1798_vm7, %v3237_v19, %v1654_v9  ;;  %v1333_v23 = vmul.f32 1.442695, %v1115_v10  ;;  %v1080_v33 = vmin.f32 %v3308_v12, 0.0 }
  0xa2   :  { %v2657_v24 = vpop.eup %2656  ;;  %2302 = vst.msk [vmem:[%s5017_s2 + $0x360] sm:$0xff] %vm2193_vm2, %v2157_v14  ;;  %v2086_v25 = vmul.f32 1.050701, %v1942_v18  ;;  %v2559_v26 = vadd.f32 -1.0, %v2655_v21  ;;  %v1405_v27 = vmul.f32 1.442695, %v1151_v17  ;;  %2361 = vmatmul.msk.f32.gmra.mxu0 %vm159_vm0, %v30_v6  ;;  %2397 = vmatmul.msk.f32.gmra.mxu1 %vm159_vm0, %v66_v13 }
  0xa3   :  { %v2659_v28 = vpop.eup %2658  ;;  %2195 = vst.msk [vmem:[%s5017_s2 + $0x8] sm:$0xff] %vm2193_vm2, %v2050_v22  ;;  %v2595_v19 = vadd.f32 -1.0, %v2657_v24  ;;  %2662 = vpow2.f32 %v1333_v23  ;;  %2433 = vmatmul.msk.f32.gmra.mxu2 %vm159_vm0, %v102_v15  ;;  %2469 = vmatmul.msk.f32.gmra.mxu3 %vm159_vm0, %v138_v20  ;;  %v1191_v38 = vmul.f32 1.442695, %v1044_v29  ;;  %v1263_v43 = vmul.f32 1.442695, %v1080_v33 }
  0xa4   :  { %v2661_v30 = vpop.eup %2660  ;;  %2231 = vst.msk [vmem:[%s5017_s2 + $0x128] sm:$0xff] %vm2193_vm2, %v2086_v25  ;;  %v1690_v31 = vmul.f32 1.6732632, %v2559_v26  ;;  %v2488_v32 = vadd.f32 -1.0, %v2659_v28  ;;  %2664 = vpow2.f32 %v1405_v27  ;;  %vm1835_vm12 = vcmp.gt.f32.partialorder %v3297_v4, 0.0  ;;  %v68_v18 = vld [vmem:[%s5016_s0 + $0x1c8] sm:$0xff] }
  0xa5   :  { %v1726_v34 = vmul.f32 1.6732632, %v2595_v19  ;;  %v2524_v35 = vadd.f32 -1.0, %v2661_v30  ;;  %2666 = vpow2.f32 %v1191_v38  ;;  %vm1871_vm13 = vcmp.gt.f32.partialorder %v3299_v5, 0.0  ;;  %v104_v23 = vld [vmem:[%s5016_s0 + $0x2e8] sm:$0xff] }
  0xa6   :  { %v1978_v39 = vsel %vm1834_vm8, %v3257_v36, %v1690_v31  ;;  %v1619_v40 = vmul.f32 1.6732632, %v2488_v32  ;;  %v3352_v44 = vpop.f32.mrf.mxu2  ;;  %v3354_v45 = vpop.f32.mrf.mxu3  ;;  %v31_v36 = vld [vmem:[%s5016_s0 + $0xa0] sm:$0xff]  ;;  %2668 = vpow2.f32 %v1263_v43  ;;  %v140_v26 = vld [vmem:[%s5016_s0 + $0x408] sm:$0xff]  ;;  %vm1764_vm14 = vcmp.gt.f32.partialorder %v3306_v11, 0.0 }
  0xa7   :  { %v2122_v46 = vmul.f32 1.050701, %v1978_v39  ;;  %v2014_v47 = vsel %vm1870_vm9, %v3259_v37, %v1726_v34  ;;  %v1655_v48 = vmul.f32 1.6732632, %v2524_v35  ;;  %v3359_v49 = vpop.f32.mrf.mxu0  ;;  %v3361_v50 = vpop.f32.mrf.mxu1  ;;  %v1116_v37 = vmin.f32 %v3352_v44, 0.0 }
  0xa8   :  { %v2158_v52 = vmul.f32 1.050701, %v2014_v47  ;;  %v1907_v53 = vsel %vm1763_vm10, %v3263_v41, %v1619_v40  ;;  %v1152_v58 = vmin.f32 %v3354_v45, 0.0  ;;  %v1045_v0 = vmin.f32 %v3359_v49, 0.0 }
  0xa9   :  { %v2663_v56 = vpop.eup %2662  ;;  %2267 = vst.msk [vmem:[%s5017_s2 + $0x248] sm:$0xff] %vm2193_vm2, %v2122_v46  ;;  %v2051_v57 = vmul.f32 1.050701, %v1907_v53  ;;  %v1943_v41 = vsel %vm1799_vm11, %v3265_v42, %v1655_v48  ;;  %v1335_v62 = vmul.f32 1.442695, %v1116_v37  ;;  %v1081_v2 = vmin.f32 %v3361_v50, 0.0 }
  0xaa   :  { %v2665_v59 = vpop.eup %2664  ;;  %2303 = vst.msk [vmem:[%s5017_s2 + $0x368] sm:$0xff] %vm2193_vm2, %v2158_v52  ;;  %v2087_v60 = vmul.f32 1.050701, %v1943_v41  ;;  %v2560_v61 = vadd.f32 -1.0, %v2663_v56  ;;  %2362 = vmatmul.msk.f32.gmra.mxu0 %vm159_vm0, %v31_v36  ;;  %2398 = vmatmul.msk.f32.gmra.mxu1 %vm159_vm0, %v67_v51  ;;  %v1407_v63 = vmul.f32 1.442695, %v1152_v58 }
  0xab   :  { %2196 = vst.msk [vmem:[%s5017_s2 + $0x10] sm:$0xff] %vm2193_vm2, %v2051_v57  ;;  %v2596_v42 = vadd.f32 -1.0, %v2665_v59  ;;  %2434 = vmatmul.msk.f32.gmra.mxu2 %vm159_vm0, %v103_v54  ;;  %2470 = vmatmul.msk.f32.gmra.mxu3 %vm159_vm0, %v139_v55  ;;  %2670 = vpow2.f32 %v1335_v62  ;;  %v2667_v3 = vpop.eup %2666  ;;  %v1193_v7 = vmul.f32 1.442695, %v1045_v0  ;;  %v1265_v13 = vmul.f32 1.442695, %v1081_v2 }
  0xac   :  { %2232 = vst.msk [vmem:[%s5017_s2 + $0x130] sm:$0xff] %vm2193_vm2, %v2087_v60  ;;  %v1691_v1 = vmul.f32 1.6732632, %v2560_v61  ;;  %2672 = vpow2.f32 %v1407_v63  ;;  %v2669_v8 = vpop.eup %2668  ;;  %v2489_v10 = vadd.f32 -1.0, %v2667_v3  ;;  %vm1800_vm15 = vcmp.gt.f32.partialorder %v3308_v12, 0.0  ;;  %v33_v53 = vld [vmem:[%s5016_s0 + $0xb0] sm:$0xff] }
  0xad   :  { %v1727_v6 = vmul.f32 1.6732632, %v2596_v42  ;;  %v2525_v20 = vadd.f32 -1.0, %v2669_v8  ;;  %2674 = vpow2.f32 %v1193_v7  ;;  %vm1836_vm1 = vcmp.gt.f32.partialorder %v3352_v44, 0.0  ;;  %v69_v58 = vld [vmem:[%s5016_s0 + $0x1d0] sm:$0xff] }
  0xae   :  { %v1979_v9 = vsel %vm1835_vm12, %v3297_v4, %v1691_v1  ;;  %v3408_v14 = vpop.f32.mrf.mxu2  ;;  %v3410_v16 = vpop.f32.mrf.mxu3  ;;  %v32_v4 = vld [vmem:[%s5016_s0 + $0xa8] sm:$0xff]  ;;  %2676 = vpow2.f32 %v1265_v13  ;;  %vm1872_vm3 = vcmp.gt.f32.partialorder %v3354_v45, 0.0  ;;  %vm1765_vm4 = vcmp.gt.f32.partialorder %v3359_v49, 0.0  ;;  %v105_v59 = vld [vmem:[%s5016_s0 + $0x2f0] sm:$0xff] }
  0xaf   :  { %v2123_v17 = vmul.f32 1.050701, %v1979_v9  ;;  %v2015_v15 = vsel %vm1871_vm13, %v3299_v5, %v1727_v6  ;;  %v3413_v21 = vpop.f32.mrf.mxu0  ;;  %v3415_v22 = vpop.f32.mrf.mxu1  ;;  %v1620_v5 = vmul.f32 1.6732632, %v2489_v10  ;;  %v1117_v25 = vmin.f32 %v3408_v14, 0.0  ;;  %v141_v62 = vld [vmem:[%s5016_s0 + $0x410] sm:$0xff] }
  0xb0   :  { %v2159_v24 = vmul.f32 1.050701, %v2015_v15  ;;  %v1656_v27 = vmul.f32 1.6732632, %v2525_v20  ;;  %v1153_v28 = vmin.f32 %v3410_v16, 0.0  ;;  %v1046_v31 = vmin.f32 %v3413_v21, 0.0 }
  0xb1   :  { %2268 = vst.msk [vmem:[%s5017_s2 + $0x250] sm:$0xff] %vm2193_vm2, %v2123_v17  ;;  %v2671_v19 = vpop.eup %2670  ;;  %v1908_v29 = vsel %vm1764_vm14, %v3306_v11, %v1620_v5  ;;  %v1337_v30 = vmul.f32 1.442695, %v1117_v25  ;;  %vm1801_vm5 = vcmp.gt.f32.partialorder %v3361_v50, 0.0  ;;  %vm1837_vm6 = vcmp.gt.f32.partialorder %v3408_v14, 0.0 }
  0xb2   :  { %2304 = vst.msk [vmem:[%s5017_s2 + $0x370] sm:$0xff] %vm2193_vm2, %v2159_v24  ;;  %2363 = vmatmul.msk.f32.gmra.mxu0 %vm159_vm0, %v32_v4  ;;  %2399 = vmatmul.msk.f32.gmra.mxu1 %vm159_vm0, %v68_v18  ;;  %v2673_v32 = vpop.eup %2672  ;;  %v2052_v33 = vmul.f32 1.050701, %v1908_v29  ;;  %v1944_v34 = vsel %vm1800_vm15, %v3308_v12, %v1656_v27  ;;  %v2561_v35 = vadd.f32 -1.0, %v2671_v19  ;;  %v1409_v38 = vmul.f32 1.442695, %v1153_v28 }
  0xb3   :  { %2435 = vmatmul.msk.f32.gmra.mxu2 %vm159_vm0, %v104_v23  ;;  %2471 = vmatmul.msk.f32.gmra.mxu3 %vm159_vm0, %v140_v26  ;;  %v2088_v11 = vmul.f32 1.050701, %v1944_v34  ;;  %v2597_v39 = vadd.f32 -1.0, %v2673_v32  ;;  %2678 = vpow2.f32 %v1337_v30  ;;  %v1195_v40 = vmul.f32 1.442695, %v1046_v31  ;;  %v2675_v43 = vpop.eup %2674  ;;  %v34_v29 = vld [vmem:[%s5016_s0 + $0xb8] sm:$0xff] }
  0xb4   :  { %2197 = vst.msk [vmem:[%s5017_s2 + $0x18] sm:$0xff] %vm2193_vm2, %v2052_v33  ;;  %v1692_v46 = vmul.f32 1.6732632, %v2561_v35  ;;  %2680 = vpow2.f32 %v1409_v38  ;;  %v1082_v12 = vmin.f32 %v3415_v22, 0.0  ;;  %v2677_v47 = vpop.eup %2676  ;;  %v2490_v36 = vadd.f32 -1.0, %v2675_v43  ;;  %v70_v30 = vld [vmem:[%s5016_s0 + $0x1d8] sm:$0xff] }
  0xb5   :  { %2233 = vst.msk [vmem:[%s5017_s2 + $0x138] sm:$0xff] %vm2193_vm2, %v2088_v11  ;;  %v1728_v48 = vmul.f32 1.6732632, %v2597_v39  ;;  %2682 = vpow2.f32 %v1195_v40  ;;  %v2526_v54 = vadd.f32 -1.0, %v2677_v47  ;;  %vm1873_vm7 = vcmp.gt.f32.partialorder %v3410_v16, 0.0  ;;  %v142_v35 = vld [vmem:[%s5016_s0 + $0x418] sm:$0xff] }
  0xb6   :  { %v3460_v51 = vpop.f32.mrf.mxu2  ;;  %v3462_v52 = vpop.f32.mrf.mxu3  ;;  %v1980_v37 = vsel %vm1836_vm1, %v3352_v44, %v1692_v46  ;;  %v1267_v55 = vmul.f32 1.442695, %v1082_v12  ;;  %v1621_v61 = vmul.f32 1.6732632, %v2490_v36  ;;  %vm1766_vm8 = vcmp.gt.f32.partialorder %v3413_v21, 0.0 }
  0xb7   :  { %v1118_v56 = vmin.f32 %v3460_v51, 0.0  ;;  %v3471_v57 = vpop.f32.mrf.mxu0  ;;  %v3473_v41 = vpop.f32.mrf.mxu1  ;;  %v2124_v60 = vmul.f32 1.050701, %v1980_v37  ;;  %v2016_v44 = vsel %vm1872_vm3, %v3354_v45, %v1728_v48  ;;  %v1657_v63 = vmul.f32 1.6732632, %v2526_v54 }
  0xb8   :  { %v2160_v42 = vmul.f32 1.050701, %v2016_v44  ;;  %2684 = vpow2.f32 %v1267_v55  ;;  %v1909_v45 = vsel %vm1765_vm4, %v3359_v49, %v1621_v61  ;;  %v1154_v2 = vmin.f32 %v3462_v52, 0.0 }
  0xb9   :  { %v1339_v0 = vmul.f32 1.442695, %v1118_v56  ;;  %v2679_v1 = vpop.eup %2678  ;;  %2269 = vst.msk [vmem:[%s5017_s2 + $0x258] sm:$0xff] %vm2193_vm2, %v2124_v60  ;;  %v1047_v3 = vmin.f32 %v3471_v57, 0.0  ;;  %v2053_v7 = vmul.f32 1.050701, %v1909_v45  ;;  %v1945_v49 = vsel %vm1801_vm5, %v3361_v50, %v1657_v63 }
  0xba   :  { %2364 = vmatmul.msk.f32.gmra.mxu0 %vm159_vm0, %v33_v53  ;;  %2400 = vmatmul.msk.f32.gmra.mxu1 %vm159_vm0, %v69_v58  ;;  %v2681_v6 = vpop.eup %2680  ;;  %2305 = vst.msk [vmem:[%s5017_s2 + $0x378] sm:$0xff] %vm2193_vm2, %v2160_v42  ;;  %v2562_v8 = vadd.f32 -1.0, %v2679_v1  ;;  %v2089_v10 = vmul.f32 1.050701, %v1945_v49  ;;  %v1411_v17 = vmul.f32 1.442695, %v1154_v2 }
  0xbb   :  { %2686 = vpow2.f32 %v1339_v0  ;;  %2436 = vmatmul.msk.f32.gmra.mxu2 %vm159_vm0, %v105_v59  ;;  %2472 = vmatmul.msk.f32.gmra.mxu3 %vm159_vm0, %v141_v62  ;;  %v2683_v9 = vpop.eup %2682  ;;  %v2598_v13 = vadd.f32 -1.0, %v2681_v6  ;;  %2198 = vst.msk [vmem:[%s5017_s2 + $0x20] sm:$0xff] %vm2193_vm2, %v2053_v7  ;;  %v1197_v50 = vmul.f32 1.442695, %v1047_v3  ;;  %v1083_v18 = vmin.f32 %v3473_v41, 0.0  ;;  %v35_v58 = vld [vmem:[%s5016_s0 + $0xc0] sm:$0xff] }
  0xbc   :  { %v1693_v15 = vmul.f32 1.6732632, %v2562_v8  ;;  %v2491_v20 = vadd.f32 -1.0, %v2683_v9  ;;  %2234 = vst.msk [vmem:[%s5017_s2 + $0x140] sm:$0xff] %vm2193_vm2, %v2089_v10  ;;  %2688 = vpow2.f32 %v1411_v17  ;;  %vm1802_vm9 = vcmp.gt.f32.partialorder %v3415_v22, 0.0  ;;  %v71_v42 = vld [vmem:[%s5016_s0 + $0x1e0] sm:$0xff] }
  0xbd   :  { %v1729_v4 = vmul.f32 1.6732632, %v2598_v13  ;;  %2690 = vpow2.f32 %v1197_v50  ;;  %v1269_v34 = vmul.f32 1.442695, %v1083_v18  ;;  %vm1838_vm10 = vcmp.gt.f32.partialorder %v3460_v51, 0.0  ;;  %v107_v7 = vld [vmem:[%s5016_s0 + $0x300] sm:$0xff] }
  0xbe   :  { %v3520_v23 = vpop.f32.mrf.mxu2  ;;  %v3522_v24 = vpop.f32.mrf.mxu3  ;;  %v1981_v25 = vsel %vm1837_vm6, %v3408_v14, %v1693_v15  ;;  %v1622_v26 = vmul.f32 1.6732632, %v2491_v20  ;;  %v106_v14 = vld [vmem:[%s5016_s0 + $0x2f8] sm:$0xff]  ;;  %vm1874_vm11 = vcmp.gt.f32.partialorder %v3462_v52, 0.0  ;;  %vm1767_vm12 = vcmp.gt.f32.partialorder %v3471_v57, 0.0  ;;  %v143_v49 = vld [vmem:[%s5016_s0 + $0x420] sm:$0xff] }
  0xbf   :  { %v2685_v5 = vpop.eup %2684  ;;  %v1119_v27 = vmin.f32 %v3520_v23, 0.0  ;;  %v3528_v28 = vpop.f32.mrf.mxu0  ;;  %v2125_v31 = vmul.f32 1.050701, %v1981_v25  ;;  %v2017_v32 = vsel %vm1873_vm7, %v3410_v16, %v1729_v4  ;;  %2692 = vpow2.f32 %v1269_v34 }
  0xc0   :  { %v3530_v19 = vpop.f32.mrf.mxu1  ;;  %v2527_v33 = vadd.f32 -1.0, %v2685_v5  ;;  %v2161_v11 = vmul.f32 1.050701, %v2017_v32  ;;  %v1910_v39 = vsel %vm1766_vm8, %v3413_v21, %v1622_v26  ;;  %v1155_v21 = vmin.f32 %v3522_v24, 0.0 }
  0xc1   :  { %v2687_v38 = vpop.eup %2686  ;;  %v1341_v40 = vmul.f32 1.442695, %v1119_v27  ;;  %2270 = vst.msk [vmem:[%s5017_s2 + $0x260] sm:$0xff] %vm2193_vm2, %v2125_v31  ;;  %v2054_v43 = vmul.f32 1.050701, %v1910_v39  ;;  %v1048_v12 = vmin.f32 %v3528_v28, 0.0 }
  0xc2   :  { %v1658_v16 = vmul.f32 1.6732632, %v2527_v33  ;;  %v2563_v46 = vadd.f32 -1.0, %v2687_v38  ;;  %2365 = vmatmul.msk.f32.gmra.mxu0 %vm159_vm0, %v34_v29  ;;  %2401 = vmatmul.msk.f32.gmra.mxu1 %vm159_vm0, %v70_v30  ;;  %2306 = vst.msk [vmem:[%s5017_s2 + $0x380] sm:$0xff] %vm2193_vm2, %v2161_v11  ;;  %v2689_v47 = vpop.eup %2688  ;;  %v1084_v53 = vmin.f32 %v3530_v19, 0.0  ;;  %vm1803_vm13 = vcmp.gt.f32.partialorder %v3473_v41, 0.0 }
  0xc3   :  { %2694 = vpow2.f32 %v1341_v40  ;;  %2437 = vmatmul.msk.f32.gmra.mxu2 %vm159_vm0, %v106_v14  ;;  %2473 = vmatmul.msk.f32.gmra.mxu3 %vm159_vm0, %v142_v35  ;;  %2199 = vst.msk [vmem:[%s5017_s2 + $0x28] sm:$0xff] %vm2193_vm2, %v2054_v43  ;;  %v2691_v37 = vpop.eup %2690  ;;  %v2599_v55 = vadd.f32 -1.0, %v2689_v47  ;;  %v1413_v56 = vmul.f32 1.442695, %v1155_v21  ;;  %v1199_v44 = vmul.f32 1.442695, %v1048_v12 }
  0xc4   :  { %v1946_v48 = vsel %vm1802_vm9, %v3415_v22, %v1658_v16  ;;  %v1694_v36 = vmul.f32 1.6732632, %v2563_v46  ;;  %v2492_v60 = vadd.f32 -1.0, %v2691_v37  ;;  %v1271_v22 = vmul.f32 1.442695, %v1084_v53  ;;  %v36_v27 = vld [vmem:[%s5016_s0 + $0xc8] sm:$0xff] }
  0xc5   :  { %v2090_v54 = vmul.f32 1.050701, %v1946_v48  ;;  %v1730_v0 = vmul.f32 1.6732632, %v2599_v55  ;;  %2696 = vpow2.f32 %v1413_v56  ;;  %v2693_v2 = vpop.eup %2692  ;;  %vm1839_vm14 = vcmp.gt.f32.partialorder %v3520_v23, 0.0  ;;  %v72_v29 = vld [vmem:[%s5016_s0 + $0x1e8] sm:$0xff] }
  0xc6   :  { %v1982_v59 = vsel %vm1838_vm10, %v3460_v51, %v1694_v36  ;;  %v3577_v61 = vpop.f32.mrf.mxu2  ;;  %v3579_v62 = vpop.f32.mrf.mxu3  ;;  %v1623_v3 = vmul.f32 1.6732632, %v2492_v60  ;;  %2698 = vpow2.f32 %v1199_v44  ;;  %v2528_v10 = vadd.f32 -1.0, %v2693_v2  ;;  %v108_v35 = vld [vmem:[%s5016_s0 + $0x308] sm:$0xff] }
  0xc7   :  { %2235 = vst.msk [vmem:[%s5017_s2 + $0x148] sm:$0xff] %vm2193_vm2, %v2090_v54  ;;  %v2126_v63 = vmul.f32 1.050701, %v1982_v59  ;;  %v1120_v51 = vmin.f32 %v3577_v61, 0.0  ;;  %v3589_v1 = vpop.f32.mrf.mxu0  ;;  %v1156_v6 = vmin.f32 %v3579_v62, 0.0  ;;  %v2018_v9 = vsel %vm1874_vm11, %v3462_v52, %v1730_v0  ;;  %v144_v12 = vld [vmem:[%s5016_s0 + $0x428] sm:$0xff] }
  0xc8   :  { %v3591_v45 = vpop.f32.mrf.mxu1  ;;  %2700 = vpow2.f32 %v1271_v22  ;;  %v2162_v17 = vmul.f32 1.050701, %v2018_v9  ;;  %v1911_v15 = vsel %vm1767_vm12, %v3471_v57, %v1623_v3  ;;  %v1659_v18 = vmul.f32 1.6732632, %v2528_v10 }
  0xc9   :  { %v2695_v8 = vpop.eup %2694  ;;  %2271 = vst.msk [vmem:[%s5017_s2 + $0x268] sm:$0xff] %vm2193_vm2, %v2126_v63  ;;  %v1343_v13 = vmul.f32 1.442695, %v1120_v51  ;;  %v1415_v50 = vmul.f32 1.442695, %v1156_v6  ;;  %v1049_v57 = vmin.f32 %v3589_v1, 0.0 }
  0xca   :  { %v2564_v20 = vadd.f32 -1.0, %v2695_v8  ;;  %2366 = vmatmul.msk.f32.gmra.mxu0 %vm159_vm0, %v35_v58  ;;  %2402 = vmatmul.msk.f32.gmra.mxu1 %vm159_vm0, %v71_v42  ;;  %v2055_v4 = vmul.f32 1.050701, %v1911_v15  ;;  %2307 = vst.msk [vmem:[%s5017_s2 + $0x388] sm:$0xff] %vm2193_vm2, %v2162_v17  ;;  %v1947_v25 = vsel %vm1803_vm13, %v3473_v41, %v1659_v18  ;;  %vm1875_vm15 = vcmp.gt.f32.partialorder %v3522_v24, 0.0  ;;  %v37_v51 = vld [vmem:[%s5016_s0 + $0xd0] sm:$0xff] }
  0xcb   :  { %2702 = vpow2.f32 %v1343_v13  ;;  %2438 = vmatmul.msk.f32.gmra.mxu2 %vm159_vm0, %v107_v7  ;;  %2474 = vmatmul.msk.f32.gmra.mxu3 %vm159_vm0, %v143_v49  ;;  %v2697_v5 = vpop.eup %2696  ;;  %vm1768_vm1 = vcmp.gt.f32.partialorder %v3528_v28, 0.0  ;;  %v1085_v26 = vmin.f32 %v3591_v45, 0.0  ;;  %v2091_v14 = vmul.f32 1.050701, %v1947_v25  ;;  %v73_v49 = vld [vmem:[%s5016_s0 + $0x1f0] sm:$0xff] }
  0xcc   :  { %v1695_v52 = vmul.f32 1.6732632, %v2564_v20  ;;  %2704 = vpow2.f32 %v1415_v50  ;;  %2200 = vst.msk [vmem:[%s5017_s2 + $0x30] sm:$0xff] %vm2193_vm2, %v2055_v4  ;;  %v2699_v30 = vpop.eup %2698  ;;  %v2600_v32 = vadd.f32 -1.0, %v2697_v5  ;;  %v1201_v41 = vmul.f32 1.442695, %v1049_v57 }
  0xcd   :  { %v2493_v39 = vadd.f32 -1.0, %v2699_v30  ;;  %v1273_v40 = vmul.f32 1.442695, %v1085_v26  ;;  %2236 = vst.msk [vmem:[%s5017_s2 + $0x150] sm:$0xff] %vm2193_vm2, %v2091_v14  ;;  %vm1804_vm3 = vcmp.gt.f32.partialorder %v3530_v19, 0.0  ;;  %vm1840_vm4 = vcmp.gt.f32.partialorder %v3577_v61, 0.0 }
  0xce   :  { %v1983_v31 = vsel %vm1839_vm14, %v3520_v23, %v1695_v52  ;;  %v3635_v33 = vpop.f32.mrf.mxu2  ;;  %v3637_v34 = vpop.f32.mrf.mxu3  ;;  %v1731_v23 = vmul.f32 1.6732632, %v2600_v32  ;;  %2706 = vpow2.f32 %v1201_v41  ;;  %vm1876_vm5 = vcmp.gt.f32.partialorder %v3579_v62, 0.0  ;;  %v109_v8 = vld [vmem:[%s5016_s0 + $0x310] sm:$0xff] }
  0xcf   :  { %v2701_v38 = vpop.eup %2700  ;;  %v2127_v11 = vmul.f32 1.050701, %v1983_v31  ;;  %v1121_v43 = vmin.f32 %v3635_v33, 0.0  ;;  %v3643_v16 = vpop.f32.mrf.mxu0  ;;  %v1624_v48 = vmul.f32 1.6732632, %v2493_v39  ;;  %2708 = vpow2.f32 %v1273_v40 }
  0xd0   :  { %v3645_v46 = vpop.f32.mrf.mxu1  ;;  %v2529_v21 = vadd.f32 -1.0, %v2701_v38  ;;  %v1157_v53 = vmin.f32 %v3637_v34, 0.0  ;;  %v2019_v54 = vsel %vm1875_vm15, %v3522_v24, %v1731_v23  ;;  %v1050_v0 = vmin.f32 %v3643_v16, 0.0 }
  0xd1   :  { %v2703_v47 = vpop.eup %2702  ;;  %2272 = vst.msk [vmem:[%s5017_s2 + $0x270] sm:$0xff] %vm2193_vm2, %v2127_v11  ;;  %v1345_v36 = vmul.f32 1.442695, %v1121_v43  ;;  %v2163_v58 = vmul.f32 1.050701, %v2019_v54  ;;  %v1912_v59 = vsel %vm1768_vm1, %v3528_v28, %v1624_v48  ;;  %v1086_v3 = vmin.f32 %v3645_v46, 0.0 }
  0xd2   :  { %v2705_v37 = vpop.eup %2704  ;;  %v1660_v55 = vmul.f32 1.6732632, %v2529_v21  ;;  %v2565_v56 = vadd.f32 -1.0, %v2703_v47  ;;  %2367 = vmatmul.msk.f32.gmra.mxu0 %vm159_vm0, %v36_v27  ;;  %2403 = vmatmul.msk.f32.gmra.mxu1 %vm159_vm0, %v72_v29  ;;  %v2056_v24 = vmul.f32 1.050701, %v1912_v59  ;;  %vm1769_vm6 = vcmp.gt.f32.partialorder %v3589_v1, 0.0 }
  0xd3   :  { %v2601_v60 = vadd.f32 -1.0, %v2705_v37  ;;  %2710 = vpow2.f32 %v1345_v36  ;;  %2439 = vmatmul.msk.f32.gmra.mxu2 %vm159_vm0, %v108_v35  ;;  %2475 = vmatmul.msk.f32.gmra.mxu3 %vm159_vm0, %v144_v12  ;;  %v1417_v42 = vmul.f32 1.442695, %v1157_v53  ;;  %2308 = vst.msk [vmem:[%s5017_s2 + $0x390] sm:$0xff] %vm2193_vm2, %v2163_v58  ;;  %v1203_v15 = vmul.f32 1.442695, %v1050_v0 }
  0xd4   :  { %v1948_v44 = vsel %vm1804_vm3, %v3530_v19, %v1660_v55  ;;  %v1696_v22 = vmul.f32 1.6732632, %v2565_v56  ;;  %v2707_v2 = vpop.eup %2706  ;;  %2201 = vst.msk [vmem:[%s5017_s2 + $0x38] sm:$0xff] %vm2193_vm2, %v2056_v24  ;;  %v1275_v52 = vmul.f32 1.442695, %v1086_v3  ;;  %vm1805_vm7 = vcmp.gt.f32.partialorder %v3591_v45, 0.0 }
  0xd5   :  { %v2092_v63 = vmul.f32 1.050701, %v1948_v44  ;;  %v1732_v28 = vmul.f32 1.6732632, %v2601_v60  ;;  %2712 = vpow2.f32 %v1417_v42  ;;  %v2709_v9 = vpop.eup %2708  ;;  %v2494_v17 = vadd.f32 -1.0, %v2707_v2  ;;  %v38_v21 = vld [vmem:[%s5016_s0 + $0xd8] sm:$0xff] }
  0xd6   :  { %v1984_v19 = vsel %vm1840_vm4, %v3577_v61, %v1696_v22  ;;  %v3691_v6 = vpop.f32.mrf.mxu2  ;;  %v3693_v7 = vpop.f32.mrf.mxu3  ;;  %v145_v61 = vld [vmem:[%s5016_s0 + $0x430] sm:$0xff]  ;;  %v2530_v18 = vadd.f32 -1.0, %v2709_v9  ;;  %2714 = vpow2.f32 %v1203_v15  ;;  %vm1841_vm8 = vcmp.gt.f32.partialorder %v3635_v33, 0.0  ;;  %v74_v12 = vld [vmem:[%s5016_s0 + $0x1f8] sm:$0xff] }
  0xd7   :  { %2237 = vst.msk [vmem:[%s5017_s2 + $0x158] sm:$0xff] %vm2193_vm2, %v2092_v63  ;;  %v2128_v10 = vmul.f32 1.050701, %v1984_v19  ;;  %v2020_v13 = vsel %vm1876_vm5, %v3579_v62, %v1732_v28  ;;  %v3709_v20 = vpop.f32.mrf.mxu0  ;;  %v1625_v5 = vmul.f32 1.6732632, %v2494_v17  ;;  %v1122_v62 = vmin.f32 %v3691_v6, 0.0 }
  0xd8   :  { %v3711_v50 = vpop.f32.mrf.mxu1  ;;  %v2164_v4 = vmul.f32 1.050701, %v2020_v13  ;;  %v1661_v25 = vmul.f32 1.6732632, %v2530_v18  ;;  %2716 = vpow2.f32 %v1275_v52  ;;  %v1158_v27 = vmin.f32 %v3693_v7, 0.0  ;;  %v146_v59 = vld [vmem:[%s5016_s0 + $0x438] sm:$0xff] }
  0xd9   :  { %v2711_v57 = vpop.eup %2710  ;;  %2273 = vst.msk [vmem:[%s5017_s2 + $0x278] sm:$0xff] %vm2193_vm2, %v2128_v10  ;;  %v1913_v29 = vsel %vm1769_vm6, %v3589_v1, %v1625_v5  ;;  %v1347_v30 = vmul.f32 1.442695, %v1122_v62  ;;  %v1051_v14 = vmin.f32 %v3709_v20, 0.0  ;;  %vm1877_vm9 = vcmp.gt.f32.partialorder %v3637_v34, 0.0  ;;  %v39_v13 = vld [vmem:[%s5016_s0 + $0xe0] sm:$0xff] }
  0xda   :  { %2309 = vst.msk [vmem:[%s5017_s2 + $0x398] sm:$0xff] %vm2193_vm2, %v2164_v4  ;;  %v2566_v26 = vadd.f32 -1.0, %v2711_v57  ;;  %2368 = vmatmul.msk.f32.gmra.mxu0 %vm159_vm0, %v37_v51  ;;  %2404 = vmatmul.msk.f32.gmra.mxu1 %vm159_vm0, %v73_v49  ;;  %v2057_v32 = vmul.f32 1.050701, %v1913_v29  ;;  %v1949_v41 = vsel %vm1805_vm7, %v3591_v45, %v1661_v25  ;;  %v1419_v38 = vmul.f32 1.442695, %v1158_v27 }
  0xdb   :  { %2440 = vmatmul.msk.f32.gmra.mxu2 %vm159_vm0, %v109_v8  ;;  %2476 = vmatmul.msk.f32.gmra.mxu3 %vm159_vm0, %v145_v61  ;;  %v2713_v31 = vpop.eup %2712  ;;  %v2093_v11 = vmul.f32 1.050701, %v1949_v41  ;;  %2718 = vpow2.f32 %v1347_v30  ;;  %v1205_v1 = vmul.f32 1.442695, %v1051_v14  ;;  %v1087_v43 = vmin.f32 %v3711_v50, 0.0  ;;  %v147_v57 = vld [vmem:[%s5016_s0 + $0x440] sm:$0xff] }
  0xdc   :  { %v1697_v35 = vmul.f32 1.6732632, %v2566_v26  ;;  %v2602_v39 = vadd.f32 -1.0, %v2713_v31  ;;  %2202 = vst.msk [vmem:[%s5017_s2 + $0x40] sm:$0xff] %vm2193_vm2, %v2057_v32  ;;  %2720 = vpow2.f32 %v1419_v38  ;;  %v2715_v47 = vpop.eup %2714  ;;  %vm1770_vm10 = vcmp.gt.f32.partialorder %v3643_v16, 0.0 }
  0xdd   :  { %2238 = vst.msk [vmem:[%s5017_s2 + $0x160] sm:$0xff] %vm2193_vm2, %v2093_v11  ;;  %2722 = vpow2.f32 %v1205_v1  ;;  %v2495_v55 = vadd.f32 -1.0, %v2715_v47  ;;  %vm1806_vm11 = vcmp.gt.f32.partialorder %v3645_v46, 0.0  ;;  %v1277_v56 = vmul.f32 1.442695, %v1087_v43 }
  0xde   :  { %v1985_v40 = vsel %vm1841_vm8, %v3635_v33, %v1697_v35  ;;  %v3744_v23 = vpop.f32.mrf.mxu2  ;;  %v3746_v45 = vpop.f32.mrf.mxu3  ;;  %v110_v33 = vld [vmem:[%s5016_s0 + $0x318] sm:$0xff]  ;;  %v1733_v36 = vmul.f32 1.6732632, %v2602_v39  ;;  %vm1842_vm12 = vcmp.gt.f32.partialorder %v3691_v6, 0.0  ;;  %vm1878_vm13 = vcmp.gt.f32.partialorder %v3693_v7, 0.0 }
  0xdf   :  { %v2129_v48 = vmul.f32 1.050701, %v1985_v40  ;;  %v3762_v53 = vpop.f32.mrf.mxu0  ;;  %v2717_v54 = vpop.eup %2716  ;;  %v1123_v58 = vmin.f32 %v3744_v23, 0.0  ;;  %v1159_v44 = vmin.f32 %v3746_v45, 0.0  ;;  %v1626_v42 = vmul.f32 1.6732632, %v2495_v55 }
  0xe0   :  { %v3764_v37 = vpop.f32.mrf.mxu1  ;;  %v2021_v60 = vsel %vm1877_vm9, %v3637_v34, %v1733_v36  ;;  %v2531_v24 = vadd.f32 -1.0, %v2717_v54  ;;  %2724 = vpow2.f32 %v1277_v56  ;;  %v1052_v34 = vmin.f32 %v3762_v53, 0.0 }
  0xe1   :  { %2274 = vst.msk [vmem:[%s5017_s2 + $0x280] sm:$0xff] %vm2193_vm2, %v2129_v48  ;;  %v2165_v22 = vmul.f32 1.050701, %v2021_v60  ;;  %v1349_v63 = vmul.f32 1.442695, %v1123_v58  ;;  %v2719_v28 = vpop.eup %2718  ;;  %v1914_v19 = vsel %vm1770_vm10, %v3643_v16, %v1626_v42  ;;  %v1088_v49 = vmin.f32 %v3764_v37, 0.0 }
  0xe2   :  { %2369 = vmatmul.msk.f32.gmra.mxu0 %vm159_vm0, %v38_v21  ;;  %2405 = vmatmul.msk.f32.gmra.mxu1 %vm159_vm0, %v74_v12  ;;  %v1662_v0 = vmul.f32 1.6732632, %v2531_v24  ;;  %v1421_v51 = vmul.f32 1.442695, %v1159_v44  ;;  %v2721_v2 = vpop.eup %2720  ;;  %v2567_v3 = vadd.f32 -1.0, %v2719_v28  ;;  %v75_v16 = vld [vmem:[%s5016_s0 + $0x200] sm:$0xff] }
  0xe3   :  { %2441 = vmatmul.msk.f32.gmra.mxu2 %vm159_vm0, %v110_v33  ;;  %2477 = vmatmul.msk.f32.gmra.mxu3 %vm159_vm0, %v146_v59  ;;  %2310 = vst.msk [vmem:[%s5017_s2 + $0x3a0] sm:$0xff] %vm2193_vm2, %v2165_v22  ;;  %2726 = vpow2.f32 %v1349_v63  ;;  %v2723_v8 = vpop.eup %2722  ;;  %v2058_v61 = vmul.f32 1.050701, %v1914_v19  ;;  %v2603_v10 = vadd.f32 -1.0, %v2721_v2  ;;  %vm1771_vm14 = vcmp.gt.f32.partialorder %v3709_v20, 0.0  ;;  %v40_v22 = vld [vmem:[%s5016_s0 + $0xe8] sm:$0xff] }
  0xe4   :  { %v1950_v9 = vsel %vm1806_vm11, %v3645_v46, %v1662_v0  ;;  %2728 = vpow2.f32 %v1421_v51  ;;  %v1698_v15 = vmul.f32 1.6732632, %v2567_v3  ;;  %v2496_v4 = vadd.f32 -1.0, %v2723_v8  ;;  %v111_v46 = vld [vmem:[%s5016_s0 + $0x320] sm:$0xff]  ;;  %v76_v42 = vld [vmem:[%s5016_s0 + $0x208] sm:$0xff] }
  0xe5   :  { %v2094_v17 = vmul.f32 1.050701, %v1950_v9  ;;  %2203 = vst.msk [vmem:[%s5017_s2 + $0x48] sm:$0xff] %vm2193_vm2, %v2058_v61  ;;  %v1734_v5 = vmul.f32 1.6732632, %v2603_v10  ;;  %vm1807_vm15 = vcmp.gt.f32.partialorder %v3711_v50, 0.0 }
  0xe6   :  { %v3804_v18 = vpop.f32.mrf.mxu2  ;;  %v3806_v52 = vpop.f32.mrf.mxu3  ;;  %v1207_v62 = vmul.f32 1.442695, %v1052_v34  ;;  %v1986_v30 = vsel %vm1842_vm12, %v3691_v6, %v1698_v15  ;;  %v1627_v14 = vmul.f32 1.6732632, %v2496_v4  ;;  %v1279_v31 = vmul.f32 1.442695, %v1088_v49 }
  0xe7   :  { %v1124_v25 = vmin.f32 %v3804_v18, 0.0  ;;  %v3819_v26 = vpop.f32.mrf.mxu0  ;;  %v2725_v29 = vpop.eup %2724  ;;  %2239 = vst.msk [vmem:[%s5017_s2 + $0x168] sm:$0xff] %vm2193_vm2, %v2094_v17  ;;  %v2130_v32 = vmul.f32 1.050701, %v1986_v30  ;;  %v2022_v41 = vsel %vm1878_vm13, %v3693_v7, %v1734_v5  ;;  %vm1843_vm1 = vcmp.gt.f32.partialorder %v3744_v23, 0.0  ;;  %v112_v51 = vld [vmem:[%s5016_s0 + $0x328] sm:$0xff] }
  0xe8   :  { %v3821_v27 = vpop.f32.mrf.mxu1  ;;  %v2532_v35 = vadd.f32 -1.0, %v2725_v29  ;;  %2730 = vpow2.f32 %v1207_v62  ;;  %v2166_v11 = vmul.f32 1.050701, %v2022_v41  ;;  %v1915_v39 = vsel %vm1771_vm14, %v3709_v20, %v1627_v14  ;;  %v148_v34 = vld [vmem:[%s5016_s0 + $0x448] sm:$0xff]  ;;  %v41_v14 = vld [vmem:[%s5016_s0 + $0xf0] sm:$0xff] }
  0xe9   :  { %v2727_v38 = vpop.eup %2726  ;;  %2732 = vpow2.f32 %v1279_v31  ;;  %v1351_v1 = vmul.f32 1.442695, %v1124_v25  ;;  %2275 = vst.msk [vmem:[%s5017_s2 + $0x288] sm:$0xff] %vm2193_vm2, %v2130_v32  ;;  %v2059_v7 = vmul.f32 1.050701, %v1915_v39  ;;  %v1160_v21 = vmin.f32 %v3806_v52, 0.0 }
  0xea   :  { %2370 = vmatmul.msk.f32.gmra.mxu0 %vm159_vm0, %v39_v13  ;;  %2406 = vmatmul.msk.f32.gmra.mxu1 %vm159_vm0, %v75_v16  ;;  %v2729_v6 = vpop.eup %2728  ;;  %v1663_v40 = vmul.f32 1.6732632, %v2532_v35  ;;  %v2568_v43 = vadd.f32 -1.0, %v2727_v38  ;;  %2311 = vst.msk [vmem:[%s5017_s2 + $0x3a8] sm:$0xff] %vm2193_vm2, %v2166_v11  ;;  %vm1879_vm3 = vcmp.gt.f32.partialorder %v3746_v45, 0.0  ;;  %v1053_v47 = vmin.f32 %v3819_v26, 0.0 }
  0xeb   :  { %2442 = vmatmul.msk.f32.gmra.mxu2 %vm159_vm0, %v111_v46  ;;  %2478 = vmatmul.msk.f32.gmra.mxu3 %vm159_vm0, %v147_v57  ;;  %v2604_v20 = vadd.f32 -1.0, %v2729_v6  ;;  %2734 = vpow2.f32 %v1351_v1  ;;  %2204 = vst.msk [vmem:[%s5017_s2 + $0x50] sm:$0xff] %vm2193_vm2, %v2059_v7  ;;  %v1423_v54 = vmul.f32 1.442695, %v1160_v21  ;;  %vm1772_vm4 = vcmp.gt.f32.partialorder %v3762_v53, 0.0  ;;  %v77_v38 = vld [vmem:[%s5016_s0 + $0x210] sm:$0xff] }
  0xec   :  { %v1951_v12 = vsel %vm1807_vm15, %v3711_v50, %v1663_v40  ;;  %v1699_v33 = vmul.f32 1.6732632, %v2568_v43  ;;  %v1209_v60 = vmul.f32 1.442695, %v1053_v47  ;;  %v1089_v50 = vmin.f32 %v3821_v27, 0.0  ;;  %v113_v11 = vld [vmem:[%s5016_s0 + $0x330] sm:$0xff] }
  0xed   :  { %v2095_v48 = vmul.f32 1.050701, %v1951_v12  ;;  %v1735_v36 = vmul.f32 1.6732632, %v2604_v20  ;;  %2736 = vpow2.f32 %v1423_v54  ;;  %vm1808_vm5 = vcmp.gt.f32.partialorder %v3764_v37, 0.0 }
  0xee   :  { %v3860_v55 = vpop.f32.mrf.mxu2  ;;  %v3862_v56 = vpop.f32.mrf.mxu3  ;;  %v1987_v59 = vsel %vm1843_vm1, %v3744_v23, %v1699_v33  ;;  %2738 = vpow2.f32 %v1209_v60  ;;  %v1281_v3 = vmul.f32 1.442695, %v1089_v50  ;;  %vm1844_vm6 = vcmp.gt.f32.partialorder %v3804_v18, 0.0 }
  0xef   :  { %v2731_v58 = vpop.eup %2730  ;;  %v3867_v24 = vpop.f32.mrf.mxu0  ;;  %2240 = vst.msk [vmem:[%s5017_s2 + $0x170] sm:$0xff] %vm2193_vm2, %v2095_v48  ;;  %v2131_v23 = vmul.f32 1.050701, %v1987_v59  ;;  %v2023_v28 = vsel %vm1879_vm3, %v3746_v45, %v1735_v36  ;;  %v1125_v8 = vmin.f32 %v3860_v55, 0.0  ;;  %v1161_v61 = vmin.f32 %v3862_v56, 0.0 }
  0xf0   :  { %v3869_v44 = vpop.f32.mrf.mxu1  ;;  %v2733_v63 = vpop.eup %2732  ;;  %v2497_v0 = vadd.f32 -1.0, %v2731_v58  ;;  %v2167_v2 = vmul.f32 1.050701, %v2023_v28  ;;  %2740 = vpow2.f32 %v1281_v3  ;;  %v1054_v15 = vmin.f32 %v3867_v24, 0.0 }
  0xf1   :  { %v2533_v19 = vadd.f32 -1.0, %v2733_v63  ;;  %v2735_v49 = vpop.eup %2734  ;;  %2276 = vst.msk [vmem:[%s5017_s2 + $0x290] sm:$0xff] %vm2193_vm2, %v2131_v23  ;;  %v1353_v16 = vmul.f32 1.442695, %v1125_v8  ;;  %v1425_v17 = vmul.f32 1.442695, %v1161_v61 }
  0xf2   :  { %v1628_v45 = vmul.f32 1.6732632, %v2497_v0  ;;  %2371 = vmatmul.msk.f32.gmra.mxu0 %vm159_vm0, %v40_v22  ;;  %2407 = vmatmul.msk.f32.gmra.mxu1 %vm159_vm0, %v76_v42  ;;  %2312 = vst.msk [vmem:[%s5017_s2 + $0x3b0] sm:$0xff] %vm2193_vm2, %v2167_v2  ;;  %v2569_v10 = vadd.f32 -1.0, %v2735_v49  ;;  %vm1880_vm7 = vcmp.gt.f32.partialorder %v3806_v52, 0.0  ;;  %v1090_v29 = vmin.f32 %v3869_v44, 0.0 }
  0xf3   :  { %v1664_v9 = vmul.f32 1.6732632, %v2533_v19  ;;  %2443 = vmatmul.msk.f32.gmra.mxu2 %vm159_vm0, %v112_v51  ;;  %2479 = vmatmul.msk.f32.gmra.mxu3 %vm159_vm0, %v148_v34  ;;  %v2737_v5 = vpop.eup %2736  ;;  %2742 = vpow2.f32 %v1353_v16  ;;  %v1211_v25 = vmul.f32 1.442695, %v1054_v15  ;;  %vm1773_vm8 = vcmp.gt.f32.partialorder %v3819_v26, 0.0  ;;  %v42_v63 = vld [vmem:[%s5016_s0 + $0xf8] sm:$0xff] }
  0xf4   :  { %v1916_v13 = vsel %vm1772_vm4, %v3762_v53, %v1628_v45  ;;  %v1700_v57 = vmul.f32 1.6732632, %v2569_v10  ;;  %v2739_v31 = vpop.eup %2738  ;;  %v2605_v32 = vadd.f32 -1.0, %v2737_v5  ;;  %2744 = vpow2.f32 %v1425_v17  ;;  %v78_v2 = vld [vmem:[%s5016_s0 + $0x218] sm:$0xff] }
  0xf5   :  { %v2060_v4 = vmul.f32 1.050701, %v1916_v13  ;;  %v1952_v46 = vsel %vm1808_vm5, %v3764_v37, %v1664_v9  ;;  %v2498_v1 = vadd.f32 -1.0, %v2739_v31  ;;  %2746 = vpow2.f32 %v1211_v25  ;;  %v114_v19 = vld [vmem:[%s5016_s0 + $0x338] sm:$0xff] }
  0xf6   :  { %v2096_v62 = vmul.f32 1.050701, %v1952_v46  ;;  %v3915_v30 = vpop.f32.mrf.mxu2  ;;  %v3917_v53 = vpop.f32.mrf.mxu3  ;;  %v1988_v37 = vsel %vm1844_vm6, %v3804_v18, %v1700_v57  ;;  %v149_v18 = vld [vmem:[%s5016_s0 + $0x450] sm:$0xff]  ;;  %v1283_v6 = vmul.f32 1.442695, %v1090_v29  ;;  %vm1809_vm9 = vcmp.gt.f32.partialorder %v3821_v27, 0.0 }
  0xf7   :  { %2205 = vst.msk [vmem:[%s5017_s2 + $0x58] sm:$0xff] %vm2193_vm2, %v2060_v4  ;;  %v3930_v41 = vpop.f32.mrf.mxu0  ;;  %v2132_v39 = vmul.f32 1.050701, %v1988_v37  ;;  %v2741_v7 = vpop.eup %2740  ;;  %v1736_v40 = vmul.f32 1.6732632, %v2605_v32  ;;  %v1126_v43 = vmin.f32 %v3915_v30, 0.0 }
  0xf8   :  { %v3932_v35 = vpop.f32.mrf.mxu1  ;;  %2241 = vst.msk [vmem:[%s5017_s2 + $0x178] sm:$0xff] %vm2193_vm2, %v2096_v62  ;;  %v1162_v20 = vmin.f32 %v3917_v53, 0.0  ;;  %v1629_v21 = vmul.f32 1.6732632, %v2498_v1  ;;  %v2534_v12 = vadd.f32 -1.0, %v2741_v7  ;;  %vm1845_vm10 = vcmp.gt.f32.partialorder %v3860_v55, 0.0 }
  0xf9   :  { %2277 = vst.msk [vmem:[%s5017_s2 + $0x298] sm:$0xff] %vm2193_vm2, %v2132_v39  ;;  %2748 = vpow2.f32 %v1283_v6  ;;  %v2024_v33 = vsel %vm1880_vm7, %v3806_v52, %v1736_v40  ;;  %v1355_v47 = vmul.f32 1.442695, %v1126_v43  ;;  %v1055_v36 = vmin.f32 %v3930_v41, 0.0  ;;  %v2743_v54 = vpop.eup %2742  ;;  %v43_v39 = vld [vmem:[%s5016_s0 + $0x100] sm:$0xff] }
  0xfa   :  { %2372 = vmatmul.msk.f32.gmra.mxu0 %vm159_vm0, %v41_v14  ;;  %2408 = vmatmul.msk.f32.gmra.mxu1 %vm159_vm0, %v77_v38  ;;  %v1427_v48 = vmul.f32 1.442695, %v1162_v20  ;;  %v2168_v58 = vmul.f32 1.050701, %v2024_v33  ;;  %v1917_v59 = vsel %vm1773_vm8, %v3819_v26, %v1629_v21  ;;  %v1665_v60 = vmul.f32 1.6732632, %v2534_v12  ;;  %v2745_v50 = vpop.eup %2744 }
  0xfb   :  { %2444 = vmatmul.msk.f32.gmra.mxu2 %vm159_vm0, %v113_v11  ;;  %2480 = vmatmul.msk.f32.gmra.mxu3 %vm159_vm0, %v149_v18  ;;  %vm1881_vm11 = vcmp.gt.f32.partialorder %v3862_v56, 0.0  ;;  %v2061_v22 = vmul.f32 1.050701, %v1917_v59  ;;  %v2570_v52 = vadd.f32 -1.0, %v2743_v54  ;;  %2750 = vpow2.f32 %v1355_v47  ;;  %v2747_v23 = vpop.eup %2746  ;;  %v79_v1 = vld [vmem:[%s5016_s0 + $0x220] sm:$0xff] }
  0xfc   :  { %v1213_v42 = vmul.f32 1.442695, %v1055_v36  ;;  %2313 = vst.msk [vmem:[%s5017_s2 + $0x3b8] sm:$0xff] %vm2193_vm2, %v2168_v58  ;;  %v1953_v26 = vsel %vm1809_vm9, %v3821_v27, %v1665_v60  ;;  %v2606_v28 = vadd.f32 -1.0, %v2745_v50  ;;  %2752 = vpow2.f32 %v1427_v48  ;;  %v150_v27 = vld [vmem:[%s5016_s0 + $0x458] sm:$0xff]  ;;  %v115_v47 = vld [vmem:[%s5016_s0 + $0x340] sm:$0xff] }
  0xfd   :  { %v1091_v0 = vmin.f32 %v3932_v35, 0.0  ;;  %2206 = vst.msk [vmem:[%s5017_s2 + $0x60] sm:$0xff] %vm2193_vm2, %v2061_v22  ;;  %v2097_v3 = vmul.f32 1.050701, %v1953_v26  ;;  %v1701_v49 = vmul.f32 1.6732632, %v2570_v52 }
  0xfe   :  { %v3978_v51 = vpop.f32.mrf.mxu2  ;;  %v3980_v34 = vpop.f32.mrf.mxu3  ;;  %v2499_v45 = vadd.f32 -1.0, %v2747_v23  ;;  %2754 = vpow2.f32 %v1213_v42  ;;  %v1737_v10 = vmul.f32 1.6732632, %v2606_v28  ;;  %vm1774_vm12 = vcmp.gt.f32.partialorder %v3867_v24, 0.0  ;;  %v151_v59 = vld [vmem:[%s5016_s0 + $0x460] sm:$0xff] }
  0xff   :  { %v3995_v8 = vpop.f32.mrf.mxu0  ;;  %v2749_v9 = vpop.eup %2748  ;;  %v1285_v13 = vmul.f32 1.442695, %v1091_v0  ;;  %v1127_v16 = vmin.f32 %v3978_v51, 0.0  ;;  %2242 = vst.msk [vmem:[%s5017_s2 + $0x180] sm:$0xff] %vm2193_vm2, %v2097_v3  ;;  %v1989_v17 = vsel %vm1845_vm10, %v3860_v55, %v1701_v49  ;;  %vm1810_vm13 = vcmp.gt.f32.partialorder %v3869_v44, 0.0  ;;  %v44_v49 = vld [vmem:[%s5016_s0 + $0x108] sm:$0xff] }
 0x100   :  { %v3997_v61 = vpop.f32.mrf.mxu1  ;;  %v1630_v15 = vmul.f32 1.6732632, %v2499_v45  ;;  %v2535_v4 = vadd.f32 -1.0, %v2749_v9  ;;  %v2133_v46 = vmul.f32 1.050701, %v1989_v17  ;;  %v2025_v57 = vsel %vm1881_vm11, %v3862_v56, %v1737_v10 }
 0x101   :  { %2756 = vpow2.f32 %v1285_v13  ;;  %v1357_v5 = vmul.f32 1.442695, %v1127_v16  ;;  %v2751_v62 = vpop.eup %2750  ;;  %v2169_v25 = vmul.f32 1.050701, %v2025_v57  ;;  %v1163_v14 = vmin.f32 %v3980_v34, 0.0 }
 0x102   :  { %2373 = vmatmul.msk.f32.gmra.mxu0 %vm159_vm0, %v42_v63  ;;  %2409 = vmatmul.msk.f32.gmra.mxu1 %vm159_vm0, %v78_v2  ;;  %v1918_v55 = vsel %vm1774_vm12, %v3867_v24, %v1630_v15  ;;  %v1666_v29 = vmul.f32 1.6732632, %v2535_v4  ;;  %v2753_v56 = vpop.eup %2752  ;;  %2278 = vst.msk [vmem:[%s5017_s2 + $0x2a0] sm:$0xff] %vm2193_vm2, %v2133_v46  ;;  %v2571_v37 = vadd.f32 -1.0, %v2751_v62  ;;  %vm1846_vm14 = vcmp.gt.f32.partialorder %v3915_v30, 0.0  ;;  %v116_v62 = vld [vmem:[%s5016_s0 + $0x348] sm:$0xff] }
 0x103   :  { %2445 = vmatmul.msk.f32.gmra.mxu2 %vm159_vm0, %v114_v19  ;;  %2481 = vmatmul.msk.f32.gmra.mxu3 %vm159_vm0, %v150_v27  ;;  %v2062_v31 = vmul.f32 1.050701, %v1918_v55  ;;  %2758 = vpow2.f32 %v1357_v5  ;;  %2314 = vst.msk [vmem:[%s5017_s2 + $0x3c0] sm:$0xff] %vm2193_vm2, %v2169_v25  ;;  %v2607_v38 = vadd.f32 -1.0, %v2753_v56  ;;  %v1429_v11 = vmul.f32 1.442695, %v1163_v14 }
 0x104   :  { %v2755_v32 = vpop.eup %2754  ;;  %v1954_v24 = vsel %vm1810_vm13, %v3869_v44, %v1666_v29  ;;  %v1056_v18 = vmin.f32 %v3995_v8, 0.0  ;;  %v1702_v7 = vmul.f32 1.6732632, %v2571_v37  ;;  %vm1882_vm15 = vcmp.gt.f32.partialorder %v3917_v53, 0.0  ;;  %v152_v25 = vld [vmem:[%s5016_s0 + $0x468] sm:$0xff] }
 0x105   :  { %2207 = vst.msk [vmem:[%s5017_s2 + $0x68] sm:$0xff] %vm2193_vm2, %v2062_v31  ;;  %v2098_v6 = vmul.f32 1.050701, %v1954_v24  ;;  %v2500_v44 = vadd.f32 -1.0, %v2755_v32  ;;  %v1738_v20 = vmul.f32 1.6732632, %v2607_v38  ;;  %2760 = vpow2.f32 %v1429_v11 }
 0x106   :  { %v4043_v40 = vpop.f32.mrf.mxu2  ;;  %v4045_v43 = vpop.f32.mrf.mxu3  ;;  %v1215_v21 = vmul.f32 1.442695, %v1056_v18  ;;  %v1990_v36 = vsel %vm1846_vm14, %v3915_v30, %v1702_v7  ;;  %vm1775_vm1 = vcmp.gt.f32.partialorder %v3930_v41, 0.0  ;;  %v1092_v58 = vmin.f32 %v3997_v61, 0.0 }
 0x107   :  { %v4048_v12 = vpop.f32.mrf.mxu0  ;;  %v2757_v48 = vpop.eup %2756  ;;  %2243 = vst.msk [vmem:[%s5017_s2 + $0x188] sm:$0xff] %vm2193_vm2, %v2098_v6  ;;  %v1631_v54 = vmul.f32 1.6732632, %v2500_v44  ;;  %v2134_v60 = vmul.f32 1.050701, %v1990_v36  ;;  %v2026_v50 = vsel %vm1882_vm15, %v3917_v53, %v1738_v20  ;;  %v1128_v30 = vmin.f32 %v4043_v40, 0.0 }
 0x108   :  { %v4050_v33 = vpop.f32.mrf.mxu1  ;;  %v2536_v22 = vadd.f32 -1.0, %v2757_v48  ;;  %2762 = vpow2.f32 %v1215_v21  ;;  %v2170_v42 = vmul.f32 1.050701, %v2026_v50  ;;  %v1287_v23 = vmul.f32 1.442695, %v1092_v58  ;;  %v81_v58 = vld [vmem:[%s5016_s0 + $0x230] sm:$0xff] }
 0x109   :  { %v2759_v52 = vpop.eup %2758  ;;  %v1919_v63 = vsel %vm1775_vm1, %v3930_v41, %v1631_v54  ;;  %2279 = vst.msk [vmem:[%s5017_s2 + $0x2a8] sm:$0xff] %vm2193_vm2, %v2134_v60  ;;  %vm1811_vm3 = vcmp.gt.f32.partialorder %v3932_v35, 0.0  ;;  %v1359_v41 = vmul.f32 1.442695, %v1128_v30  ;;  %v1164_v0 = vmin.f32 %v4045_v43, 0.0  ;;  %v45_v54 = vld [vmem:[%s5016_s0 + $0x110] sm:$0xff] }
 0x10a   :  { %2374 = vmatmul.msk.f32.gmra.mxu0 %vm159_vm0, %v43_v39  ;;  %2410 = vmatmul.msk.f32.gmra.mxu1 %vm159_vm0, %v79_v1  ;;  %v2063_v26 = vmul.f32 1.050701, %v1919_v63  ;;  %v1667_v53 = vmul.f32 1.6732632, %v2536_v22  ;;  %v2572_v28 = vadd.f32 -1.0, %v2759_v52  ;;  %2315 = vst.msk [vmem:[%s5017_s2 + $0x3c8] sm:$0xff] %vm2193_vm2, %v2170_v42  ;;  %2764 = vpow2.f32 %v1287_v23 }
 0x10b   :  { %2446 = vmatmul.msk.f32.gmra.mxu2 %vm159_vm0, %v115_v47  ;;  %2482 = vmatmul.msk.f32.gmra.mxu3 %vm159_vm0, %v151_v59  ;;  %v2761_v2 = vpop.eup %2760  ;;  %vm1847_vm4 = vcmp.gt.f32.partialorder %v3978_v51, 0.0  ;;  %v1057_v3 = vmin.f32 %v4048_v12, 0.0  ;;  %2766 = vpow2.f32 %v1359_v41  ;;  %v1431_v10 = vmul.f32 1.442695, %v1164_v0  ;;  %v117_v63 = vld [vmem:[%s5016_s0 + $0x350] sm:$0xff] }
 0x10c   :  { %2208 = vst.msk [vmem:[%s5017_s2 + $0x70] sm:$0xff] %vm2193_vm2, %v2063_v26  ;;  %v1955_v19 = vsel %vm1811_vm3, %v3932_v35, %v1667_v53  ;;  %v1703_v27 = vmul.f32 1.6732632, %v2572_v28  ;;  %v2608_v9 = vadd.f32 -1.0, %v2761_v2  ;;  %v80_v35 = vld [vmem:[%s5016_s0 + $0x228] sm:$0xff]  ;;  %vm1883_vm5 = vcmp.gt.f32.partialorder %v3980_v34, 0.0 }
 0x10d   :  { %v2099_v45 = vmul.f32 1.050701, %v1955_v19  ;;  %v1217_v4 = vmul.f32 1.442695, %v1057_v3  ;;  %v1093_v46 = vmin.f32 %v4050_v33, 0.0  ;;  %2768 = vpow2.f32 %v1431_v10 }
 0x10e   :  { %v4094_v13 = vpop.f32.mrf.mxu2  ;;  %v4096_v16 = vpop.f32.mrf.mxu3  ;;  %v1991_v15 = vsel %vm1847_vm4, %v3978_v51, %v1703_v27  ;;  %v1739_v55 = vmul.f32 1.6732632, %v2608_v9  ;;  %vm1776_vm6 = vcmp.gt.f32.partialorder %v3995_v8, 0.0  ;;  %vm1812_vm7 = vcmp.gt.f32.partialorder %v3997_v61, 0.0 }
 0x10f   :  { %v2763_v17 = vpop.eup %2762  ;;  %v4104_v57 = vpop.f32.mrf.mxu0  ;;  %2244 = vst.msk [vmem:[%s5017_s2 + $0x190] sm:$0xff] %vm2193_vm2, %v2099_v45  ;;  %v2135_v51 = vmul.f32 1.050701, %v1991_v15  ;;  %2770 = vpow2.f32 %v1217_v4  ;;  %v1289_v14 = vmul.f32 1.442695, %v1093_v46  ;;  %v1129_v56 = vmin.f32 %v4094_v13, 0.0 }
 0x110   :  { %v4106_v5 = vpop.f32.mrf.mxu1  ;;  %v2501_v29 = vadd.f32 -1.0, %v2763_v17  ;;  %v2765_v31 = vpop.eup %2764  ;;  %v2027_v37 = vsel %vm1883_vm5, %v3980_v34, %v1739_v55  ;;  %v1165_v24 = vmin.f32 %v4096_v16, 0.0  ;;  %vm1848_vm8 = vcmp.gt.f32.partialorder %v4043_v40, 0.0 }
 0x111   :  { %2280 = vst.msk [vmem:[%s5017_s2 + $0x2b0] sm:$0xff] %vm2193_vm2, %v2135_v51  ;;  %v2171_v38 = vmul.f32 1.050701, %v2027_v37  ;;  %v2537_v11 = vadd.f32 -1.0, %v2765_v31  ;;  %2772 = vpow2.f32 %v1289_v14  ;;  %v1361_v18 = vmul.f32 1.442695, %v1129_v56  ;;  %v2767_v39 = vpop.eup %2766 }
 0x112   :  { %v1632_v32 = vmul.f32 1.6732632, %v2501_v29  ;;  %2375 = vmatmul.msk.f32.gmra.mxu0 %vm159_vm0, %v44_v49  ;;  %2411 = vmatmul.msk.f32.gmra.mxu1 %vm159_vm0, %v80_v35  ;;  %v1433_v1 = vmul.f32 1.442695, %v1165_v24  ;;  %v1058_v6 = vmin.f32 %v4104_v57, 0.0  ;;  %v2573_v20 = vadd.f32 -1.0, %v2767_v39 }
 0x113   :  { %2447 = vmatmul.msk.f32.gmra.mxu2 %vm159_vm0, %v116_v62  ;;  %2483 = vmatmul.msk.f32.gmra.mxu3 %vm159_vm0, %v152_v25  ;;  %2316 = vst.msk [vmem:[%s5017_s2 + $0x3d0] sm:$0xff] %vm2193_vm2, %v2171_v38  ;;  %v1668_v44 = vmul.f32 1.6732632, %v2537_v11  ;;  %2774 = vpow2.f32 %v1361_v18  ;;  %v2769_v21 = vpop.eup %2768  ;;  %vm1884_vm9 = vcmp.gt.f32.partialorder %v4045_v43, 0.0  ;;  %vm1777_vm10 = vcmp.gt.f32.partialorder %v4048_v12, 0.0  ;;  %v46_v62 = vld [vmem:[%s5016_s0 + $0x118] sm:$0xff] }
 0x114   :  { %v1920_v34 = vsel %vm1776_vm6, %v3995_v8, %v1632_v32  ;;  %2776 = vpow2.f32 %v1433_v1  ;;  %v1219_v47 = vmul.f32 1.442695, %v1058_v6  ;;  %v1094_v8 = vmin.f32 %v4106_v5, 0.0  ;;  %v82_v56 = vld [vmem:[%s5016_s0 + $0x238] sm:$0xff] }
 0x115   :  { %v2064_v7 = vmul.f32 1.050701, %v1920_v34  ;;  %v2771_v59 = vpop.eup %2770  ;;  %v1956_v60 = vsel %vm1812_vm7, %v3997_v61, %v1668_v44  ;;  %v1704_v50 = vmul.f32 1.6732632, %v2573_v20  ;;  %v2609_v22 = vadd.f32 -1.0, %v2769_v21  ;;  %v153_v61 = vld [vmem:[%s5016_s0 + $0x470] sm:$0xff] }
 0x116   :  { %v4144_v48 = vpop.f32.mrf.mxu2  ;;  %v4146_v36 = vpop.f32.mrf.mxu3  ;;  %v2100_v23 = vmul.f32 1.050701, %v1956_v60  ;;  %v2502_v30 = vadd.f32 -1.0, %v2771_v59  ;;  %2778 = vpow2.f32 %v1219_v47  ;;  %v1291_v26 = vmul.f32 1.442695, %v1094_v8  ;;  %v118_v34 = vld [vmem:[%s5016_s0 + $0x358] sm:$0xff] }
 0x117   :  { %2209 = vst.msk [vmem:[%s5017_s2 + $0x78] sm:$0xff] %vm2193_vm2, %v2064_v7  ;;  %v4162_v52 = vpop.f32.mrf.mxu0  ;;  %v2773_v53 = vpop.eup %2772  ;;  %v1992_v28 = vsel %vm1848_vm8, %v4043_v40, %v1704_v50  ;;  %v1740_v41 = vmul.f32 1.6732632, %v2609_v22  ;;  %vm1813_vm11 = vcmp.gt.f32.partialorder %v4050_v33, 0.0  ;;  %v1130_v0 = vmin.f32 %v4144_v48, 0.0  ;;  %v154_v1 = vld [vmem:[%s5016_s0 + $0x478] sm:$0xff] }
 0x118   :  { %v4164_v42 = vpop.f32.mrf.mxu1  ;;  %2245 = vst.msk [vmem:[%s5017_s2 + $0x198] sm:$0xff] %vm2193_vm2, %v2100_v23  ;;  %v2136_v2 = vmul.f32 1.050701, %v1992_v28  ;;  %v1633_v19 = vmul.f32 1.6732632, %v2502_v30  ;;  %v2538_v27 = vadd.f32 -1.0, %v2773_v53  ;;  %2780 = vpow2.f32 %v1291_v26 }
 0x119   :  { %v2775_v3 = vpop.eup %2774  ;;  %v2028_v40 = vsel %vm1884_vm9, %v4045_v43, %v1740_v41  ;;  %vm1849_vm12 = vcmp.gt.f32.partialorder %v4094_v13, 0.0  ;;  %v1363_v49 = vmul.f32 1.442695, %v1130_v0  ;;  %v1166_v45 = vmin.f32 %v4146_v36, 0.0 }
 0x11a   :  { %2376 = vmatmul.msk.f32.gmra.mxu0 %vm159_vm0, %v45_v54  ;;  %2412 = vmatmul.msk.f32.gmra.mxu1 %vm159_vm0, %v81_v58  ;;  %v2777_v9 = vpop.eup %2776  ;;  %2281 = vst.msk [vmem:[%s5017_s2 + $0x2b8] sm:$0xff] %vm2193_vm2, %v2136_v2  ;;  %v2172_v10 = vmul.f32 1.050701, %v2028_v40  ;;  %v1921_v43 = vsel %vm1777_vm10, %v4048_v12, %v1633_v19  ;;  %v1669_v35 = vmul.f32 1.6732632, %v2538_v27  ;;  %v2574_v17 = vadd.f32 -1.0, %v2775_v3 }
 0x11b   :  { %2448 = vmatmul.msk.f32.gmra.mxu2 %vm159_vm0, %v117_v63  ;;  %2484 = vmatmul.msk.f32.gmra.mxu3 %vm159_vm0, %v153_v61  ;;  %v2065_v15 = vmul.f32 1.050701, %v1921_v43  ;;  %v2610_v4 = vadd.f32 -1.0, %v2777_v9  ;;  %2782 = vpow2.f32 %v1363_v49  ;;  %v1435_v46 = vmul.f32 1.442695, %v1166_v45 }
 0x11c   :  { %v2779_v25 = vpop.eup %2778  ;;  %2317 = vst.msk [vmem:[%s5017_s2 + $0x3d8] sm:$0xff] %vm2193_vm2, %v2172_v10  ;;  %v1957_v12 = vsel %vm1813_vm11, %v4050_v33, %v1669_v35  ;;  %v1705_v51 = vmul.f32 1.6732632, %v2574_v17  ;;  %vm1885_vm13 = vcmp.gt.f32.partialorder %v4096_v16, 0.0  ;;  %v1059_v55 = vmin.f32 %v4162_v52, 0.0 }
 0x11d   :  { %2210 = vst.msk [vmem:[%s5017_s2 + $0x80] sm:$0xff] %vm2193_vm2, %v2065_v15  ;;  %v2101_v31 = vmul.f32 1.050701, %v1957_v12  ;;  %v1741_v33 = vmul.f32 1.6732632, %v2610_v4  ;;  %v2503_v37 = vadd.f32 -1.0, %v2779_v25  ;;  %2784 = vpow2.f32 %v1435_v46 }
 0x11e   :  { %v4209_v29 = vpop.f32.mrf.mxu2  ;;  %v4211_v14 = vpop.f32.mrf.mxu3  ;;  %v1993_v11 = vsel %vm1849_vm12, %v4094_v13, %v1705_v51  ;;  %vm1778_vm14 = vcmp.gt.f32.partialorder %v4104_v57, 0.0  ;;  %v1221_v18 = vmul.f32 1.442695, %v1059_v55  ;;  %v1095_v39 = vmin.f32 %v4164_v42, 0.0 }
 0x11f   :  { %v4220_v32 = vpop.f32.mrf.mxu0  ;;  %v2781_v38 = vpop.eup %2780  ;;  %2246 = vst.msk [vmem:[%s5017_s2 + $0x1a0] sm:$0xff] %vm2193_vm2, %v2101_v31  ;;  %v2137_v6 = vmul.f32 1.050701, %v1993_v11  ;;  %v2029_v13 = vsel %vm1885_vm13, %v4096_v16, %v1741_v33  ;;  %v1634_v7 = vmul.f32 1.6732632, %v2503_v37  ;;  %v1131_v47 = vmin.f32 %v4209_v29, 0.0 }
 0x120   :  { %v4222_v24 = vpop.f32.mrf.mxu1  ;;  %v2539_v44 = vadd.f32 -1.0, %v2781_v38  ;;  %v2173_v20 = vmul.f32 1.050701, %v2029_v13  ;;  %2786 = vpow2.f32 %v1221_v18  ;;  %v1293_v21 = vmul.f32 1.442695, %v1095_v39 }
 0x121   :  { %v2783_v8 = vpop.eup %2782  ;;  %2282 = vst.msk [vmem:[%s5017_s2 + $0x2c0] sm:$0xff] %vm2193_vm2, %v2137_v6  ;;  %v1922_v16 = vsel %vm1778_vm14, %v4104_v57, %v1634_v7  ;;  %vm1814_vm15 = vcmp.gt.f32.partialorder %v4106_v5, 0.0  ;;  %v1167_v58 = vmin.f32 %v4211_v14, 0.0  ;;  %v1365_v50 = vmul.f32 1.442695, %v1131_v47 }
 0x122   :  { %2377 = vmatmul.msk.f32.gmra.mxu0 %vm159_vm0, %v46_v62  ;;  %2413 = vmatmul.msk.f32.gmra.mxu1 %vm159_vm0, %v82_v56  ;;  %v1670_v54 = vmul.f32 1.6732632, %v2539_v44  ;;  %2318 = vst.msk [vmem:[%s5017_s2 + $0x3e0] sm:$0xff] %vm2193_vm2, %v2173_v20  ;;  %v2066_v59 = vmul.f32 1.050701, %v1922_v16  ;;  %v2575_v60 = vadd.f32 -1.0, %v2783_v8  ;;  %2788 = vpow2.f32 %v1293_v21 }
 0x123   :  { %2449 = vmatmul.msk.f32.gmra.mxu2 %vm159_vm0, %v118_v34  ;;  %2485 = vmatmul.msk.f32.gmra.mxu3 %vm159_vm0, %v154_v1  ;;  %v2785_v22 = vpop.eup %2784  ;;  %vm1850_vm1 = vcmp.gt.f32.partialorder %v4144_v48, 0.0  ;;  %v1437_v63 = vmul.f32 1.442695, %v1167_v58  ;;  %v1060_v23 = vmin.f32 %v4220_v32, 0.0  ;;  %2790 = vpow2.f32 %v1365_v50 }
 0x124   :  { %v1958_v57 = vsel %vm1814_vm15, %v4106_v5, %v1670_v54  ;;  %2211 = vst.msk [vmem:[%s5017_s2 + $0x88] sm:$0xff] %vm2193_vm2, %v2066_v59  ;;  %v1706_v26 = vmul.f32 1.6732632, %v2575_v60  ;;  %v2611_v61 = vadd.f32 -1.0, %v2785_v22  ;;  %vm1886_vm0 = vcmp.gt.f32.partialorder %v4146_v36, 0.0 }
 0x125   :  { %v2102_v30 = vmul.f32 1.050701, %v1958_v57  ;;  %2792 = vpow2.f32 %v1437_v63  ;;  %v1223_v5 = vmul.f32 1.442695, %v1060_v23  ;;  %v1096_v41 = vmin.f32 %v4222_v24, 0.0 }
 0x126   :  { %v4267_v53 = vpop.f32.mrf.mxu2  ;;  %v4269_v28 = vpop.f32.mrf.mxu3  ;;  %v1994_v27 = vsel %vm1850_vm1, %v4144_v48, %v1706_v26  ;;  %v1742_v3 = vmul.f32 1.6732632, %v2611_v61  ;;  %vm1779_vm3 = vcmp.gt.f32.partialorder %v4162_v52, 0.0  ;;  %vm1815_vm4 = vcmp.gt.f32.partialorder %v4164_v42, 0.0 }
 0x127   :  { %v4273_v0 = vpop.f32.mrf.mxu0  ;;  %v2787_v19 = vpop.eup %2786  ;;  %2247 = vst.msk [vmem:[%s5017_s2 + $0x1a8] sm:$0xff] %vm2193_vm2, %v2102_v30  ;;  %v1132_v40 = vmin.f32 %v4267_v53, 0.0  ;;  %v2138_v49 = vmul.f32 1.050701, %v1994_v27  ;;  %2794 = vpow2.f32 %v1223_v5  ;;  %v1295_v9 = vmul.f32 1.442695, %v1096_v41 }
 0x128   :  { %v4275_v2 = vpop.f32.mrf.mxu1  ;;  %v2504_v45 = vadd.f32 -1.0, %v2787_v19  ;;  %v2789_v10 = vpop.eup %2788  ;;  %v2030_v43 = vsel %vm1886_vm0, %v4146_v36, %v1742_v3  ;;  %v1168_v17 = vmin.f32 %v4269_v28, 0.0  ;;  %vm1851_vm5 = vcmp.gt.f32.partialorder %v4209_v29, 0.0 }
 0x129   :  { %v1367_v35 = vmul.f32 1.442695, %v1132_v40  ;;  %2283 = vst.msk [vmem:[%s5017_s2 + $0x2c8] sm:$0xff] %vm2193_vm2, %v2138_v49  ;;  %v2174_v48 = vmul.f32 1.050701, %v2030_v43  ;;  %v2540_v4 = vadd.f32 -1.0, %v2789_v10  ;;  %2796 = vpow2.f32 %v1295_v9  ;;  %v2791_v46 = vpop.eup %2790 }
 0x12a   :  { %v1635_v15 = vmul.f32 1.6732632, %v2504_v45  ;;  %v1439_v62 = vmul.f32 1.442695, %v1168_v17  ;;  %v1061_v36 = vmin.f32 %v4273_v0, 0.0  ;;  %v2576_v55 = vadd.f32 -1.0, %v2791_v46 }
 0x12b   :  { %2798 = vpow2.f32 %v1367_v35  ;;  %v2793_v25 = vpop.eup %2792  ;;  %2319 = vst.msk [vmem:[%s5017_s2 + $0x3e8] sm:$0xff] %vm2193_vm2, %v2174_v48  ;;  %v1671_v51 = vmul.f32 1.6732632, %v2540_v4  ;;  %vm1887_vm6 = vcmp.gt.f32.partialorder %v4211_v14, 0.0  ;;  %vm1780_vm7 = vcmp.gt.f32.partialorder %v4220_v32, 0.0 }
 0x12c   :  { %v1923_v12 = vsel %vm1779_vm3, %v4162_v52, %v1635_v15  ;;  %v2612_v31 = vadd.f32 -1.0, %v2793_v25  ;;  %2800 = vpow2.f32 %v1439_v62  ;;  %v1225_v33 = vmul.f32 1.442695, %v1061_v36 }
 0x12d   :  { %v2067_v56 = vmul.f32 1.050701, %v1923_v12  ;;  %v2795_v11 = vpop.eup %2794  ;;  %v1959_v18 = vsel %vm1815_vm4, %v4164_v42, %v1671_v51  ;;  %v1707_v39 = vmul.f32 1.6732632, %v2576_v55  ;;  %v1097_v52 = vmin.f32 %v4275_v2, 0.0 }
 0x12e   :  { %v4305_v37 = vpop.f32.mrf.mxu2  ;;  %v4307_v38 = vpop.f32.mrf.mxu3  ;;  %v2103_v6 = vmul.f32 1.050701, %v1959_v18  ;;  %v1743_v13 = vmul.f32 1.6732632, %v2612_v31  ;;  %v2505_v7 = vadd.f32 -1.0, %v2795_v11  ;;  %2802 = vpow2.f32 %v1225_v33 }
 0x12f   :  { %v4314_v34 = vpop.f32.mrf.mxu0  ;;  %2212 = vst.msk [vmem:[%s5017_s2 + $0x90] sm:$0xff] %vm2193_vm2, %v2067_v56  ;;  %v2797_v44 = vpop.eup %2796  ;;  %v1995_v42 = vsel %vm1851_vm5, %v4209_v29, %v1707_v39  ;;  %vm1816_vm8 = vcmp.gt.f32.partialorder %v4222_v24, 0.0  ;;  %v1297_v20 = vmul.f32 1.442695, %v1097_v52  ;;  %v1133_v21 = vmin.f32 %v4305_v37, 0.0 }
 0x130   :  { %v4316_v1 = vpop.f32.mrf.mxu1  ;;  %2248 = vst.msk [vmem:[%s5017_s2 + $0x1b0] sm:$0xff] %vm2193_vm2, %v2103_v6  ;;  %v2139_v8 = vmul.f32 1.050701, %v1995_v42  ;;  %v2031_v16 = vsel %vm1887_vm6, %v4211_v14, %v1743_v13  ;;  %v1636_v54 = vmul.f32 1.6732632, %v2505_v7  ;;  %v2541_v58 = vadd.f32 -1.0, %v2797_v44 }
 0x131   :  { %v2799_v47 = vpop.eup %2798  ;;  %v2175_v59 = vmul.f32 1.050701, %v2031_v16  ;;  %2804 = vpow2.f32 %v1297_v20  ;;  %v1369_v60 = vmul.f32 1.442695, %v1133_v21  ;;  %vm1852_vm9 = vcmp.gt.f32.partialorder %v4267_v53, 0.0 }
 0x132   :  { %v2577_v29 = vadd.f32 -1.0, %v2799_v47  ;;  %v2801_v50 = vpop.eup %2800  ;;  %2284 = vst.msk [vmem:[%s5017_s2 + $0x2d0] sm:$0xff] %vm2193_vm2, %v2139_v8  ;;  %v1924_v22 = vsel %vm1780_vm7, %v4220_v32, %v1636_v54  ;;  %v1672_v57 = vmul.f32 1.6732632, %v2541_v58  ;;  %v1169_v14 = vmin.f32 %v4307_v38, 0.0 }
 0x133   :  { %2320 = vst.msk [vmem:[%s5017_s2 + $0x3f0] sm:$0xff] %vm2193_vm2, %v2175_v59  ;;  %v2068_v63 = vmul.f32 1.050701, %v1924_v22  ;;  %v2613_v30 = vadd.f32 -1.0, %v2801_v50  ;;  %2806 = vpow2.f32 %v1369_v60  ;;  %vm1888_vm10 = vcmp.gt.f32.partialorder %v4269_v28, 0.0 }
 0x134   :  { %v1708_v23 = vmul.f32 1.6732632, %v2577_v29  ;;  %v2803_v26 = vpop.eup %2802  ;;  %v1960_v61 = vsel %vm1816_vm8, %v4222_v24, %v1672_v57  ;;  %v1441_v32 = vmul.f32 1.442695, %v1169_v14  ;;  %v1062_v5 = vmin.f32 %v4314_v34, 0.0 }
 0x135   :  { %2213 = vst.msk [vmem:[%s5017_s2 + $0x98] sm:$0xff] %vm2193_vm2, %v2068_v63  ;;  %v2104_v27 = vmul.f32 1.050701, %v1960_v61  ;;  %v1744_v24 = vmul.f32 1.6732632, %v2613_v30  ;;  %v2506_v40 = vadd.f32 -1.0, %v2803_v26 }
 0x136   :  { %v4352_v41 = vpop.f32.mrf.mxu2  ;;  %v4354_v19 = vpop.f32.mrf.mxu3  ;;  %v1996_v3 = vsel %vm1852_vm9, %v4267_v53, %v1708_v23  ;;  %2808 = vpow2.f32 %v1441_v32  ;;  %v1227_v10 = vmul.f32 1.442695, %v1062_v5  ;;  %v1098_v43 = vmin.f32 %v4316_v1, 0.0 }
 0x137   :  { %v4363_v49 = vpop.f32.mrf.mxu0  ;;  %v2140_v9 = vmul.f32 1.050701, %v1996_v3  ;;  %v2805_v35 = vpop.eup %2804  ;;  %2249 = vst.msk [vmem:[%s5017_s2 + $0x1b8] sm:$0xff] %vm2193_vm2, %v2104_v27  ;;  %v2032_v53 = vsel %vm1888_vm10, %v4269_v28, %v1744_v24  ;;  %v1637_v17 = vmul.f32 1.6732632, %v2506_v40  ;;  %vm1781_vm11 = vcmp.gt.f32.partialorder %v4273_v0, 0.0 }
 0x138   :  { %v4365_v45 = vpop.f32.mrf.mxu1  ;;  %v1134_v48 = vmin.f32 %v4352_v41, 0.0  ;;  %v2176_v15 = vmul.f32 1.050701, %v2032_v53  ;;  %v2542_v4 = vadd.f32 -1.0, %v2805_v35  ;;  %2810 = vpow2.f32 %v1227_v10 }
 0x139   :  { %2285 = vst.msk [vmem:[%s5017_s2 + $0x2d8] sm:$0xff] %vm2193_vm2, %v2140_v9  ;;  %v1299_v46 = vmul.f32 1.442695, %v1098_v43  ;;  %v2807_v62 = vpop.eup %2806  ;;  %v1925_v36 = vsel %vm1781_vm11, %v4273_v0, %v1637_v17  ;;  %vm1817_vm12 = vcmp.gt.f32.partialorder %v4275_v2, 0.0  ;;  %v1170_v25 = vmin.f32 %v4354_v19, 0.0 }
 0x13a   :  { %v1371_v28 = vmul.f32 1.442695, %v1134_v48  ;;  %2321 = vst.msk [vmem:[%s5017_s2 + $0x3f8] sm:$0xff] %vm2193_vm2, %v2176_v15  ;;  %v2069_v12 = vmul.f32 1.050701, %v1925_v36  ;;  %v2578_v55 = vadd.f32 -1.0, %v2807_v62 }
 0x13b   :  { %v1673_v51 = vmul.f32 1.6732632, %v2542_v4  ;;  %2812 = vpow2.f32 %v1299_v46  ;;  %vm1853_vm13 = vcmp.gt.f32.partialorder %v4305_v37, 0.0  ;;  %v1443_v56 = vmul.f32 1.442695, %v1170_v25 }
 0x13c   :  { %2814 = vpow2.f32 %v1371_v28  ;;  %v1063_v0 = vmin.f32 %v4363_v49, 0.0  ;;  %v2809_v31 = vpop.eup %2808  ;;  %2214 = vst.msk [vmem:[%s5017_s2 + $0xa0] sm:$0xff] %vm2193_vm2, %v2069_v12  ;;  %v1709_v11 = vmul.f32 1.6732632, %v2578_v55  ;;  %vm1889_vm14 = vcmp.gt.f32.partialorder %v4307_v38, 0.0 }
 0x13d   :  { %v1961_v33 = vsel %vm1817_vm12, %v4275_v2, %v1673_v51  ;;  %v1099_v18 = vmin.f32 %v4365_v45, 0.0  ;;  %v2614_v13 = vadd.f32 -1.0, %v2809_v31  ;;  %2816 = vpow2.f32 %v1443_v56 }
 0x13e   :  { %v4397_v39 = vpop.f32.mrf.mxu2  ;;  %v4399_v52 = vpop.f32.mrf.mxu3  ;;  %v2105_v6 = vmul.f32 1.050701, %v1961_v33  ;;  %v1229_v7 = vmul.f32 1.442695, %v1063_v0  ;;  %v1997_v2 = vsel %vm1853_vm13, %v4305_v37, %v1709_v11  ;;  %vm1782_vm15 = vcmp.gt.f32.partialorder %v4314_v34, 0.0 }
 0x13f   :  { %v4401_v44 = vpop.f32.mrf.mxu0  ;;  %v2811_v20 = vpop.eup %2810  ;;  %v1301_v21 = vmul.f32 1.442695, %v1099_v18  ;;  %v1135_v47 = vmin.f32 %v4397_v39, 0.0  ;;  %v2141_v8 = vmul.f32 1.050701, %v1997_v2  ;;  %vm1818_vm1 = vcmp.gt.f32.partialorder %v4316_v1, 0.0 }
 0x140   :  { %v4403_v42 = vpop.f32.mrf.mxu1  ;;  %2250 = vst.msk [vmem:[%s5017_s2 + $0x1c0] sm:$0xff] %vm2193_vm2, %v2105_v6  ;;  %v1745_v16 = vmul.f32 1.6732632, %v2614_v13  ;;  %v2507_v54 = vadd.f32 -1.0, %v2811_v20  ;;  %2818 = vpow2.f32 %v1229_v7  ;;  %v1171_v37 = vmin.f32 %v4399_v52, 0.0 }
 0x141   :  { %v2813_v58 = vpop.eup %2812  ;;  %2820 = vpow2.f32 %v1301_v21  ;;  %v1373_v59 = vmul.f32 1.442695, %v1135_v47  ;;  %2286 = vst.msk [vmem:[%s5017_s2 + $0x2e0] sm:$0xff] %vm2193_vm2, %v2141_v8  ;;  %vm1854_vm0 = vcmp.gt.f32.partialorder %v4352_v41, 0.0  ;;  %vm1890_vm3 = vcmp.gt.f32.partialorder %v4354_v19, 0.0 }
 0x142   :  { %v2815_v29 = vpop.eup %2814  ;;  %v2033_v60 = vsel %vm1889_vm14, %v4307_v38, %v1745_v16  ;;  %v1638_v50 = vmul.f32 1.6732632, %v2507_v54  ;;  %v2543_v22 = vadd.f32 -1.0, %v2813_v58  ;;  %v1445_v63 = vmul.f32 1.442695, %v1171_v37 }
 0x143   :  { %v2177_v57 = vmul.f32 1.050701, %v2033_v60  ;;  %v2579_v14 = vadd.f32 -1.0, %v2815_v29  ;;  %2822 = vpow2.f32 %v1373_v59  ;;  %v2817_v23 = vpop.eup %2816  ;;  %v1064_v61 = vmin.f32 %v4401_v44, 0.0 }
 0x144   :  { %v1926_v30 = vsel %vm1782_vm15, %v4314_v34, %v1638_v50  ;;  %v1674_v26 = vmul.f32 1.6732632, %v2543_v22  ;;  %v2615_v5 = vadd.f32 -1.0, %v2817_v23  ;;  %2824 = vpow2.f32 %v1445_v63 }
 0x145   :  { %2322 = vst.msk [vmem:[%s5017_s2 + $0x400] sm:$0xff] %vm2193_vm2, %v2177_v57  ;;  %v2070_v38 = vmul.f32 1.050701, %v1926_v30  ;;  %v1710_v32 = vmul.f32 1.6732632, %v2579_v14  ;;  %vm1783_vm4 = vcmp.gt.f32.partialorder %v4363_v49, 0.0 }
 0x146   :  { %v4433_v27 = vpop.f32.mrf.mxu2  ;;  %v4435_v3 = vpop.f32.mrf.mxu3  ;;  %v1962_v34 = vsel %vm1818_vm1, %v4316_v1, %v1674_v26  ;;  %v1231_v40 = vmul.f32 1.442695, %v1064_v61  ;;  %v1100_v9 = vmin.f32 %v4403_v42, 0.0  ;;  %v1746_v17 = vmul.f32 1.6732632, %v2615_v5 }
 0x147   :  { %v2819_v24 = vpop.eup %2818  ;;  %v4442_v10 = vpop.f32.mrf.mxu0  ;;  %2215 = vst.msk [vmem:[%s5017_s2 + $0xa8] sm:$0xff] %vm2193_vm2, %v2070_v38  ;;  %v2106_v53 = vmul.f32 1.050701, %v1962_v34  ;;  %v1998_v1 = vsel %vm1854_vm0, %v4352_v41, %v1710_v32  ;;  %vm1819_vm5 = vcmp.gt.f32.partialorder %v4365_v45, 0.0  ;;  %v1136_v41 = vmin.f32 %v4433_v27, 0.0 }
 0x148   :  { %v4444_v43 = vpop.f32.mrf.mxu1  ;;  %v2821_v35 = vpop.eup %2820  ;;  %v2508_v48 = vadd.f32 -1.0, %v2819_v24  ;;  %v2142_v15 = vmul.f32 1.050701, %v1998_v1  ;;  %2826 = vpow2.f32 %v1231_v40  ;;  %v1303_v46 = vmul.f32 1.442695, %v1100_v9 }
 0x149   :  { %v2544_v4 = vadd.f32 -1.0, %v2821_v35  ;;  %v2823_v62 = vpop.eup %2822  ;;  %2251 = vst.msk [vmem:[%s5017_s2 + $0x1c8] sm:$0xff] %vm2193_vm2, %v2106_v53  ;;  %v2034_v36 = vsel %vm1890_vm3, %v4354_v19, %v1746_v17  ;;  %vm1855_vm6 = vcmp.gt.f32.partialorder %v4397_v39, 0.0  ;;  %v1375_v19 = vmul.f32 1.442695, %v1136_v41 }
 0x14a   :  { %v1639_v28 = vmul.f32 1.6732632, %v2508_v48  ;;  %2287 = vst.msk [vmem:[%s5017_s2 + $0x2e8] sm:$0xff] %vm2193_vm2, %v2142_v15  ;;  %v2178_v25 = vmul.f32 1.050701, %v2034_v36  ;;  %v2580_v51 = vadd.f32 -1.0, %v2823_v62  ;;  %2828 = vpow2.f32 %v1303_v46  ;;  %v2825_v55 = vpop.eup %2824 }
 0x14b   :  { %v1675_v12 = vmul.f32 1.6732632, %v2544_v4  ;;  %v1172_v0 = vmin.f32 %v4435_v3, 0.0  ;;  %v2616_v18 = vadd.f32 -1.0, %v2825_v55  ;;  %2830 = vpow2.f32 %v1375_v19 }
 0x14c   :  { %v1927_v56 = vsel %vm1783_vm4, %v4363_v49, %v1639_v28  ;;  %2323 = vst.msk [vmem:[%s5017_s2 + $0x408] sm:$0xff] %vm2193_vm2, %v2178_v25  ;;  %v1711_v11 = vmul.f32 1.6732632, %v2580_v51  ;;  %v1065_v49 = vmin.f32 %v4442_v10, 0.0  ;;  %vm1891_vm7 = vcmp.gt.f32.partialorder %v4399_v52, 0.0 }
 0x14d   :  { %v2071_v31 = vmul.f32 1.050701, %v1927_v56  ;;  %v1963_v33 = vsel %vm1819_vm5, %v4365_v45, %v1675_v12  ;;  %v1447_v13 = vmul.f32 1.442695, %v1172_v0  ;;  %v1747_v21 = vmul.f32 1.6732632, %v2616_v18 }
 0x14e   :  { %v2107_v6 = vmul.f32 1.050701, %v1963_v33  ;;  %v4477_v7 = vpop.f32.mrf.mxu2  ;;  %v4479_v20 = vpop.f32.mrf.mxu3  ;;  %v1999_v45 = vsel %vm1855_vm6, %v4397_v39, %v1711_v11  ;;  %v1101_v47 = vmin.f32 %v4444_v43, 0.0  ;;  %v1233_v59 = vmul.f32 1.442695, %v1065_v49 }
 0x14f   :  { %v2827_v2 = vpop.eup %2826  ;;  %2216 = vst.msk [vmem:[%s5017_s2 + $0xb0] sm:$0xff] %vm2193_vm2, %v2071_v31  ;;  %v4490_v8 = vpop.f32.mrf.mxu0  ;;  %v2143_v54 = vmul.f32 1.050701, %v1999_v45  ;;  %2832 = vpow2.f32 %v1447_v13  ;;  %v2035_v39 = vsel %vm1891_vm7, %v4399_v52, %v1747_v21  ;;  %vm1784_vm8 = vcmp.gt.f32.partialorder %v4401_v44, 0.0 }
 0x150   :  { %v4492_v16 = vpop.f32.mrf.mxu1  ;;  %2252 = vst.msk [vmem:[%s5017_s2 + $0x1d0] sm:$0xff] %vm2193_vm2, %v2107_v6  ;;  %v2509_v58 = vadd.f32 -1.0, %v2827_v2  ;;  %v2829_v37 = vpop.eup %2828  ;;  %v1305_v29 = vmul.f32 1.442695, %v1101_v47  ;;  %v1137_v60 = vmin.f32 %v4477_v7, 0.0  ;;  %2834 = vpow2.f32 %v1233_v59 }
 0x151   :  { %2288 = vst.msk [vmem:[%s5017_s2 + $0x2f0] sm:$0xff] %vm2193_vm2, %v2143_v54  ;;  %v2179_v50 = vmul.f32 1.050701, %v2035_v39  ;;  %v2545_v57 = vadd.f32 -1.0, %v2829_v37  ;;  %vm1820_vm9 = vcmp.gt.f32.partialorder %v4403_v42, 0.0  ;;  %v1173_v52 = vmin.f32 %v4479_v20, 0.0  ;;  %v2831_v63 = vpop.eup %2830 }
 0x152   :  { %v1640_v22 = vmul.f32 1.6732632, %v2509_v58  ;;  %2836 = vpow2.f32 %v1305_v29  ;;  %v1377_v14 = vmul.f32 1.442695, %v1137_v60  ;;  %vm1856_vm10 = vcmp.gt.f32.partialorder %v4433_v27, 0.0 }
 0x153   :  { %2324 = vst.msk [vmem:[%s5017_s2 + $0x410] sm:$0xff] %vm2193_vm2, %v2179_v50  ;;  %v1676_v30 = vmul.f32 1.6732632, %v2545_v57  ;;  %v1066_v26 = vmin.f32 %v4490_v8, 0.0  ;;  %v2581_v38 = vadd.f32 -1.0, %v2831_v63  ;;  %vm1892_vm11 = vcmp.gt.f32.partialorder %v4435_v3, 0.0 }
 0x154   :  { %v1928_v23 = vsel %vm1784_vm8, %v4401_v44, %v1640_v22  ;;  %2838 = vpow2.f32 %v1377_v14  ;;  %v1449_v32 = vmul.f32 1.442695, %v1173_v52  ;;  %v1102_v40 = vmin.f32 %v4492_v16, 0.0 }
 0x155   :  { %v2072_v61 = vmul.f32 1.050701, %v1928_v23  ;;  %v2833_v5 = vpop.eup %2832  ;;  %v1964_v24 = vsel %vm1820_vm9, %v4403_v42, %v1676_v30  ;;  %v1235_v34 = vmul.f32 1.442695, %v1066_v26  ;;  %v1712_v53 = vmul.f32 1.6732632, %v2581_v38 }
 0x156   :  { %v4517_v9 = vpop.f32.mrf.mxu2  ;;  %v4519_v44 = vpop.f32.mrf.mxu3  ;;  %v2108_v35 = vmul.f32 1.050701, %v1964_v24  ;;  %v2617_v1 = vadd.f32 -1.0, %v2833_v5  ;;  %2840 = vpow2.f32 %v1449_v32  ;;  %vm1785_vm12 = vcmp.gt.f32.partialorder %v4442_v10, 0.0 }
 0x157   :  { %2217 = vst.msk [vmem:[%s5017_s2 + $0xb8] sm:$0xff] %vm2193_vm2, %v2072_v61  ;;  %v4525_v17 = vpop.f32.mrf.mxu0  ;;  %v2835_v48 = vpop.eup %2834  ;;  %2842 = vpow2.f32 %v1235_v34  ;;  %v1307_v15 = vmul.f32 1.442695, %v1102_v40  ;;  %v1138_v4 = vmin.f32 %v4517_v9, 0.0  ;;  %v2000_v62 = vsel %vm1856_vm10, %v4433_v27, %v1712_v53 }
 0x158   :  { %v4527_v42 = vpop.f32.mrf.mxu1  ;;  %v2837_v46 = vpop.eup %2836  ;;  %2253 = vst.msk [vmem:[%s5017_s2 + $0x1d8] sm:$0xff] %vm2193_vm2, %v2108_v35  ;;  %v1748_v36 = vmul.f32 1.6732632, %v2617_v1  ;;  %v2510_v28 = vadd.f32 -1.0, %v2835_v48  ;;  %vm1821_vm13 = vcmp.gt.f32.partialorder %v4444_v43, 0.0  ;;  %vm1857_vm14 = vcmp.gt.f32.partialorder %v4477_v7, 0.0 }
 0x159   :  { %v2144_v41 = vmul.f32 1.050701, %v2000_v62  ;;  %v2546_v25 = vadd.f32 -1.0, %v2837_v46  ;;  %2844 = vpow2.f32 %v1307_v15  ;;  %v1379_v12 = vmul.f32 1.442695, %v1138_v4 }
 0x15a   :  { %v2839_v51 = vpop.eup %2838  ;;  %v2036_v55 = vsel %vm1892_vm11, %v4435_v3, %v1748_v36  ;;  %v1641_v56 = vmul.f32 1.6732632, %v2510_v28  ;;  %v1174_v19 = vmin.f32 %v4519_v44, 0.0  ;;  %vm1893_vm15 = vcmp.gt.f32.partialorder %v4479_v20, 0.0 }
 0x15b   :  { %2289 = vst.msk [vmem:[%s5017_s2 + $0x2f8] sm:$0xff] %vm2193_vm2, %v2144_v41  ;;  %v2180_v27 = vmul.f32 1.050701, %v2036_v55  ;;  %v1677_v0 = vmul.f32 1.6732632, %v2546_v25  ;;  %v2582_v31 = vadd.f32 -1.0, %v2839_v51  ;;  %2846 = vpow2.f32 %v1379_v12 }
 0x15c   :  { %v2841_v33 = vpop.eup %2840  ;;  %v1929_v11 = vsel %vm1785_vm12, %v4442_v10, %v1641_v56  ;;  %v1451_v3 = vmul.f32 1.442695, %v1174_v19  ;;  %v1067_v18 = vmin.f32 %v4525_v17, 0.0  ;;  %vm1786_vm1 = vcmp.gt.f32.partialorder %v4490_v8, 0.0 }
 0x15d   :  { %v2843_v6 = vpop.eup %2842  ;;  %2325 = vst.msk [vmem:[%s5017_s2 + $0x418] sm:$0xff] %vm2193_vm2, %v2180_v27  ;;  %v2073_v13 = vmul.f32 1.050701, %v1929_v11  ;;  %v1965_v49 = vsel %vm1821_vm13, %v4444_v43, %v1677_v0  ;;  %v1713_v2 = vmul.f32 1.6732632, %v2582_v31  ;;  %v2618_v45 = vadd.f32 -1.0, %v2841_v33 }
 0x15e   :  { %v4560_v21 = vpop.f32.mrf.mxu2  ;;  %v4562_v10 = vpop.f32.mrf.mxu3  ;;  %v2109_v47 = vmul.f32 1.050701, %v1965_v49  ;;  %v2511_v54 = vadd.f32 -1.0, %v2843_v6  ;;  %2848 = vpow2.f32 %v1451_v3  ;;  %v1237_v58 = vmul.f32 1.442695, %v1067_v18 }
 0x15f   :  { %v4564_v59 = vpop.f32.mrf.mxu0  ;;  %v2845_v39 = vpop.eup %2844  ;;  %2218 = vst.msk [vmem:[%s5017_s2 + $0xc0] sm:$0xff] %vm2193_vm2, %v2073_v13  ;;  %v2001_v43 = vsel %vm1857_vm14, %v4477_v7, %v1713_v2  ;;  %v1749_v29 = vmul.f32 1.6732632, %v2618_v45  ;;  %v1103_v60 = vmin.f32 %v4527_v42, 0.0  ;;  %vm1822_vm0 = vcmp.gt.f32.partialorder %v4492_v16, 0.0 }
 0x160   :  { %v4566_v37 = vpop.f32.mrf.mxu1  ;;  %2254 = vst.msk [vmem:[%s5017_s2 + $0x1e0] sm:$0xff] %vm2193_vm2, %v2109_v47  ;;  %v2145_v50 = vmul.f32 1.050701, %v2001_v43  ;;  %v1642_v22 = vmul.f32 1.6732632, %v2511_v54  ;;  %v2547_v57 = vadd.f32 -1.0, %v2845_v39  ;;  %2850 = vpow2.f32 %v1237_v58 }
 0x161   :  { %v2847_v14 = vpop.eup %2846  ;;  %v2037_v52 = vsel %vm1893_vm15, %v4479_v20, %v1749_v29  ;;  %v1309_v7 = vmul.f32 1.442695, %v1103_v60  ;;  %v1139_v63 = vmin.f32 %v4560_v21, 0.0  ;;  %v1175_v20 = vmin.f32 %v4562_v10, 0.0 }
 0x162   :  { %2290 = vst.msk [vmem:[%s5017_s2 + $0x300] sm:$0xff] %vm2193_vm2, %v2145_v50  ;;  %v2181_v23 = vmul.f32 1.050701, %v2037_v52  ;;  %v1930_v30 = vsel %vm1786_vm1, %v4490_v8, %v1642_v22  ;;  %v1678_v26 = vmul.f32 1.6732632, %v2547_v57  ;;  %v2583_v61 = vadd.f32 -1.0, %v2847_v14 }
 0x163   :  { %v2074_v38 = vmul.f32 1.050701, %v1930_v30  ;;  %2852 = vpow2.f32 %v1309_v7  ;;  %v1381_v32 = vmul.f32 1.442695, %v1139_v63  ;;  %vm1858_vm3 = vcmp.gt.f32.partialorder %v4517_v9, 0.0 }
 0x164   :  { %v2849_v5 = vpop.eup %2848  ;;  %2326 = vst.msk [vmem:[%s5017_s2 + $0x420] sm:$0xff] %vm2193_vm2, %v2181_v23  ;;  %v1966_v24 = vsel %vm1822_vm0, %v4492_v16, %v1678_v26  ;;  %v1714_v34 = vmul.f32 1.6732632, %v2583_v61  ;;  %v1068_v8 = vmin.f32 %v4564_v59, 0.0  ;;  %v1453_v53 = vmul.f32 1.442695, %v1175_v20 }
 0x165   :  { %2219 = vst.msk [vmem:[%s5017_s2 + $0xc8] sm:$0xff] %vm2193_vm2, %v2074_v38  ;;  %v2110_v40 = vmul.f32 1.050701, %v1966_v24  ;;  %v2619_v35 = vadd.f32 -1.0, %v2849_v5  ;;  %2854 = vpow2.f32 %v1381_v32  ;;  %vm1894_vm4 = vcmp.gt.f32.partialorder %v4519_v44, 0.0 }
 0x166   :  { %v4603_v1 = vpop.f32.mrf.mxu2  ;;  %v4605_v48 = vpop.f32.mrf.mxu3  ;;  %v2002_v16 = vsel %vm1858_vm3, %v4517_v9, %v1714_v34  ;;  %v1239_v4 = vmul.f32 1.442695, %v1068_v8  ;;  %v1104_v46 = vmin.f32 %v4566_v37, 0.0  ;;  %2856 = vpow2.f32 %v1453_v53 }
 0x167   :  { %v2851_v15 = vpop.eup %2850  ;;  %v4610_v62 = vpop.f32.mrf.mxu0  ;;  %2255 = vst.msk [vmem:[%s5017_s2 + $0x1e8] sm:$0xff] %vm2193_vm2, %v2110_v40  ;;  %v2146_v28 = vmul.f32 1.050701, %v2002_v16  ;;  %v1750_v41 = vmul.f32 1.6732632, %v2619_v35  ;;  %vm1787_vm5 = vcmp.gt.f32.partialorder %v4525_v17, 0.0 }
 0x168   :  { %v4612_v36 = vpop.f32.mrf.mxu1  ;;  %v2512_v25 = vadd.f32 -1.0, %v2851_v15  ;;  %2858 = vpow2.f32 %v1239_v4  ;;  %v1311_v9 = vmul.f32 1.442695, %v1104_v46  ;;  %v1140_v12 = vmin.f32 %v4603_v1, 0.0 }
 0x169   :  { %v2853_v51 = vpop.eup %2852  ;;  %2291 = vst.msk [vmem:[%s5017_s2 + $0x308] sm:$0xff] %vm2193_vm2, %v2146_v28  ;;  %v2038_v55 = vsel %vm1894_vm4, %v4519_v44, %v1750_v41  ;;  %vm1823_vm6 = vcmp.gt.f32.partialorder %v4527_v42, 0.0  ;;  %v1176_v19 = vmin.f32 %v4605_v48, 0.0  ;;  %vm1859_vm7 = vcmp.gt.f32.partialorder %v4560_v21, 0.0 }
 0x16a   :  { %v1643_v56 = vmul.f32 1.6732632, %v2512_v25  ;;  %v2182_v27 = vmul.f32 1.050701, %v2038_v55  ;;  %v2548_v0 = vadd.f32 -1.0, %v2853_v51  ;;  %2860 = vpow2.f32 %v1311_v9 }
 0x16b   :  { %v1383_v31 = vmul.f32 1.442695, %v1140_v12  ;;  %v2855_v33 = vpop.eup %2854  ;;  %v1455_v3 = vmul.f32 1.442695, %v1176_v19  ;;  %v1069_v18 = vmin.f32 %v4610_v62, 0.0  ;;  %vm1895_vm8 = vcmp.gt.f32.partialorder %v4562_v10, 0.0 }
 0x16c   :  { %v1931_v11 = vsel %vm1787_vm5, %v4525_v17, %v1643_v56  ;;  %2327 = vst.msk [vmem:[%s5017_s2 + $0x428] sm:$0xff] %vm2193_vm2, %v2182_v27  ;;  %v1679_v6 = vmul.f32 1.6732632, %v2548_v0  ;;  %v2584_v13 = vadd.f32 -1.0, %v2855_v33  ;;  %v2857_v49 = vpop.eup %2856  ;;  %v1105_v17 = vmin.f32 %v4612_v36, 0.0 }
 0x16d   :  { %v2075_v44 = vmul.f32 1.050701, %v1931_v11  ;;  %2862 = vpow2.f32 %v1383_v31  ;;  %v1241_v2 = vmul.f32 1.442695, %v1069_v18  ;;  %v2620_v43 = vadd.f32 -1.0, %v2857_v49 }
 0x16e   :  { %2864 = vpow2.f32 %v1455_v3  ;;  %v4638_v45 = vpop.f32.mrf.mxu2  ;;  %v4640_v47 = vpop.f32.mrf.mxu3  ;;  %v1967_v58 = vsel %vm1823_vm6, %v4527_v42, %v1679_v6  ;;  %v1715_v39 = vmul.f32 1.6732632, %v2584_v13  ;;  %vm1788_vm9 = vcmp.gt.f32.partialorder %v4564_v59, 0.0 }
 0x16f   :  { %v2859_v54 = vpop.eup %2858  ;;  %2220 = vst.msk [vmem:[%s5017_s2 + $0xd0] sm:$0xff] %vm2193_vm2, %v2075_v44  ;;  %v4650_v29 = vpop.f32.mrf.mxu0  ;;  %v2111_v50 = vmul.f32 1.050701, %v1967_v58  ;;  %2866 = vpow2.f32 %v1241_v2  ;;  %v1313_v57 = vmul.f32 1.442695, %v1105_v17  ;;  %vm1824_vm10 = vcmp.gt.f32.partialorder %v4566_v37, 0.0 }
 0x170   :  { %v4652_v60 = vpop.f32.mrf.mxu1  ;;  %v2513_v22 = vadd.f32 -1.0, %v2859_v54  ;;  %v2861_v14 = vpop.eup %2860  ;;  %v2003_v52 = vsel %vm1859_vm7, %v4560_v21, %v1715_v39  ;;  %v1751_v7 = vmul.f32 1.6732632, %v2620_v43  ;;  %v1141_v42 = vmin.f32 %v4638_v45, 0.0 }
 0x171   :  { %2256 = vst.msk [vmem:[%s5017_s2 + $0x1f0] sm:$0xff] %vm2193_vm2, %v2111_v50  ;;  %v2147_v63 = vmul.f32 1.050701, %v2003_v52  ;;  %v2549_v30 = vadd.f32 -1.0, %v2861_v14  ;;  %2868 = vpow2.f32 %v1313_v57  ;;  %vm1860_vm11 = vcmp.gt.f32.partialorder %v4603_v1, 0.0 }
 0x172   :  { %v1644_v23 = vmul.f32 1.6732632, %v2513_v22  ;;  %v2039_v61 = vsel %vm1895_vm8, %v4562_v10, %v1751_v7  ;;  %v1385_v21 = vmul.f32 1.442695, %v1141_v42  ;;  %v1177_v38 = vmin.f32 %v4640_v47, 0.0 }
 0x173   :  { %v2863_v26 = vpop.eup %2862  ;;  %2292 = vst.msk [vmem:[%s5017_s2 + $0x310] sm:$0xff] %vm2193_vm2, %v2147_v63  ;;  %v2183_v20 = vmul.f32 1.050701, %v2039_v61  ;;  %v1680_v24 = vmul.f32 1.6732632, %v2549_v30  ;;  %vm1896_vm12 = vcmp.gt.f32.partialorder %v4605_v48, 0.0 }
 0x174   :  { %v2865_v32 = vpop.eup %2864  ;;  %v1932_v5 = vsel %vm1788_vm9, %v4564_v59, %v1644_v23  ;;  %v2585_v34 = vadd.f32 -1.0, %v2863_v26  ;;  %2870 = vpow2.f32 %v1385_v21  ;;  %v1457_v40 = vmul.f32 1.442695, %v1177_v38 }
 0x175   :  { %v2076_v8 = vmul.f32 1.050701, %v1932_v5  ;;  %v2621_v10 = vadd.f32 -1.0, %v2865_v32  ;;  %v2867_v35 = vpop.eup %2866  ;;  %2328 = vst.msk [vmem:[%s5017_s2 + $0x430] sm:$0xff] %vm2193_vm2, %v2183_v20  ;;  %v1968_v53 = vsel %vm1824_vm10, %v4566_v37, %v1680_v24  ;;  %v1070_v59 = vmin.f32 %v4650_v29, 0.0 }
 0x176   :  { %v1716_v15 = vmul.f32 1.6732632, %v2585_v34  ;;  %v4684_v16 = vpop.f32.mrf.mxu2  ;;  %v4686_v4 = vpop.f32.mrf.mxu3  ;;  %v2112_v46 = vmul.f32 1.050701, %v1968_v53  ;;  %v2514_v41 = vadd.f32 -1.0, %v2867_v35  ;;  %2872 = vpow2.f32 %v1457_v40 }
 0x177   :  { %2221 = vst.msk [vmem:[%s5017_s2 + $0xd8] sm:$0xff] %vm2193_vm2, %v2076_v8  ;;  %v1752_v28 = vmul.f32 1.6732632, %v2621_v10  ;;  %v4692_v25 = vpop.f32.mrf.mxu0  ;;  %v2869_v9 = vpop.eup %2868  ;;  %vm1789_vm13 = vcmp.gt.f32.partialorder %v4610_v62, 0.0  ;;  %v1243_v51 = vmul.f32 1.442695, %v1070_v59 }
 0x178   :  { %v4694_v37 = vpop.f32.mrf.mxu1  ;;  %v2004_v12 = vsel %vm1860_vm11, %v4603_v1, %v1716_v15  ;;  %v1106_v55 = vmin.f32 %v4652_v60, 0.0  ;;  %2257 = vst.msk [vmem:[%s5017_s2 + $0x1f8] sm:$0xff] %vm2193_vm2, %v2112_v46  ;;  %v1645_v27 = vmul.f32 1.6732632, %v2514_v41  ;;  %v2550_v0 = vadd.f32 -1.0, %v2869_v9 }
 0x179   :  { %v2148_v56 = vmul.f32 1.050701, %v2004_v12  ;;  %v2040_v19 = vsel %vm1896_vm12, %v4605_v48, %v1752_v28  ;;  %2874 = vpow2.f32 %v1243_v51  ;;  %v1142_v33 = vmin.f32 %v4684_v16, 0.0 }
 0x17a   :  { %v2184_v31 = vmul.f32 1.050701, %v2040_v19  ;;  %v1315_v1 = vmul.f32 1.442695, %v1106_v55  ;;  %v2871_v11 = vpop.eup %2870  ;;  %v1933_v3 = vsel %vm1789_vm13, %v4610_v62, %v1645_v27  ;;  %v1681_v18 = vmul.f32 1.6732632, %v2550_v0 }
 0x17b   :  { %2293 = vst.msk [vmem:[%s5017_s2 + $0x318] sm:$0xff] %vm2193_vm2, %v2148_v56  ;;  %vm1825_vm14 = vcmp.gt.f32.partialorder %v4612_v36, 0.0  ;;  %v1178_v48 = vmin.f32 %v4686_v4, 0.0  ;;  %v2077_v44 = vmul.f32 1.050701, %v1933_v3  ;;  %v2586_v6 = vadd.f32 -1.0, %v2871_v11 }
 0x17c   :  { %2329 = vst.msk [vmem:[%s5017_s2 + $0x438] sm:$0xff] %vm2193_vm2, %v2184_v31  ;;  %2876 = vpow2.f32 %v1315_v1  ;;  %v1387_v13 = vmul.f32 1.442695, %v1142_v33  ;;  %v2873_v49 = vpop.eup %2872  ;;  %v1969_v2 = vsel %vm1825_vm14, %v4612_v36, %v1681_v18  ;;  %vm1861_vm15 = vcmp.gt.f32.partialorder %v4638_v45, 0.0 }
 0x17d   :  { %v1459_v62 = vmul.f32 1.442695, %v1178_v48  ;;  %v1071_v17 = vmin.f32 %v4692_v25, 0.0  ;;  %2222 = vst.msk [vmem:[%s5017_s2 + $0xe0] sm:$0xff] %vm2193_vm2, %v2077_v44  ;;  %v2113_v54 = vmul.f32 1.050701, %v1969_v2 }
 0x17e   :  { %v1717_v58 = vmul.f32 1.6732632, %v2586_v6  ;;  %v2622_v39 = vadd.f32 -1.0, %v2873_v49  ;;  %2878 = vpow2.f32 %v1387_v13  ;;  %v4727_v43 = vpop.f32.mrf.mxu2  ;;  %v4729_v50 = vpop.f32.mrf.mxu3  ;;  %vm1897_vm1 = vcmp.gt.f32.partialorder %v4640_v47, 0.0 }
 0x17f   :  { %2880 = vpow2.f32 %v1459_v62  ;;  %v1245_v36 = vmul.f32 1.442695, %v1071_v17  ;;  %v1107_v22 = vmin.f32 %v4694_v37, 0.0  ;;  %v4733_v57 = vpop.f32.mrf.mxu0  ;;  %v2875_v52 = vpop.eup %2874  ;;  %2258 = vst.msk [vmem:[%s5017_s2 + $0x200] sm:$0xff] %vm2193_vm2, %v2113_v54  ;;  %vm1790_vm0 = vcmp.gt.f32.partialorder %v4650_v29, 0.0 }
 0x180   :  { %v4735_v14 = vpop.f32.mrf.mxu1  ;;  %v2005_v7 = vsel %vm1861_vm15, %v4638_v45, %v1717_v58  ;;  %v1753_v42 = vmul.f32 1.6732632, %v2622_v39  ;;  %v1143_v63 = vmin.f32 %v4727_v43, 0.0  ;;  %v2515_v30 = vadd.f32 -1.0, %v2875_v52 }
 0x181   :  { %v2149_v23 = vmul.f32 1.050701, %v2005_v7  ;;  %2882 = vpow2.f32 %v1245_v36  ;;  %v1317_v26 = vmul.f32 1.442695, %v1107_v22  ;;  %vm1826_vm3 = vcmp.gt.f32.partialorder %v4652_v60, 0.0 }
 0x182   :  { %v2877_v61 = vpop.eup %2876  ;;  %v2041_v21 = vsel %vm1897_vm1, %v4640_v47, %v1753_v42  ;;  %v1389_v38 = vmul.f32 1.442695, %v1143_v63  ;;  %v1179_v32 = vmin.f32 %v4729_v50, 0.0  ;;  %v1646_v20 = vmul.f32 1.6732632, %v2515_v30 }
 0x183   :  { %2294 = vst.msk [vmem:[%s5017_s2 + $0x320] sm:$0xff] %vm2193_vm2, %v2149_v23  ;;  %v2185_v45 = vmul.f32 1.050701, %v2041_v21  ;;  %v2551_v5 = vadd.f32 -1.0, %v2877_v61  ;;  %2884 = vpow2.f32 %v1317_v26  ;;  %vm1862_vm4 = vcmp.gt.f32.partialorder %v4684_v16, 0.0 }
 0x184   :  { %v2879_v24 = vpop.eup %2878  ;;  %2886 = vpow2.f32 %v1389_v38  ;;  %v1461_v34 = vmul.f32 1.442695, %v1179_v32  ;;  %v1072_v47 = vmin.f32 %v4733_v57, 0.0  ;;  %v1934_v10 = vsel %vm1790_vm0, %v4650_v29, %v1646_v20 }
 0x185   :  { %v2881_v8 = vpop.eup %2880  ;;  %2330 = vst.msk [vmem:[%s5017_s2 + $0x440] sm:$0xff] %vm2193_vm2, %v2185_v45  ;;  %v1682_v40 = vmul.f32 1.6732632, %v2551_v5  ;;  %v2587_v35 = vadd.f32 -1.0, %v2879_v24  ;;  %vm1898_vm5 = vcmp.gt.f32.partialorder %v4686_v4, 0.0  ;;  %vm1791_vm6 = vcmp.gt.f32.partialorder %v4692_v25, 0.0 }
 0x186   :  { %v2078_v53 = vmul.f32 1.050701, %v1934_v10  ;;  %v2623_v15 = vadd.f32 -1.0, %v2881_v8  ;;  %2888 = vpow2.f32 %v1461_v34  ;;  %v1247_v59 = vmul.f32 1.442695, %v1072_v47  ;;  %v4765_v46 = vpop.f32.mrf.mxu2  ;;  %v4767_v28 = vpop.f32.mrf.mxu3 }
 0x187   :  { %v2883_v41 = vpop.eup %2882  ;;  %v1970_v9 = vsel %vm1826_vm3, %v4652_v60, %v1682_v40  ;;  %v1718_v12 = vmul.f32 1.6732632, %v2587_v35  ;;  %v1108_v29 = vmin.f32 %v4735_v14, 0.0  ;;  %v4774_v51 = vpop.f32.mrf.mxu0  ;;  %vm1827_vm7 = vcmp.gt.f32.partialorder %v4694_v37, 0.0 }
 0x188   :  { %v4776_v55 = vpop.f32.mrf.mxu1  ;;  %2223 = vst.msk [vmem:[%s5017_s2 + $0xe8] sm:$0xff] %vm2193_vm2, %v2078_v53  ;;  %v2114_v56 = vmul.f32 1.050701, %v1970_v9  ;;  %v1754_v19 = vmul.f32 1.6732632, %v2623_v15  ;;  %v2516_v27 = vadd.f32 -1.0, %v2883_v41  ;;  %2890 = vpow2.f32 %v1247_v59 }
 0x189   :  { %v2885_v0 = vpop.eup %2884  ;;  %v2006_v60 = vsel %vm1862_vm4, %v4684_v16, %v1718_v12  ;;  %v1319_v31 = vmul.f32 1.442695, %v1108_v29  ;;  %v1144_v1 = vmin.f32 %v4765_v46, 0.0  ;;  %vm1863_vm8 = vcmp.gt.f32.partialorder %v4727_v43, 0.0 }
 0x18a   :  { %v2887_v33 = vpop.eup %2886  ;;  %2259 = vst.msk [vmem:[%s5017_s2 + $0x208] sm:$0xff] %vm2193_vm2, %v2114_v56  ;;  %v2150_v11 = vmul.f32 1.050701, %v2006_v60  ;;  %v2042_v3 = vsel %vm1898_vm5, %v4686_v4, %v1754_v19  ;;  %v1647_v18 = vmul.f32 1.6732632, %v2516_v27  ;;  %v2552_v48 = vadd.f32 -1.0, %v2885_v0 }
 0x18b   :  { %v2186_v44 = vmul.f32 1.050701, %v2042_v3  ;;  %v2588_v16 = vadd.f32 -1.0, %v2887_v33  ;;  %2892 = vpow2.f32 %v1319_v31  ;;  %v1391_v6 = vmul.f32 1.442695, %v1144_v1 }
 0x18c   :  { %v2889_v13 = vpop.eup %2888  ;;  %2295 = vst.msk [vmem:[%s5017_s2 + $0x328] sm:$0xff] %vm2193_vm2, %v2150_v11  ;;  %v1935_v49 = vsel %vm1791_vm6, %v4692_v25, %v1647_v18  ;;  %v1683_v2 = vmul.f32 1.6732632, %v2552_v48  ;;  %v1180_v4 = vmin.f32 %v4767_v28, 0.0  ;;  %vm1899_vm9 = vcmp.gt.f32.partialorder %v4729_v50, 0.0 }
 0x18d   :  { %2331 = vst.msk [vmem:[%s5017_s2 + $0x448] sm:$0xff] %vm2193_vm2, %v2186_v44  ;;  %v2079_v62 = vmul.f32 1.050701, %v1935_v49  ;;  %v1719_v17 = vmul.f32 1.6732632, %v2588_v16  ;;  %v2624_v54 = vadd.f32 -1.0, %v2889_v13  ;;  %2894 = vpow2.f32 %v1391_v6 }
 0x18e   :  { %v2891_v58 = vpop.eup %2890  ;;  %v1971_v39 = vsel %vm1827_vm7, %v4694_v37, %v1683_v2  ;;  %v1463_v25 = vmul.f32 1.442695, %v1180_v4  ;;  %v1073_v36 = vmin.f32 %v4774_v51, 0.0  ;;  %v4812_v22 = vpop.f32.mrf.mxu2  ;;  %v1109_v61 = vmin.f32 %v4776_v55, 0.0 }
 0x18f   :  { %v4814_v52 = vpop.f32.mrf.mxu3  ;;  %2224 = vst.msk [vmem:[%s5017_s2 + $0xf0] sm:$0xff] %vm2193_vm2, %v2079_v62  ;;  %v2115_v7 = vmul.f32 1.050701, %v1971_v39  ;;  %v2007_v42 = vsel %vm1863_vm8, %v4727_v43, %v1719_v17  ;;  %v1755_v37 = vmul.f32 1.6732632, %v2624_v54  ;;  %v2517_v63 = vadd.f32 -1.0, %v2891_v58  ;;  %v4823_v23 = vpop.f32.mrf.mxu0 }
 0x190   :  { %v2151_v30 = vmul.f32 1.050701, %v2007_v42  ;;  %2896 = vpow2.f32 %v1463_v25  ;;  %v1249_v26 = vmul.f32 1.442695, %v1073_v36  ;;  %v4826_v21 = vpop.f32.mrf.mxu1  ;;  %vm1792_vm10 = vcmp.gt.f32.partialorder %v4733_v57, 0.0 }
 0x191   :  { %v2893_v38 = vpop.eup %2892  ;;  %2260 = vst.msk [vmem:[%s5017_s2 + $0x210] sm:$0xff] %vm2193_vm2, %v2115_v7  ;;  %v2043_v43 = vsel %vm1899_vm9, %v4729_v50, %v1755_v37  ;;  %v1648_v32 = vmul.f32 1.6732632, %v2517_v63  ;;  %v1145_v45 = vmin.f32 %v4812_v22, 0.0  ;;  %v1321_v24 = vmul.f32 1.442695, %v1109_v61 }
 0x192   :  { %2296 = vst.msk [vmem:[%s5017_s2 + $0x330] sm:$0xff] %vm2193_vm2, %v2151_v30  ;;  %v2187_v20 = vmul.f32 1.050701, %v2043_v43  ;;  %v2553_v5 = vadd.f32 -1.0, %v2893_v38  ;;  %2898 = vpow2.f32 %v1249_v26  ;;  %vm1828_vm11 = vcmp.gt.f32.partialorder %v4735_v14, 0.0 }
 0x193   :  { %v2895_v34 = vpop.eup %2894  ;;  %v1936_v47 = vsel %vm1792_vm10, %v4733_v57, %v1648_v32  ;;  %v1393_v50 = vmul.f32 1.442695, %v1145_v45  ;;  %v1181_v8 = vmin.f32 %v4814_v52, 0.0  ;;  %2900 = vpow2.f32 %v1321_v24 }
 0x194   :  { %2332 = vst.msk [vmem:[%s5017_s2 + $0x450] sm:$0xff] %vm2193_vm2, %v2187_v20  ;;  %v2080_v10 = vmul.f32 1.050701, %v1936_v47  ;;  %v1684_v40 = vmul.f32 1.6732632, %v2553_v5  ;;  %v2589_v35 = vadd.f32 -1.0, %v2895_v34 }
 0x195   :  { %vm1864_vm12 = vcmp.gt.f32.partialorder %v4765_v46, 0.0  ;;  %2902 = vpow2.f32 %v1393_v50  ;;  %v1465_v53 = vmul.f32 1.442695, %v1181_v8  ;;  %v1074_v57 = vmin.f32 %v4823_v23, 0.0 }
 0x196   :  { %v2897_v15 = vpop.eup %2896  ;;  %2225 = vst.msk [vmem:[%s5017_s2 + $0xf8] sm:$0xff] %vm2193_vm2, %v2080_v10  ;;  %v1972_v59 = vsel %vm1828_vm11, %v4735_v14, %v1684_v40  ;;  %v1720_v41 = vmul.f32 1.6732632, %v2589_v35  ;;  %vm1900_vm13 = vcmp.gt.f32.partialorder %v4767_v28, 0.0  ;;  %v1110_v9 = vmin.f32 %v4826_v21, 0.0  ;;  %v4857_v12 = vpop.f32.mrf.mxu2 }
 0x197   :  { %v4859_v29 = vpop.f32.mrf.mxu3  ;;  %v2116_v56 = vmul.f32 1.050701, %v1972_v59  ;;  %v2625_v19 = vadd.f32 -1.0, %v2897_v15  ;;  %2904 = vpow2.f32 %v1465_v53  ;;  %v1251_v27 = vmul.f32 1.442695, %v1074_v57  ;;  %v4870_v3 = vpop.f32.mrf.mxu0 }
 0x198   :  { %v2899_v0 = vpop.eup %2898  ;;  %v2008_v60 = vsel %vm1864_vm12, %v4765_v46, %v1720_v41  ;;  %vm1793_vm14 = vcmp.gt.f32.partialorder %v4774_v51, 0.0  ;;  %v1323_v14 = vmul.f32 1.442695, %v1110_v9  ;;  %v1146_v31 = vmin.f32 %v4857_v12, 0.0  ;;  %v4874_v44 = vpop.f32.mrf.mxu1 }
 0x199   :  { %2261 = vst.msk [vmem:[%s5017_s2 + $0x218] sm:$0xff] %vm2193_vm2, %v2116_v56  ;;  %v2152_v1 = vmul.f32 1.050701, %v2008_v60  ;;  %v1756_v33 = vmul.f32 1.6732632, %v2625_v19  ;;  %v2518_v11 = vadd.f32 -1.0, %v2899_v0  ;;  %2906 = vpow2.f32 %v1251_v27  ;;  %v2901_v18 = vpop.eup %2900 }
 0x19a   :  { %vm1829_vm15 = vcmp.gt.f32.partialorder %v4776_v55, 0.0  ;;  %2908 = vpow2.f32 %v1323_v14  ;;  %v1395_v46 = vmul.f32 1.442695, %v1146_v31  ;;  %v1182_v48 = vmin.f32 %v4859_v29, 0.0 }
 0x19b   :  { %v2903_v16 = vpop.eup %2902  ;;  %2297 = vst.msk [vmem:[%s5017_s2 + $0x338] sm:$0xff] %vm2193_vm2, %v2152_v1  ;;  %v2044_v6 = vsel %vm1900_vm13, %v4767_v28, %v1756_v33  ;;  %v1649_v13 = vmul.f32 1.6732632, %v2518_v11  ;;  %v2554_v49 = vadd.f32 -1.0, %v2901_v18  ;;  %vm1865_vm1 = vcmp.gt.f32.partialorder %v4812_v22, 0.0 }
 0x19c   :  { %v2188_v2 = vmul.f32 1.050701, %v2044_v6  ;;  %v2590_v4 = vadd.f32 -1.0, %v2903_v16  ;;  %2910 = vpow2.f32 %v1395_v46  ;;  %v1467_v62 = vmul.f32 1.442695, %v1182_v48 }
 0x19d   :  { %v2905_v17 = vpop.eup %2904  ;;  %v1937_v54 = vsel %vm1793_vm14, %v4774_v51, %v1649_v13  ;;  %v1685_v58 = vmul.f32 1.6732632, %v2554_v49  ;;  %vm1901_vm0 = vcmp.gt.f32.partialorder %v4814_v52, 0.0  ;;  %v1075_v39 = vmin.f32 %v4870_v3, 0.0 }
 0x19e   :  { %2333 = vst.msk [vmem:[%s5017_s2 + $0x458] sm:$0xff] %vm2193_vm2, %v2188_v2  ;;  %v2081_v28 = vmul.f32 1.050701, %v1937_v54  ;;  %v1721_v25 = vmul.f32 1.6732632, %v2590_v4  ;;  %v2626_v36 = vadd.f32 -1.0, %v2905_v17  ;;  %2912 = vpow2.f32 %v1467_v62  ;;  %v4893_v7 = vpop.f32.mrf.mxu2 }
 0x19f   :  { %v4895_v42 = vpop.f32.mrf.mxu3  ;;  %v2907_v37 = vpop.eup %2906  ;;  %v1973_v51 = vsel %vm1829_vm15, %v4776_v55, %v1685_v58  ;;  %vm1794_vm3 = vcmp.gt.f32.partialorder %v4823_v23, 0.0  ;;  %v1253_v63 = vmul.f32 1.442695, %v1075_v39  ;;  %v1111_v30 = vmin.f32 %v4874_v44, 0.0 }
 0x1a0   :  { %v2909_v26 = vpop.eup %2908  ;;  %2226 = vst.msk [vmem:[%s5017_s2 + $0x100] sm:$0xff] %vm2193_vm2, %v2081_v28  ;;  %v2117_v61 = vmul.f32 1.050701, %v1973_v51  ;;  %v2009_v38 = vsel %vm1865_vm1, %v4812_v22, %v1721_v25  ;;  %v1757_v43 = vmul.f32 1.6732632, %v2626_v36  ;;  %v2519_v32 = vadd.f32 -1.0, %v2907_v37  ;;  %v4922_v10 = vpop.f32.mrf.mxu0 }
 0x1a1   :  { %v2153_v45 = vmul.f32 1.050701, %v2009_v38  ;;  %v2555_v55 = vadd.f32 -1.0, %v2909_v26  ;;  %2914 = vpow2.f32 %v1253_v63  ;;  %v1325_v20 = vmul.f32 1.442695, %v1111_v30  ;;  %v4929_v57 = vpop.f32.mrf.mxu1 }
 0x1a2   :  { %v2911_v5 = vpop.eup %2910  ;;  %2262 = vst.msk [vmem:[%s5017_s2 + $0x220] sm:$0xff] %vm2193_vm2, %v2117_v61  ;;  %v2045_v24 = vsel %vm1901_vm0, %v4814_v52, %v1757_v43  ;;  %v1650_v34 = vmul.f32 1.6732632, %v2519_v32  ;;  %vm1830_vm4 = vcmp.gt.f32.partialorder %v4826_v21, 0.0  ;;  %v1147_v22 = vmin.f32 %v4893_v7, 0.0 }
 0x1a3   :  { %2298 = vst.msk [vmem:[%s5017_s2 + $0x340] sm:$0xff] %vm2193_vm2, %v2153_v45  ;;  %v2189_v47 = vmul.f32 1.050701, %v2045_v24  ;;  %v1686_v50 = vmul.f32 1.6732632, %v2555_v55  ;;  %v2591_v8 = vadd.f32 -1.0, %v2911_v5  ;;  %2916 = vpow2.f32 %v1325_v20 }
 0x1a4   :  { %v2913_v40 = vpop.eup %2912  ;;  %v1938_v52 = vsel %vm1794_vm3, %v4823_v23, %v1650_v34  ;;  %vm1866_vm5 = vcmp.gt.f32.partialorder %v4857_v12, 0.0  ;;  %v1397_v35 = vmul.f32 1.442695, %v1147_v22  ;;  %v1183_v53 = vmin.f32 %v4895_v42, 0.0 }
 0x1a5   :  { %2334 = vst.msk [vmem:[%s5017_s2 + $0x460] sm:$0xff] %vm2193_vm2, %v2189_v47  ;;  %v2082_v15 = vmul.f32 1.050701, %v1938_v52  ;;  %v1974_v59 = vsel %vm1830_vm4, %v4826_v21, %v1686_v50  ;;  %v1722_v41 = vmul.f32 1.6732632, %v2591_v8  ;;  %v2627_v9 = vadd.f32 -1.0, %v2913_v40 }
 0x1a6   :  { %v2118_v23 = vmul.f32 1.050701, %v1974_v59  ;;  %2918 = vpow2.f32 %v1397_v35  ;;  %v1469_v56 = vmul.f32 1.442695, %v1183_v53  ;;  %v1076_v19 = vmin.f32 %v4922_v10, 0.0  ;;  %v4939_v27 = vpop.f32.mrf.mxu2 }
 0x1a7   :  { %v2915_v0 = vpop.eup %2914  ;;  %2227 = vst.msk [vmem:[%s5017_s2 + $0x108] sm:$0xff] %vm2193_vm2, %v2082_v15  ;;  %v2010_v60 = vsel %vm1866_vm5, %v4857_v12, %v1722_v41  ;;  %v1758_v21 = vmul.f32 1.6732632, %v2627_v9  ;;  %vm1902_vm6 = vcmp.gt.f32.partialorder %v4859_v29, 0.0  ;;  %v1112_v14 = vmin.f32 %v4929_v57, 0.0  ;;  %v4954_v11 = vpop.f32.mrf.mxu3 }
 0x1a8   :  { %2263 = vst.msk [vmem:[%s5017_s2 + $0x228] sm:$0xff] %vm2193_vm2, %v2118_v23  ;;  %v2154_v31 = vmul.f32 1.050701, %v2010_v60  ;;  %v2520_v1 = vadd.f32 -1.0, %v2915_v0  ;;  %2920 = vpow2.f32 %v1469_v56  ;;  %v1255_v33 = vmul.f32 1.442695, %v1076_v19 }
 0x1a9   :  { %v2917_v18 = vpop.eup %2916  ;;  %v2046_v46 = vsel %vm1902_vm6, %v4859_v29, %v1758_v21  ;;  %v1327_v12 = vmul.f32 1.442695, %v1112_v14  ;;  %v1148_v48 = vmin.f32 %v4939_v27, 0.0  ;;  %vm1795_vm7 = vcmp.gt.f32.partialorder %v4870_v3, 0.0 }
 0x1aa   :  { %2299 = vst.msk [vmem:[%s5017_s2 + $0x348] sm:$0xff] %vm2193_vm2, %v2154_v31  ;;  %v2190_v16 = vmul.f32 1.050701, %v2046_v46  ;;  %v1651_v6 = vmul.f32 1.6732632, %v2520_v1  ;;  %v2556_v13 = vadd.f32 -1.0, %v2917_v18  ;;  %2922 = vpow2.f32 %v1255_v33 }
 0x1ab   :  { %2924 = vpow2.f32 %v1327_v12  ;;  %v1399_v49 = vmul.f32 1.442695, %v1148_v48  ;;  %v1184_v2 = vmin.f32 %v4954_v11, 0.0  ;;  %vm1831_vm8 = vcmp.gt.f32.partialorder %v4874_v44, 0.0 }
 0x1ac   :  { %v2919_v4 = vpop.eup %2918  ;;  %2335 = vst.msk [vmem:[%s5017_s2 + $0x468] sm:$0xff] %vm2193_vm2, %v2190_v16  ;;  %v1939_v29 = vsel %vm1795_vm7, %v4870_v3, %v1651_v6  ;;  %v1687_v62 = vmul.f32 1.6732632, %v2556_v13  ;;  %vm1867_vm9 = vcmp.gt.f32.partialorder %v4893_v7, 0.0  ;;  %vm1903_vm10 = vcmp.gt.f32.partialorder %v4895_v42, 0.0 }
 0x1ad   :  { %v2083_v17 = vmul.f32 1.050701, %v1939_v29  ;;  %v2592_v54 = vadd.f32 -1.0, %v2919_v4  ;;  %2926 = vpow2.f32 %v1399_v49  ;;  %v1471_v58 = vmul.f32 1.442695, %v1184_v2 }
 0x1ae   :  { %v2921_v39 = vpop.eup %2920  ;;  %v1975_v28 = vsel %vm1831_vm8, %v4874_v44, %v1687_v62  ;;  %vm1796_vm11 = vcmp.gt.f32.partialorder %v4922_v10, 0.0  ;;  %vm1832_vm12 = vcmp.gt.f32.partialorder %v4929_v57, 0.0  ;;  %vm1868_vm13 = vcmp.gt.f32.partialorder %v4939_v27, 0.0 }
 0x1af   :  { %2228 = vst.msk [vmem:[%s5017_s2 + $0x110] sm:$0xff] %vm2193_vm2, %v2083_v17  ;;  %v2119_v25 = vmul.f32 1.050701, %v1975_v28  ;;  %v1723_v36 = vmul.f32 1.6732632, %v2592_v54  ;;  %v2628_v37 = vadd.f32 -1.0, %v2921_v39  ;;  %2928 = vpow2.f32 %v1471_v58 }
 0x1b0   :  { %v2923_v3 = vpop.eup %2922  ;;  %vm1904_vm14 = vcmp.gt.f32.partialorder %v4954_v11, 0.0 }
 0x1b1   :  { %v2925_v51 = vpop.eup %2924  ;;  %2264 = vst.msk [vmem:[%s5017_s2 + $0x230] sm:$0xff] %vm2193_vm2, %v2119_v25  ;;  %v2011_v44 = vsel %vm1867_vm9, %v4893_v7, %v1723_v36  ;;  %v1759_v63 = vmul.f32 1.6732632, %v2628_v37  ;;  %v2521_v30 = vadd.f32 -1.0, %v2923_v3 }
 0x1b2   :  { %v2155_v26 = vmul.f32 1.050701, %v2011_v44  ;;  %v2557_v61 = vadd.f32 -1.0, %v2925_v51 }
 0x1b3   :  { %v2927_v38 = vpop.eup %2926  ;;  %v2047_v43 = vsel %vm1903_vm10, %v4895_v42, %v1759_v63  ;;  %v1652_v32 = vmul.f32 1.6732632, %v2521_v30 }
 0x1b4   :  { %2300 = vst.msk [vmem:[%s5017_s2 + $0x350] sm:$0xff] %vm2193_vm2, %v2155_v26  ;;  %v2191_v45 = vmul.f32 1.050701, %v2047_v43  ;;  %v1688_v55 = vmul.f32 1.6732632, %v2557_v61  ;;  %v2593_v7 = vadd.f32 -1.0, %v2927_v38 }
 0x1b5   :  { %v2929_v20 = vpop.eup %2928  ;;  %v1940_v5 = vsel %vm1796_vm11, %v4922_v10, %v1652_v32 }
 0x1b6   :  { %2336 = vst.msk [vmem:[%s5017_s2 + $0x470] sm:$0xff] %vm2193_vm2, %v2191_v45  ;;  %v2084_v42 = vmul.f32 1.050701, %v1940_v5  ;;  %v1976_v24 = vsel %vm1832_vm12, %v4929_v57, %v1688_v55  ;;  %v1724_v34 = vmul.f32 1.6732632, %v2593_v7  ;;  %v2629_v22 = vadd.f32 -1.0, %v2929_v20 }
 0x1b7   :  { %v2120_v47 = vmul.f32 1.050701, %v1976_v24 }
 0x1b8   :  { %2229 = vst.msk [vmem:[%s5017_s2 + $0x118] sm:$0xff] %vm2193_vm2, %v2084_v42  ;;  %v2012_v50 = vsel %vm1868_vm13, %v4939_v27, %v1724_v34  ;;  %v1760_v8 = vmul.f32 1.6732632, %v2629_v22 }
 0x1b9   :  { %2265 = vst.msk [vmem:[%s5017_s2 + $0x238] sm:$0xff] %vm2193_vm2, %v2120_v47  ;;  %v2156_v10 = vmul.f32 1.050701, %v2012_v50 }
 0x1ba   :  { %v2048_v40 = vsel %vm1904_vm14, %v4954_v11, %v1760_v8 }
 0x1bb   :  { %2301 = vst.msk [vmem:[%s5017_s2 + $0x358] sm:$0xff] %vm2193_vm2, %v2156_v10  ;;  %v2192_v52 = vmul.f32 1.050701, %v2048_v40 }
 0x1bd   :  { %2337 = vst.msk [vmem:[%s5017_s2 + $0x478] sm:$0xff] %vm2193_vm2, %v2192_v52 }

// kernel: encoder_forward.6
= control target key start
LH: loop header
LB: loop body
LE: loop exit
PB: predicated region body
PF: predicated region fallthrough
CT: control target
= control target key end

     0   :  { %vm371_vm0 = vcmask 261120   ;;  %s2297_s1 = inlined_call_operand.vmem [shape: f32[256,32], index: 1, kind: input, shape index: {}]   ;;  %s2298_s0 = inlined_call_operand.vmem [shape: f32[288,256], index: 0, kind: input, shape index: {}]   ;;  %s2299_s2 = inlined_call_operand.vmem [shape: f32[1,32], index: 2, kind: input, shape index: {}]   ;;  %s2300_s3 = inlined_call_operand.vmem [shape: f32[1,32], index: 3, kind: input, shape index: {}]   ;;  %s2301_s4 = inlined_call_operand.vmem [shape: f32[288,32], index: 4, kind: output, shape index: {}]  }
   0x1   :  { %v104_v0 = vld [vmem:[%s2297_s1 + $0x78] sm:$0xff]  ;;  %v103_v2 = vld [vmem:[%s2297_s1 + $0x70] sm:$0xff]  ;;  %v102_v4 = vld [vmem:[%s2297_s1 + $0x68] sm:$0xff] }
   0x2   :  { %v120_v1 = vld [vmem:[%s2297_s1 + $0xf8] sm:$0xff]  ;;  %121 = vmatpush.msra.mxu0 %v104_v0  ;;  %v119_v3 = vld [vmem:[%s2297_s1 + $0xf0] sm:$0xff]  ;;  %v118_v5 = vld [vmem:[%s2297_s1 + $0xe8] sm:$0xff]  ;;  %1024 = vmatpush.msra.mxu2 %v104_v0 }
   0x3   :  { %246 = vmatpush.msra.mxu1 %v120_v1  ;;  %1040 = vmatpush.msra.mxu3 %v120_v1  ;;  %v101_v6 = vld [vmem:[%s2297_s1 + $0x60] sm:$0xff]  ;;  %v100_v8 = vld [vmem:[%s2297_s1 + $0x58] sm:$0xff]  ;;  %v99_v10 = vld [vmem:[%s2297_s1 + $0x50] sm:$0xff] }
   0x4   :  { %122 = vmatpush.msra.mxu0 %v103_v2  ;;  %v117_v7 = vld [vmem:[%s2297_s1 + $0xe0] sm:$0xff]  ;;  %1025 = vmatpush.msra.mxu2 %v103_v2  ;;  %v116_v9 = vld [vmem:[%s2297_s1 + $0xd8] sm:$0xff]  ;;  %v115_v11 = vld [vmem:[%s2297_s1 + $0xd0] sm:$0xff] }
   0x5   :  { %247 = vmatpush.msra.mxu1 %v119_v3  ;;  %1041 = vmatpush.msra.mxu3 %v119_v3  ;;  %v98_v12 = vld [vmem:[%s2297_s1 + $0x48] sm:$0xff]  ;;  %v97_v14 = vld [vmem:[%s2297_s1 + $0x40] sm:$0xff]  ;;  %v96_v16 = vld [vmem:[%s2297_s1 + $0x38] sm:$0xff] }
   0x6   :  { %123 = vmatpush.msra.mxu0 %v102_v4  ;;  %1026 = vmatpush.msra.mxu2 %v102_v4  ;;  %v114_v13 = vld [vmem:[%s2297_s1 + $0xc8] sm:$0xff]  ;;  %v113_v15 = vld [vmem:[%s2297_s1 + $0xc0] sm:$0xff]  ;;  %v112_v17 = vld [vmem:[%s2297_s1 + $0xb8] sm:$0xff] }
   0x7   :  { %248 = vmatpush.msra.mxu1 %v118_v5  ;;  %1042 = vmatpush.msra.mxu3 %v118_v5  ;;  %v95_v18 = vld [vmem:[%s2297_s1 + $0x30] sm:$0xff]  ;;  %v94_v20 = vld [vmem:[%s2297_s1 + $0x28] sm:$0xff]  ;;  %v93_v22 = vld [vmem:[%s2297_s1 + $0x20] sm:$0xff] }
   0x8   :  { %124 = vmatpush.msra.mxu0 %v101_v6  ;;  %1027 = vmatpush.msra.mxu2 %v101_v6  ;;  %v111_v19 = vld [vmem:[%s2297_s1 + $0xb0] sm:$0xff]  ;;  %v110_v21 = vld [vmem:[%s2297_s1 + $0xa8] sm:$0xff]  ;;  %v109_v23 = vld [vmem:[%s2297_s1 + $0xa0] sm:$0xff] }
   0x9   :  { %249 = vmatpush.msra.mxu1 %v117_v7  ;;  %1043 = vmatpush.msra.mxu3 %v117_v7  ;;  %v92_v24 = vld [vmem:[%s2297_s1 + $0x18] sm:$0xff]  ;;  %v91_v26 = vld [vmem:[%s2297_s1 + $0x10] sm:$0xff]  ;;  %v90_v28 = vld [vmem:[%s2297_s1 + $0x8] sm:$0xff] }
   0xa   :  { %125 = vmatpush.msra.mxu0 %v100_v8  ;;  %1028 = vmatpush.msra.mxu2 %v100_v8  ;;  %v108_v25 = vld [vmem:[%s2297_s1 + $0x98] sm:$0xff]  ;;  %v107_v27 = vld [vmem:[%s2297_s1 + $0x90] sm:$0xff]  ;;  %v106_v29 = vld [vmem:[%s2297_s1 + $0x88] sm:$0xff] }
   0xb   :  { %250 = vmatpush.msra.mxu1 %v116_v9  ;;  %1044 = vmatpush.msra.mxu3 %v116_v9  ;;  %v89_v30 = vld [vmem:[%s2297_s1] sm:$0xff]  ;;  %v18_v33 = vld [vmem:[%s2298_s0 + $0x8] sm:$0xff]  ;;  %v19_v36 = vld [vmem:[%s2298_s0 + $0x10] sm:$0xff] }
   0xc   :  { %126 = vmatpush.msra.mxu0 %v99_v10  ;;  %1029 = vmatpush.msra.mxu2 %v99_v10  ;;  %v105_v31 = vld [vmem:[%s2297_s1 + $0x80] sm:$0xff]  ;;  %v54_v35 = vld [vmem:[%s2298_s0 + $0x128] sm:$0xff]  ;;  %v20_v37 = vld [vmem:[%s2298_s0 + $0x18] sm:$0xff] }
   0xd   :  { %251 = vmatpush.msra.mxu1 %v115_v11  ;;  %1045 = vmatpush.msra.mxu3 %v115_v11  ;;  %v17_v32 = vld [vmem:[%s2298_s0] sm:$0xff]  ;;  %v55_v38 = vld [vmem:[%s2298_s0 + $0x130] sm:$0xff]  ;;  %v56_v39 = vld [vmem:[%s2298_s0 + $0x138] sm:$0xff] }
   0xe   :  { %127 = vmatpush.msra.mxu0 %v98_v12  ;;  %1030 = vmatpush.msra.mxu2 %v98_v12  ;;  %v53_v34 = vld [vmem:[%s2298_s0 + $0x120] sm:$0xff]  ;;  %v22_v41 = vld [vmem:[%s2298_s0 + $0x28] sm:$0xff]  ;;  %v23_v44 = vld [vmem:[%s2298_s0 + $0x30] sm:$0xff] }
   0xf   :  { %252 = vmatpush.msra.mxu1 %v114_v13  ;;  %1046 = vmatpush.msra.mxu3 %v114_v13  ;;  %v21_v40 = vld [vmem:[%s2298_s0 + $0x20] sm:$0xff]  ;;  %v58_v43 = vld [vmem:[%s2298_s0 + $0x148] sm:$0xff]  ;;  %v24_v45 = vld [vmem:[%s2298_s0 + $0x38] sm:$0xff] }
  0x10   :  { %128 = vmatpush.msra.mxu0 %v97_v14  ;;  %1031 = vmatpush.msra.mxu2 %v97_v14  ;;  %v57_v42 = vld [vmem:[%s2298_s0 + $0x140] sm:$0xff]  ;;  %v59_v46 = vld [vmem:[%s2298_s0 + $0x150] sm:$0xff]  ;;  %v60_v47 = vld [vmem:[%s2298_s0 + $0x158] sm:$0xff] }
  0x11   :  { %253 = vmatpush.msra.mxu1 %v113_v15  ;;  %1047 = vmatpush.msra.mxu3 %v113_v15  ;;  %v25_v48 = vld [vmem:[%s2298_s0 + $0x40] sm:$0xff]  ;;  %v26_v49 = vld [vmem:[%s2298_s0 + $0x48] sm:$0xff]  ;;  %v27_v52 = vld [vmem:[%s2298_s0 + $0x50] sm:$0xff] }
  0x12   :  { %129 = vmatpush.msra.mxu0 %v96_v16  ;;  %1032 = vmatpush.msra.mxu2 %v96_v16  ;;  %v61_v50 = vld [vmem:[%s2298_s0 + $0x160] sm:$0xff]  ;;  %v62_v51 = vld [vmem:[%s2298_s0 + $0x168] sm:$0xff]  ;;  %v28_v53 = vld [vmem:[%s2298_s0 + $0x58] sm:$0xff] }
  0x13   :  { %254 = vmatpush.msra.mxu1 %v112_v17  ;;  %1048 = vmatpush.msra.mxu3 %v112_v17  ;;  %v63_v54 = vld [vmem:[%s2298_s0 + $0x170] sm:$0xff]  ;;  %v64_v55 = vld [vmem:[%s2298_s0 + $0x178] sm:$0xff]  ;;  %v29_v56 = vld [vmem:[%s2298_s0 + $0x60] sm:$0xff] }
  0x14   :  { %130 = vmatpush.msra.mxu0 %v95_v18  ;;  %1033 = vmatpush.msra.mxu2 %v95_v18  ;;  %v30_v57 = vld [vmem:[%s2298_s0 + $0x68] sm:$0xff]  ;;  %v65_v58 = vld [vmem:[%s2298_s0 + $0x180] sm:$0xff]  ;;  %v31_v60 = vld [vmem:[%s2298_s0 + $0x70] sm:$0xff] }
  0x15   :  { %255 = vmatpush.msra.mxu1 %v111_v19  ;;  %1049 = vmatpush.msra.mxu3 %v111_v19  ;;  %v66_v59 = vld [vmem:[%s2298_s0 + $0x188] sm:$0xff]  ;;  %v32_v61 = vld [vmem:[%s2298_s0 + $0x78] sm:$0xff]  ;;  %v67_v62 = vld [vmem:[%s2298_s0 + $0x190] sm:$0xff] }
  0x16   :  { %131 = vmatpush.msra.mxu0 %v94_v20  ;;  %1034 = vmatpush.msra.mxu2 %v94_v20  ;;  %v68_v63 = vld [vmem:[%s2298_s0 + $0x198] sm:$0xff]  ;;  %v33_v0 = vld [vmem:[%s2298_s0 + $0x80] sm:$0xff]  ;;  %v34_v1 = vld [vmem:[%s2298_s0 + $0x88] sm:$0xff] }
  0x17   :  { %256 = vmatpush.msra.mxu1 %v110_v21  ;;  %1050 = vmatpush.msra.mxu3 %v110_v21  ;;  %v69_v2 = vld [vmem:[%s2298_s0 + $0x1a0] sm:$0xff]  ;;  %v70_v3 = vld [vmem:[%s2298_s0 + $0x1a8] sm:$0xff]  ;;  %v35_v4 = vld [vmem:[%s2298_s0 + $0x90] sm:$0xff] }
  0x18   :  { %132 = vmatpush.msra.mxu0 %v93_v22  ;;  %1035 = vmatpush.msra.mxu2 %v93_v22  ;;  %v36_v5 = vld [vmem:[%s2298_s0 + $0x98] sm:$0xff]  ;;  %v71_v6 = vld [vmem:[%s2298_s0 + $0x1b0] sm:$0xff]  ;;  %v37_v8 = vld [vmem:[%s2298_s0 + $0xa0] sm:$0xff] }
  0x19   :  { %257 = vmatpush.msra.mxu1 %v109_v23  ;;  %1051 = vmatpush.msra.mxu3 %v109_v23  ;;  %v72_v7 = vld [vmem:[%s2298_s0 + $0x1b8] sm:$0xff]  ;;  %v38_v9 = vld [vmem:[%s2298_s0 + $0xa8] sm:$0xff]  ;;  %v73_v10 = vld [vmem:[%s2298_s0 + $0x1c0] sm:$0xff] }
  0x1a   :  { %133 = vmatpush.msra.mxu0 %v92_v24  ;;  %1036 = vmatpush.msra.mxu2 %v92_v24  ;;  %v74_v11 = vld [vmem:[%s2298_s0 + $0x1c8] sm:$0xff]  ;;  %v39_v12 = vld [vmem:[%s2298_s0 + $0xb0] sm:$0xff]  ;;  %v40_v13 = vld [vmem:[%s2298_s0 + $0xb8] sm:$0xff] }
  0x1b   :  { %258 = vmatpush.msra.mxu1 %v108_v25  ;;  %1052 = vmatpush.msra.mxu3 %v108_v25  ;;  %v75_v14 = vld [vmem:[%s2298_s0 + $0x1d0] sm:$0xff]  ;;  %v76_v15 = vld [vmem:[%s2298_s0 + $0x1d8] sm:$0xff]  ;;  %v41_v16 = vld [vmem:[%s2298_s0 + $0xc0] sm:$0xff] }
  0x1c   :  { %134 = vmatpush.msra.mxu0 %v91_v26  ;;  %1037 = vmatpush.msra.mxu2 %v91_v26  ;;  %v42_v17 = vld [vmem:[%s2298_s0 + $0xc8] sm:$0xff]  ;;  %v77_v18 = vld [vmem:[%s2298_s0 + $0x1e0] sm:$0xff]  ;;  %v43_v20 = vld [vmem:[%s2298_s0 + $0xd0] sm:$0xff] }
  0x1d   :  { %259 = vmatpush.msra.mxu1 %v107_v27  ;;  %1053 = vmatpush.msra.mxu3 %v107_v27  ;;  %v78_v19 = vld [vmem:[%s2298_s0 + $0x1e8] sm:$0xff]  ;;  %v44_v21 = vld [vmem:[%s2298_s0 + $0xd8] sm:$0xff]  ;;  %v79_v22 = vld [vmem:[%s2298_s0 + $0x1f0] sm:$0xff] }
  0x1e   :  { %135 = vmatpush.msra.mxu0 %v90_v28  ;;  %1038 = vmatpush.msra.mxu2 %v90_v28  ;;  %v80_v23 = vld [vmem:[%s2298_s0 + $0x1f8] sm:$0xff]  ;;  %v45_v24 = vld [vmem:[%s2298_s0 + $0xe0] sm:$0xff]  ;;  %v46_v25 = vld [vmem:[%s2298_s0 + $0xe8] sm:$0xff] }
  0x1f   :  { %260 = vmatpush.msra.mxu1 %v106_v29  ;;  %1054 = vmatpush.msra.mxu3 %v106_v29  ;;  %v81_v26 = vld [vmem:[%s2298_s0 + $0x200] sm:$0xff]  ;;  %v82_v27 = vld [vmem:[%s2298_s0 + $0x208] sm:$0xff]  ;;  %v47_v28 = vld [vmem:[%s2298_s0 + $0xf0] sm:$0xff] }
  0x20   :  { %136 = vmatpush.msra.mxu0 %v89_v30  ;;  %1039 = vmatpush.msra.mxu2 %v89_v30  ;;  %v48_v29 = vld [vmem:[%s2298_s0 + $0xf8] sm:$0xff]  ;;  %v83_v30 = vld [vmem:[%s2298_s0 + $0x210] sm:$0xff] }
  0x21   :  { %261 = vmatpush.msra.mxu1 %v105_v31  ;;  %137 = vmatmul.f32.vlgmr.msra.gmra.mxu0 %v17_v32 }
  0x22   :  { %262 = vmatmul.f32.vlgmr.msra.gmra.mxu1 %v18_v33  ;;  %1055 = vmatpush.msra.mxu3 %v105_v31  ;;  %v84_v31 = vld [vmem:[%s2298_s0 + $0x218] sm:$0xff] }
  0x23   :  { %191 = vmatmul.f32.vlgmr.msra.gmra.mxu2 %v53_v34  ;;  %316 = vmatmul.f32.vlgmr.msra.gmra.mxu3 %v54_v35  ;;  %v49_v34 = vld [vmem:[%s2298_s0 + $0x100] sm:$0xff]  ;;  %v50_v35 = vld [vmem:[%s2298_s0 + $0x108] sm:$0xff] }
  0x29   :  { %140 = vmatmul.f32.gmra.mxu0 %v19_v36 }
  0x2a   :  { %265 = vmatmul.f32.gmra.mxu1 %v20_v37  ;;  %v85_v37 = vld [vmem:[%s2298_s0 + $0x220] sm:$0xff] }
  0x2b   :  { %194 = vmatmul.f32.gmra.mxu2 %v55_v38  ;;  %319 = vmatmul.f32.gmra.mxu3 %v56_v39  ;;  %v86_v38 = vld [vmem:[%s2298_s0 + $0x228] sm:$0xff] }
  0x31   :  { %143 = vmatmul.f32.gmra.mxu0 %v21_v40 }
  0x32   :  { %268 = vmatmul.f32.gmra.mxu1 %v22_v41  ;;  %v51_v41 = vld [vmem:[%s2298_s0 + $0x110] sm:$0xff] }
  0x33   :  { %197 = vmatmul.f32.gmra.mxu2 %v57_v42  ;;  %322 = vmatmul.f32.gmra.mxu3 %v58_v43  ;;  %v52_v42 = vld [vmem:[%s2298_s0 + $0x118] sm:$0xff] }
  0x39   :  { %146 = vmatmul.f32.gmra.mxu0 %v23_v44 }
  0x3a   :  { %271 = vmatmul.f32.gmra.mxu1 %v24_v45 }
  0x3b   :  { %200 = vmatmul.f32.gmra.mxu2 %v59_v46  ;;  %325 = vmatmul.f32.gmra.mxu3 %v60_v47  ;;  %v87_v47 = vld [vmem:[%s2298_s0 + $0x230] sm:$0xff] }
  0x41   :  { %149 = vmatmul.f32.gmra.mxu0 %v25_v48  ;;  %v88_v48 = vld [vmem:[%s2298_s0 + $0x238] sm:$0xff] }
  0x42   :  { %274 = vmatmul.f32.gmra.mxu1 %v26_v49 }
  0x43   :  { %203 = vmatmul.f32.gmra.mxu2 %v61_v50  ;;  %328 = vmatmul.f32.gmra.mxu3 %v62_v51 }
  0x49   :  { %152 = vmatmul.f32.gmra.mxu0 %v27_v52 }
  0x4a   :  { %277 = vmatmul.f32.gmra.mxu1 %v28_v53 }
  0x4b   :  { %206 = vmatmul.f32.gmra.mxu2 %v63_v54  ;;  %331 = vmatmul.f32.gmra.mxu3 %v64_v55 }
  0x51   :  { %155 = vmatmul.f32.gmra.mxu0 %v29_v56 }
  0x52   :  { %280 = vmatmul.f32.gmra.mxu1 %v30_v57 }
  0x53   :  { %209 = vmatmul.f32.gmra.mxu2 %v65_v58  ;;  %334 = vmatmul.f32.gmra.mxu3 %v66_v59 }
  0x59   :  { %158 = vmatmul.f32.gmra.mxu0 %v31_v60 }
  0x5a   :  { %283 = vmatmul.f32.gmra.mxu1 %v32_v61 }
  0x5b   :  { %212 = vmatmul.f32.gmra.mxu2 %v67_v62  ;;  %337 = vmatmul.f32.gmra.mxu3 %v68_v63 }
  0x61   :  { %161 = vmatmul.f32.gmra.mxu0 %v33_v0 }
  0x62   :  { %286 = vmatmul.f32.gmra.mxu1 %v34_v1 }
  0x63   :  { %215 = vmatmul.f32.gmra.mxu2 %v69_v2  ;;  %340 = vmatmul.f32.gmra.mxu3 %v70_v3 }
  0x69   :  { %164 = vmatmul.f32.gmra.mxu0 %v35_v4 }
  0x6a   :  { %289 = vmatmul.f32.gmra.mxu1 %v36_v5 }
  0x6b   :  { %218 = vmatmul.f32.gmra.mxu2 %v71_v6  ;;  %343 = vmatmul.f32.gmra.mxu3 %v72_v7 }
  0x71   :  { %167 = vmatmul.f32.gmra.mxu0 %v37_v8 }
  0x72   :  { %292 = vmatmul.f32.gmra.mxu1 %v38_v9 }
  0x73   :  { %221 = vmatmul.f32.gmra.mxu2 %v73_v10  ;;  %346 = vmatmul.f32.gmra.mxu3 %v74_v11 }
  0x79   :  { %170 = vmatmul.f32.gmra.mxu0 %v39_v12 }
  0x7a   :  { %295 = vmatmul.f32.gmra.mxu1 %v40_v13 }
  0x7b   :  { %224 = vmatmul.f32.gmra.mxu2 %v75_v14  ;;  %349 = vmatmul.f32.gmra.mxu3 %v76_v15 }
  0x81   :  { %173 = vmatmul.f32.gmra.mxu0 %v41_v16 }
  0x82   :  { %298 = vmatmul.f32.gmra.mxu1 %v42_v17 }
  0x83   :  { %227 = vmatmul.f32.gmra.mxu2 %v77_v18  ;;  %352 = vmatmul.f32.gmra.mxu3 %v78_v19 }
  0x89   :  { %176 = vmatmul.f32.gmra.mxu0 %v43_v20 }
  0x8a   :  { %301 = vmatmul.f32.gmra.mxu1 %v44_v21 }
  0x8b   :  { %230 = vmatmul.f32.gmra.mxu2 %v79_v22  ;;  %355 = vmatmul.f32.gmra.mxu3 %v80_v23 }
  0x91   :  { %179 = vmatmul.f32.gmra.mxu0 %v45_v24 }
  0x92   :  { %304 = vmatmul.f32.gmra.mxu1 %v46_v25 }
  0x93   :  { %233 = vmatmul.f32.gmra.mxu2 %v81_v26  ;;  %358 = vmatmul.f32.gmra.mxu3 %v82_v27 }
  0x99   :  { %182 = vmatmul.f32.gmra.mxu0 %v47_v28 }
  0x9a   :  { %307 = vmatmul.f32.gmra.mxu1 %v48_v29 }
  0x9b   :  { %236 = vmatmul.f32.gmra.mxu2 %v83_v30  ;;  %361 = vmatmul.f32.gmra.mxu3 %v84_v31 }
  0x9e   :  { %v138_v32 = vpop.f32.mrf.mxu0 }
  0x9f   :  { %v263_v33 = vpop.f32.mrf.mxu1 }
  0xa0   :  { %v1449_v36 = vadd.f32 %v263_v33, %v138_v32 }
  0xa1   :  { %185 = vmatmul.f32.gmra.mxu0 %v49_v34 }
  0xa2   :  { %310 = vmatmul.f32.gmra.mxu1 %v50_v35 }
  0xa3   :  { %239 = vmatmul.f32.gmra.mxu2 %v85_v37  ;;  %364 = vmatmul.f32.gmra.mxu3 %v86_v38 }
  0xa6   :  { %v141_v39 = vpop.f32.mrf.mxu0  ;;  %v192_v44 = vpop.f32.mrf.mxu2 }
  0xa7   :  { %v266_v40 = vpop.f32.mrf.mxu1  ;;  %v317_v45 = vpop.f32.mrf.mxu3 }
  0xa8   :  { %v1463_v43 = vadd.f32 %v266_v40, %v141_v39  ;;  %v1465_v46 = vadd.f32 %v317_v45, %v192_v44  ;;  %v450_v45 = vmul.f32 %v1449_v36, %v1449_v36 }
  0xa9   :  { %188 = vmatmul.f32.gmra.mxu0 %v51_v41 }
  0xaa   :  { %313 = vmatmul.f32.gmra.mxu1 %v52_v42  ;;  %v451_v39 = vmul.f32 %v1463_v43, %v1463_v43 }
  0xab   :  { %242 = vmatmul.f32.gmra.mxu2 %v87_v47  ;;  %367 = vmatmul.f32.gmra.mxu3 %v88_v48  ;;  %v373_v47 = vsel %vm371_vm0, %v1463_v43, 0.0 }
  0xae   :  { %v144_v49 = vpop.f32.mrf.mxu0  ;;  %v195_v52 = vpop.f32.mrf.mxu2 }
  0xaf   :  { %v269_v50 = vpop.f32.mrf.mxu1  ;;  %v320_v53 = vpop.f32.mrf.mxu3 }
  0xb0   :  { %v1473_v51 = vadd.f32 %v269_v50, %v144_v49  ;;  %v1475_v54 = vadd.f32 %v320_v53, %v195_v52  ;;  %v372_v49 = vsel %vm371_vm0, %v1449_v36, 0.0  ;;  %v487_v50 = vsel %vm371_vm0, %v451_v39, 0.0 }
  0xb2   :  { %v452_v48 = vmul.f32 %v1473_v51, %v1473_v51  ;;  %v375_v52 = vsel %vm371_vm0, %v1473_v51, 0.0 }
  0xb6   :  { %v147_v55 = vpop.f32.mrf.mxu0  ;;  %v198_v58 = vpop.f32.mrf.mxu2 }
  0xb7   :  { %v272_v56 = vpop.f32.mrf.mxu1  ;;  %v323_v59 = vpop.f32.mrf.mxu3 }
  0xb8   :  { %v1477_v57 = vadd.f32 %v272_v56, %v147_v55  ;;  %v1479_v60 = vadd.f32 %v323_v59, %v198_v58  ;;  %v374_v55 = vadd.f32 %v373_v47, %v372_v49  ;;  %v486_v56 = vsel %vm371_vm0, %v450_v45, 0.0 }
  0xb9   :  { %v489_v58 = vsel %vm371_vm0, %v452_v48, 0.0 }
  0xba   :  { %v453_v53 = vmul.f32 %v1477_v57, %v1477_v57  ;;  %v377_v59 = vsel %vm371_vm0, %v1477_v57, 0.0 }
  0xbe   :  { %v150_v61 = vpop.f32.mrf.mxu0  ;;  %v201_v0 = vpop.f32.mrf.mxu2 }
  0xbf   :  { %v275_v62 = vpop.f32.mrf.mxu1  ;;  %v326_v1 = vpop.f32.mrf.mxu3 }
  0xc0   :  { %v1481_v63 = vadd.f32 %v275_v62, %v150_v61  ;;  %v1483_v2 = vadd.f32 %v326_v1, %v201_v0  ;;  %v488_v62 = vadd.f32 %v487_v50, %v486_v56  ;;  %v376_v0 = vadd.f32 %v375_v52, %v374_v55 }
  0xc1   :  { %v491_v1 = vsel %vm371_vm0, %v453_v53, 0.0 }
  0xc2   :  { %v454_v61 = vmul.f32 %v1481_v63, %v1481_v63 }
  0xc6   :  { %v153_v3 = vpop.f32.mrf.mxu0  ;;  %v204_v6 = vpop.f32.mrf.mxu2 }
  0xc7   :  { %v278_v4 = vpop.f32.mrf.mxu1  ;;  %v329_v7 = vpop.f32.mrf.mxu3 }
  0xc8   :  { %v1485_v5 = vadd.f32 %v278_v4, %v153_v3  ;;  %v1487_v8 = vadd.f32 %v329_v7, %v204_v6  ;;  %v379_v3 = vsel %vm371_vm0, %v1481_v63, 0.0  ;;  %v490_v7 = vadd.f32 %v489_v58, %v488_v62 }
  0xca   :  { %v455_v4 = vmul.f32 %v1485_v5, %v1485_v5  ;;  %v492_v45 = vadd.f32 %v491_v1, %v490_v7 }
  0xce   :  { %v156_v9 = vpop.f32.mrf.mxu0  ;;  %v207_v12 = vpop.f32.mrf.mxu2 }
  0xcf   :  { %v281_v10 = vpop.f32.mrf.mxu1  ;;  %v332_v13 = vpop.f32.mrf.mxu3 }
  0xd0   :  { %v1489_v11 = vadd.f32 %v281_v10, %v156_v9  ;;  %v1491_v14 = vadd.f32 %v332_v13, %v207_v12  ;;  %v378_v9 = vadd.f32 %v377_v59, %v376_v0  ;;  %v493_v13 = vsel %vm371_vm0, %v454_v61, 0.0 }
  0xd1   :  { %v494_v53 = vadd.f32 %v493_v13, %v492_v45 }
  0xd2   :  { %v380_v47 = vadd.f32 %v379_v3, %v378_v9  ;;  %v383_v49 = vsel %vm371_vm0, %v1489_v11, 0.0 }
  0xd6   :  { %v159_v15 = vpop.f32.mrf.mxu0  ;;  %v210_v17 = vpop.f32.mrf.mxu2 }
  0xd7   :  { %v284_v16 = vpop.f32.mrf.mxu1  ;;  %v335_v18 = vpop.f32.mrf.mxu3 }
  0xd8   :  { %v1493_v19 = vadd.f32 %v335_v18, %v210_v17  ;;  %v1541_v6 = vadd.f32 %v284_v16, %v159_v15  ;;  %v381_v17 = vsel %vm371_vm0, %v1485_v5, 0.0  ;;  %v456_v18 = vmul.f32 %v1489_v11, %v1489_v11 }
  0xd9   :  { %v495_v16 = vsel %vm371_vm0, %v455_v4, 0.0  ;;  %v382_v55 = vadd.f32 %v381_v17, %v380_v47 }
  0xda   :  { %v457_v50 = vmul.f32 %v1541_v6, %v1541_v6  ;;  %v496_v59 = vadd.f32 %v495_v16, %v494_v53 }
  0xdb   :  { %v384_v61 = vadd.f32 %v383_v49, %v382_v55 }
  0xdc   :  { %v499_v62 = vsel %vm371_vm0, %v457_v50, 0.0 }
  0xde   :  { %v162_v20 = vpop.f32.mrf.mxu0  ;;  %v1495_v22 = vpop.f32.mrf.mxu2 }
  0xdf   :  { %v287_v21 = vpop.f32.mrf.mxu1  ;;  %v1497_v23 = vpop.f32.mrf.mxu3 }
  0xe0   :  { %v1548_v39 = vadd.f32 %v287_v21, %v162_v20  ;;  %v497_v20 = vsel %vm371_vm0, %v456_v18, 0.0  ;;  %v385_v21 = vsel %vm371_vm0, %v1541_v6, 0.0 }
  0xe1   :  { %v498_v1 = vadd.f32 %v497_v20, %v496_v59  ;;  %v386_v3 = vadd.f32 %v385_v21, %v384_v61 }
  0xe2   :  { %v458_v56 = vmul.f32 %v1548_v39, %v1548_v39 }
  0xe3   :  { %v500_v17 = vadd.f32 %v499_v62, %v498_v1 }
  0xe4   :  { %v501_v9 = vsel %vm371_vm0, %v458_v56, 0.0 }
  0xe5   :  { %v502_v16 = vadd.f32 %v501_v9, %v500_v17 }
  0xe6   :  { %v165_v24 = vpop.f32.mrf.mxu0  ;;  %v1499_v26 = vpop.f32.mrf.mxu2 }
  0xe7   :  { %v290_v25 = vpop.f32.mrf.mxu1  ;;  %v1501_v27 = vpop.f32.mrf.mxu3 }
  0xe8   :  { %v1559_v52 = vadd.f32 %v290_v25, %v165_v24  ;;  %v387_v24 = vsel %vm371_vm0, %v1548_v39, 0.0 }
  0xe9   :  { %v388_v18 = vadd.f32 %v387_v24, %v386_v3 }
  0xea   :  { %v459_v25 = vmul.f32 %v1559_v52, %v1559_v52 }
  0xec   :  { %v503_v45 = vsel %vm371_vm0, %v459_v25, 0.0 }
  0xed   :  { %v504_v21 = vadd.f32 %v503_v45, %v502_v16 }
  0xee   :  { %v168_v28 = vpop.f32.mrf.mxu0  ;;  %v1503_v30 = vpop.f32.mrf.mxu2 }
  0xef   :  { %v293_v29 = vpop.f32.mrf.mxu1  ;;  %v1505_v31 = vpop.f32.mrf.mxu3 }
  0xf0   :  { %v1566_v58 = vadd.f32 %v293_v29, %v168_v28  ;;  %v389_v28 = vsel %vm371_vm0, %v1559_v52, 0.0 }
  0xf1   :  { %v390_v49 = vadd.f32 %v389_v28, %v388_v18 }
  0xf2   :  { %v460_v29 = vmul.f32 %v1566_v58, %v1566_v58 }
  0xf6   :  { %v171_v32 = vpop.f32.mrf.mxu0  ;;  %v1507_v34 = vpop.f32.mrf.mxu2 }
  0xf7   :  { %v296_v33 = vpop.f32.mrf.mxu1  ;;  %v1509_v35 = vpop.f32.mrf.mxu3 }
  0xf8   :  { %v1573_v0 = vadd.f32 %v296_v33, %v171_v32  ;;  %v391_v32 = vsel %vm371_vm0, %v1566_v58, 0.0 }
  0xf9   :  { %v392_v56 = vadd.f32 %v391_v32, %v390_v49 }
  0xfa   :  { %v461_v33 = vmul.f32 %v1573_v0, %v1573_v0 }
  0xfe   :  { %v174_v37 = vpop.f32.mrf.mxu0  ;;  %v1513_v40 = vpop.f32.mrf.mxu2 }
  0xff   :  { %v299_v38 = vpop.f32.mrf.mxu1  ;;  %v1515_v41 = vpop.f32.mrf.mxu3 }
 0x100   :  { %v1580_v13 = vadd.f32 %v299_v38, %v174_v37  ;;  %v505_v37 = vsel %vm371_vm0, %v460_v29, 0.0  ;;  %v393_v38 = vsel %vm371_vm0, %v1573_v0, 0.0 }
 0x101   :  { %v506_v62 = vadd.f32 %v505_v37, %v504_v21  ;;  %v394_v24 = vadd.f32 %v393_v38, %v392_v56 }
 0x102   :  { %v462_v55 = vmul.f32 %v1580_v13, %v1580_v13 }
 0x104   :  { %v509_v3 = vsel %vm371_vm0, %v462_v55, 0.0 }
 0x106   :  { %v177_v42 = vpop.f32.mrf.mxu0  ;;  %v1550_v48 = vpop.f32.mrf.mxu2 }
 0x107   :  { %v302_v44 = vpop.f32.mrf.mxu1  ;;  %v1552_v15 = vpop.f32.mrf.mxu3 }
 0x108   :  { %v1587_v47 = vadd.f32 %v302_v44, %v177_v42  ;;  %v507_v42 = vsel %vm371_vm0, %v461_v33, 0.0  ;;  %v395_v44 = vsel %vm371_vm0, %v1580_v13, 0.0 }
 0x109   :  { %v508_v28 = vadd.f32 %v507_v42, %v506_v62  ;;  %v396_v29 = vadd.f32 %v395_v44, %v394_v24 }
 0x10a   :  { %v463_v59 = vmul.f32 %v1587_v47, %v1587_v47 }
 0x10b   :  { %v510_v18 = vadd.f32 %v509_v3, %v508_v28 }
 0x10c   :  { %v511_v17 = vsel %vm371_vm0, %v463_v59, 0.0 }
 0x10d   :  { %v512_v49 = vadd.f32 %v511_v17, %v510_v18 }
 0x10e   :  { %v180_v10 = vpop.f32.mrf.mxu0  ;;  %v1589_v50 = vpop.f32.mrf.mxu2 }
 0x10f   :  { %v305_v12 = vpop.f32.mrf.mxu1  ;;  %v1591_v53 = vpop.f32.mrf.mxu3 }
 0x110   :  { %v1598_v20 = vadd.f32 %v305_v12, %v180_v10  ;;  %v397_v10 = vsel %vm371_vm0, %v1587_v47, 0.0 }
 0x111   :  { %v398_v45 = vadd.f32 %v397_v10, %v396_v29  ;;  %v468_v10 = vmul.f32 %v1465_v46, %v1465_v46 }
 0x112   :  { %v464_v12 = vmul.f32 %v1598_v20, %v1598_v20 }
 0x114   :  { %v513_v32 = vsel %vm371_vm0, %v464_v12, 0.0 }
 0x115   :  { %v514_v42 = vadd.f32 %v513_v32, %v512_v49  ;;  %v470_v49 = vmul.f32 %v1479_v60, %v1479_v60 }
 0x116   :  { %v183_v4 = vpop.f32.mrf.mxu0  ;;  %v1624_v38 = vpop.f32.mrf.mxu2 }
 0x117   :  { %v308_v7 = vpop.f32.mrf.mxu1  ;;  %v1626_v55 = vpop.f32.mrf.mxu3 }
 0x118   :  { %v1605_v61 = vadd.f32 %v308_v7, %v183_v4  ;;  %v399_v4 = vsel %vm371_vm0, %v1598_v20, 0.0 }
 0x119   :  { %v400_v37 = vadd.f32 %v399_v4, %v398_v45  ;;  %v407_v4 = vsel %vm371_vm0, %v1465_v46, 0.0 }
 0x11a   :  { %v465_v7 = vmul.f32 %v1605_v61, %v1605_v61  ;;  %v401_v33 = vsel %vm371_vm0, %v1605_v61, 0.0 }
 0x11b   :  { %v402_v44 = vadd.f32 %v401_v33, %v400_v37  ;;  %v521_v33 = vsel %vm371_vm0, %v468_v10, 0.0  ;;  %v413_v10 = vsel %vm371_vm0, %v1483_v2, 0.0 }
 0x11c   :  { %v515_v21 = vsel %vm371_vm0, %v465_v7, 0.0  ;;  %v469_v7 = vmul.f32 %v1475_v54, %v1475_v54 }
 0x11e   :  { %v186_v25 = vpop.f32.mrf.mxu0 }
 0x11f   :  { %v311_v1 = vpop.f32.mrf.mxu1 }
 0x120   :  { %v1612_v9 = vadd.f32 %v311_v1, %v186_v25  ;;  %v516_v1 = vadd.f32 %v515_v21, %v514_v42  ;;  %v1652_v42 = vpop.f32.mrf.mxu3 }
 0x122   :  { %v466_v16 = vmul.f32 %v1612_v9, %v1612_v9  ;;  %v403_v56 = vsel %vm371_vm0, %v1612_v9, 0.0 }
 0x123   :  { %v404_v3 = vadd.f32 %v403_v56, %v402_v44  ;;  %v1650_v56 = vpop.f32.mrf.mxu2  ;;  %v523_v44 = vsel %vm371_vm0, %v469_v7, 0.0  ;;  %v473_v7 = vmul.f32 %v1491_v14, %v1491_v14 }
 0x124   :  { %v517_v24 = vsel %vm371_vm0, %v466_v16, 0.0  ;;  %v409_v16 = vsel %vm371_vm0, %v1475_v54, 0.0 }
 0x125   :  { %v518_v29 = vadd.f32 %v517_v24, %v516_v1 }
 0x126   :  { %v189_v59 = vpop.f32.mrf.mxu0 }
 0x127   :  { %v314_v62 = vpop.f32.mrf.mxu1 }
 0x128   :  { %v1632_v25 = vadd.f32 %v314_v62, %v189_v59  ;;  %v411_v59 = vsel %vm371_vm0, %v1479_v60, 0.0  ;;  %v471_v62 = vmul.f32 %v1483_v2, %v1483_v2 }
 0x12a   :  { %v405_v12 = vsel %vm371_vm0, %v1632_v25, 0.0  ;;  %v467_v28 = vmul.f32 %v1632_v25, %v1632_v25 }
 0x12b   :  { %v406_v17 = vadd.f32 %v405_v12, %v404_v3  ;;  %v525_v3 = vsel %vm371_vm0, %v470_v49, 0.0  ;;  %v472_v12 = vmul.f32 %v1487_v8, %v1487_v8  ;;  %v474_v49 = vmul.f32 %v1493_v19, %v1493_v19 }
 0x12c   :  { %v519_v18 = vsel %vm371_vm0, %v467_v28, 0.0 }
 0x12d   :  { %v408_v45 = vadd.f32 %v407_v4, %v406_v17  ;;  %v520_v32 = vadd.f32 %v519_v18, %v518_v29  ;;  %v527_v17 = vsel %vm371_vm0, %v471_v62, 0.0  ;;  %v415_v4 = vsel %vm371_vm0, %v1487_v8, 0.0 }
 0x12e   :  { %v1671_v18 = vadd.f32 %v1497_v23, %v1495_v22  ;;  %v419_v22 = vsel %vm371_vm0, %v1493_v19, 0.0  ;;  %v1689_v62 = vadd.f32 %v1505_v31, %v1503_v30 }
 0x12f   :  { %v410_v37 = vadd.f32 %v409_v16, %v408_v45  ;;  %v522_v21 = vadd.f32 %v521_v33, %v520_v32  ;;  %v529_v33 = vsel %vm371_vm0, %v472_v12, 0.0  ;;  %v417_v16 = vsel %vm371_vm0, %v1491_v14, 0.0 }
 0x130   :  { %v475_v23 = vmul.f32 %v1671_v18, %v1671_v18 }
 0x131   :  { %v412_v24 = vadd.f32 %v411_v59, %v410_v37  ;;  %v524_v1 = vadd.f32 %v523_v44, %v522_v21  ;;  %v1680_v37 = vadd.f32 %v1501_v27, %v1499_v26  ;;  %v531_v59 = vsel %vm371_vm0, %v473_v7, 0.0 }
 0x132   :  { %v533_v26 = vsel %vm371_vm0, %v474_v49, 0.0  ;;  %v421_v27 = vsel %vm371_vm0, %v1671_v18, 0.0  ;;  %v535_v30 = vsel %vm371_vm0, %v475_v23, 0.0  ;;  %v1707_v7 = vadd.f32 %v1515_v41, %v1513_v40 }
 0x133   :  { %v414_v28 = vadd.f32 %v413_v10, %v412_v24  ;;  %v526_v29 = vadd.f32 %v525_v3, %v524_v1  ;;  %v240_v3 = vpop.f32.mrf.mxu2  ;;  %v365_v10 = vpop.f32.mrf.mxu3  ;;  %v476_v12 = vmul.f32 %v1680_v37, %v1680_v37  ;;  %v423_v31 = vsel %vm371_vm0, %v1680_v37, 0.0 }
 0x134   :  { %v479_v41 = vmul.f32 %v1707_v7, %v1707_v7 }
 0x135   :  { %v416_v45 = vadd.f32 %v415_v4, %v414_v28  ;;  %v528_v32 = vadd.f32 %v527_v17, %v526_v29  ;;  %v1698_v28 = vadd.f32 %v1509_v35, %v1507_v34  ;;  %v477_v4 = vmul.f32 %v1689_v62, %v1689_v62 }
 0x137   :  { %v418_v21 = vadd.f32 %v417_v16, %v416_v45  ;;  %v530_v44 = vadd.f32 %v529_v33, %v528_v32  ;;  %v1711_v45 = vadd.f32 %v1552_v15, %v1550_v48  ;;  %v537_v32 = vsel %vm371_vm0, %v476_v12, 0.0 }
 0x138   :  { %v425_v33 = vsel %vm371_vm0, %v1689_v62, 0.0  ;;  %v478_v16 = vmul.f32 %v1698_v28, %v1698_v28  ;;  %v427_v40 = vsel %vm371_vm0, %v1698_v28, 0.0  ;;  %v1725_v48 = vadd.f32 %v1591_v53, %v1589_v50 }
 0x139   :  { %v532_v24 = vadd.f32 %v531_v59, %v530_v44  ;;  %v420_v1 = vadd.f32 %v419_v22, %v418_v21  ;;  %v539_v44 = vsel %vm371_vm0, %v477_v4, 0.0  ;;  %v480_v15 = vmul.f32 %v1711_v45, %v1711_v45 }
 0x13a   :  { %v541_v23 = vsel %vm371_vm0, %v478_v16, 0.0  ;;  %v543_v50 = vsel %vm371_vm0, %v479_v41, 0.0  ;;  %v431_v53 = vsel %vm371_vm0, %v1711_v45, 0.0  ;;  %v433_v4 = vsel %vm371_vm0, %v1725_v48, 0.0 }
 0x13b   :  { %v422_v29 = vadd.f32 %v421_v27, %v420_v1  ;;  %v534_v17 = vadd.f32 %v533_v26, %v532_v24  ;;  %v429_v24 = vsel %vm371_vm0, %v1707_v7, 0.0  ;;  %v1734_v1 = vadd.f32 %v1626_v55, %v1624_v38  ;;  %v243_v12 = vpop.f32.mrf.mxu2 }
 0x13d   :  { %v424_v34 = vadd.f32 %v423_v31, %v422_v29  ;;  %v536_v35 = vadd.f32 %v535_v30, %v534_v17  ;;  %v368_v29 = vpop.f32.mrf.mxu3  ;;  %v481_v17 = vmul.f32 %v1725_v48, %v1725_v48  ;;  %v1743_v30 = vadd.f32 %v1652_v42, %v1650_v56 }
 0x13e   :  { %v545_v31 = vsel %vm371_vm0, %v480_v15, 0.0  ;;  %v435_v56 = vsel %vm371_vm0, %v1734_v1, 0.0 }
 0x13f   :  { %v426_v49 = vadd.f32 %v425_v33, %v424_v34  ;;  %v538_v21 = vadd.f32 %v537_v32, %v536_v35  ;;  %v482_v34 = vmul.f32 %v1734_v1, %v1734_v1  ;;  %v1750_v35 = vadd.f32 %v365_v10, %v240_v3 }
 0x140   :  { %v1752_v32 = vadd.f32 %v368_v29, %v243_v12  ;;  %v483_v42 = vmul.f32 %v1743_v30, %v1743_v30  ;;  %v437_v3 = vsel %vm371_vm0, %v1743_v30, 0.0 }
 0x141   :  { %v428_v59 = vadd.f32 %v427_v40, %v426_v49  ;;  %v540_v22 = vadd.f32 %v539_v44, %v538_v21  ;;  %v547_v49 = vsel %vm371_vm0, %v481_v17, 0.0  ;;  %v549_v40 = vsel %vm371_vm0, %v482_v34, 0.0 }
 0x142   :  { %v484_v10 = vmul.f32 %v1750_v35, %v1750_v35  ;;  %v485_v41 = vmul.f32 %v1752_v32, %v1752_v32 }
 0x143   :  { %v430_v26 = vadd.f32 %v429_v24, %v428_v59  ;;  %v542_v27 = vadd.f32 %v541_v23, %v540_v22  ;;  %v551_v22 = vsel %vm371_vm0, %v483_v42, 0.0  ;;  %v439_v23 = vsel %vm371_vm0, %v1750_v35, 0.0 }
 0x144   :  { %v441_v24 = vsel %vm371_vm0, %v1752_v32, 0.0  ;;  %v553_v12 = vsel %vm371_vm0, %v484_v10, 0.0  ;;  %v555_v29 = vsel %vm371_vm0, %v485_v41, 0.0 }
 0x145   :  { %v432_v38 = vadd.f32 %v431_v53, %v430_v26  ;;  %v544_v55 = vadd.f32 %v543_v50, %v542_v27 }
 0x147   :  { %v434_v33 = vadd.f32 %v433_v4, %v432_v38  ;;  %v546_v16 = vadd.f32 %v545_v31, %v544_v55 }
 0x149   :  { %v548_v21 = vadd.f32 %v547_v49, %v546_v16  ;;  %v436_v44 = vadd.f32 %v435_v56, %v434_v33 }
 0x14b   :  { %v550_v15 = vadd.f32 %v549_v40, %v548_v21  ;;  %v438_v59 = vadd.f32 %v437_v3, %v436_v44 }
 0x14d   :  { %v552_v26 = vadd.f32 %v551_v22, %v550_v15  ;;  %v440_v27 = vadd.f32 %v439_v23, %v438_v59 }
 0x14f   :  { %v554_v50 = vadd.f32 %v553_v12, %v552_v26  ;;  %v442_v53 = vadd.f32 %v441_v24, %v440_v27  ;;  %v566_v12 = vld [vmem:[%s2299_s2] sm:$0x1] }
 0x151   :  { %v443_v17 = vrot.slane %v442_v53, 4  ;;  %v556_v31 = vadd.f32 %v555_v29, %v554_v50 }
 0x153   :  { %v444_v38 = vadd.f32 %v443_v17, %v442_v53  ;;  %v557_v55 = vrot.slane %v556_v31, 4 }
 0x155   :  { %v445_v4 = vrot.slane %v444_v38, 2  ;;  %v558_v34 = vadd.f32 %v557_v55, %v556_v31  ;;  %v579_v31 = vld [vmem:[%s2300_s3] sm:$0x1] }
 0x157   :  { %v446_v33 = vadd.f32 %v445_v4, %v444_v38  ;;  %v559_v16 = vrot.slane %v558_v34, 2 }
 0x159   :  { %v447_v49 = vrot.slane %v446_v33, 1  ;;  %v560_v56 = vadd.f32 %v559_v16, %v558_v34 }
 0x15b   :  { %v448_v42 = vadd.f32 %v447_v49, %v446_v33  ;;  %v561_v21 = vrot.slane %v560_v56, 1 }
 0x15d   :  { %v449_v44 = vmul.f32 0.0034722222, %v448_v42  ;;  %v562_v40 = vadd.f32 %v561_v21, %v560_v56 }
 0x15f   :  { %v563_v3 = vmul.f32 0.0034722222, %v562_v40  ;;  %v564_v10 = vmul.f32 %v449_v44, %v449_v44 }
 0x161   :  { %v565_v15 = vsub.f32 %v563_v3, %v564_v10 }
 0x163   :  { %v567_v41 = vadd.f32 1e-05, %v565_v15 }
 0x165   :  { %1056 = vrsqrt.f32 %v567_v41  ;;  %vm574_vm2 = vweird.f32 %v567_v41 }
 0x16b   :  { %v1057_v59 = vpop.eup %1056 }
 0x16c   :  { %v569_v22 = vmul.f32 %v1057_v59, %v567_v41  ;;  %vm575_vm1 = vweird.f32 %v1057_v59 }
 0x16d   :  { %vm576_vm3 = vmor %vm574_vm2, %vm575_vm1 }
 0x16e   :  { %v570_v23 = vmul.f32 %v1057_v59, %v569_v22 }
 0x170   :  { %v571_v24 = vmul.f32 0.5, %v570_v23 }
 0x172   :  { %v572_v26 = vsub.f32 1.5, %v571_v24 }
 0x174   :  { %v573_v27 = vmul.f32 %v1057_v59, %v572_v26 }
 0x176   :  { %v577_v29 = vsel %vm576_vm3, %v1057_v59, %v573_v27 }
 0x177   :  { %v578_v50 = vmul.f32 %v577_v29, %v566_v12 }
 0x179   :  { %v580_v53 = vmul.f32 %v578_v50, %v449_v44  ;;  %v583_v17 = vperm.slane %v578_v50, 0 }
 0x17b   :  { %v581_v38 = vsub.f32 %v579_v31, %v580_v53  ;;  %v585_v55 = vmul.f32 %v583_v17, %v1449_v36  ;;  %v586_v4 = vmul.f32 %v583_v17, %v1463_v43  ;;  %v587_v34 = vmul.f32 %v583_v17, %v1473_v51 }
 0x17c   :  { %v588_v33 = vmul.f32 %v583_v17, %v1477_v57  ;;  %v589_v16 = vmul.f32 %v583_v17, %v1481_v63  ;;  %v590_v49 = vmul.f32 %v583_v17, %v1485_v5  ;;  %v591_v56 = vmul.f32 %v583_v17, %v1489_v11 }
 0x17d   :  { %v592_v42 = vmul.f32 %v583_v17, %v1541_v6  ;;  %v593_v21 = vmul.f32 %v583_v17, %v1548_v39  ;;  %v594_v44 = vmul.f32 %v583_v17, %v1559_v52  ;;  %v595_v36 = vmul.f32 %v583_v17, %v1566_v58 }
 0x17e   :  { %v596_v43 = vmul.f32 %v583_v17, %v1573_v0  ;;  %v597_v51 = vmul.f32 %v583_v17, %v1580_v13  ;;  %v598_v57 = vmul.f32 %v583_v17, %v1587_v47  ;;  %v599_v63 = vmul.f32 %v583_v17, %v1598_v20 }
 0x17f   :  { %v600_v5 = vmul.f32 %v583_v17, %v1605_v61  ;;  %v601_v11 = vmul.f32 %v583_v17, %v1612_v9  ;;  %v602_v6 = vmul.f32 %v583_v17, %v1632_v25  ;;  %v603_v39 = vmul.f32 %v583_v17, %v1465_v46 }
 0x180   :  { %v604_v52 = vmul.f32 %v583_v17, %v1475_v54  ;;  %v605_v58 = vmul.f32 %v583_v17, %v1479_v60  ;;  %v606_v0 = vmul.f32 %v583_v17, %v1483_v2  ;;  %v607_v13 = vmul.f32 %v583_v17, %v1487_v8 }
 0x181   :  { %v608_v47 = vmul.f32 %v583_v17, %v1491_v14  ;;  %v622_v40 = vperm.slane %v581_v38, 0  ;;  %v609_v20 = vmul.f32 %v583_v17, %v1493_v19  ;;  %v610_v61 = vmul.f32 %v583_v17, %v1671_v18 }
 0x182   :  { %v611_v9 = vmul.f32 %v583_v17, %v1680_v37  ;;  %v612_v25 = vmul.f32 %v583_v17, %v1689_v62  ;;  %v613_v46 = vmul.f32 %v583_v17, %v1698_v28  ;;  %v614_v54 = vmul.f32 %v583_v17, %v1707_v7 }
 0x183   :  { %v615_v60 = vmul.f32 %v583_v17, %v1711_v45  ;;  %v616_v2 = vmul.f32 %v583_v17, %v1725_v48  ;;  %v617_v8 = vmul.f32 %v583_v17, %v1734_v1  ;;  %v618_v14 = vmul.f32 %v583_v17, %v1743_v30 }
 0x184   :  { %v619_v19 = vmul.f32 %v583_v17, %v1750_v35  ;;  %v620_v18 = vmul.f32 %v583_v17, %v1752_v32  ;;  %v1815_v3 = vadd.f32 %v622_v40, %v585_v55  ;;  %v1817_v37 = vadd.f32 %v622_v40, %v586_v4 }
 0x185   :  { %v1819_v62 = vadd.f32 %v622_v40, %v587_v34  ;;  %v1821_v28 = vadd.f32 %v622_v40, %v588_v33  ;;  %v1823_v7 = vadd.f32 %v622_v40, %v589_v16  ;;  %v1825_v45 = vadd.f32 %v622_v40, %v590_v49 }
 0x186   :  { %v1827_v48 = vadd.f32 %v622_v40, %v591_v56  ;;  %v1829_v1 = vadd.f32 %v622_v40, %v592_v42  ;;  %v1831_v30 = vadd.f32 %v622_v40, %v593_v21  ;;  %v1833_v35 = vadd.f32 %v622_v40, %v594_v44 }
 0x187   :  { %v1835_v32 = vadd.f32 %v622_v40, %v595_v36  ;;  %v1837_v10 = vadd.f32 %v622_v40, %v596_v43  ;;  %v1839_v15 = vadd.f32 %v622_v40, %v597_v51  ;;  %v1841_v41 = vadd.f32 %v622_v40, %v598_v57 }
 0x188   :  { %v1843_v59 = vadd.f32 %v622_v40, %v599_v63  ;;  %v1845_v22 = vadd.f32 %v622_v40, %v600_v5  ;;  %v1847_v23 = vadd.f32 %v622_v40, %v601_v11  ;;  %v1849_v24 = vadd.f32 %v622_v40, %v602_v6 }
 0x189   :  { %v1851_v26 = vadd.f32 %v622_v40, %v603_v39  ;;  %v1853_v27 = vadd.f32 %v622_v40, %v604_v52  ;;  %v1855_v12 = vadd.f32 %v622_v40, %v605_v58  ;;  %v1857_v29 = vadd.f32 %v622_v40, %v606_v0 }
 0x18a   :  { %2338 = vst [vmem:[#allocation2_spill] sm:$0xff] %v1849_v24  ;;  %v1859_v50 = vadd.f32 %v622_v40, %v607_v13  ;;  %v1861_v53 = vadd.f32 %v622_v40, %v608_v47  ;;  %v1863_v17 = vadd.f32 %v622_v40, %v609_v20  ;;  %v1865_v31 = vadd.f32 %v622_v40, %v610_v61 }
 0x18b   :  { %2339 = vst [vmem:[#allocation3_spill] sm:$0xff] %v1851_v26  ;;  %v1867_v38 = vadd.f32 %v622_v40, %v611_v9  ;;  %v1869_v55 = vadd.f32 %v622_v40, %v612_v25  ;;  %v1871_v4 = vadd.f32 %v622_v40, %v613_v46  ;;  %v1873_v34 = vadd.f32 %v622_v40, %v614_v54 }
 0x18c   :  { %2340 = vst [vmem:[#allocation4_spill] sm:$0xff] %v1855_v12  ;;  %v1875_v33 = vadd.f32 %v622_v40, %v615_v60  ;;  %v660_v16 = vmin.f32 %v1815_v3, 0.0  ;;  %v1878_v49 = vadd.f32 %v622_v40, %v616_v2  ;;  %v1880_v56 = vadd.f32 %v622_v40, %v617_v8 }
 0x18d   :  { %2341 = vst [vmem:[#allocation5_spill] sm:$0xff] %v1857_v29  ;;  %v1882_v42 = vadd.f32 %v622_v40, %v618_v14  ;;  %v661_v21 = vmin.f32 %v1817_v37, 0.0  ;;  %v1885_v44 = vadd.f32 %v622_v40, %v619_v19  ;;  %v1887_v36 = vadd.f32 %v622_v40, %v620_v18 }
 0x18e   :  { %2342 = vst [vmem:[#allocation6_spill] sm:$0xff] %v1859_v50  ;;  %v662_v43 = vmin.f32 %v1819_v62, 0.0  ;;  %v663_v51 = vmin.f32 %v1821_v28, 0.0  ;;  %v664_v57 = vmin.f32 %v1823_v7, 0.0  ;;  %v665_v63 = vmin.f32 %v1825_v45, 0.0 }
 0x18f   :  { %2343 = vst [vmem:[#allocation7_spill] sm:$0xff] %v1861_v53  ;;  %v666_v5 = vmin.f32 %v1827_v48, 0.0  ;;  %v667_v11 = vmin.f32 %v1829_v1, 0.0  ;;  %v668_v6 = vmin.f32 %v1831_v30, 0.0  ;;  %v669_v39 = vmin.f32 %v1833_v35, 0.0 }
 0x190   :  { %2344 = vst [vmem:[#allocation8_spill] sm:$0xff] %v1863_v17  ;;  %v670_v52 = vmin.f32 %v1835_v32, 0.0  ;;  %v696_v58 = vmul.f32 1.442695, %v660_v16  ;;  %v671_v0 = vmin.f32 %v1837_v10, 0.0  ;;  %v672_v13 = vmin.f32 %v1839_v15, 0.0 }
 0x191   :  { %2345 = vst [vmem:[#allocation9_spill] sm:$0xff] %v1865_v31  ;;  %v673_v47 = vmin.f32 %v1841_v41, 0.0  ;;  %v698_v40 = vmul.f32 1.442695, %v661_v21  ;;  %v674_v20 = vmin.f32 %v1843_v59, 0.0  ;;  %v675_v61 = vmin.f32 %v1845_v22, 0.0 }
 0x192   :  { %2346 = vst [vmem:[#allocation10_spill] sm:$0xff] %v1867_v38  ;;  %v676_v9 = vmin.f32 %v1847_v23, 0.0  ;;  %v700_v25 = vmul.f32 1.442695, %v662_v43  ;;  %v677_v46 = vmin.f32 %v1849_v24, 0.0  ;;  %v678_v54 = vmin.f32 %v1851_v26, 0.0 }
 0x193   :  { %2347 = vst [vmem:[#allocation11_spill] sm:$0xff] %v1869_v55  ;;  %v679_v60 = vmin.f32 %v1853_v27, 0.0  ;;  %v702_v2 = vmul.f32 1.442695, %v663_v51  ;;  %v680_v8 = vmin.f32 %v1855_v12, 0.0  ;;  %v681_v14 = vmin.f32 %v1857_v29, 0.0 }
 0x194   :  { %2348 = vst [vmem:[#allocation12_spill] sm:$0xff] %v1871_v4  ;;  %1058 = vpow2.f32 %v696_v58  ;;  %v704_v19 = vmul.f32 1.442695, %v664_v57  ;;  %v682_v18 = vmin.f32 %v1859_v50, 0.0  ;;  %v683_v16 = vmin.f32 %v1861_v53, 0.0 }
 0x195   :  { %2349 = vst [vmem:[#allocation13_spill] sm:$0xff] %v1873_v34  ;;  %1060 = vpow2.f32 %v698_v40  ;;  %v706_v21 = vmul.f32 1.442695, %v665_v63  ;;  %v684_v43 = vmin.f32 %v1863_v17, 0.0  ;;  %v685_v24 = vmin.f32 %v1865_v31, 0.0 }
 0x196   :  { %2350 = vst [vmem:[#allocation14_spill] sm:$0xff] %v1875_v33  ;;  %1062 = vpow2.f32 %v700_v25  ;;  %v708_v26 = vmul.f32 1.442695, %v666_v5  ;;  %v686_v51 = vmin.f32 %v1867_v38, 0.0  ;;  %v687_v12 = vmin.f32 %v1869_v55, 0.0 }
 0x197   :  { %2351 = vst [vmem:[#allocation15_spill] sm:$0xff] %v1878_v49  ;;  %1064 = vpow2.f32 %v702_v2  ;;  %v710_v29 = vmul.f32 1.442695, %v667_v11  ;;  %v688_v57 = vmin.f32 %v1871_v4, 0.0  ;;  %v689_v58 = vmin.f32 %v1873_v34, 0.0 }
 0x198   :  { %2352 = vst [vmem:[#allocation16_spill] sm:$0xff] %v1880_v56  ;;  %1066 = vpow2.f32 %v704_v19  ;;  %v712_v53 = vmul.f32 1.442695, %v668_v6  ;;  %v690_v63 = vmin.f32 %v1875_v33, 0.0  ;;  %v691_v40 = vmin.f32 %v1878_v49, 0.0 }
 0x199   :  { %2353 = vst [vmem:[#allocation17_spill] sm:$0xff] %v1882_v42  ;;  %1068 = vpow2.f32 %v706_v21  ;;  %v714_v31 = vmul.f32 1.442695, %v669_v39  ;;  %v692_v5 = vmin.f32 %v1880_v56, 0.0  ;;  %v693_v38 = vmin.f32 %v1882_v42, 0.0 }
 0x19a   :  { %2354 = vst [vmem:[#allocation18_spill] sm:$0xff] %v1885_v44  ;;  %v1059_v25 = vpop.eup %1058  ;;  %1070 = vpow2.f32 %v708_v26  ;;  %v716_v2 = vmul.f32 1.442695, %v670_v52  ;;  %v694_v4 = vmin.f32 %v1885_v44, 0.0  ;;  %v695_v34 = vmin.f32 %v1887_v36, 0.0 }
 0x19b   :  { %2355 = vst [vmem:[#allocation19_spill] sm:$0xff] %v1887_v36  ;;  %v1061_v11 = vpop.eup %1060  ;;  %1072 = vpow2.f32 %v710_v29  ;;  %v718_v6 = vmul.f32 1.442695, %v671_v0  ;;  %v720_v33 = vmul.f32 1.442695, %v672_v13  ;;  %vm840_vm4 = vcmp.gt.f32.partialorder %v1815_v3, 0.0 }
 0x19c   :  { %v1063_v19 = vpop.eup %1062  ;;  %1074 = vpow2.f32 %v712_v53  ;;  %v722_v49 = vmul.f32 1.442695, %v673_v47  ;;  %v724_v21 = vmul.f32 1.442695, %v674_v20  ;;  %v726_v55 = vmul.f32 1.442695, %v675_v61 }
 0x19d   :  { %v1065_v39 = vpop.eup %1064  ;;  %1076 = vpow2.f32 %v714_v31  ;;  %v728_v56 = vmul.f32 1.442695, %v676_v9  ;;  %v730_v17 = vmul.f32 1.442695, %v677_v46  ;;  %v732_v26 = vmul.f32 1.442695, %v678_v54 }
 0x19e   :  { %v1067_v42 = vpop.eup %1066  ;;  %1078 = vpow2.f32 %v716_v2  ;;  %v734_v52 = vmul.f32 1.442695, %v679_v60  ;;  %v736_v50 = vmul.f32 1.442695, %v680_v8  ;;  %v738_v36 = vmul.f32 1.442695, %v681_v14 }
 0x19f   :  { %v1069_v44 = vpop.eup %1068  ;;  %1080 = vpow2.f32 %v718_v6  ;;  %v1923_v29 = vmul.f32 1.442695, %v682_v18  ;;  %v1925_v0 = vmul.f32 1.442695, %v683_v16  ;;  %v1927_v13 = vmul.f32 1.442695, %v684_v43 }
 0x1a0   :  { %v1071_v53 = vpop.eup %1070  ;;  %1082 = vpow2.f32 %v720_v33  ;;  %v1929_v31 = vmul.f32 1.442695, %v685_v24  ;;  %v1931_v47 = vmul.f32 1.442695, %v686_v51  ;;  %v1933_v61 = vmul.f32 1.442695, %v687_v12 }
 0x1a1   :  { %v1073_v20 = vpop.eup %1072  ;;  %1084 = vpow2.f32 %v722_v49  ;;  %v1935_v9 = vmul.f32 1.442695, %v688_v57  ;;  %v1937_v46 = vmul.f32 1.442695, %v689_v58  ;;  %v1939_v60 = vmul.f32 1.442695, %v690_v63 }
 0x1a2   :  { %v1075_v54 = vpop.eup %1074  ;;  %1086 = vpow2.f32 %v724_v21  ;;  %v1941_v8 = vmul.f32 1.442695, %v691_v40  ;;  %v988_v33 = vadd.f32 -1.0, %v1059_v25  ;;  %v1943_v24 = vmul.f32 1.442695, %v692_v5 }
 0x1a3   :  { %v1077_v14 = vpop.eup %1076  ;;  %1088 = vpow2.f32 %v726_v55  ;;  %v989_v18 = vadd.f32 -1.0, %v1061_v11  ;;  %v990_v16 = vadd.f32 -1.0, %v1063_v19  ;;  %v1945_v12 = vmul.f32 1.442695, %v693_v38 }
 0x1a4   :  { %v1079_v49 = vpop.eup %1078  ;;  %1090 = vpow2.f32 %v728_v56  ;;  %v991_v43 = vadd.f32 -1.0, %v1065_v39  ;;  %v992_v51 = vadd.f32 -1.0, %v1067_v42  ;;  %v1947_v58 = vmul.f32 1.442695, %v694_v4 }
 0x1a5   :  { %v1081_v57 = vpop.eup %1080  ;;  %1092 = vpow2.f32 %v730_v17  ;;  %v993_v63 = vadd.f32 -1.0, %v1069_v44  ;;  %v994_v40 = vadd.f32 -1.0, %v1071_v53  ;;  %v1949_v25 = vmul.f32 1.442695, %v695_v34 }
 0x1a6   :  { %v1083_v2 = vpop.eup %1082  ;;  %1094 = vpow2.f32 %v732_v26  ;;  %v995_v55 = vadd.f32 -1.0, %v1073_v20  ;;  %v804_v5 = vmul.f32 1.6732632, %v988_v33  ;;  %v996_v6 = vadd.f32 -1.0, %v1075_v54 }
 0x1a7   :  { %v1085_v11 = vpop.eup %1084  ;;  %v805_v19 = vmul.f32 1.6732632, %v989_v18  ;;  %v806_v56 = vmul.f32 1.6732632, %v990_v16  ;;  %1096 = vpow2.f32 %v734_v52  ;;  %v997_v21 = vadd.f32 -1.0, %v1077_v14 }
 0x1a8   :  { %v1087_v38 = vpop.eup %1086  ;;  %v807_v42 = vmul.f32 1.6732632, %v991_v43  ;;  %v1951_v39 = vmul.f32 1.6732632, %v992_v51  ;;  %1098 = vpow2.f32 %v736_v50  ;;  %v998_v4 = vadd.f32 -1.0, %v1079_v49 }
 0x1a9   :  { %v1089_v17 = vpop.eup %1088  ;;  %v1954_v44 = vmul.f32 1.6732632, %v993_v63  ;;  %v1956_v34 = vmul.f32 1.6732632, %v994_v40  ;;  %v999_v53 = vadd.f32 -1.0, %v1081_v57  ;;  %v1000_v20 = vadd.f32 -1.0, %v1083_v2 }
 0x1aa   :  { %v1091_v26 = vpop.eup %1090  ;;  %v1958_v54 = vmul.f32 1.6732632, %v995_v55  ;;  %vm841_vm5 = vcmp.gt.f32.partialorder %v1817_v37, 0.0  ;;  %1100 = vpow2.f32 %v738_v36  ;;  %v1961_v33 = vmul.f32 1.6732632, %v996_v6 }
 0x1ab   :  { %v1093_v52 = vpop.eup %1092  ;;  %vm842_vm6 = vcmp.gt.f32.partialorder %v1819_v62, 0.0  ;;  %vm843_vm7 = vcmp.gt.f32.partialorder %v1821_v28, 0.0  ;;  %v1001_v14 = vadd.f32 -1.0, %v1085_v11  ;;  %v1002_v18 = vadd.f32 -1.0, %v1087_v38 }
 0x1ac   :  { %v1095_v50 = vpop.eup %1094  ;;  %v1965_v16 = vmul.f32 1.6732632, %v997_v21  ;;  %vm844_vm8 = vcmp.gt.f32.partialorder %v1823_v7, 0.0  ;;  %1102 = vpow2.f32 %v1923_v29  ;;  %v1003_v49 = vadd.f32 -1.0, %v1089_v17 }
 0x1ad   :  { %v1969_v43 = vmul.f32 1.6732632, %v998_v4  ;;  %vm845_vm9 = vcmp.gt.f32.partialorder %v1825_v45, 0.0  ;;  %v1097_v36 = vpop.eup %1096  ;;  %v1004_v51 = vadd.f32 -1.0, %v1091_v26  ;;  %v1972_v57 = vmul.f32 1.6732632, %v999_v53 }
 0x1ae   :  { %v1974_v63 = vmul.f32 1.6732632, %v1000_v20  ;;  %vm846_vm10 = vcmp.gt.f32.partialorder %v1827_v48, 0.0  ;;  %v1099_v40 = vpop.eup %1098  ;;  %1104 = vpow2.f32 %v1925_v0  ;;  %v1005_v2 = vadd.f32 -1.0, %v1093_v52 }
 0x1af   :  { %v1006_v55 = vadd.f32 -1.0, %v1095_v50  ;;  %vm847_vm11 = vcmp.gt.f32.partialorder %v1829_v1, 0.0  ;;  %1106 = vpow2.f32 %v1927_v13  ;;  %v1980_v29 = vmul.f32 1.6732632, %v1001_v14 }
 0x1b0   :  { %v1982_v11 = vmul.f32 1.6732632, %v1002_v18  ;;  %vm848_vm12 = vcmp.gt.f32.partialorder %v1831_v30, 0.0  ;;  %v1101_v6 = vpop.eup %1100  ;;  %1108 = vpow2.f32 %v1929_v31  ;;  %v1007_v38 = vadd.f32 -1.0, %v1097_v36 }
 0x1b1   :  { %v1986_v21 = vmul.f32 1.6732632, %v1003_v49  ;;  %vm849_vm13 = vcmp.gt.f32.partialorder %v1833_v35, 0.0  ;;  %v876_v0 = vsel %vm840_vm4, %v1815_v3, %v804_v5  ;;  %1110 = vpow2.f32 %v1931_v47 }
 0x1b2   :  { %v1008_v13 = vadd.f32 -1.0, %v1099_v40  ;;  %v1993_v17 = vmul.f32 1.6732632, %v1004_v51  ;;  %vm850_vm14 = vcmp.gt.f32.partialorder %v1835_v32, 0.0  ;;  %v877_v31 = vsel %vm841_vm5, %v1817_v37, %v805_v19  ;;  %v1103_v4 = vpop.eup %1102 }
 0x1b3   :  { %1112 = vpow2.f32 %v1933_v61  ;;  %v2000_v26 = vmul.f32 1.6732632, %v1005_v2  ;;  %v2002_v53 = vmul.f32 1.6732632, %v1006_v55  ;;  %vm851_vm15 = vcmp.gt.f32.partialorder %v1837_v10, 0.0 }
 0x1b4   :  { %v878_v3 = vsel %vm842_vm6, %v1819_v62, %v806_v56  ;;  %1114 = vpow2.f32 %v1935_v9  ;;  %v1009_v47 = vadd.f32 -1.0, %v1101_v6  ;;  %vm852_vm1 = vcmp.gt.f32.partialorder %v1839_v15, 0.0  ;;  %v1105_v5 = vpop.eup %1104 }
 0x1b5   :  { %v879_v37 = vsel %vm843_vm7, %v1821_v28, %v807_v42  ;;  %v912_v61 = vmul.f32 1.050701, %v876_v0  ;;  %1116 = vpow2.f32 %v1937_v46  ;;  %v2014_v19 = vmul.f32 1.6732632, %v1007_v38  ;;  %v1107_v56 = vpop.eup %1106 }
 0x1b6   :  { %vm853_vm2 = vcmp.gt.f32.partialorder %v1841_v41, 0.0  ;;  %v880_v62 = vsel %vm844_vm8, %v1823_v7, %v1951_v39  ;;  %v913_v9 = vmul.f32 1.050701, %v877_v31  ;;  %v1010_v20 = vadd.f32 -1.0, %v1103_v4  ;;  %v1109_v42 = vpop.eup %1108 }
 0x1b7   :  { %v2021_v52 = vmul.f32 1.6732632, %v1008_v13  ;;  %vm854_vm3 = vcmp.gt.f32.partialorder %v1843_v59, 0.0  ;;  %v881_v28 = vsel %vm845_vm9, %v1825_v45, %v1954_v44  ;;  %v914_v46 = vmul.f32 1.050701, %v878_v3  ;;  %v1111_v50 = vpop.eup %1110  ;;  %948 = vst.msk [vmem:[%s2301_s4] sm:$0xff] %vm371_vm0, %v912_v61 }
 0x1b8   :  { %1118 = vpow2.f32 %v1939_v60  ;;  %vm855_vm4 = vcmp.gt.f32.partialorder %v1845_v22, 0.0  ;;  %v882_v7 = vsel %vm846_vm10, %v1827_v48, %v1956_v34  ;;  %v915_v39 = vmul.f32 1.050701, %v879_v37  ;;  %949 = vst.msk [vmem:[%s2301_s4 + $0x8] sm:$0xff] %vm371_vm0, %v913_v9 }
 0x1b9   :  { %v1011_v14 = vadd.f32 -1.0, %v1105_v5  ;;  %v2034_v18 = vmul.f32 1.6732632, %v1009_v47  ;;  %v883_v45 = vsel %vm847_vm11, %v1829_v1, %v1958_v54  ;;  %v916_v44 = vmul.f32 1.050701, %v880_v62  ;;  %v1113_v60 = vpop.eup %1112  ;;  %950 = vst.msk [vmem:[%s2301_s4 + $0x10] sm:$0xff] %vm371_vm0, %v914_v46 }
 0x1ba   :  { %1120 = vpow2.f32 %v1941_v8  ;;  %vm856_vm5 = vcmp.gt.f32.partialorder %v1847_v23, 0.0  ;;  %v884_v48 = vsel %vm848_vm12, %v1831_v30, %v1961_v33  ;;  %v917_v34 = vmul.f32 1.050701, %v881_v28  ;;  %v1115_v1 = vpop.eup %1114  ;;  %v2356_v33 = vld [vmem:[#allocation2_spill] sm:$0xff]  ;;  %951 = vst.msk [vmem:[%s2301_s4 + $0x18] sm:$0xff] %vm371_vm0, %v915_v39  ;;  %v2359_v47 = vld [vmem:[#allocation5_spill] sm:$0xff] }
 0x1bb   :  { %v1012_v54 = vadd.f32 -1.0, %v1107_v56  ;;  %v2054_v49 = vmul.f32 1.6732632, %v1010_v20  ;;  %v885_v8 = vsel %vm849_vm13, %v1833_v35, %v1965_v16  ;;  %v918_v36 = vmul.f32 1.050701, %v882_v7  ;;  %v1117_v30 = vpop.eup %1116  ;;  %952 = vst.msk [vmem:[%s2301_s4 + $0x20] sm:$0xff] %vm371_vm0, %v916_v44 }
 0x1bc   :  { %1122 = vpow2.f32 %v1943_v24  ;;  %vm857_vm6 = vcmp.gt.f32.partialorder %v2356_v33, 0.0  ;;  %v886_v51 = vsel %vm850_vm14, %v1835_v32, %v1969_v43  ;;  %v919_v40 = vmul.f32 1.050701, %v883_v45  ;;  %v2357_v43 = vld [vmem:[#allocation3_spill] sm:$0xff]  ;;  %953 = vst.msk [vmem:[%s2301_s4 + $0x28] sm:$0xff] %vm371_vm0, %v917_v34  ;;  %v2360_v5 = vld [vmem:[#allocation6_spill] sm:$0xff] }
 0x1bd   :  { %v1013_v35 = vadd.f32 -1.0, %v1109_v42  ;;  %v2074_v16 = vmul.f32 1.6732632, %v1011_v14  ;;  %v887_v24 = vsel %vm851_vm15, %v1837_v10, %v1972_v57  ;;  %v920_v2 = vmul.f32 1.050701, %v884_v48  ;;  %954 = vst.msk [vmem:[%s2301_s4 + $0x30] sm:$0xff] %vm371_vm0, %v918_v36 }
 0x1be   :  { %v1119_v32 = vpop.eup %1118  ;;  %1124 = vpow2.f32 %v1945_v12  ;;  %vm858_vm7 = vcmp.gt.f32.partialorder %v2357_v43, 0.0  ;;  %v888_v55 = vsel %vm852_vm1, %v1839_v15, %v1974_v63  ;;  %v921_v6 = vmul.f32 1.050701, %v885_v8  ;;  %955 = vst.msk [vmem:[%s2301_s4 + $0x38] sm:$0xff] %vm371_vm0, %v919_v40  ;;  %v2361_v20 = vld [vmem:[#allocation7_spill] sm:$0xff]  ;;  %v2364_v44 = vld [vmem:[#allocation10_spill] sm:$0xff] }
 0x1bf   :  { %v1014_v10 = vadd.f32 -1.0, %v1111_v50  ;;  %v828_v57 = vmul.f32 1.6732632, %v1012_v54  ;;  %v889_v12 = vsel %vm853_vm2, %v1841_v41, %v1980_v29  ;;  %v922_v38 = vmul.f32 1.050701, %v886_v51  ;;  %956 = vst.msk [vmem:[%s2301_s4 + $0x40] sm:$0xff] %vm371_vm0, %v920_v2 }
 0x1c0   :  { %v1121_v15 = vpop.eup %1120  ;;  %1126 = vpow2.f32 %v1947_v58  ;;  %vm859_vm8 = vcmp.gt.f32.partialorder %v1853_v27, 0.0  ;;  %v890_v63 = vsel %vm854_vm3, %v1843_v59, %v1982_v11  ;;  %v923_v0 = vmul.f32 1.050701, %v887_v24  ;;  %v2358_v11 = vld [vmem:[#allocation4_spill] sm:$0xff]  ;;  %957 = vst.msk [vmem:[%s2301_s4 + $0x48] sm:$0xff] %vm371_vm0, %v921_v6  ;;  %v2363_v50 = vld [vmem:[#allocation9_spill] sm:$0xff] }
 0x1c1   :  { %v1015_v41 = vadd.f32 -1.0, %v1113_v60  ;;  %v829_v29 = vmul.f32 1.6732632, %v1013_v35  ;;  %v891_v58 = vsel %vm855_vm4, %v1845_v22, %v1986_v21  ;;  %v924_v13 = vmul.f32 1.050701, %v888_v55  ;;  %958 = vst.msk [vmem:[%s2301_s4 + $0x50] sm:$0xff] %vm371_vm0, %v922_v38 }
 0x1c2   :  { %v1123_v59 = vpop.eup %1122  ;;  %1128 = vpow2.f32 %v1949_v25  ;;  %vm860_vm9 = vcmp.gt.f32.partialorder %v2358_v11, 0.0  ;;  %v892_v31 = vsel %vm856_vm5, %v1847_v23, %v1993_v17  ;;  %v925_v4 = vmul.f32 1.050701, %v889_v12  ;;  %959 = vst.msk [vmem:[%s2301_s4 + $0x58] sm:$0xff] %vm371_vm0, %v923_v0  ;;  %v2366_v40 = vld [vmem:[#allocation12_spill] sm:$0xff]  ;;  %v2367_v6 = vld [vmem:[#allocation13_spill] sm:$0xff] }
 0x1c3   :  { %v1016_v22 = vadd.f32 -1.0, %v1115_v1  ;;  %v830_v21 = vmul.f32 1.6732632, %v1014_v10  ;;  %v893_v25 = vsel %vm857_vm6, %v2356_v33, %v2000_v26  ;;  %v926_v3 = vmul.f32 1.050701, %v890_v63  ;;  %960 = vst.msk [vmem:[%s2301_s4 + $0x60] sm:$0xff] %vm371_vm0, %v924_v13 }
 0x1c4   :  { %v1125_v23 = vpop.eup %1124  ;;  %v1017_v17 = vadd.f32 -1.0, %v1117_v30  ;;  %vm861_vm10 = vcmp.gt.f32.partialorder %v2359_v47, 0.0  ;;  %v894_v37 = vsel %vm858_vm7, %v2357_v43, %v2002_v53  ;;  %v927_v61 = vmul.f32 1.050701, %v891_v58  ;;  %961 = vst.msk [vmem:[%s2301_s4 + $0x68] sm:$0xff] %vm371_vm0, %v925_v4  ;;  %v2365_v1 = vld [vmem:[#allocation11_spill] sm:$0xff] }
 0x1c5   :  { %v831_v26 = vmul.f32 1.6732632, %v1015_v41  ;;  %vm862_vm11 = vcmp.gt.f32.partialorder %v2360_v5, 0.0  ;;  %v895_v62 = vsel %vm859_vm8, %v1853_v27, %v2014_v19  ;;  %v928_v9 = vmul.f32 1.050701, %v892_v31  ;;  %v2362_v19 = vld [vmem:[#allocation8_spill] sm:$0xff] }
 0x1c6   :  { %v1127_v53 = vpop.eup %1126  ;;  %v1018_v56 = vadd.f32 -1.0, %v1119_v32  ;;  %vm863_vm12 = vcmp.gt.f32.partialorder %v2361_v20, 0.0  ;;  %v896_v28 = vsel %vm860_vm9, %v2358_v11, %v2021_v52  ;;  %v929_v46 = vmul.f32 1.050701, %v893_v25  ;;  %962 = vst.msk [vmem:[%s2301_s4 + $0x70] sm:$0xff] %vm371_vm0, %v926_v3  ;;  %v2368_v38 = vld [vmem:[#allocation14_spill] sm:$0xff] }
 0x1c7   :  { %v832_v27 = vmul.f32 1.6732632, %v1016_v22  ;;  %vm864_vm13 = vcmp.gt.f32.partialorder %v2362_v19, 0.0  ;;  %v897_v42 = vsel %vm861_vm10, %v2359_v47, %v2034_v18  ;;  %v930_v7 = vmul.f32 1.050701, %v894_v37  ;;  %963 = vst.msk [vmem:[%s2301_s4 + $0x78] sm:$0xff] %vm371_vm0, %v927_v61 }
 0x1c8   :  { %v1129_v52 = vpop.eup %1128  ;;  %v1019_v39 = vadd.f32 -1.0, %v1121_v15  ;;  %vm865_vm14 = vcmp.gt.f32.partialorder %v2363_v50, 0.0  ;;  %v898_v14 = vsel %vm862_vm11, %v2360_v5, %v2054_v49  ;;  %v931_v45 = vmul.f32 1.050701, %v895_v62  ;;  %964 = vst.msk [vmem:[%s2301_s4 + $0x80] sm:$0xff] %vm371_vm0, %v928_v9  ;;  %v2369_v41 = vld [vmem:[#allocation15_spill] sm:$0xff] }
 0x1c9   :  { %v833_v18 = vmul.f32 1.6732632, %v1017_v17  ;;  %vm866_vm15 = vcmp.gt.f32.partialorder %v2364_v44, 0.0  ;;  %v899_v60 = vsel %vm863_vm12, %v2361_v20, %v2074_v16  ;;  %v932_v48 = vmul.f32 1.050701, %v896_v28  ;;  %965 = vst.msk [vmem:[%s2301_s4 + $0x88] sm:$0xff] %vm371_vm0, %v929_v46 }
 0x1ca   :  { %v1020_v34 = vadd.f32 -1.0, %v1123_v59  ;;  %vm867_vm1 = vcmp.gt.f32.partialorder %v2365_v1, 0.0  ;;  %v900_v54 = vsel %vm864_vm13, %v2362_v19, %v828_v57  ;;  %v933_v49 = vmul.f32 1.050701, %v897_v42  ;;  %966 = vst.msk [vmem:[%s2301_s4 + $0x90] sm:$0xff] %vm371_vm0, %v930_v7  ;;  %v2370_v59 = vld [vmem:[#allocation16_spill] sm:$0xff] }
 0x1cb   :  { %v1021_v8 = vadd.f32 -1.0, %v1125_v23  ;;  %v834_v36 = vmul.f32 1.6732632, %v1018_v56  ;;  %v901_v30 = vsel %vm865_vm14, %v2363_v50, %v829_v29  ;;  %v934_v33 = vmul.f32 1.050701, %v898_v14  ;;  %967 = vst.msk [vmem:[%s2301_s4 + $0x98] sm:$0xff] %vm371_vm0, %v931_v45 }
 0x1cc   :  { %v1022_v51 = vadd.f32 -1.0, %v1127_v53  ;;  %vm868_vm2 = vcmp.gt.f32.partialorder %v2366_v40, 0.0  ;;  %v902_v35 = vsel %vm866_vm15, %v2364_v44, %v830_v21  ;;  %v935_v16 = vmul.f32 1.050701, %v899_v60  ;;  %968 = vst.msk [vmem:[%s2301_s4 + $0xa0] sm:$0xff] %vm371_vm0, %v932_v48  ;;  %v2371_v4 = vld [vmem:[#allocation17_spill] sm:$0xff] }
 0x1cd   :  { %v1023_v24 = vadd.f32 -1.0, %v1129_v52  ;;  %v835_v2 = vmul.f32 1.6732632, %v1019_v39  ;;  %v903_v32 = vsel %vm867_vm1, %v2365_v1, %v831_v26  ;;  %v936_v43 = vmul.f32 1.050701, %v900_v54  ;;  %969 = vst.msk [vmem:[%s2301_s4 + $0xa8] sm:$0xff] %vm371_vm0, %v933_v49 }
 0x1ce   :  { %v836_v55 = vmul.f32 1.6732632, %v1020_v34  ;;  %vm869_vm3 = vcmp.gt.f32.partialorder %v2367_v6, 0.0  ;;  %v904_v10 = vsel %vm868_vm2, %v2366_v40, %v832_v27  ;;  %v937_v57 = vmul.f32 1.050701, %v901_v30  ;;  %970 = vst.msk [vmem:[%s2301_s4 + $0xb0] sm:$0xff] %vm371_vm0, %v934_v33 }
 0x1cf   :  { %v837_v12 = vmul.f32 1.6732632, %v1021_v8  ;;  %vm870_vm4 = vcmp.gt.f32.partialorder %v2368_v38, 0.0  ;;  %v905_v15 = vsel %vm869_vm3, %v2367_v6, %v833_v18  ;;  %v938_v63 = vmul.f32 1.050701, %v902_v35  ;;  %971 = vst.msk [vmem:[%s2301_s4 + $0xb8] sm:$0xff] %vm371_vm0, %v935_v16 }
 0x1d0   :  { %v838_v0 = vmul.f32 1.6732632, %v1022_v51  ;;  %vm871_vm5 = vcmp.gt.f32.partialorder %v2369_v41, 0.0  ;;  %v906_v29 = vsel %vm870_vm4, %v2368_v38, %v834_v36  ;;  %v939_v58 = vmul.f32 1.050701, %v903_v32  ;;  %972 = vst.msk [vmem:[%s2301_s4 + $0xc0] sm:$0xff] %vm371_vm0, %v936_v43 }
 0x1d1   :  { %v839_v13 = vmul.f32 1.6732632, %v1023_v24  ;;  %vm872_vm6 = vcmp.gt.f32.partialorder %v2370_v59, 0.0  ;;  %v907_v11 = vsel %vm871_vm5, %v2369_v41, %v835_v2  ;;  %v940_v31 = vmul.f32 1.050701, %v904_v10  ;;  %973 = vst.msk [vmem:[%s2301_s4 + $0xc8] sm:$0xff] %vm371_vm0, %v937_v57 }
 0x1d2   :  { %vm873_vm7 = vcmp.gt.f32.partialorder %v2371_v4, 0.0  ;;  %v908_v22 = vsel %vm872_vm6, %v2370_v59, %v836_v55  ;;  %v941_v21 = vmul.f32 1.050701, %v905_v15  ;;  %v2372_v25 = vld [vmem:[#allocation18_spill] sm:$0xff]  ;;  %v942_v23 = vmul.f32 1.050701, %v906_v29 }
 0x1d3   :  { %vm874_vm8 = vcmp.gt.f32.partialorder %v2372_v25, 0.0  ;;  %v909_v3 = vsel %vm873_vm7, %v2371_v4, %v837_v12  ;;  %974 = vst.msk [vmem:[%s2301_s4 + $0xd0] sm:$0xff] %vm371_vm0, %v938_v63  ;;  %v2373_v17 = vld [vmem:[#allocation19_spill] sm:$0xff]  ;;  %v943_v37 = vmul.f32 1.050701, %v907_v11 }
 0x1d4   :  { %vm875_vm9 = vcmp.gt.f32.partialorder %v2373_v17, 0.0  ;;  %v910_v47 = vsel %vm874_vm8, %v2372_v25, %v838_v0  ;;  %975 = vst.msk [vmem:[%s2301_s4 + $0xd8] sm:$0xff] %vm371_vm0, %v939_v58  ;;  %v944_v26 = vmul.f32 1.050701, %v908_v22  ;;  %v945_v5 = vmul.f32 1.050701, %v909_v3 }
 0x1d5   :  { %v911_v61 = vsel %vm875_vm9, %v2373_v17, %v839_v13  ;;  %976 = vst.msk [vmem:[%s2301_s4 + $0xe0] sm:$0xff] %vm371_vm0, %v940_v31  ;;  %v946_v62 = vmul.f32 1.050701, %v910_v47 }
 0x1d6   :  { %977 = vst.msk [vmem:[%s2301_s4 + $0xe8] sm:$0xff] %vm371_vm0, %v941_v21  ;;  %v947_v9 = vmul.f32 1.050701, %v911_v61 }
 0x1d7   :  { %978 = vst.msk [vmem:[%s2301_s4 + $0xf0] sm:$0xff] %vm371_vm0, %v942_v23 }
 0x1d8   :  { %979 = vst.msk [vmem:[%s2301_s4 + $0xf8] sm:$0xff] %vm371_vm0, %v943_v37 }
 0x1d9   :  { %980 = vst.msk [vmem:[%s2301_s4 + $0x100] sm:$0xff] %vm371_vm0, %v944_v26 }
 0x1da   :  { %981 = vst.msk [vmem:[%s2301_s4 + $0x108] sm:$0xff] %vm371_vm0, %v945_v5 }
 0x1db   :  { %982 = vst.msk [vmem:[%s2301_s4 + $0x110] sm:$0xff] %vm371_vm0, %v946_v62 }
 0x1dc   :  { %983 = vst.msk [vmem:[%s2301_s4 + $0x118] sm:$0xff] %vm371_vm0, %v947_v9 }

// kernel: encoder_forward.7
= control target key start
LH: loop header
LB: loop body
LE: loop exit
PB: predicated region body
PF: predicated region fallthrough
CT: control target
= control target key end

     0   :  { %vm293_vm0 = vcmask 523264   ;;  %s985_s1 = inlined_call_operand.vmem [shape: f32[512,64], index: 1, kind: input, shape index: {}]   ;;  %s986_s0 = inlined_call_operand.vmem [shape: f32[72,512], index: 0, kind: input, shape index: {}]   ;;  %s987_s2 = inlined_call_operand.vmem [shape: f32[1,64], index: 2, kind: input, shape index: {}]   ;;  %s988_s3 = inlined_call_operand.vmem [shape: f32[1,64], index: 3, kind: input, shape index: {}]   ;;  %s989_s4 = inlined_call_operand.vmem [shape: f32[72,64], index: 4, kind: output, shape index: {}]  }
   0x1   :  { %v100_v0 = vld [vmem:[%s985_s1 + $0x178] sm:$0xff]  ;;  %v99_v1 = vld [vmem:[%s985_s1 + $0x170] sm:$0xff]  ;;  %v98_v5 = vld [vmem:[%s985_s1 + $0x168] sm:$0xff] }
   0x2   :  { %v116_v2 = vld [vmem:[%s985_s1 + $0x1f8] sm:$0xff]  ;;  %205 = vmatpush.msra.mxu2 %v100_v0  ;;  %v115_v6 = vld [vmem:[%s985_s1 + $0x1f0] sm:$0xff]  ;;  %v114_v9 = vld [vmem:[%s985_s1 + $0x1e8] sm:$0xff] }
   0x3   :  { %249 = vmatpush.msra.mxu3 %v116_v2  ;;  %v68_v3 = vld [vmem:[%s985_s1 + $0x78] sm:$0xff]  ;;  %v67_v7 = vld [vmem:[%s985_s1 + $0x70] sm:$0xff]  ;;  %v66_v10 = vld [vmem:[%s985_s1 + $0x68] sm:$0xff] }
   0x4   :  { %v84_v4 = vld [vmem:[%s985_s1 + $0xf8] sm:$0xff]  ;;  %117 = vmatpush.msra.mxu0 %v68_v3  ;;  %v83_v8 = vld [vmem:[%s985_s1 + $0xf0] sm:$0xff]  ;;  %206 = vmatpush.msra.mxu2 %v99_v1  ;;  %v97_v11 = vld [vmem:[%s985_s1 + $0x160] sm:$0xff] }
   0x5   :  { %161 = vmatpush.msra.mxu1 %v84_v4  ;;  %250 = vmatpush.msra.mxu3 %v115_v6  ;;  %v82_v12 = vld [vmem:[%s985_s1 + $0xe8] sm:$0xff]  ;;  %v113_v13 = vld [vmem:[%s985_s1 + $0x1e0] sm:$0xff]  ;;  %v96_v16 = vld [vmem:[%s985_s1 + $0x158] sm:$0xff] }
   0x6   :  { %118 = vmatpush.msra.mxu0 %v67_v7  ;;  %207 = vmatpush.msra.mxu2 %v98_v5  ;;  %v65_v14 = vld [vmem:[%s985_s1 + $0x60] sm:$0xff]  ;;  %v112_v17 = vld [vmem:[%s985_s1 + $0x1d8] sm:$0xff]  ;;  %v95_v20 = vld [vmem:[%s985_s1 + $0x150] sm:$0xff] }
   0x7   :  { %162 = vmatpush.msra.mxu1 %v83_v8  ;;  %251 = vmatpush.msra.mxu3 %v114_v9  ;;  %v81_v15 = vld [vmem:[%s985_s1 + $0xe0] sm:$0xff]  ;;  %v64_v18 = vld [vmem:[%s985_s1 + $0x58] sm:$0xff]  ;;  %v111_v21 = vld [vmem:[%s985_s1 + $0x1d0] sm:$0xff] }
   0x8   :  { %119 = vmatpush.msra.mxu0 %v66_v10  ;;  %208 = vmatpush.msra.mxu2 %v97_v11  ;;  %v80_v19 = vld [vmem:[%s985_s1 + $0xd8] sm:$0xff]  ;;  %v63_v22 = vld [vmem:[%s985_s1 + $0x50] sm:$0xff]  ;;  %v94_v24 = vld [vmem:[%s985_s1 + $0x148] sm:$0xff] }
   0x9   :  { %163 = vmatpush.msra.mxu1 %v82_v12  ;;  %252 = vmatpush.msra.mxu3 %v113_v13  ;;  %v79_v23 = vld [vmem:[%s985_s1 + $0xd0] sm:$0xff]  ;;  %v110_v25 = vld [vmem:[%s985_s1 + $0x1c8] sm:$0xff]  ;;  %v93_v28 = vld [vmem:[%s985_s1 + $0x140] sm:$0xff] }
   0xa   :  { %120 = vmatpush.msra.mxu0 %v65_v14  ;;  %209 = vmatpush.msra.mxu2 %v96_v16  ;;  %v62_v26 = vld [vmem:[%s985_s1 + $0x48] sm:$0xff]  ;;  %v109_v29 = vld [vmem:[%s985_s1 + $0x1c0] sm:$0xff]  ;;  %v92_v32 = vld [vmem:[%s985_s1 + $0x138] sm:$0xff] }
   0xb   :  { %164 = vmatpush.msra.mxu1 %v81_v15  ;;  %253 = vmatpush.msra.mxu3 %v112_v17  ;;  %v78_v27 = vld [vmem:[%s985_s1 + $0xc8] sm:$0xff]  ;;  %v61_v30 = vld [vmem:[%s985_s1 + $0x40] sm:$0xff]  ;;  %v108_v33 = vld [vmem:[%s985_s1 + $0x1b8] sm:$0xff] }
   0xc   :  { %121 = vmatpush.msra.mxu0 %v64_v18  ;;  %210 = vmatpush.msra.mxu2 %v95_v20  ;;  %v77_v31 = vld [vmem:[%s985_s1 + $0xc0] sm:$0xff]  ;;  %v60_v34 = vld [vmem:[%s985_s1 + $0x38] sm:$0xff]  ;;  %v91_v36 = vld [vmem:[%s985_s1 + $0x130] sm:$0xff] }
   0xd   :  { %165 = vmatpush.msra.mxu1 %v80_v19  ;;  %254 = vmatpush.msra.mxu3 %v111_v21  ;;  %v76_v35 = vld [vmem:[%s985_s1 + $0xb8] sm:$0xff]  ;;  %v107_v37 = vld [vmem:[%s985_s1 + $0x1b0] sm:$0xff]  ;;  %v90_v40 = vld [vmem:[%s985_s1 + $0x128] sm:$0xff] }
   0xe   :  { %122 = vmatpush.msra.mxu0 %v63_v22  ;;  %211 = vmatpush.msra.mxu2 %v94_v24  ;;  %v59_v38 = vld [vmem:[%s985_s1 + $0x30] sm:$0xff]  ;;  %v106_v41 = vld [vmem:[%s985_s1 + $0x1a8] sm:$0xff]  ;;  %v89_v44 = vld [vmem:[%s985_s1 + $0x120] sm:$0xff] }
   0xf   :  { %166 = vmatpush.msra.mxu1 %v79_v23  ;;  %255 = vmatpush.msra.mxu3 %v110_v25  ;;  %v75_v39 = vld [vmem:[%s985_s1 + $0xb0] sm:$0xff]  ;;  %v58_v42 = vld [vmem:[%s985_s1 + $0x28] sm:$0xff]  ;;  %v105_v45 = vld [vmem:[%s985_s1 + $0x1a0] sm:$0xff] }
  0x10   :  { %123 = vmatpush.msra.mxu0 %v62_v26  ;;  %212 = vmatpush.msra.mxu2 %v93_v28  ;;  %v74_v43 = vld [vmem:[%s985_s1 + $0xa8] sm:$0xff]  ;;  %v57_v46 = vld [vmem:[%s985_s1 + $0x20] sm:$0xff]  ;;  %v88_v48 = vld [vmem:[%s985_s1 + $0x118] sm:$0xff] }
  0x11   :  { %167 = vmatpush.msra.mxu1 %v78_v27  ;;  %256 = vmatpush.msra.mxu3 %v109_v29  ;;  %v73_v47 = vld [vmem:[%s985_s1 + $0xa0] sm:$0xff]  ;;  %v104_v49 = vld [vmem:[%s985_s1 + $0x198] sm:$0xff]  ;;  %v87_v52 = vld [vmem:[%s985_s1 + $0x110] sm:$0xff] }
  0x12   :  { %124 = vmatpush.msra.mxu0 %v61_v30  ;;  %213 = vmatpush.msra.mxu2 %v92_v32  ;;  %v56_v50 = vld [vmem:[%s985_s1 + $0x18] sm:$0xff]  ;;  %v103_v53 = vld [vmem:[%s985_s1 + $0x190] sm:$0xff]  ;;  %v86_v56 = vld [vmem:[%s985_s1 + $0x108] sm:$0xff] }
  0x13   :  { %168 = vmatpush.msra.mxu1 %v77_v31  ;;  %257 = vmatpush.msra.mxu3 %v108_v33  ;;  %v72_v51 = vld [vmem:[%s985_s1 + $0x98] sm:$0xff]  ;;  %v55_v54 = vld [vmem:[%s985_s1 + $0x10] sm:$0xff]  ;;  %v102_v57 = vld [vmem:[%s985_s1 + $0x188] sm:$0xff] }
  0x14   :  { %125 = vmatpush.msra.mxu0 %v60_v34  ;;  %214 = vmatpush.msra.mxu2 %v91_v36  ;;  %v71_v55 = vld [vmem:[%s985_s1 + $0x90] sm:$0xff]  ;;  %v54_v58 = vld [vmem:[%s985_s1 + $0x8] sm:$0xff]  ;;  %v85_v60 = vld [vmem:[%s985_s1 + $0x100] sm:$0xff] }
  0x15   :  { %169 = vmatpush.msra.mxu1 %v76_v35  ;;  %258 = vmatpush.msra.mxu3 %v107_v37  ;;  %v70_v59 = vld [vmem:[%s985_s1 + $0x88] sm:$0xff]  ;;  %v101_v61 = vld [vmem:[%s985_s1 + $0x180] sm:$0xff]  ;;  %v19_v62 = vld [vmem:[%s986_s0 + $0x10] sm:$0xff] }
  0x16   :  { %126 = vmatpush.msra.mxu0 %v59_v38  ;;  %215 = vmatpush.msra.mxu2 %v90_v40  ;;  %v20_v63 = vld [vmem:[%s986_s0 + $0x18] sm:$0xff]  ;;  %v53_v0 = vld [vmem:[%s985_s1] sm:$0xff]  ;;  %v18_v3 = vld [vmem:[%s986_s0 + $0x8] sm:$0xff] }
  0x17   :  { %170 = vmatpush.msra.mxu1 %v75_v39  ;;  %259 = vmatpush.msra.mxu3 %v106_v41  ;;  %v69_v1 = vld [vmem:[%s985_s1 + $0x80] sm:$0xff]  ;;  %v23_v4 = vld [vmem:[%s986_s0 + $0x30] sm:$0xff]  ;;  %v24_v5 = vld [vmem:[%s986_s0 + $0x38] sm:$0xff] }
  0x18   :  { %127 = vmatpush.msra.mxu0 %v58_v42  ;;  %216 = vmatpush.msra.mxu2 %v89_v44  ;;  %v17_v2 = vld [vmem:[%s986_s0] sm:$0xff]  ;;  %v22_v7 = vld [vmem:[%s986_s0 + $0x28] sm:$0xff]  ;;  %v27_v8 = vld [vmem:[%s986_s0 + $0x50] sm:$0xff] }
  0x19   :  { %171 = vmatpush.msra.mxu1 %v74_v43  ;;  %260 = vmatpush.msra.mxu3 %v105_v45  ;;  %v21_v6 = vld [vmem:[%s986_s0 + $0x20] sm:$0xff]  ;;  %v28_v9 = vld [vmem:[%s986_s0 + $0x58] sm:$0xff]  ;;  %v26_v11 = vld [vmem:[%s986_s0 + $0x48] sm:$0xff] }
  0x1a   :  { %128 = vmatpush.msra.mxu0 %v57_v46  ;;  %217 = vmatpush.msra.mxu2 %v88_v48  ;;  %v25_v10 = vld [vmem:[%s986_s0 + $0x40] sm:$0xff]  ;;  %v31_v12 = vld [vmem:[%s986_s0 + $0x70] sm:$0xff]  ;;  %v32_v13 = vld [vmem:[%s986_s0 + $0x78] sm:$0xff] }
  0x1b   :  { %172 = vmatpush.msra.mxu1 %v73_v47  ;;  %261 = vmatpush.msra.mxu3 %v104_v49  ;;  %v29_v14 = vld [vmem:[%s986_s0 + $0x60] sm:$0xff]  ;;  %v30_v15 = vld [vmem:[%s986_s0 + $0x68] sm:$0xff]  ;;  %v35_v16 = vld [vmem:[%s986_s0 + $0x90] sm:$0xff] }
  0x1c   :  { %129 = vmatpush.msra.mxu0 %v56_v50  ;;  %218 = vmatpush.msra.mxu2 %v87_v52  ;;  %v36_v17 = vld [vmem:[%s986_s0 + $0x98] sm:$0xff]  ;;  %v33_v18 = vld [vmem:[%s986_s0 + $0x80] sm:$0xff]  ;;  %v34_v19 = vld [vmem:[%s986_s0 + $0x88] sm:$0xff] }
  0x1d   :  { %173 = vmatpush.msra.mxu1 %v72_v51  ;;  %262 = vmatpush.msra.mxu3 %v103_v53  ;;  %v39_v20 = vld [vmem:[%s986_s0 + $0xb0] sm:$0xff]  ;;  %v40_v21 = vld [vmem:[%s986_s0 + $0xb8] sm:$0xff]  ;;  %v37_v22 = vld [vmem:[%s986_s0 + $0xa0] sm:$0xff] }
  0x1e   :  { %130 = vmatpush.msra.mxu0 %v55_v54  ;;  %219 = vmatpush.msra.mxu2 %v86_v56  ;;  %v38_v23 = vld [vmem:[%s986_s0 + $0xa8] sm:$0xff]  ;;  %v43_v24 = vld [vmem:[%s986_s0 + $0xd0] sm:$0xff]  ;;  %v44_v25 = vld [vmem:[%s986_s0 + $0xd8] sm:$0xff] }
  0x1f   :  { %174 = vmatpush.msra.mxu1 %v71_v55  ;;  %263 = vmatpush.msra.mxu3 %v102_v57  ;;  %v41_v26 = vld [vmem:[%s986_s0 + $0xc0] sm:$0xff]  ;;  %v42_v27 = vld [vmem:[%s986_s0 + $0xc8] sm:$0xff]  ;;  %v47_v28 = vld [vmem:[%s986_s0 + $0xf0] sm:$0xff] }
  0x20   :  { %131 = vmatpush.msra.mxu0 %v54_v58  ;;  %220 = vmatpush.msra.mxu2 %v85_v60  ;;  %v48_v29 = vld [vmem:[%s986_s0 + $0xf8] sm:$0xff]  ;;  %v45_v30 = vld [vmem:[%s986_s0 + $0xe0] sm:$0xff]  ;;  %v46_v31 = vld [vmem:[%s986_s0 + $0xe8] sm:$0xff] }
  0x21   :  { %175 = vmatpush.msra.mxu1 %v70_v59  ;;  %264 = vmatpush.msra.mxu3 %v101_v61  ;;  %v51_v32 = vld [vmem:[%s986_s0 + $0x110] sm:$0xff]  ;;  %v52_v33 = vld [vmem:[%s986_s0 + $0x118] sm:$0xff]  ;;  %v49_v34 = vld [vmem:[%s986_s0 + $0x100] sm:$0xff] }
  0x22   :  { %221 = vmatmul.f32.vlgmr.msra.gmra.mxu2 %v19_v62  ;;  %265 = vmatmul.f32.vlgmr.msra.gmra.mxu3 %v20_v63  ;;  %v50_v35 = vld [vmem:[%s986_s0 + $0x108] sm:$0xff] }
  0x23   :  { %132 = vmatpush.msra.mxu0 %v53_v0  ;;  %176 = vmatpush.msra.mxu1 %v69_v1 }
  0x24   :  { %133 = vmatmul.f32.vlgmr.msra.gmra.mxu0 %v17_v2  ;;  %177 = vmatmul.f32.vlgmr.msra.gmra.mxu1 %v18_v3 }
  0x2a   :  { %224 = vmatmul.f32.gmra.mxu2 %v23_v4  ;;  %268 = vmatmul.f32.gmra.mxu3 %v24_v5 }
  0x2c   :  { %136 = vmatmul.f32.gmra.mxu0 %v21_v6  ;;  %180 = vmatmul.f32.gmra.mxu1 %v22_v7 }
  0x32   :  { %227 = vmatmul.f32.gmra.mxu2 %v27_v8  ;;  %271 = vmatmul.f32.gmra.mxu3 %v28_v9 }
  0x34   :  { %139 = vmatmul.f32.gmra.mxu0 %v25_v10  ;;  %183 = vmatmul.f32.gmra.mxu1 %v26_v11 }
  0x3a   :  { %230 = vmatmul.f32.gmra.mxu2 %v31_v12  ;;  %274 = vmatmul.f32.gmra.mxu3 %v32_v13 }
  0x3c   :  { %142 = vmatmul.f32.gmra.mxu0 %v29_v14  ;;  %186 = vmatmul.f32.gmra.mxu1 %v30_v15 }
  0x42   :  { %233 = vmatmul.f32.gmra.mxu2 %v35_v16  ;;  %277 = vmatmul.f32.gmra.mxu3 %v36_v17 }
  0x44   :  { %145 = vmatmul.f32.gmra.mxu0 %v33_v18  ;;  %189 = vmatmul.f32.gmra.mxu1 %v34_v19 }
  0x4a   :  { %236 = vmatmul.f32.gmra.mxu2 %v39_v20  ;;  %280 = vmatmul.f32.gmra.mxu3 %v40_v21 }
  0x4c   :  { %148 = vmatmul.f32.gmra.mxu0 %v37_v22  ;;  %192 = vmatmul.f32.gmra.mxu1 %v38_v23 }
  0x52   :  { %239 = vmatmul.f32.gmra.mxu2 %v43_v24  ;;  %283 = vmatmul.f32.gmra.mxu3 %v44_v25 }
  0x54   :  { %151 = vmatmul.f32.gmra.mxu0 %v41_v26  ;;  %195 = vmatmul.f32.gmra.mxu1 %v42_v27 }
  0x5a   :  { %242 = vmatmul.f32.gmra.mxu2 %v47_v28  ;;  %286 = vmatmul.f32.gmra.mxu3 %v48_v29 }
  0x5c   :  { %154 = vmatmul.f32.gmra.mxu0 %v45_v30  ;;  %198 = vmatmul.f32.gmra.mxu1 %v46_v31 }
  0x62   :  { %245 = vmatmul.f32.gmra.mxu2 %v51_v32  ;;  %289 = vmatmul.f32.gmra.mxu3 %v52_v33 }
  0x64   :  { %157 = vmatmul.f32.gmra.mxu0 %v49_v34  ;;  %201 = vmatmul.f32.gmra.mxu1 %v50_v35 }
  0xa1   :  { %v134_v36 = vpop.f32.mrf.mxu0  ;;  %v178_v37 = vpop.f32.mrf.mxu1 }
  0xa2   :  { %v179_v59 = vadd.f32 %v178_v37, %v134_v36 }
  0xa5   :  { %v222_v38 = vpop.f32.mrf.mxu2  ;;  %v266_v39 = vpop.f32.mrf.mxu3 }
  0xa6   :  { %v223_v1 = vadd.f32 %v222_v38, %v179_v59 }
  0xa8   :  { %v834_v9 = vadd.f32 %v266_v39, %v223_v1 }
  0xa9   :  { %v137_v40 = vpop.f32.mrf.mxu0  ;;  %v181_v41 = vpop.f32.mrf.mxu1 }
  0xaa   :  { %v182_v58 = vadd.f32 %v181_v41, %v137_v40  ;;  %v318_v18 = vmul.f32 %v834_v9, %v834_v9  ;;  %v294_v26 = vsel %vm293_vm0, %v834_v9, 0.0 }
  0xac   :  { %v327_v31 = vsel %vm293_vm0, %v318_v18, 0.0 }
  0xad   :  { %v225_v42 = vpop.f32.mrf.mxu2  ;;  %v269_v43 = vpop.f32.mrf.mxu3 }
  0xae   :  { %v226_v63 = vadd.f32 %v225_v42, %v182_v58 }
  0xb0   :  { %v832_v6 = vadd.f32 %v269_v43, %v226_v63 }
  0xb1   :  { %v140_v44 = vpop.f32.mrf.mxu0  ;;  %v184_v45 = vpop.f32.mrf.mxu1 }
  0xb2   :  { %v185_v60 = vadd.f32 %v184_v45, %v140_v44  ;;  %v319_v15 = vmul.f32 %v832_v6, %v832_v6  ;;  %v295_v22 = vsel %vm293_vm0, %v832_v6, 0.0 }
  0xb3   :  { %v296_v32 = vadd.f32 %v295_v22, %v294_v26 }
  0xb4   :  { %v328_v27 = vsel %vm293_vm0, %v319_v15, 0.0 }
  0xb5   :  { %v228_v46 = vpop.f32.mrf.mxu2  ;;  %v272_v47 = vpop.f32.mrf.mxu3  ;;  %v329_v40 = vadd.f32 %v328_v27, %v327_v31 }
  0xb6   :  { %v229_v2 = vadd.f32 %v228_v46, %v185_v60 }
  0xb8   :  { %v836_v10 = vadd.f32 %v272_v47, %v229_v2 }
  0xb9   :  { %v143_v48 = vpop.f32.mrf.mxu0  ;;  %v187_v49 = vpop.f32.mrf.mxu1 }
  0xba   :  { %v188_v0 = vadd.f32 %v187_v49, %v143_v48  ;;  %v320_v19 = vmul.f32 %v836_v10, %v836_v10  ;;  %v297_v28 = vsel %vm293_vm0, %v836_v10, 0.0 }
  0xbb   :  { %v298_v41 = vadd.f32 %v297_v28, %v296_v32 }
  0xbc   :  { %v330_v33 = vsel %vm293_vm0, %v320_v19, 0.0 }
  0xbd   :  { %v231_v50 = vpop.f32.mrf.mxu2  ;;  %v275_v51 = vpop.f32.mrf.mxu3  ;;  %v331_v46 = vadd.f32 %v330_v33, %v329_v40 }
  0xbe   :  { %v232_v7 = vadd.f32 %v231_v50, %v188_v0 }
  0xc0   :  { %v840_v16 = vadd.f32 %v275_v51, %v232_v7 }
  0xc1   :  { %v146_v52 = vpop.f32.mrf.mxu0  ;;  %v190_v53 = vpop.f32.mrf.mxu1 }
  0xc2   :  { %v191_v5 = vadd.f32 %v190_v53, %v146_v52  ;;  %v321_v29 = vmul.f32 %v840_v16, %v840_v16  ;;  %v299_v36 = vsel %vm293_vm0, %v840_v16, 0.0 }
  0xc3   :  { %v300_v47 = vadd.f32 %v299_v36, %v298_v41 }
  0xc4   :  { %v332_v42 = vsel %vm293_vm0, %v321_v29, 0.0 }
  0xc5   :  { %v234_v54 = vpop.f32.mrf.mxu2  ;;  %v278_v55 = vpop.f32.mrf.mxu3 }
  0xc6   :  { %v235_v13 = vadd.f32 %v234_v54, %v191_v5  ;;  %v333_v54 = vadd.f32 %v332_v42, %v331_v46 }
  0xc8   :  { %v848_v23 = vadd.f32 %v278_v55, %v235_v13 }
  0xc9   :  { %v149_v56 = vpop.f32.mrf.mxu0  ;;  %v193_v57 = vpop.f32.mrf.mxu1 }
  0xca   :  { %v194_v8 = vadd.f32 %v193_v57, %v149_v56  ;;  %v322_v37 = vmul.f32 %v848_v23, %v848_v23  ;;  %v301_v43 = vsel %vm293_vm0, %v848_v23, 0.0 }
  0xcb   :  { %v302_v55 = vadd.f32 %v301_v43, %v300_v47  ;;  %v353_v43 = vld [vmem:[%s987_s2] sm:$0x1] }
  0xcc   :  { %v334_v50 = vsel %vm293_vm0, %v322_v37, 0.0 }
  0xcd   :  { %v237_v61 = vpop.f32.mrf.mxu2  ;;  %v281_v62 = vpop.f32.mrf.mxu3  ;;  %v335_v59 = vadd.f32 %v334_v50, %v333_v54 }
  0xce   :  { %v238_v17 = vadd.f32 %v237_v61, %v194_v8 }
  0xd0   :  { %v857_v30 = vadd.f32 %v281_v62, %v238_v17 }
  0xd1   :  { %v152_v3 = vpop.f32.mrf.mxu0  ;;  %v196_v4 = vpop.f32.mrf.mxu1 }
  0xd2   :  { %v197_v14 = vadd.f32 %v196_v4, %v152_v3  ;;  %v323_v44 = vmul.f32 %v857_v30, %v857_v30  ;;  %v303_v51 = vsel %vm293_vm0, %v857_v30, 0.0 }
  0xd3   :  { %v304_v60 = vadd.f32 %v303_v51, %v302_v55 }
  0xd4   :  { %v336_v56 = vsel %vm293_vm0, %v323_v44, 0.0 }
  0xd5   :  { %v240_v11 = vpop.f32.mrf.mxu2  ;;  %v284_v12 = vpop.f32.mrf.mxu3  ;;  %v337_v2 = vadd.f32 %v336_v56, %v335_v59 }
  0xd6   :  { %v241_v24 = vadd.f32 %v240_v11, %v197_v14 }
  0xd8   :  { %v865_v38 = vadd.f32 %v284_v12, %v241_v24 }
  0xd9   :  { %v155_v20 = vpop.f32.mrf.mxu0  ;;  %v199_v21 = vpop.f32.mrf.mxu1 }
  0xda   :  { %v200_v25 = vadd.f32 %v199_v21, %v155_v20  ;;  %v324_v52 = vmul.f32 %v865_v38, %v865_v38  ;;  %v305_v57 = vsel %vm293_vm0, %v865_v38, 0.0 }
  0xdb   :  { %v306_v3 = vadd.f32 %v305_v57, %v304_v60 }
  0xdc   :  { %v338_v63 = vsel %vm293_vm0, %v324_v52, 0.0 }
  0xdd   :  { %v243_v34 = vpop.f32.mrf.mxu2  ;;  %v287_v35 = vpop.f32.mrf.mxu3  ;;  %v339_v7 = vadd.f32 %v338_v63, %v337_v2 }
  0xde   :  { %v244_v39 = vadd.f32 %v243_v34, %v200_v25 }
  0xe0   :  { %v872_v45 = vadd.f32 %v287_v35, %v244_v39 }
  0xe1   :  { %v158_v48 = vpop.f32.mrf.mxu0  ;;  %v202_v49 = vpop.f32.mrf.mxu1 }
  0xe2   :  { %v203_v53 = vadd.f32 %v202_v49, %v158_v48  ;;  %v325_v58 = vmul.f32 %v872_v45, %v872_v45  ;;  %v307_v0 = vsel %vm293_vm0, %v872_v45, 0.0  ;;  %v366_v48 = vld [vmem:[%s988_s3] sm:$0x1] }
  0xe3   :  { %v308_v8 = vadd.f32 %v307_v0, %v306_v3 }
  0xe4   :  { %v340_v4 = vsel %vm293_vm0, %v325_v58, 0.0 }
  0xe5   :  { %v246_v61 = vpop.f32.mrf.mxu2  ;;  %v290_v62 = vpop.f32.mrf.mxu3  ;;  %v341_v13 = vadd.f32 %v340_v4, %v339_v7 }
  0xe6   :  { %v247_v1 = vadd.f32 %v246_v61, %v203_v53 }
  0xe8   :  { %v291_v5 = vadd.f32 %v290_v62, %v247_v1 }
  0xea   :  { %v309_v11 = vsel %vm293_vm0, %v291_v5, 0.0  ;;  %v326_v12 = vmul.f32 %v291_v5, %v291_v5 }
  0xeb   :  { %v310_v14 = vadd.f32 %v309_v11, %v308_v8 }
  0xec   :  { %v342_v15 = vsel %vm293_vm0, %v326_v12, 0.0 }
  0xed   :  { %v311_v17 = vrot.slane %v310_v14, 4  ;;  %v343_v18 = vadd.f32 %v342_v15, %v341_v13 }
  0xef   :  { %v312_v19 = vadd.f32 %v311_v17, %v310_v14  ;;  %v344_v20 = vrot.slane %v343_v18, 4 }
  0xf1   :  { %v313_v21 = vrot.slane %v312_v19, 2  ;;  %v345_v22 = vadd.f32 %v344_v20, %v343_v18 }
  0xf3   :  { %v314_v24 = vadd.f32 %v313_v21, %v312_v19  ;;  %v346_v25 = vrot.slane %v345_v22, 2 }
  0xf5   :  { %v315_v26 = vrot.slane %v314_v24, 1  ;;  %v347_v27 = vadd.f32 %v346_v25, %v345_v22 }
  0xf7   :  { %v316_v28 = vadd.f32 %v315_v26, %v314_v24  ;;  %v348_v29 = vrot.slane %v347_v27, 1 }
  0xf9   :  { %v317_v31 = vmul.f32 0.013888889, %v316_v28  ;;  %v349_v32 = vadd.f32 %v348_v29, %v347_v27 }
  0xfb   :  { %v350_v33 = vmul.f32 0.013888889, %v349_v32  ;;  %v351_v34 = vmul.f32 %v317_v31, %v317_v31 }
  0xfd   :  { %v352_v35 = vsub.f32 %v350_v33, %v351_v34 }
  0xff   :  { %v354_v36 = vadd.f32 1e-05, %v352_v35 }
 0x101   :  { %487 = vrsqrt.f32 %v354_v36  ;;  %vm361_vm2 = vweird.f32 %v354_v36 }
 0x107   :  { %v488_v37 = vpop.eup %487 }
 0x108   :  { %v356_v39 = vmul.f32 %v488_v37, %v354_v36  ;;  %vm362_vm1 = vweird.f32 %v488_v37 }
 0x109   :  { %vm363_vm3 = vmor %vm361_vm2, %vm362_vm1 }
 0x10a   :  { %v357_v40 = vmul.f32 %v488_v37, %v356_v39 }
 0x10c   :  { %v358_v41 = vmul.f32 0.5, %v357_v40 }
 0x10e   :  { %v359_v42 = vsub.f32 1.5, %v358_v41 }
 0x110   :  { %v360_v44 = vmul.f32 %v488_v37, %v359_v42 }
 0x112   :  { %v364_v46 = vsel %vm363_vm3, %v488_v37, %v360_v44 }
 0x113   :  { %v365_v47 = vmul.f32 %v364_v46, %v353_v43 }
 0x115   :  { %v367_v49 = vmul.f32 %v365_v47, %v317_v31  ;;  %v370_v50 = vperm.slane %v365_v47, 0 }
 0x117   :  { %v368_v51 = vsub.f32 %v366_v48, %v367_v49  ;;  %v372_v52 = vmul.f32 %v370_v50, %v834_v9  ;;  %v373_v53 = vmul.f32 %v370_v50, %v832_v6  ;;  %v374_v54 = vmul.f32 %v370_v50, %v836_v10 }
 0x118   :  { %v375_v55 = vmul.f32 %v370_v50, %v840_v16  ;;  %v376_v56 = vmul.f32 %v370_v50, %v848_v23  ;;  %v377_v58 = vmul.f32 %v370_v50, %v857_v30  ;;  %v378_v59 = vmul.f32 %v370_v50, %v865_v38 }
 0x119   :  { %v382_v57 = vperm.slane %v368_v51, 0  ;;  %v379_v60 = vmul.f32 %v370_v50, %v872_v45  ;;  %v380_v61 = vmul.f32 %v370_v50, %v291_v5 }
 0x11b   :  { %v384_v62 = vadd.f32 %v382_v57, %v372_v52  ;;  %v385_v63 = vadd.f32 %v382_v57, %v373_v53  ;;  %v904_v0 = vadd.f32 %v382_v57, %v374_v54  ;;  %v906_v9 = vadd.f32 %v382_v57, %v375_v55 }
 0x11c   :  { %v908_v6 = vadd.f32 %v382_v57, %v376_v56  ;;  %v910_v10 = vadd.f32 %v382_v57, %v377_v58  ;;  %v912_v16 = vadd.f32 %v382_v57, %v378_v59  ;;  %v914_v23 = vadd.f32 %v382_v57, %v379_v60 }
 0x11d   :  { %v916_v30 = vadd.f32 %v382_v57, %v380_v61  ;;  %v393_v38 = vmin.f32 %v384_v62, 0.0  ;;  %v394_v1 = vmin.f32 %v385_v63, 0.0  ;;  %v395_v45 = vmin.f32 %v904_v0, 0.0 }
 0x11e   :  { %v396_v2 = vmin.f32 %v906_v9, 0.0  ;;  %v397_v3 = vmin.f32 %v908_v6, 0.0  ;;  %v398_v4 = vmin.f32 %v910_v10, 0.0  ;;  %v399_v5 = vmin.f32 %v912_v16, 0.0 }
 0x11f   :  { %v402_v7 = vmul.f32 1.442695, %v393_v38  ;;  %v404_v8 = vmul.f32 1.442695, %v394_v1  ;;  %v400_v11 = vmin.f32 %v914_v23, 0.0  ;;  %v401_v14 = vmin.f32 %v916_v30, 0.0 }
 0x120   :  { %v406_v12 = vmul.f32 1.442695, %v395_v45  ;;  %v408_v13 = vmul.f32 1.442695, %v396_v2  ;;  %v410_v15 = vmul.f32 1.442695, %v397_v3 }
 0x121   :  { %489 = vpow2.f32 %v402_v7  ;;  %v412_v17 = vmul.f32 1.442695, %v398_v4  ;;  %v414_v18 = vmul.f32 1.442695, %v399_v5  ;;  %v416_v19 = vmul.f32 1.442695, %v400_v11 }
 0x122   :  { %491 = vpow2.f32 %v404_v8  ;;  %v418_v20 = vmul.f32 1.442695, %v401_v14  ;;  %vm438_vm4 = vcmp.gt.f32.partialorder %v384_v62, 0.0  ;;  %vm439_vm5 = vcmp.gt.f32.partialorder %v385_v63, 0.0 }
 0x123   :  { %493 = vpow2.f32 %v406_v12  ;;  %vm440_vm6 = vcmp.gt.f32.partialorder %v904_v0, 0.0  ;;  %vm441_vm7 = vcmp.gt.f32.partialorder %v906_v9, 0.0  ;;  %vm442_vm8 = vcmp.gt.f32.partialorder %v908_v6, 0.0 }
 0x124   :  { %495 = vpow2.f32 %v408_v13  ;;  %vm443_vm9 = vcmp.gt.f32.partialorder %v910_v10, 0.0  ;;  %vm444_vm10 = vcmp.gt.f32.partialorder %v912_v16, 0.0  ;;  %vm445_vm11 = vcmp.gt.f32.partialorder %v914_v23, 0.0 }
 0x125   :  { %497 = vpow2.f32 %v410_v15  ;;  %vm446_vm12 = vcmp.gt.f32.partialorder %v916_v30, 0.0 }
 0x126   :  { %499 = vpow2.f32 %v412_v17 }
 0x127   :  { %v490_v21 = vpop.eup %489  ;;  %501 = vpow2.f32 %v414_v18 }
 0x128   :  { %v492_v22 = vpop.eup %491  ;;  %503 = vpow2.f32 %v416_v19  ;;  %v478_v24 = vadd.f32 -1.0, %v490_v21 }
 0x129   :  { %v494_v25 = vpop.eup %493  ;;  %505 = vpow2.f32 %v418_v20  ;;  %v479_v26 = vadd.f32 -1.0, %v492_v22 }
 0x12a   :  { %v496_v27 = vpop.eup %495  ;;  %v480_v28 = vadd.f32 -1.0, %v494_v25  ;;  %v429_v29 = vmul.f32 1.6732632, %v478_v24 }
 0x12b   :  { %v498_v31 = vpop.eup %497  ;;  %v481_v32 = vadd.f32 -1.0, %v496_v27  ;;  %v430_v33 = vmul.f32 1.6732632, %v479_v26 }
 0x12c   :  { %v500_v34 = vpop.eup %499  ;;  %v482_v35 = vadd.f32 -1.0, %v498_v31  ;;  %v431_v36 = vmul.f32 1.6732632, %v480_v28  ;;  %v447_v37 = vsel %vm438_vm4, %v384_v62, %v429_v29 }
 0x12d   :  { %v502_v39 = vpop.eup %501  ;;  %v483_v40 = vadd.f32 -1.0, %v500_v34  ;;  %v432_v41 = vmul.f32 1.6732632, %v481_v32  ;;  %v448_v42 = vsel %vm439_vm5, %v385_v63, %v430_v33  ;;  %v456_v43 = vmul.f32 1.050701, %v447_v37 }
 0x12e   :  { %v504_v44 = vpop.eup %503  ;;  %v484_v46 = vadd.f32 -1.0, %v502_v39  ;;  %v433_v47 = vmul.f32 1.6732632, %v482_v35  ;;  %v449_v48 = vsel %vm440_vm6, %v904_v0, %v431_v36  ;;  %v457_v49 = vmul.f32 1.050701, %v448_v42 }
 0x12f   :  { %v506_v50 = vpop.eup %505  ;;  %v485_v51 = vadd.f32 -1.0, %v504_v44  ;;  %v434_v52 = vmul.f32 1.6732632, %v483_v40  ;;  %v450_v53 = vsel %vm441_vm7, %v906_v9, %v432_v41  ;;  %v458_v54 = vmul.f32 1.050701, %v449_v48  ;;  %465 = vst.msk [vmem:[%s989_s4] sm:$0xff] %vm293_vm0, %v456_v43 }
 0x130   :  { %v486_v55 = vadd.f32 -1.0, %v506_v50  ;;  %v435_v56 = vmul.f32 1.6732632, %v484_v46  ;;  %v451_v57 = vsel %vm442_vm8, %v908_v6, %v433_v47  ;;  %v459_v58 = vmul.f32 1.050701, %v450_v53  ;;  %466 = vst.msk [vmem:[%s989_s4 + $0x8] sm:$0xff] %vm293_vm0, %v457_v49 }
 0x131   :  { %v436_v59 = vmul.f32 1.6732632, %v485_v51  ;;  %v452_v60 = vsel %vm443_vm9, %v910_v10, %v434_v52  ;;  %v460_v61 = vmul.f32 1.050701, %v451_v57  ;;  %467 = vst.msk [vmem:[%s989_s4 + $0x10] sm:$0xff] %vm293_vm0, %v458_v54 }
 0x132   :  { %v437_v62 = vmul.f32 1.6732632, %v486_v55  ;;  %v453_v63 = vsel %vm444_vm10, %v912_v16, %v435_v56  ;;  %v461_v0 = vmul.f32 1.050701, %v452_v60  ;;  %468 = vst.msk [vmem:[%s989_s4 + $0x18] sm:$0xff] %vm293_vm0, %v459_v58 }
 0x133   :  { %v454_v9 = vsel %vm445_vm11, %v914_v23, %v436_v59  ;;  %v462_v6 = vmul.f32 1.050701, %v453_v63  ;;  %469 = vst.msk [vmem:[%s989_s4 + $0x20] sm:$0xff] %vm293_vm0, %v460_v61 }
 0x134   :  { %v455_v10 = vsel %vm446_vm12, %v916_v30, %v437_v62  ;;  %v463_v38 = vmul.f32 1.050701, %v454_v9  ;;  %470 = vst.msk [vmem:[%s989_s4 + $0x28] sm:$0xff] %vm293_vm0, %v461_v0 }
 0x135   :  { %v464_v16 = vmul.f32 1.050701, %v455_v10  ;;  %471 = vst.msk [vmem:[%s989_s4 + $0x30] sm:$0xff] %vm293_vm0, %v462_v6 }
 0x136   :  { %472 = vst.msk [vmem:[%s989_s4 + $0x38] sm:$0xff] %vm293_vm0, %v463_v38 }
 0x137   :  { %473 = vst.msk [vmem:[%s989_s4 + $0x40] sm:$0xff] %vm293_vm0, %v464_v16 }

// kernel: encoder_forward.8
= control target key start
LH: loop header
LB: loop body
LE: loop exit
PB: predicated region body
PF: predicated region fallthrough
CT: control target
= control target key end

     0   :  { %s966_s1 = inlined_call_operand.vmem [shape: f32[1024,128], index: 1, kind: input, shape index: {}]   ;;  %s967_s0 = inlined_call_operand.vmem [shape: f32[24,1024], index: 0, kind: input, shape index: {}]   ;;  %s968_s2 = inlined_call_operand.vmem [shape: f32[1,128], index: 2, kind: input, shape index: {}]   ;;  %s969_s3 = inlined_call_operand.vmem [shape: f32[1,128], index: 3, kind: input, shape index: {}]   ;;  %s970_s4 = inlined_call_operand.vmem [shape: f32[24,128], index: 4, kind: output, shape index: {}]  }
   0x1   :  { %v56_v0 = vld [vmem:[%s966_s1 + $0x78] sm:$0xff]  ;;  %v55_v2 = vld [vmem:[%s966_s1 + $0x70] sm:$0xff]  ;;  %v54_v6 = vld [vmem:[%s966_s1 + $0x68] sm:$0xff] }
   0x2   :  { %v88_v1 = vld [vmem:[%s966_s1 + $0x178] sm:$0xff]  ;;  %169 = vmatpush.msra.mxu0 %v56_v0  ;;  %v87_v4 = vld [vmem:[%s966_s1 + $0x170] sm:$0xff]  ;;  %v86_v8 = vld [vmem:[%s966_s1 + $0x168] sm:$0xff] }
   0x3   :  { %221 = vmatpush.msra.mxu2 %v88_v1  ;;  %v72_v3 = vld [vmem:[%s966_s1 + $0xf8] sm:$0xff]  ;;  %v71_v7 = vld [vmem:[%s966_s1 + $0xf0] sm:$0xff]  ;;  %v70_v10 = vld [vmem:[%s966_s1 + $0xe8] sm:$0xff] }
   0x4   :  { %v104_v5 = vld [vmem:[%s966_s1 + $0x1f8] sm:$0xff]  ;;  %195 = vmatpush.msra.mxu1 %v72_v3  ;;  %170 = vmatpush.msra.mxu0 %v55_v2  ;;  %v103_v9 = vld [vmem:[%s966_s1 + $0x1f0] sm:$0xff]  ;;  %v53_v11 = vld [vmem:[%s966_s1 + $0x60] sm:$0xff] }
   0x5   :  { %247 = vmatpush.msra.mxu3 %v104_v5  ;;  %222 = vmatpush.msra.mxu2 %v87_v4  ;;  %v85_v12 = vld [vmem:[%s966_s1 + $0x160] sm:$0xff]  ;;  %v102_v13 = vld [vmem:[%s966_s1 + $0x1e8] sm:$0xff]  ;;  %v52_v16 = vld [vmem:[%s966_s1 + $0x58] sm:$0xff] }
   0x6   :  { %196 = vmatpush.msra.mxu1 %v71_v7  ;;  %171 = vmatpush.msra.mxu0 %v54_v6  ;;  %v69_v14 = vld [vmem:[%s966_s1 + $0xe0] sm:$0xff]  ;;  %v84_v17 = vld [vmem:[%s966_s1 + $0x158] sm:$0xff]  ;;  %v51_v20 = vld [vmem:[%s966_s1 + $0x50] sm:$0xff] }
   0x7   :  { %248 = vmatpush.msra.mxu3 %v103_v9  ;;  %223 = vmatpush.msra.mxu2 %v86_v8  ;;  %v101_v15 = vld [vmem:[%s966_s1 + $0x1e0] sm:$0xff]  ;;  %v68_v18 = vld [vmem:[%s966_s1 + $0xd8] sm:$0xff]  ;;  %v83_v21 = vld [vmem:[%s966_s1 + $0x150] sm:$0xff] }
   0x8   :  { %197 = vmatpush.msra.mxu1 %v70_v10  ;;  %172 = vmatpush.msra.mxu0 %v53_v11  ;;  %v100_v19 = vld [vmem:[%s966_s1 + $0x1d8] sm:$0xff]  ;;  %v67_v22 = vld [vmem:[%s966_s1 + $0xd0] sm:$0xff]  ;;  %v50_v24 = vld [vmem:[%s966_s1 + $0x48] sm:$0xff] }
   0x9   :  { %249 = vmatpush.msra.mxu3 %v102_v13  ;;  %224 = vmatpush.msra.mxu2 %v85_v12  ;;  %v99_v23 = vld [vmem:[%s966_s1 + $0x1d0] sm:$0xff]  ;;  %v82_v25 = vld [vmem:[%s966_s1 + $0x148] sm:$0xff]  ;;  %v49_v28 = vld [vmem:[%s966_s1 + $0x40] sm:$0xff] }
   0xa   :  { %198 = vmatpush.msra.mxu1 %v69_v14  ;;  %173 = vmatpush.msra.mxu0 %v52_v16  ;;  %v66_v26 = vld [vmem:[%s966_s1 + $0xc8] sm:$0xff]  ;;  %v81_v29 = vld [vmem:[%s966_s1 + $0x140] sm:$0xff]  ;;  %v48_v32 = vld [vmem:[%s966_s1 + $0x38] sm:$0xff] }
   0xb   :  { %250 = vmatpush.msra.mxu3 %v101_v15  ;;  %225 = vmatpush.msra.mxu2 %v84_v17  ;;  %v98_v27 = vld [vmem:[%s966_s1 + $0x1c8] sm:$0xff]  ;;  %v65_v30 = vld [vmem:[%s966_s1 + $0xc0] sm:$0xff]  ;;  %v80_v33 = vld [vmem:[%s966_s1 + $0x138] sm:$0xff] }
   0xc   :  { %199 = vmatpush.msra.mxu1 %v68_v18  ;;  %174 = vmatpush.msra.mxu0 %v51_v20  ;;  %v97_v31 = vld [vmem:[%s966_s1 + $0x1c0] sm:$0xff]  ;;  %v64_v34 = vld [vmem:[%s966_s1 + $0xb8] sm:$0xff]  ;;  %v47_v36 = vld [vmem:[%s966_s1 + $0x30] sm:$0xff] }
   0xd   :  { %251 = vmatpush.msra.mxu3 %v100_v19  ;;  %226 = vmatpush.msra.mxu2 %v83_v21  ;;  %v96_v35 = vld [vmem:[%s966_s1 + $0x1b8] sm:$0xff]  ;;  %v79_v37 = vld [vmem:[%s966_s1 + $0x130] sm:$0xff]  ;;  %v46_v40 = vld [vmem:[%s966_s1 + $0x28] sm:$0xff] }
   0xe   :  { %200 = vmatpush.msra.mxu1 %v67_v22  ;;  %175 = vmatpush.msra.mxu0 %v50_v24  ;;  %v63_v38 = vld [vmem:[%s966_s1 + $0xb0] sm:$0xff]  ;;  %v78_v41 = vld [vmem:[%s966_s1 + $0x128] sm:$0xff]  ;;  %v45_v44 = vld [vmem:[%s966_s1 + $0x20] sm:$0xff] }
   0xf   :  { %252 = vmatpush.msra.mxu3 %v99_v23  ;;  %227 = vmatpush.msra.mxu2 %v82_v25  ;;  %v95_v39 = vld [vmem:[%s966_s1 + $0x1b0] sm:$0xff]  ;;  %v62_v42 = vld [vmem:[%s966_s1 + $0xa8] sm:$0xff]  ;;  %v77_v45 = vld [vmem:[%s966_s1 + $0x120] sm:$0xff] }
  0x10   :  { %201 = vmatpush.msra.mxu1 %v66_v26  ;;  %176 = vmatpush.msra.mxu0 %v49_v28  ;;  %v94_v43 = vld [vmem:[%s966_s1 + $0x1a8] sm:$0xff]  ;;  %v61_v46 = vld [vmem:[%s966_s1 + $0xa0] sm:$0xff]  ;;  %v44_v48 = vld [vmem:[%s966_s1 + $0x18] sm:$0xff] }
  0x11   :  { %253 = vmatpush.msra.mxu3 %v98_v27  ;;  %228 = vmatpush.msra.mxu2 %v81_v29  ;;  %v93_v47 = vld [vmem:[%s966_s1 + $0x1a0] sm:$0xff]  ;;  %v76_v49 = vld [vmem:[%s966_s1 + $0x118] sm:$0xff]  ;;  %v43_v52 = vld [vmem:[%s966_s1 + $0x10] sm:$0xff] }
  0x12   :  { %202 = vmatpush.msra.mxu1 %v65_v30  ;;  %177 = vmatpush.msra.mxu0 %v48_v32  ;;  %v60_v50 = vld [vmem:[%s966_s1 + $0x98] sm:$0xff]  ;;  %v75_v53 = vld [vmem:[%s966_s1 + $0x110] sm:$0xff]  ;;  %v42_v56 = vld [vmem:[%s966_s1 + $0x8] sm:$0xff] }
  0x13   :  { %254 = vmatpush.msra.mxu3 %v97_v31  ;;  %229 = vmatpush.msra.mxu2 %v80_v33  ;;  %v92_v51 = vld [vmem:[%s966_s1 + $0x198] sm:$0xff]  ;;  %v59_v54 = vld [vmem:[%s966_s1 + $0x90] sm:$0xff]  ;;  %v74_v57 = vld [vmem:[%s966_s1 + $0x108] sm:$0xff] }
  0x14   :  { %203 = vmatpush.msra.mxu1 %v64_v34  ;;  %178 = vmatpush.msra.mxu0 %v47_v36  ;;  %v91_v55 = vld [vmem:[%s966_s1 + $0x190] sm:$0xff]  ;;  %v58_v58 = vld [vmem:[%s966_s1 + $0x88] sm:$0xff]  ;;  %v41_v60 = vld [vmem:[%s966_s1] sm:$0xff] }
  0x15   :  { %255 = vmatpush.msra.mxu3 %v96_v35  ;;  %230 = vmatpush.msra.mxu2 %v79_v37  ;;  %v90_v59 = vld [vmem:[%s966_s1 + $0x188] sm:$0xff]  ;;  %v73_v61 = vld [vmem:[%s966_s1 + $0x100] sm:$0xff]  ;;  %v120_v62 = vld [vmem:[%s966_s1 + $0x278] sm:$0xff] }
  0x16   :  { %204 = vmatpush.msra.mxu1 %v63_v38  ;;  %179 = vmatpush.msra.mxu0 %v46_v40  ;;  %v152_v63 = vld [vmem:[%s966_s1 + $0x378] sm:$0xff]  ;;  %v57_v0 = vld [vmem:[%s966_s1 + $0x80] sm:$0xff]  ;;  %v119_v2 = vld [vmem:[%s966_s1 + $0x270] sm:$0xff] }
  0x17   :  { %256 = vmatpush.msra.mxu3 %v95_v39  ;;  %231 = vmatpush.msra.mxu2 %v78_v41  ;;  %v89_v1 = vld [vmem:[%s966_s1 + $0x180] sm:$0xff]  ;;  %v136_v3 = vld [vmem:[%s966_s1 + $0x2f8] sm:$0xff]  ;;  %v151_v4 = vld [vmem:[%s966_s1 + $0x370] sm:$0xff] }
  0x18   :  { %205 = vmatpush.msra.mxu1 %v62_v42  ;;  %180 = vmatpush.msra.mxu0 %v45_v44  ;;  %v168_v5 = vld [vmem:[%s966_s1 + $0x3f8] sm:$0xff]  ;;  %v118_v6 = vld [vmem:[%s966_s1 + $0x268] sm:$0xff]  ;;  %v135_v7 = vld [vmem:[%s966_s1 + $0x2f0] sm:$0xff] }
  0x19   :  { %257 = vmatpush.msra.mxu3 %v94_v43  ;;  %232 = vmatpush.msra.mxu2 %v77_v45  ;;  %v150_v8 = vld [vmem:[%s966_s1 + $0x368] sm:$0xff]  ;;  %v167_v9 = vld [vmem:[%s966_s1 + $0x3f0] sm:$0xff]  ;;  %v117_v11 = vld [vmem:[%s966_s1 + $0x260] sm:$0xff] }
  0x1a   :  { %206 = vmatpush.msra.mxu1 %v61_v46  ;;  %181 = vmatpush.msra.mxu0 %v44_v48  ;;  %v19_v10 = vld [vmem:[%s967_s0 + $0x10] sm:$0xff]  ;;  %v134_v12 = vld [vmem:[%s966_s1 + $0x2e8] sm:$0xff]  ;;  %v149_v13 = vld [vmem:[%s966_s1 + $0x360] sm:$0xff] }
  0x1b   :  { %258 = vmatpush.msra.mxu3 %v93_v47  ;;  %233 = vmatpush.msra.mxu2 %v76_v49  ;;  %v166_v14 = vld [vmem:[%s966_s1 + $0x3e8] sm:$0xff]  ;;  %v17_v15 = vld [vmem:[%s967_s0] sm:$0xff]  ;;  %v20_v16 = vld [vmem:[%s967_s0 + $0x18] sm:$0xff] }
  0x1c   :  { %207 = vmatpush.msra.mxu1 %v60_v50  ;;  %182 = vmatpush.msra.mxu0 %v43_v52  ;;  %v116_v17 = vld [vmem:[%s966_s1 + $0x258] sm:$0xff]  ;;  %v133_v18 = vld [vmem:[%s966_s1 + $0x2e0] sm:$0xff]  ;;  %v18_v21 = vld [vmem:[%s967_s0 + $0x8] sm:$0xff] }
  0x1d   :  { %259 = vmatpush.msra.mxu3 %v92_v51  ;;  %234 = vmatpush.msra.mxu2 %v75_v53  ;;  %v148_v19 = vld [vmem:[%s966_s1 + $0x358] sm:$0xff]  ;;  %v165_v20 = vld [vmem:[%s966_s1 + $0x3e0] sm:$0xff]  ;;  %v115_v22 = vld [vmem:[%s966_s1 + $0x250] sm:$0xff] }
  0x1e   :  { %208 = vmatpush.msra.mxu1 %v59_v54  ;;  %183 = vmatpush.msra.mxu0 %v42_v56  ;;  %v132_v23 = vld [vmem:[%s966_s1 + $0x2d8] sm:$0xff]  ;;  %v147_v24 = vld [vmem:[%s966_s1 + $0x350] sm:$0xff]  ;;  %v114_v26 = vld [vmem:[%s966_s1 + $0x248] sm:$0xff] }
  0x1f   :  { %260 = vmatpush.msra.mxu3 %v91_v55  ;;  %235 = vmatpush.msra.mxu2 %v74_v57  ;;  %v164_v25 = vld [vmem:[%s966_s1 + $0x3d8] sm:$0xff]  ;;  %v131_v27 = vld [vmem:[%s966_s1 + $0x2d0] sm:$0xff]  ;;  %v146_v28 = vld [vmem:[%s966_s1 + $0x348] sm:$0xff] }
  0x20   :  { %209 = vmatpush.msra.mxu1 %v58_v58  ;;  %184 = vmatpush.msra.mxu0 %v41_v60  ;;  %v163_v29 = vld [vmem:[%s966_s1 + $0x3d0] sm:$0xff]  ;;  %v113_v31 = vld [vmem:[%s966_s1 + $0x240] sm:$0xff]  ;;  %v130_v32 = vld [vmem:[%s966_s1 + $0x2c8] sm:$0xff] }
  0x21   :  { %261 = vmatpush.msra.mxu3 %v90_v59  ;;  %236 = vmatpush.msra.mxu2 %v73_v61  ;;  %v27_v30 = vld [vmem:[%s967_s0 + $0x50] sm:$0xff]  ;;  %v145_v33 = vld [vmem:[%s966_s1 + $0x340] sm:$0xff]  ;;  %v162_v34 = vld [vmem:[%s966_s1 + $0x3c8] sm:$0xff] }
  0x22   :  { %273 = vmatpush.msrb.mxu0 %v120_v62  ;;  %210 = vmatpush.msra.mxu1 %v57_v0  ;;  %v25_v35 = vld [vmem:[%s967_s0 + $0x40] sm:$0xff]  ;;  %v28_v36 = vld [vmem:[%s967_s0 + $0x58] sm:$0xff]  ;;  %v26_v41 = vld [vmem:[%s967_s0 + $0x48] sm:$0xff] }
  0x23   :  { %325 = vmatpush.msrb.mxu2 %v152_v63  ;;  %262 = vmatpush.msra.mxu3 %v89_v1  ;;  %v112_v37 = vld [vmem:[%s966_s1 + $0x238] sm:$0xff]  ;;  %v129_v38 = vld [vmem:[%s966_s1 + $0x2c0] sm:$0xff]  ;;  %v111_v42 = vld [vmem:[%s966_s1 + $0x230] sm:$0xff] }
  0x24   :  { %274 = vmatpush.msrb.mxu0 %v119_v2  ;;  %299 = vmatpush.msrb.mxu1 %v136_v3  ;;  %v144_v39 = vld [vmem:[%s966_s1 + $0x338] sm:$0xff]  ;;  %v161_v40 = vld [vmem:[%s966_s1 + $0x3c0] sm:$0xff]  ;;  %v143_v44 = vld [vmem:[%s966_s1 + $0x330] sm:$0xff] }
  0x25   :  { %326 = vmatpush.msrb.mxu2 %v151_v4  ;;  %351 = vmatpush.msrb.mxu3 %v168_v5  ;;  %v128_v43 = vld [vmem:[%s966_s1 + $0x2b8] sm:$0xff]  ;;  %v110_v46 = vld [vmem:[%s966_s1 + $0x228] sm:$0xff]  ;;  %v127_v47 = vld [vmem:[%s966_s1 + $0x2b0] sm:$0xff] }
  0x26   :  { %275 = vmatpush.msrb.mxu0 %v118_v6  ;;  %300 = vmatpush.msrb.mxu1 %v135_v7  ;;  %v160_v45 = vld [vmem:[%s966_s1 + $0x3b8] sm:$0xff]  ;;  %v142_v48 = vld [vmem:[%s966_s1 + $0x328] sm:$0xff]  ;;  %v159_v49 = vld [vmem:[%s966_s1 + $0x3b0] sm:$0xff] }
  0x27   :  { %327 = vmatpush.msrb.mxu2 %v150_v8  ;;  %352 = vmatpush.msrb.mxu3 %v167_v9  ;;  %v35_v50 = vld [vmem:[%s967_s0 + $0x90] sm:$0xff]  ;;  %v109_v51 = vld [vmem:[%s966_s1 + $0x220] sm:$0xff]  ;;  %v126_v52 = vld [vmem:[%s966_s1 + $0x2a8] sm:$0xff] }
  0x28   :  { %237 = vmatmul.f32.vlgmr.msra.gmra.mxu2 %v19_v10  ;;  %276 = vmatpush.msrb.mxu0 %v117_v11  ;;  %v141_v53 = vld [vmem:[%s966_s1 + $0x320] sm:$0xff]  ;;  %v158_v54 = vld [vmem:[%s966_s1 + $0x3a8] sm:$0xff]  ;;  %v36_v56 = vld [vmem:[%s967_s0 + $0x98] sm:$0xff] }
  0x29   :  { %301 = vmatpush.msrb.mxu1 %v134_v12  ;;  %328 = vmatpush.msrb.mxu2 %v149_v13  ;;  %v33_v55 = vld [vmem:[%s967_s0 + $0x80] sm:$0xff]  ;;  %v108_v57 = vld [vmem:[%s966_s1 + $0x218] sm:$0xff]  ;;  %v34_v61 = vld [vmem:[%s967_s0 + $0x88] sm:$0xff] }
  0x2a   :  { %353 = vmatpush.msrb.mxu3 %v166_v14  ;;  %185 = vmatmul.f32.vlgmr.msra.gmra.mxu0 %v17_v15  ;;  %v125_v58 = vld [vmem:[%s966_s1 + $0x2a0] sm:$0xff]  ;;  %v140_v59 = vld [vmem:[%s966_s1 + $0x318] sm:$0xff]  ;;  %v107_v62 = vld [vmem:[%s966_s1 + $0x210] sm:$0xff] }
  0x2b   :  { %263 = vmatmul.f32.vlgmr.msra.gmra.mxu3 %v20_v16  ;;  %277 = vmatpush.msrb.mxu0 %v116_v17  ;;  %v157_v60 = vld [vmem:[%s966_s1 + $0x3a0] sm:$0xff]  ;;  %v124_v63 = vld [vmem:[%s966_s1 + $0x298] sm:$0xff]  ;;  %v139_v0 = vld [vmem:[%s966_s1 + $0x310] sm:$0xff] }
  0x2c   :  { %302 = vmatpush.msrb.mxu1 %v133_v18  ;;  %329 = vmatpush.msrb.mxu2 %v148_v19  ;;  %v156_v1 = vld [vmem:[%s966_s1 + $0x398] sm:$0xff]  ;;  %v106_v2 = vld [vmem:[%s966_s1 + $0x208] sm:$0xff]  ;;  %v123_v3 = vld [vmem:[%s966_s1 + $0x290] sm:$0xff] }
  0x2d   :  { %354 = vmatpush.msrb.mxu3 %v165_v20  ;;  %211 = vmatmul.f32.vlgmr.msra.gmra.mxu1 %v18_v21  ;;  %v138_v4 = vld [vmem:[%s966_s1 + $0x308] sm:$0xff]  ;;  %v155_v5 = vld [vmem:[%s966_s1 + $0x390] sm:$0xff]  ;;  %v105_v6 = vld [vmem:[%s966_s1 + $0x200] sm:$0xff] }
  0x2e   :  { %278 = vmatpush.msrb.mxu0 %v115_v22  ;;  %303 = vmatpush.msrb.mxu1 %v132_v23  ;;  %v122_v7 = vld [vmem:[%s966_s1 + $0x288] sm:$0xff]  ;;  %v137_v8 = vld [vmem:[%s966_s1 + $0x300] sm:$0xff]  ;;  %v23_v11 = vld [vmem:[%s967_s0 + $0x30] sm:$0xff] }
  0x2f   :  { %330 = vmatpush.msrb.mxu2 %v147_v24  ;;  %355 = vmatpush.msrb.mxu3 %v164_v25  ;;  %v154_v9 = vld [vmem:[%s966_s1 + $0x388] sm:$0xff]  ;;  %v21_v10 = vld [vmem:[%s967_s0 + $0x20] sm:$0xff]  ;;  %v24_v15 = vld [vmem:[%s967_s0 + $0x38] sm:$0xff] }
  0x30   :  { %279 = vmatpush.msrb.mxu0 %v114_v26  ;;  %304 = vmatpush.msrb.mxu1 %v131_v27  ;;  %v121_v12 = vld [vmem:[%s966_s1 + $0x280] sm:$0xff]  ;;  %v22_v14 = vld [vmem:[%s967_s0 + $0x28] sm:$0xff]  ;;  %v31_v17 = vld [vmem:[%s967_s0 + $0x70] sm:$0xff] }
  0x31   :  { %331 = vmatpush.msrb.mxu2 %v146_v28  ;;  %356 = vmatpush.msrb.mxu3 %v163_v29  ;;  %v153_v13 = vld [vmem:[%s966_s1 + $0x380] sm:$0xff]  ;;  %v30_v18 = vld [vmem:[%s967_s0 + $0x68] sm:$0xff]  ;;  %v32_v19 = vld [vmem:[%s967_s0 + $0x78] sm:$0xff] }
  0x32   :  { %240 = vmatmul.f32.gmra.mxu2 %v27_v30  ;;  %280 = vmatpush.msrb.mxu0 %v113_v31  ;;  %v29_v16 = vld [vmem:[%s967_s0 + $0x60] sm:$0xff]  ;;  %v39_v21 = vld [vmem:[%s967_s0 + $0xb0] sm:$0xff]  ;;  %v38_v22 = vld [vmem:[%s967_s0 + $0xa8] sm:$0xff] }
  0x33   :  { %305 = vmatpush.msrb.mxu1 %v130_v32  ;;  %332 = vmatpush.msrb.mxu2 %v145_v33  ;;  %v37_v20 = vld [vmem:[%s967_s0 + $0xa0] sm:$0xff]  ;;  %v40_v23 = vld [vmem:[%s967_s0 + $0xb8] sm:$0xff] }
  0x34   :  { %357 = vmatpush.msrb.mxu3 %v162_v34  ;;  %188 = vmatmul.f32.gmra.mxu0 %v25_v35 }
  0x35   :  { %266 = vmatmul.f32.gmra.mxu3 %v28_v36  ;;  %281 = vmatpush.msrb.mxu0 %v112_v37 }
  0x36   :  { %306 = vmatpush.msrb.mxu1 %v129_v38  ;;  %333 = vmatpush.msrb.mxu2 %v144_v39 }
  0x37   :  { %358 = vmatpush.msrb.mxu3 %v161_v40  ;;  %214 = vmatmul.f32.gmra.mxu1 %v26_v41 }
  0x38   :  { %282 = vmatpush.msrb.mxu0 %v111_v42  ;;  %307 = vmatpush.msrb.mxu1 %v128_v43 }
  0x39   :  { %334 = vmatpush.msrb.mxu2 %v143_v44  ;;  %359 = vmatpush.msrb.mxu3 %v160_v45 }
  0x3a   :  { %283 = vmatpush.msrb.mxu0 %v110_v46  ;;  %308 = vmatpush.msrb.mxu1 %v127_v47 }
  0x3b   :  { %335 = vmatpush.msrb.mxu2 %v142_v48  ;;  %360 = vmatpush.msrb.mxu3 %v159_v49 }
  0x3c   :  { %243 = vmatmul.f32.gmra.mxu2 %v35_v50  ;;  %284 = vmatpush.msrb.mxu0 %v109_v51 }
  0x3d   :  { %309 = vmatpush.msrb.mxu1 %v126_v52  ;;  %336 = vmatpush.msrb.mxu2 %v141_v53 }
  0x3e   :  { %361 = vmatpush.msrb.mxu3 %v158_v54  ;;  %191 = vmatmul.f32.gmra.mxu0 %v33_v55 }
  0x3f   :  { %269 = vmatmul.f32.gmra.mxu3 %v36_v56  ;;  %285 = vmatpush.msrb.mxu0 %v108_v57 }
  0x40   :  { %310 = vmatpush.msrb.mxu1 %v125_v58  ;;  %337 = vmatpush.msrb.mxu2 %v140_v59 }
  0x41   :  { %362 = vmatpush.msrb.mxu3 %v157_v60  ;;  %217 = vmatmul.f32.gmra.mxu1 %v34_v61 }
  0x42   :  { %286 = vmatpush.msrb.mxu0 %v107_v62  ;;  %311 = vmatpush.msrb.mxu1 %v124_v63 }
  0x43   :  { %338 = vmatpush.msrb.mxu2 %v139_v0  ;;  %363 = vmatpush.msrb.mxu3 %v156_v1 }
  0x44   :  { %287 = vmatpush.msrb.mxu0 %v106_v2  ;;  %312 = vmatpush.msrb.mxu1 %v123_v3 }
  0x45   :  { %339 = vmatpush.msrb.mxu2 %v138_v4  ;;  %364 = vmatpush.msrb.mxu3 %v155_v5 }
  0x46   :  { %288 = vmatpush.msrb.mxu0 %v105_v6  ;;  %313 = vmatpush.msrb.mxu1 %v122_v7 }
  0x47   :  { %340 = vmatpush.msrb.mxu2 %v137_v8  ;;  %365 = vmatpush.msrb.mxu3 %v154_v9 }
  0x48   :  { %289 = vmatmul.f32.vlgmr.msrb.gmra.mxu0 %v21_v10  ;;  %341 = vmatmul.f32.vlgmr.msrb.gmra.mxu2 %v23_v11 }
  0x49   :  { %314 = vmatpush.msrb.mxu1 %v121_v12  ;;  %366 = vmatpush.msrb.mxu3 %v153_v13 }
  0x4a   :  { %315 = vmatmul.f32.vlgmr.msrb.gmra.mxu1 %v22_v14  ;;  %367 = vmatmul.f32.vlgmr.msrb.gmra.mxu3 %v24_v15 }
  0x50   :  { %292 = vmatmul.f32.gmra.mxu0 %v29_v16  ;;  %344 = vmatmul.f32.gmra.mxu2 %v31_v17 }
  0x52   :  { %318 = vmatmul.f32.gmra.mxu1 %v30_v18  ;;  %370 = vmatmul.f32.gmra.mxu3 %v32_v19 }
  0x58   :  { %295 = vmatmul.f32.gmra.mxu0 %v37_v20  ;;  %347 = vmatmul.f32.gmra.mxu2 %v39_v21 }
  0x5a   :  { %321 = vmatmul.f32.gmra.mxu1 %v38_v22  ;;  %373 = vmatmul.f32.gmra.mxu3 %v40_v23 }
  0xa7   :  { %v186_v24 = vpop.f32.mrf.mxu0 }
  0xaa   :  { %v212_v25 = vpop.f32.mrf.mxu1 }
  0xab   :  { %v238_v26 = vpop.f32.mrf.mxu2  ;;  %v213_v38 = vadd.f32 %v212_v25, %v186_v24 }
  0xad   :  { %v239_v41 = vadd.f32 %v238_v26, %v213_v38  ;;  %v413_v38 = vld [vmem:[%s969_s3] sm:$0x1] }
  0xae   :  { %v264_v27 = vpop.f32.mrf.mxu3 }
  0xaf   :  { %v265_v47 = vadd.f32 %v264_v27, %v239_v41 }
  0xb1   :  { %v189_v28 = vpop.f32.mrf.mxu0 }
  0xb4   :  { %v215_v29 = vpop.f32.mrf.mxu1 }
  0xb5   :  { %v241_v30 = vpop.f32.mrf.mxu2  ;;  %v216_v35 = vadd.f32 %v215_v29, %v189_v28 }
  0xb7   :  { %v242_v40 = vadd.f32 %v241_v30, %v216_v35 }
  0xb8   :  { %v267_v31 = vpop.f32.mrf.mxu3 }
  0xb9   :  { %v268_v43 = vadd.f32 %v267_v31, %v242_v40 }
  0xbb   :  { %v192_v32 = vpop.f32.mrf.mxu0 }
  0xbe   :  { %v218_v33 = vpop.f32.mrf.mxu1 }
  0xbf   :  { %v244_v34 = vpop.f32.mrf.mxu2  ;;  %v219_v44 = vadd.f32 %v218_v33, %v192_v32 }
  0xc1   :  { %v245_v50 = vadd.f32 %v244_v34, %v219_v44  ;;  %v400_v34 = vld [vmem:[%s968_s2] sm:$0x1] }
  0xc2   :  { %v270_v36 = vpop.f32.mrf.mxu3 }
  0xc3   :  { %v271_v54 = vadd.f32 %v270_v36, %v245_v50 }
  0xc5   :  { %v290_v37 = vpop.f32.mrf.mxu0 }
  0xc6   :  { %v291_v51 = vadd.f32 %v290_v37, %v265_v47 }
  0xc7   :  { %v316_v39 = vpop.f32.mrf.mxu1 }
  0xc8   :  { %v317_v55 = vadd.f32 %v316_v39, %v291_v51 }
  0xcb   :  { %v342_v42 = vpop.f32.mrf.mxu2 }
  0xcc   :  { %v343_v59 = vadd.f32 %v342_v42, %v317_v55 }
  0xcd   :  { %v293_v45 = vpop.f32.mrf.mxu0  ;;  %v368_v46 = vpop.f32.mrf.mxu3 }
  0xce   :  { %v294_v48 = vadd.f32 %v293_v45, %v268_v43  ;;  %v369_v63 = vadd.f32 %v368_v46, %v343_v59 }
  0xcf   :  { %v319_v49 = vpop.f32.mrf.mxu1 }
  0xd0   :  { %v320_v52 = vadd.f32 %v319_v49, %v294_v48  ;;  %v386_v5 = vmul.f32 %v369_v63, %v369_v63 }
  0xd3   :  { %v345_v53 = vpop.f32.mrf.mxu2 }
  0xd4   :  { %v346_v56 = vadd.f32 %v345_v53, %v320_v52 }
  0xd5   :  { %v296_v57 = vpop.f32.mrf.mxu0  ;;  %v371_v58 = vpop.f32.mrf.mxu3 }
  0xd6   :  { %v297_v60 = vadd.f32 %v296_v57, %v271_v54  ;;  %v372_v62 = vadd.f32 %v371_v58, %v346_v56 }
  0xd7   :  { %v322_v61 = vpop.f32.mrf.mxu1 }
  0xd8   :  { %v323_v0 = vadd.f32 %v322_v61, %v297_v60  ;;  %v387_v2 = vmul.f32 %v372_v62, %v372_v62  ;;  %v377_v6 = vadd.f32 %v372_v62, %v369_v63 }
  0xda   :  { %v389_v8 = vadd.f32 %v387_v2, %v386_v5 }
  0xdb   :  { %v348_v1 = vpop.f32.mrf.mxu2 }
  0xdc   :  { %v349_v3 = vadd.f32 %v348_v1, %v323_v0 }
  0xdd   :  { %v374_v4 = vpop.f32.mrf.mxu3 }
  0xde   :  { %v375_v7 = vadd.f32 %v374_v4, %v349_v3 }
  0xe0   :  { %v378_v9 = vadd.f32 %v377_v6, %v375_v7  ;;  %v388_v10 = vmul.f32 %v375_v7, %v375_v7 }
  0xe2   :  { %v379_v11 = vrot.slane %v378_v9, 4  ;;  %v390_v12 = vadd.f32 %v389_v8, %v388_v10 }
  0xe4   :  { %v380_v13 = vadd.f32 %v379_v11, %v378_v9  ;;  %v391_v14 = vrot.slane %v390_v12, 4 }
  0xe6   :  { %v381_v15 = vrot.slane %v380_v13, 2  ;;  %v392_v16 = vadd.f32 %v391_v14, %v390_v12 }
  0xe8   :  { %v382_v17 = vadd.f32 %v381_v15, %v380_v13  ;;  %v393_v18 = vrot.slane %v392_v16, 2 }
  0xea   :  { %v383_v19 = vrot.slane %v382_v17, 1  ;;  %v394_v20 = vadd.f32 %v393_v18, %v392_v16 }
  0xec   :  { %v384_v21 = vadd.f32 %v383_v19, %v382_v17  ;;  %v395_v22 = vrot.slane %v394_v20, 1 }
  0xee   :  { %v385_v23 = vmul.f32 0.055555556, %v384_v21  ;;  %v396_v24 = vadd.f32 %v395_v22, %v394_v20 }
  0xf0   :  { %v397_v25 = vmul.f32 0.055555556, %v396_v24  ;;  %v398_v26 = vmul.f32 %v385_v23, %v385_v23 }
  0xf2   :  { %v399_v27 = vsub.f32 %v397_v25, %v398_v26 }
  0xf4   :  { %v401_v28 = vadd.f32 1e-05, %v399_v27 }
  0xf6   :  { %462 = vrsqrt.f32 %v401_v28  ;;  %vm408_vm1 = vweird.f32 %v401_v28 }
  0xfc   :  { %v463_v29 = vpop.eup %462 }
  0xfd   :  { %v403_v30 = vmul.f32 %v463_v29, %v401_v28  ;;  %vm409_vm0 = vweird.f32 %v463_v29 }
  0xfe   :  { %vm410_vm2 = vmor %vm408_vm1, %vm409_vm0 }
  0xff   :  { %v404_v31 = vmul.f32 %v463_v29, %v403_v30 }
 0x101   :  { %v405_v32 = vmul.f32 0.5, %v404_v31 }
 0x103   :  { %v406_v33 = vsub.f32 1.5, %v405_v32 }
 0x105   :  { %v407_v35 = vmul.f32 %v463_v29, %v406_v33 }
 0x107   :  { %v411_v36 = vsel %vm410_vm2, %v463_v29, %v407_v35 }
 0x108   :  { %v412_v37 = vmul.f32 %v411_v36, %v400_v34 }
 0x10a   :  { %v414_v39 = vmul.f32 %v412_v37, %v385_v23  ;;  %v417_v40 = vperm.slane %v412_v37, 0 }
 0x10c   :  { %v415_v41 = vsub.f32 %v413_v38, %v414_v39  ;;  %v419_v42 = vmul.f32 %v417_v40, %v369_v63  ;;  %v420_v43 = vmul.f32 %v417_v40, %v372_v62  ;;  %v421_v44 = vmul.f32 %v417_v40, %v375_v7 }
 0x10e   :  { %v423_v45 = vperm.slane %v415_v41, 0 }
 0x110   :  { %v425_v46 = vadd.f32 %v423_v45, %v419_v42  ;;  %v426_v47 = vadd.f32 %v423_v45, %v420_v43  ;;  %v427_v48 = vadd.f32 %v423_v45, %v421_v44 }
 0x112   :  { %v428_v49 = vmin.f32 %v425_v46, 0.0  ;;  %v429_v50 = vmin.f32 %v426_v47, 0.0  ;;  %v430_v51 = vmin.f32 %v427_v48, 0.0  ;;  %vm443_vm3 = vcmp.gt.f32.partialorder %v425_v46, 0.0 }
 0x113   :  { %vm444_vm4 = vcmp.gt.f32.partialorder %v426_v47, 0.0  ;;  %vm445_vm5 = vcmp.gt.f32.partialorder %v427_v48, 0.0 }
 0x114   :  { %v431_v52 = vmul.f32 1.442695, %v428_v49  ;;  %v433_v53 = vmul.f32 1.442695, %v429_v50  ;;  %v435_v54 = vmul.f32 1.442695, %v430_v51 }
 0x116   :  { %464 = vpow2.f32 %v431_v52 }
 0x117   :  { %466 = vpow2.f32 %v433_v53 }
 0x118   :  { %468 = vpow2.f32 %v435_v54 }
 0x11c   :  { %v465_v55 = vpop.eup %464 }
 0x11d   :  { %v467_v56 = vpop.eup %466  ;;  %v459_v57 = vadd.f32 -1.0, %v465_v55 }
 0x11e   :  { %v469_v58 = vpop.eup %468  ;;  %v460_v59 = vadd.f32 -1.0, %v467_v56 }
 0x11f   :  { %v461_v60 = vadd.f32 -1.0, %v469_v58  ;;  %v440_v61 = vmul.f32 1.6732632, %v459_v57 }
 0x120   :  { %v441_v62 = vmul.f32 1.6732632, %v460_v59 }
 0x121   :  { %v442_v63 = vmul.f32 1.6732632, %v461_v60  ;;  %v446_v0 = vsel %vm443_vm3, %v425_v46, %v440_v61 }
 0x122   :  { %v447_v1 = vsel %vm444_vm4, %v426_v47, %v441_v62  ;;  %v449_v2 = vmul.f32 1.050701, %v446_v0 }
 0x123   :  { %v448_v3 = vsel %vm445_vm5, %v427_v48, %v442_v63  ;;  %v450_v4 = vmul.f32 1.050701, %v447_v1 }
 0x124   :  { %v451_v5 = vmul.f32 1.050701, %v448_v3  ;;  %452 = vst [vmem:[%s970_s4] sm:$0xff] %v449_v2 }
 0x125   :  { %453 = vst [vmem:[%s970_s4 + $0x8] sm:$0xff] %v450_v4 }
 0x126   :  { %454 = vst [vmem:[%s970_s4 + $0x10] sm:$0xff] %v451_v5 }

// kernel: encoder_forward.9
= control target key start
LH: loop header
LB: loop body
LE: loop exit
PB: predicated region body
PF: predicated region fallthrough
CT: control target
= control target key end

     0   :  { %vm734_vm5 = vcmask 1040384   ;;  %s1764_s1 = inlined_call_operand.vmem [shape: f32[1152,256], index: 1, kind: input, shape index: {}]   ;;  %s1765_s0 = inlined_call_operand.vmem [shape: f32[8,1152], index: 0, kind: input, shape index: {}]   ;;  %s1766_s2 = inlined_call_operand.vmem [shape: f32[1,256], index: 2, kind: input, shape index: {}]   ;;  %s1767_s3 = inlined_call_operand.vmem [shape: f32[1,256], index: 3, kind: input, shape index: {}]   ;;  %s1768_s4 = inlined_call_operand.vmem [shape: f32[8,256], index: 4, kind: output, shape index: {}]  }
   0x1   :  { %v56_v0 = vld [vmem:[%s1764_s1 + $0xf0] sm:$0xff]  ;;  %v54_v1 = vld [vmem:[%s1764_s1 + $0xe0] sm:$0xff] }
   0x2   :  { %v88_v2 = vld [vmem:[%s1764_s1 + $0x1f0] sm:$0xff]  ;;  %314 = vmatpush.msra.mxu0 %v56_v0  ;;  %v86_v3 = vld [vmem:[%s1764_s1 + $0x1e0] sm:$0xff] }
   0x3   :  { %334 = vmatpush.msra.mxu1 %v88_v2  ;;  %v120_v4 = vld [vmem:[%s1764_s1 + $0x2f0] sm:$0xff]  ;;  %v118_v7 = vld [vmem:[%s1764_s1 + $0x2e0] sm:$0xff] }
   0x4   :  { %v52_v5 = vld [vmem:[%s1764_s1 + $0xd0] sm:$0xff]  ;;  %354 = vmatpush.msra.mxu2 %v120_v4  ;;  %315 = vmatpush.msra.mxu0 %v54_v1  ;;  %v50_v8 = vld [vmem:[%s1764_s1 + $0xc0] sm:$0xff] }
   0x5   :  { %v84_v6 = vld [vmem:[%s1764_s1 + $0x1d0] sm:$0xff]  ;;  %335 = vmatpush.msra.mxu1 %v86_v3  ;;  %v82_v10 = vld [vmem:[%s1764_s1 + $0x1c0] sm:$0xff] }
   0x6   :  { %v152_v9 = vld [vmem:[%s1764_s1 + $0x3f0] sm:$0xff]  ;;  %355 = vmatpush.msra.mxu2 %v118_v7  ;;  %v150_v12 = vld [vmem:[%s1764_s1 + $0x3e0] sm:$0xff]  ;;  %316 = vmatpush.msra.mxu0 %v52_v5 }
   0x7   :  { %374 = vmatpush.msra.mxu3 %v152_v9  ;;  %v116_v11 = vld [vmem:[%s1764_s1 + $0x2d0] sm:$0xff]  ;;  %336 = vmatpush.msra.mxu1 %v84_v6  ;;  %v114_v13 = vld [vmem:[%s1764_s1 + $0x2c0] sm:$0xff] }
   0x8   :  { %v148_v14 = vld [vmem:[%s1764_s1 + $0x3d0] sm:$0xff]  ;;  %356 = vmatpush.msra.mxu2 %v116_v11  ;;  %317 = vmatpush.msra.mxu0 %v50_v8  ;;  %v146_v18 = vld [vmem:[%s1764_s1 + $0x3c0] sm:$0xff] }
   0x9   :  { %v48_v15 = vld [vmem:[%s1764_s1 + $0xb0] sm:$0xff]  ;;  %375 = vmatpush.msra.mxu3 %v150_v12  ;;  %337 = vmatpush.msra.mxu1 %v82_v10  ;;  %v46_v19 = vld [vmem:[%s1764_s1 + $0xa0] sm:$0xff] }
   0xa   :  { %v80_v16 = vld [vmem:[%s1764_s1 + $0x1b0] sm:$0xff]  ;;  %357 = vmatpush.msra.mxu2 %v114_v13  ;;  %v78_v20 = vld [vmem:[%s1764_s1 + $0x1a0] sm:$0xff]  ;;  %318 = vmatpush.msra.mxu0 %v48_v15 }
   0xb   :  { %v112_v17 = vld [vmem:[%s1764_s1 + $0x2b0] sm:$0xff]  ;;  %376 = vmatpush.msra.mxu3 %v148_v14  ;;  %338 = vmatpush.msra.mxu1 %v80_v16  ;;  %v110_v21 = vld [vmem:[%s1764_s1 + $0x2a0] sm:$0xff] }
   0xc   :  { %v144_v22 = vld [vmem:[%s1764_s1 + $0x3b0] sm:$0xff]  ;;  %358 = vmatpush.msra.mxu2 %v112_v17  ;;  %319 = vmatpush.msra.mxu0 %v46_v19  ;;  %v142_v26 = vld [vmem:[%s1764_s1 + $0x3a0] sm:$0xff] }
   0xd   :  { %v44_v23 = vld [vmem:[%s1764_s1 + $0x90] sm:$0xff]  ;;  %377 = vmatpush.msra.mxu3 %v146_v18  ;;  %339 = vmatpush.msra.mxu1 %v78_v20  ;;  %v42_v27 = vld [vmem:[%s1764_s1 + $0x80] sm:$0xff] }
   0xe   :  { %v76_v24 = vld [vmem:[%s1764_s1 + $0x190] sm:$0xff]  ;;  %359 = vmatpush.msra.mxu2 %v110_v21  ;;  %v74_v28 = vld [vmem:[%s1764_s1 + $0x180] sm:$0xff]  ;;  %320 = vmatpush.msra.mxu0 %v44_v23 }
   0xf   :  { %v108_v25 = vld [vmem:[%s1764_s1 + $0x290] sm:$0xff]  ;;  %378 = vmatpush.msra.mxu3 %v144_v22  ;;  %340 = vmatpush.msra.mxu1 %v76_v24  ;;  %v106_v29 = vld [vmem:[%s1764_s1 + $0x280] sm:$0xff] }
  0x10   :  { %v140_v30 = vld [vmem:[%s1764_s1 + $0x390] sm:$0xff]  ;;  %360 = vmatpush.msra.mxu2 %v108_v25  ;;  %321 = vmatpush.msra.mxu0 %v42_v27  ;;  %v138_v34 = vld [vmem:[%s1764_s1 + $0x380] sm:$0xff] }
  0x11   :  { %v40_v31 = vld [vmem:[%s1764_s1 + $0x70] sm:$0xff]  ;;  %379 = vmatpush.msra.mxu3 %v142_v26  ;;  %341 = vmatpush.msra.mxu1 %v74_v28  ;;  %v38_v35 = vld [vmem:[%s1764_s1 + $0x60] sm:$0xff] }
  0x12   :  { %v72_v32 = vld [vmem:[%s1764_s1 + $0x170] sm:$0xff]  ;;  %361 = vmatpush.msra.mxu2 %v106_v29  ;;  %v70_v36 = vld [vmem:[%s1764_s1 + $0x160] sm:$0xff]  ;;  %322 = vmatpush.msra.mxu0 %v40_v31 }
  0x13   :  { %v104_v33 = vld [vmem:[%s1764_s1 + $0x270] sm:$0xff]  ;;  %380 = vmatpush.msra.mxu3 %v140_v30  ;;  %342 = vmatpush.msra.mxu1 %v72_v32  ;;  %v102_v37 = vld [vmem:[%s1764_s1 + $0x260] sm:$0xff] }
  0x14   :  { %v136_v38 = vld [vmem:[%s1764_s1 + $0x370] sm:$0xff]  ;;  %362 = vmatpush.msra.mxu2 %v104_v33  ;;  %323 = vmatpush.msra.mxu0 %v38_v35  ;;  %v134_v42 = vld [vmem:[%s1764_s1 + $0x360] sm:$0xff] }
  0x15   :  { %v36_v39 = vld [vmem:[%s1764_s1 + $0x50] sm:$0xff]  ;;  %381 = vmatpush.msra.mxu3 %v138_v34  ;;  %343 = vmatpush.msra.mxu1 %v70_v36  ;;  %v34_v43 = vld [vmem:[%s1764_s1 + $0x40] sm:$0xff] }
  0x16   :  { %v68_v40 = vld [vmem:[%s1764_s1 + $0x150] sm:$0xff]  ;;  %363 = vmatpush.msra.mxu2 %v102_v37  ;;  %v66_v44 = vld [vmem:[%s1764_s1 + $0x140] sm:$0xff]  ;;  %324 = vmatpush.msra.mxu0 %v36_v39 }
  0x17   :  { %v100_v41 = vld [vmem:[%s1764_s1 + $0x250] sm:$0xff]  ;;  %382 = vmatpush.msra.mxu3 %v136_v38  ;;  %344 = vmatpush.msra.mxu1 %v68_v40  ;;  %v98_v45 = vld [vmem:[%s1764_s1 + $0x240] sm:$0xff] }
  0x18   :  { %v132_v46 = vld [vmem:[%s1764_s1 + $0x350] sm:$0xff]  ;;  %364 = vmatpush.msra.mxu2 %v100_v41  ;;  %325 = vmatpush.msra.mxu0 %v34_v43  ;;  %v130_v50 = vld [vmem:[%s1764_s1 + $0x340] sm:$0xff] }
  0x19   :  { %v32_v47 = vld [vmem:[%s1764_s1 + $0x30] sm:$0xff]  ;;  %383 = vmatpush.msra.mxu3 %v134_v42  ;;  %345 = vmatpush.msra.mxu1 %v66_v44  ;;  %v30_v51 = vld [vmem:[%s1764_s1 + $0x20] sm:$0xff] }
  0x1a   :  { %v64_v48 = vld [vmem:[%s1764_s1 + $0x130] sm:$0xff]  ;;  %365 = vmatpush.msra.mxu2 %v98_v45  ;;  %v62_v52 = vld [vmem:[%s1764_s1 + $0x120] sm:$0xff]  ;;  %326 = vmatpush.msra.mxu0 %v32_v47 }
  0x1b   :  { %v96_v49 = vld [vmem:[%s1764_s1 + $0x230] sm:$0xff]  ;;  %384 = vmatpush.msra.mxu3 %v132_v46  ;;  %346 = vmatpush.msra.mxu1 %v64_v48  ;;  %v94_v53 = vld [vmem:[%s1764_s1 + $0x220] sm:$0xff] }
  0x1c   :  { %v128_v54 = vld [vmem:[%s1764_s1 + $0x330] sm:$0xff]  ;;  %366 = vmatpush.msra.mxu2 %v96_v49  ;;  %327 = vmatpush.msra.mxu0 %v30_v51  ;;  %v126_v58 = vld [vmem:[%s1764_s1 + $0x320] sm:$0xff] }
  0x1d   :  { %v28_v55 = vld [vmem:[%s1764_s1 + $0x10] sm:$0xff]  ;;  %385 = vmatpush.msra.mxu3 %v130_v50  ;;  %347 = vmatpush.msra.mxu1 %v62_v52  ;;  %v26_v59 = vld [vmem:[%s1764_s1] sm:$0xff] }
  0x1e   :  { %v60_v56 = vld [vmem:[%s1764_s1 + $0x110] sm:$0xff]  ;;  %367 = vmatpush.msra.mxu2 %v94_v53  ;;  %v58_v60 = vld [vmem:[%s1764_s1 + $0x100] sm:$0xff]  ;;  %328 = vmatpush.msra.mxu0 %v28_v55 }
  0x1f   :  { %v92_v57 = vld [vmem:[%s1764_s1 + $0x210] sm:$0xff]  ;;  %386 = vmatpush.msra.mxu3 %v128_v54  ;;  %348 = vmatpush.msra.mxu1 %v60_v56  ;;  %v90_v63 = vld [vmem:[%s1764_s1 + $0x200] sm:$0xff]  ;;  %v1186_v56 = vld [vmem:[%s1765_s0 + $0x18] sm:$0xff] }
  0x20   :  { %v184_v61 = vld [vmem:[%s1764_s1 + $0x4f0] sm:$0xff]  ;;  %368 = vmatpush.msra.mxu2 %v92_v57  ;;  %329 = vmatpush.msra.mxu0 %v26_v59  ;;  %v182_v1 = vld [vmem:[%s1764_s1 + $0x4e0] sm:$0xff] }
  0x21   :  { %v216_v62 = vld [vmem:[%s1764_s1 + $0x5f0] sm:$0xff]  ;;  %387 = vmatpush.msra.mxu3 %v126_v58  ;;  %349 = vmatpush.msra.mxu1 %v58_v60  ;;  %v214_v2 = vld [vmem:[%s1764_s1 + $0x5e0] sm:$0xff] }
  0x22   :  { %v124_v0 = vld [vmem:[%s1764_s1 + $0x310] sm:$0xff]  ;;  %394 = vmatpush.msrb.mxu0 %v184_v61  ;;  %v122_v4 = vld [vmem:[%s1764_s1 + $0x300] sm:$0xff]  ;;  %369 = vmatpush.msra.mxu2 %v90_v63  ;;  %v1205_v61 = vld [vmem:[%s1765_s0 + $0x8] sm:$0xff] }
  0x23   :  { %414 = vmatpush.msrb.mxu1 %v216_v62  ;;  %v248_v3 = vld [vmem:[%s1764_s1 + $0x6f0] sm:$0xff]  ;;  %388 = vmatpush.msra.mxu3 %v124_v0  ;;  %v246_v7 = vld [vmem:[%s1764_s1 + $0x6e0] sm:$0xff] }
  0x24   :  { %v180_v5 = vld [vmem:[%s1764_s1 + $0x4d0] sm:$0xff]  ;;  %395 = vmatpush.msrb.mxu0 %v182_v1  ;;  %434 = vmatpush.msrb.mxu2 %v248_v3  ;;  %v178_v9 = vld [vmem:[%s1764_s1 + $0x4c0] sm:$0xff]  ;;  %v57_v3 = vld [vmem:[%s1764_s1 + $0xf8] sm:$0xff] }
  0x25   :  { %v212_v6 = vld [vmem:[%s1764_s1 + $0x5d0] sm:$0xff]  ;;  %415 = vmatpush.msrb.mxu1 %v214_v2  ;;  %389 = vmatpush.msra.mxu3 %v122_v4  ;;  %v210_v10 = vld [vmem:[%s1764_s1 + $0x5c0] sm:$0xff] }
  0x26   :  { %v280_v8 = vld [vmem:[%s1764_s1 + $0x7f0] sm:$0xff]  ;;  %396 = vmatpush.msrb.mxu0 %v180_v5  ;;  %v278_v12 = vld [vmem:[%s1764_s1 + $0x7e0] sm:$0xff]  ;;  %435 = vmatpush.msrb.mxu2 %v246_v7 }
  0x27   :  { %416 = vmatpush.msrb.mxu1 %v212_v6  ;;  %v244_v11 = vld [vmem:[%s1764_s1 + $0x6d0] sm:$0xff]  ;;  %454 = vmatpush.msrb.mxu3 %v280_v8  ;;  %v242_v15 = vld [vmem:[%s1764_s1 + $0x6c0] sm:$0xff]  ;;  %v55_v8 = vld [vmem:[%s1764_s1 + $0xe8] sm:$0xff] }
  0x28   :  { %v176_v13 = vld [vmem:[%s1764_s1 + $0x4b0] sm:$0xff]  ;;  %397 = vmatpush.msrb.mxu0 %v178_v9  ;;  %436 = vmatpush.msrb.mxu2 %v244_v11  ;;  %v174_v17 = vld [vmem:[%s1764_s1 + $0x4a0] sm:$0xff]  ;;  %v89_v9 = vld [vmem:[%s1764_s1 + $0x1f8] sm:$0xff] }
  0x29   :  { %v208_v14 = vld [vmem:[%s1764_s1 + $0x5b0] sm:$0xff]  ;;  %417 = vmatpush.msrb.mxu1 %v210_v10  ;;  %455 = vmatpush.msrb.mxu3 %v278_v12  ;;  %v206_v18 = vld [vmem:[%s1764_s1 + $0x5a0] sm:$0xff]  ;;  %v1258_v12 = vld [vmem:[%s1765_s0 + $0x38] sm:$0xff] }
  0x2a   :  { %v276_v16 = vld [vmem:[%s1764_s1 + $0x7d0] sm:$0xff]  ;;  %398 = vmatpush.msrb.mxu0 %v176_v13  ;;  %v274_v20 = vld [vmem:[%s1764_s1 + $0x7c0] sm:$0xff]  ;;  %437 = vmatpush.msrb.mxu2 %v242_v15  ;;  %v87_v15 = vld [vmem:[%s1764_s1 + $0x1e8] sm:$0xff] }
  0x2b   :  { %418 = vmatpush.msrb.mxu1 %v208_v14  ;;  %v240_v19 = vld [vmem:[%s1764_s1 + $0x6b0] sm:$0xff]  ;;  %456 = vmatpush.msrb.mxu3 %v276_v16  ;;  %v238_v23 = vld [vmem:[%s1764_s1 + $0x6a0] sm:$0xff]  ;;  %v53_v14 = vld [vmem:[%s1764_s1 + $0xd8] sm:$0xff] }
  0x2c   :  { %v172_v21 = vld [vmem:[%s1764_s1 + $0x490] sm:$0xff]  ;;  %399 = vmatpush.msrb.mxu0 %v174_v17  ;;  %438 = vmatpush.msrb.mxu2 %v240_v19  ;;  %v170_v25 = vld [vmem:[%s1764_s1 + $0x480] sm:$0xff]  ;;  %v121_v16 = vld [vmem:[%s1764_s1 + $0x2f8] sm:$0xff] }
  0x2d   :  { %v204_v22 = vld [vmem:[%s1764_s1 + $0x590] sm:$0xff]  ;;  %419 = vmatpush.msrb.mxu1 %v206_v18  ;;  %457 = vmatpush.msrb.mxu3 %v274_v20  ;;  %v202_v26 = vld [vmem:[%s1764_s1 + $0x580] sm:$0xff]  ;;  %v1277_v17 = vld [vmem:[%s1765_s0 + $0x28] sm:$0xff] }
  0x2e   :  { %v272_v24 = vld [vmem:[%s1764_s1 + $0x7b0] sm:$0xff]  ;;  %400 = vmatpush.msrb.mxu0 %v172_v21  ;;  %v270_v28 = vld [vmem:[%s1764_s1 + $0x7a0] sm:$0xff]  ;;  %439 = vmatpush.msrb.mxu2 %v238_v23  ;;  %v51_v19 = vld [vmem:[%s1764_s1 + $0xc8] sm:$0xff] }
  0x2f   :  { %420 = vmatpush.msrb.mxu1 %v204_v22  ;;  %v236_v27 = vld [vmem:[%s1764_s1 + $0x690] sm:$0xff]  ;;  %458 = vmatpush.msrb.mxu3 %v272_v24  ;;  %v234_v31 = vld [vmem:[%s1764_s1 + $0x680] sm:$0xff]  ;;  %v85_v20 = vld [vmem:[%s1764_s1 + $0x1d8] sm:$0xff] }
  0x30   :  { %v168_v29 = vld [vmem:[%s1764_s1 + $0x470] sm:$0xff]  ;;  %401 = vmatpush.msrb.mxu0 %v170_v25  ;;  %440 = vmatpush.msrb.mxu2 %v236_v27  ;;  %v166_v33 = vld [vmem:[%s1764_s1 + $0x460] sm:$0xff]  ;;  %v119_v21 = vld [vmem:[%s1764_s1 + $0x2e8] sm:$0xff] }
  0x31   :  { %v200_v30 = vld [vmem:[%s1764_s1 + $0x570] sm:$0xff]  ;;  %421 = vmatpush.msrb.mxu1 %v202_v26  ;;  %459 = vmatpush.msrb.mxu3 %v270_v28  ;;  %v198_v34 = vld [vmem:[%s1764_s1 + $0x560] sm:$0xff]  ;;  %v49_v23 = vld [vmem:[%s1764_s1 + $0xb8] sm:$0xff] }
  0x32   :  { %v268_v32 = vld [vmem:[%s1764_s1 + $0x790] sm:$0xff]  ;;  %402 = vmatpush.msrb.mxu0 %v168_v29  ;;  %v266_v36 = vld [vmem:[%s1764_s1 + $0x780] sm:$0xff]  ;;  %441 = vmatpush.msrb.mxu2 %v234_v31  ;;  %v83_v24 = vld [vmem:[%s1764_s1 + $0x1c8] sm:$0xff] }
  0x33   :  { %422 = vmatpush.msrb.mxu1 %v200_v30  ;;  %v232_v35 = vld [vmem:[%s1764_s1 + $0x670] sm:$0xff]  ;;  %460 = vmatpush.msrb.mxu3 %v268_v32  ;;  %v230_v39 = vld [vmem:[%s1764_s1 + $0x660] sm:$0xff]  ;;  %v117_v25 = vld [vmem:[%s1764_s1 + $0x2d8] sm:$0xff] }
  0x34   :  { %v164_v37 = vld [vmem:[%s1764_s1 + $0x450] sm:$0xff]  ;;  %403 = vmatpush.msrb.mxu0 %v166_v33  ;;  %442 = vmatpush.msrb.mxu2 %v232_v35  ;;  %v162_v41 = vld [vmem:[%s1764_s1 + $0x440] sm:$0xff]  ;;  %v47_v27 = vld [vmem:[%s1764_s1 + $0xa8] sm:$0xff] }
  0x35   :  { %v196_v38 = vld [vmem:[%s1764_s1 + $0x550] sm:$0xff]  ;;  %423 = vmatpush.msrb.mxu1 %v198_v34  ;;  %461 = vmatpush.msrb.mxu3 %v266_v36  ;;  %v194_v42 = vld [vmem:[%s1764_s1 + $0x540] sm:$0xff]  ;;  %v81_v28 = vld [vmem:[%s1764_s1 + $0x1b8] sm:$0xff] }
  0x36   :  { %v264_v40 = vld [vmem:[%s1764_s1 + $0x770] sm:$0xff]  ;;  %404 = vmatpush.msrb.mxu0 %v164_v37  ;;  %v262_v44 = vld [vmem:[%s1764_s1 + $0x760] sm:$0xff]  ;;  %443 = vmatpush.msrb.mxu2 %v230_v39  ;;  %v115_v29 = vld [vmem:[%s1764_s1 + $0x2c8] sm:$0xff] }
  0x37   :  { %424 = vmatpush.msrb.mxu1 %v196_v38  ;;  %v228_v43 = vld [vmem:[%s1764_s1 + $0x650] sm:$0xff]  ;;  %462 = vmatpush.msrb.mxu3 %v264_v40  ;;  %v226_v47 = vld [vmem:[%s1764_s1 + $0x640] sm:$0xff]  ;;  %v45_v31 = vld [vmem:[%s1764_s1 + $0x98] sm:$0xff] }
  0x38   :  { %v160_v45 = vld [vmem:[%s1764_s1 + $0x430] sm:$0xff]  ;;  %405 = vmatpush.msrb.mxu0 %v162_v41  ;;  %444 = vmatpush.msrb.mxu2 %v228_v43  ;;  %v158_v49 = vld [vmem:[%s1764_s1 + $0x420] sm:$0xff]  ;;  %v79_v32 = vld [vmem:[%s1764_s1 + $0x1a8] sm:$0xff] }
  0x39   :  { %v192_v46 = vld [vmem:[%s1764_s1 + $0x530] sm:$0xff]  ;;  %425 = vmatpush.msrb.mxu1 %v194_v42  ;;  %463 = vmatpush.msrb.mxu3 %v262_v44  ;;  %v190_v51 = vld [vmem:[%s1764_s1 + $0x520] sm:$0xff]  ;;  %v113_v33 = vld [vmem:[%s1764_s1 + $0x2b8] sm:$0xff] }
  0x3a   :  { %v260_v48 = vld [vmem:[%s1764_s1 + $0x750] sm:$0xff]  ;;  %406 = vmatpush.msrb.mxu0 %v160_v45  ;;  %445 = vmatpush.msrb.mxu2 %v226_v47  ;;  %v258_v54 = vld [vmem:[%s1764_s1 + $0x740] sm:$0xff]  ;;  %v43_v35 = vld [vmem:[%s1764_s1 + $0x88] sm:$0xff] }
  0x3b   :  { %v1163_v50 = vld [vmem:[%s1765_s0 + $0x10] sm:$0xff]  ;;  %426 = vmatpush.msrb.mxu1 %v192_v46  ;;  %464 = vmatpush.msrb.mxu3 %v260_v48  ;;  %v1181_v55 = vld [vmem:[%s1765_s0] sm:$0xff]  ;;  %v77_v36 = vld [vmem:[%s1764_s1 + $0x198] sm:$0xff] }
  0x3c   :  { %v224_v52 = vld [vmem:[%s1764_s1 + $0x630] sm:$0xff]  ;;  %407 = vmatpush.msrb.mxu0 %v158_v49  ;;  %370 = vmatmul.f32.vlgmr.msra.gmra.mxu2 %v1163_v50  ;;  %v154_v57 = vld [vmem:[%s1764_s1 + $0x400] sm:$0xff]  ;;  %v111_v37 = vld [vmem:[%s1764_s1 + $0x2a8] sm:$0xff] }
  0x3d   :  { %v156_v53 = vld [vmem:[%s1764_s1 + $0x410] sm:$0xff]  ;;  %427 = vmatpush.msrb.mxu1 %v190_v51  ;;  %446 = vmatpush.msrb.mxu2 %v224_v52  ;;  %v222_v59 = vld [vmem:[%s1764_s1 + $0x620] sm:$0xff]  ;;  %v41_v39 = vld [vmem:[%s1764_s1 + $0x78] sm:$0xff] }
  0x3e   :  { %v188_v58 = vld [vmem:[%s1764_s1 + $0x510] sm:$0xff]  ;;  %408 = vmatpush.msrb.mxu0 %v156_v53  ;;  %465 = vmatpush.msrb.mxu3 %v258_v54  ;;  %v186_v63 = vld [vmem:[%s1764_s1 + $0x500] sm:$0xff]  ;;  %v75_v40 = vld [vmem:[%s1764_s1 + $0x188] sm:$0xff] }
  0x3f   :  { %v256_v60 = vld [vmem:[%s1764_s1 + $0x730] sm:$0xff]  ;;  %330 = vmatmul.f32.vlgmr.msra.gmra.mxu0 %v1181_v55  ;;  %390 = vmatmul.f32.vlgmr.msra.gmra.mxu3 %v1186_v56  ;;  %v254_v1 = vld [vmem:[%s1764_s1 + $0x720] sm:$0xff]  ;;  %v109_v41 = vld [vmem:[%s1764_s1 + $0x298] sm:$0xff] }
  0x40   :  { %v312_v62 = vld [vmem:[%s1764_s1 + $0x8f0] sm:$0xff]  ;;  %409 = vmatpush.msrb.mxu0 %v154_v57  ;;  %428 = vmatpush.msrb.mxu1 %v188_v58  ;;  %v310_v2 = vld [vmem:[%s1764_s1 + $0x8e0] sm:$0xff]  ;;  %v39_v43 = vld [vmem:[%s1764_s1 + $0x68] sm:$0xff] }
  0x41   :  { %v220_v0 = vld [vmem:[%s1764_s1 + $0x610] sm:$0xff]  ;;  %447 = vmatpush.msrb.mxu2 %v222_v59  ;;  %466 = vmatpush.msrb.mxu3 %v256_v60  ;;  %v218_v4 = vld [vmem:[%s1764_s1 + $0x600] sm:$0xff]  ;;  %v73_v44 = vld [vmem:[%s1764_s1 + $0x178] sm:$0xff] }
  0x42   :  { %350 = vmatmul.f32.vlgmr.msra.gmra.mxu1 %v1205_v61  ;;  %474 = vmatpush.msra.mxu0 %v312_v62  ;;  %v252_v5 = vld [vmem:[%s1764_s1 + $0x710] sm:$0xff]  ;;  %v250_v10 = vld [vmem:[%s1764_s1 + $0x700] sm:$0xff]  ;;  %v107_v45 = vld [vmem:[%s1764_s1 + $0x288] sm:$0xff] }
  0x43   :  { %429 = vmatpush.msrb.mxu1 %v186_v63  ;;  %448 = vmatpush.msrb.mxu2 %v220_v0  ;;  %v1235_v6 = vld [vmem:[%s1765_s0 + $0x30] sm:$0xff]  ;;  %v1253_v11 = vld [vmem:[%s1765_s0 + $0x20] sm:$0xff]  ;;  %v37_v47 = vld [vmem:[%s1764_s1 + $0x58] sm:$0xff] }
  0x44   :  { %467 = vmatpush.msrb.mxu3 %v254_v1  ;;  %475 = vmatpush.msra.mxu0 %v310_v2  ;;  %v308_v7 = vld [vmem:[%s1764_s1 + $0x8d0] sm:$0xff]  ;;  %v306_v13 = vld [vmem:[%s1764_s1 + $0x8c0] sm:$0xff]  ;;  %v71_v48 = vld [vmem:[%s1764_s1 + $0x168] sm:$0xff] }
  0x45   :  { %494 = vmatpush.msra.mxu1 %v57_v3  ;;  %449 = vmatpush.msrb.mxu2 %v218_v4  ;;  %v304_v18 = vld [vmem:[%s1764_s1 + $0x8b0] sm:$0xff]  ;;  %v302_v22 = vld [vmem:[%s1764_s1 + $0x8a0] sm:$0xff]  ;;  %v105_v49 = vld [vmem:[%s1764_s1 + $0x278] sm:$0xff] }
  0x46   :  { %468 = vmatpush.msrb.mxu3 %v252_v5  ;;  %450 = vmatmul.f32.vlgmr.msrb.gmra.mxu2 %v1235_v6  ;;  %v300_v26 = vld [vmem:[%s1764_s1 + $0x890] sm:$0xff]  ;;  %v298_v30 = vld [vmem:[%s1764_s1 + $0x880] sm:$0xff]  ;;  %v35_v52 = vld [vmem:[%s1764_s1 + $0x48] sm:$0xff] }
  0x47   :  { %476 = vmatpush.msra.mxu0 %v308_v7  ;;  %495 = vmatpush.msra.mxu1 %v55_v8  ;;  %v296_v34 = vld [vmem:[%s1764_s1 + $0x870] sm:$0xff]  ;;  %v294_v38 = vld [vmem:[%s1764_s1 + $0x860] sm:$0xff]  ;;  %v69_v53 = vld [vmem:[%s1764_s1 + $0x158] sm:$0xff] }
  0x48   :  { %514 = vmatpush.msra.mxu2 %v89_v9  ;;  %469 = vmatpush.msrb.mxu3 %v250_v10  ;;  %v292_v42 = vld [vmem:[%s1764_s1 + $0x850] sm:$0xff]  ;;  %v290_v46 = vld [vmem:[%s1764_s1 + $0x840] sm:$0xff]  ;;  %v103_v54 = vld [vmem:[%s1764_s1 + $0x268] sm:$0xff] }
  0x49   :  { %410 = vmatmul.f32.vlgmr.msrb.gmra.mxu0 %v1253_v11  ;;  %470 = vmatmul.f32.vlgmr.msrb.gmra.mxu3 %v1258_v12  ;;  %v288_v51 = vld [vmem:[%s1764_s1 + $0x830] sm:$0xff]  ;;  %v286_v57 = vld [vmem:[%s1764_s1 + $0x820] sm:$0xff]  ;;  %v33_v58 = vld [vmem:[%s1764_s1 + $0x38] sm:$0xff] }
  0x4a   :  { %477 = vmatpush.msra.mxu0 %v306_v13  ;;  %496 = vmatpush.msra.mxu1 %v53_v14  ;;  %v67_v59 = vld [vmem:[%s1764_s1 + $0x148] sm:$0xff]  ;;  %v101_v60 = vld [vmem:[%s1764_s1 + $0x258] sm:$0xff]  ;;  %v284_v62 = vld [vmem:[%s1764_s1 + $0x810] sm:$0xff] }
  0x4b   :  { %515 = vmatpush.msra.mxu2 %v87_v15  ;;  %534 = vmatpush.msra.mxu3 %v121_v16  ;;  %v31_v63 = vld [vmem:[%s1764_s1 + $0x28] sm:$0xff]  ;;  %v65_v0 = vld [vmem:[%s1764_s1 + $0x138] sm:$0xff]  ;;  %v282_v2 = vld [vmem:[%s1764_s1 + $0x800] sm:$0xff] }
  0x4c   :  { %430 = vmatmul.f32.vlgmr.msrb.gmra.mxu1 %v1277_v17  ;;  %478 = vmatpush.msra.mxu0 %v304_v18  ;;  %v99_v1 = vld [vmem:[%s1764_s1 + $0x248] sm:$0xff]  ;;  %v29_v3 = vld [vmem:[%s1764_s1 + $0x18] sm:$0xff]  ;;  %v1427_v7 = vld [vmem:[%s1765_s0 + $0x40] sm:$0xff] }
  0x4d   :  { %497 = vmatpush.msra.mxu1 %v51_v19  ;;  %516 = vmatpush.msra.mxu2 %v85_v20  ;;  %v63_v4 = vld [vmem:[%s1764_s1 + $0x128] sm:$0xff]  ;;  %v97_v5 = vld [vmem:[%s1764_s1 + $0x238] sm:$0xff] }
  0x4e   :  { %535 = vmatpush.msra.mxu3 %v119_v21  ;;  %479 = vmatpush.msra.mxu0 %v302_v22  ;;  %v153_v8 = vld [vmem:[%s1764_s1 + $0x3f8] sm:$0xff]  ;;  %v27_v9 = vld [vmem:[%s1764_s1 + $0x8] sm:$0xff] }
  0x4f   :  { %498 = vmatpush.msra.mxu1 %v49_v23  ;;  %517 = vmatpush.msra.mxu2 %v83_v24  ;;  %v61_v10 = vld [vmem:[%s1764_s1 + $0x118] sm:$0xff]  ;;  %v95_v13 = vld [vmem:[%s1764_s1 + $0x228] sm:$0xff] }
  0x50   :  { %536 = vmatpush.msra.mxu3 %v117_v25  ;;  %480 = vmatpush.msra.mxu0 %v300_v26  ;;  %v151_v14 = vld [vmem:[%s1764_s1 + $0x3e8] sm:$0xff]  ;;  %v185_v15 = vld [vmem:[%s1764_s1 + $0x4f8] sm:$0xff] }
  0x51   :  { %499 = vmatpush.msra.mxu1 %v47_v27  ;;  %518 = vmatpush.msra.mxu2 %v81_v28  ;;  %v59_v16 = vld [vmem:[%s1764_s1 + $0x108] sm:$0xff]  ;;  %v93_v18 = vld [vmem:[%s1764_s1 + $0x218] sm:$0xff] }
  0x52   :  { %537 = vmatpush.msra.mxu3 %v115_v29  ;;  %481 = vmatpush.msra.mxu0 %v298_v30  ;;  %v149_v19 = vld [vmem:[%s1764_s1 + $0x3d8] sm:$0xff]  ;;  %v183_v20 = vld [vmem:[%s1764_s1 + $0x4e8] sm:$0xff] }
  0x53   :  { %500 = vmatpush.msra.mxu1 %v45_v31  ;;  %519 = vmatpush.msra.mxu2 %v79_v32  ;;  %v217_v21 = vld [vmem:[%s1764_s1 + $0x5f8] sm:$0xff]  ;;  %v91_v22 = vld [vmem:[%s1764_s1 + $0x208] sm:$0xff] }
  0x54   :  { %538 = vmatpush.msra.mxu3 %v113_v33  ;;  %482 = vmatpush.msra.mxu0 %v296_v34  ;;  %v147_v23 = vld [vmem:[%s1764_s1 + $0x3c8] sm:$0xff]  ;;  %v181_v24 = vld [vmem:[%s1764_s1 + $0x4d8] sm:$0xff] }
  0x55   :  { %501 = vmatpush.msra.mxu1 %v43_v35  ;;  %520 = vmatpush.msra.mxu2 %v77_v36  ;;  %v215_v25 = vld [vmem:[%s1764_s1 + $0x5e8] sm:$0xff]  ;;  %v249_v26 = vld [vmem:[%s1764_s1 + $0x6f8] sm:$0xff] }
  0x56   :  { %539 = vmatpush.msra.mxu3 %v111_v37  ;;  %483 = vmatpush.msra.mxu0 %v294_v38  ;;  %v145_v27 = vld [vmem:[%s1764_s1 + $0x3b8] sm:$0xff]  ;;  %v179_v28 = vld [vmem:[%s1764_s1 + $0x4c8] sm:$0xff] }
  0x57   :  { %502 = vmatpush.msra.mxu1 %v41_v39  ;;  %521 = vmatpush.msra.mxu2 %v75_v40  ;;  %v213_v29 = vld [vmem:[%s1764_s1 + $0x5d8] sm:$0xff]  ;;  %v247_v30 = vld [vmem:[%s1764_s1 + $0x6e8] sm:$0xff] }
  0x58   :  { %540 = vmatpush.msra.mxu3 %v109_v41  ;;  %484 = vmatpush.msra.mxu0 %v292_v42  ;;  %v143_v31 = vld [vmem:[%s1764_s1 + $0x3a8] sm:$0xff]  ;;  %v177_v32 = vld [vmem:[%s1764_s1 + $0x4b8] sm:$0xff] }
  0x59   :  { %503 = vmatpush.msra.mxu1 %v39_v43  ;;  %522 = vmatpush.msra.mxu2 %v73_v44  ;;  %v211_v33 = vld [vmem:[%s1764_s1 + $0x5c8] sm:$0xff]  ;;  %v245_v34 = vld [vmem:[%s1764_s1 + $0x6d8] sm:$0xff] }
  0x5a   :  { %541 = vmatpush.msra.mxu3 %v107_v45  ;;  %485 = vmatpush.msra.mxu0 %v290_v46  ;;  %v141_v35 = vld [vmem:[%s1764_s1 + $0x398] sm:$0xff]  ;;  %v175_v36 = vld [vmem:[%s1764_s1 + $0x4a8] sm:$0xff] }
  0x5b   :  { %504 = vmatpush.msra.mxu1 %v37_v47  ;;  %523 = vmatpush.msra.mxu2 %v71_v48  ;;  %v209_v37 = vld [vmem:[%s1764_s1 + $0x5b8] sm:$0xff]  ;;  %v243_v38 = vld [vmem:[%s1764_s1 + $0x6c8] sm:$0xff] }
  0x5c   :  { %542 = vmatpush.msra.mxu3 %v105_v49  ;;  %486 = vmatpush.msra.mxu0 %v288_v51  ;;  %v139_v39 = vld [vmem:[%s1764_s1 + $0x388] sm:$0xff]  ;;  %v173_v40 = vld [vmem:[%s1764_s1 + $0x498] sm:$0xff] }
  0x5d   :  { %505 = vmatpush.msra.mxu1 %v35_v52  ;;  %524 = vmatpush.msra.mxu2 %v69_v53  ;;  %v207_v41 = vld [vmem:[%s1764_s1 + $0x5a8] sm:$0xff]  ;;  %v241_v42 = vld [vmem:[%s1764_s1 + $0x6b8] sm:$0xff] }
  0x5e   :  { %543 = vmatpush.msra.mxu3 %v103_v54  ;;  %487 = vmatpush.msra.mxu0 %v286_v57  ;;  %v137_v43 = vld [vmem:[%s1764_s1 + $0x378] sm:$0xff]  ;;  %v171_v44 = vld [vmem:[%s1764_s1 + $0x488] sm:$0xff] }
  0x5f   :  { %506 = vmatpush.msra.mxu1 %v33_v58  ;;  %525 = vmatpush.msra.mxu2 %v67_v59  ;;  %v205_v45 = vld [vmem:[%s1764_s1 + $0x598] sm:$0xff]  ;;  %v239_v46 = vld [vmem:[%s1764_s1 + $0x6a8] sm:$0xff] }
  0x60   :  { %544 = vmatpush.msra.mxu3 %v101_v60  ;;  %488 = vmatpush.msra.mxu0 %v284_v62  ;;  %v135_v47 = vld [vmem:[%s1764_s1 + $0x368] sm:$0xff]  ;;  %v169_v48 = vld [vmem:[%s1764_s1 + $0x478] sm:$0xff] }
  0x61   :  { %507 = vmatpush.msra.mxu1 %v31_v63  ;;  %526 = vmatpush.msra.mxu2 %v65_v0  ;;  %v203_v49 = vld [vmem:[%s1764_s1 + $0x588] sm:$0xff]  ;;  %v237_v51 = vld [vmem:[%s1764_s1 + $0x698] sm:$0xff] }
  0x62   :  { %545 = vmatpush.msra.mxu3 %v99_v1  ;;  %489 = vmatpush.msra.mxu0 %v282_v2  ;;  %v133_v52 = vld [vmem:[%s1764_s1 + $0x358] sm:$0xff]  ;;  %v167_v53 = vld [vmem:[%s1764_s1 + $0x468] sm:$0xff] }
  0x63   :  { %508 = vmatpush.msra.mxu1 %v29_v3  ;;  %527 = vmatpush.msra.mxu2 %v63_v4  ;;  %v201_v54 = vld [vmem:[%s1764_s1 + $0x578] sm:$0xff]  ;;  %v235_v57 = vld [vmem:[%s1764_s1 + $0x688] sm:$0xff] }
  0x64   :  { %546 = vmatpush.msra.mxu3 %v97_v5  ;;  %490 = vmatmul.f32.vlgmr.msra.gmra.mxu0 %v1427_v7  ;;  %v131_v58 = vld [vmem:[%s1764_s1 + $0x348] sm:$0xff]  ;;  %v165_v59 = vld [vmem:[%s1764_s1 + $0x458] sm:$0xff] }
  0x65   :  { %554 = vmatpush.msrb.mxu0 %v153_v8  ;;  %509 = vmatpush.msra.mxu1 %v27_v9  ;;  %v199_v60 = vld [vmem:[%s1764_s1 + $0x568] sm:$0xff]  ;;  %v233_v62 = vld [vmem:[%s1764_s1 + $0x678] sm:$0xff] }
  0x66   :  { %528 = vmatpush.msra.mxu2 %v61_v10  ;;  %547 = vmatpush.msra.mxu3 %v95_v13  ;;  %v129_v63 = vld [vmem:[%s1764_s1 + $0x338] sm:$0xff]  ;;  %v163_v0 = vld [vmem:[%s1764_s1 + $0x448] sm:$0xff] }
  0x67   :  { %555 = vmatpush.msrb.mxu0 %v151_v14  ;;  %574 = vmatpush.msrb.mxu1 %v185_v15  ;;  %v197_v1 = vld [vmem:[%s1764_s1 + $0x558] sm:$0xff]  ;;  %v231_v2 = vld [vmem:[%s1764_s1 + $0x668] sm:$0xff] }
  0x68   :  { %529 = vmatpush.msra.mxu2 %v59_v16  ;;  %548 = vmatpush.msra.mxu3 %v93_v18  ;;  %v127_v3 = vld [vmem:[%s1764_s1 + $0x328] sm:$0xff]  ;;  %v161_v4 = vld [vmem:[%s1764_s1 + $0x438] sm:$0xff] }
  0x69   :  { %556 = vmatpush.msrb.mxu0 %v149_v19  ;;  %575 = vmatpush.msrb.mxu1 %v183_v20  ;;  %v195_v5 = vld [vmem:[%s1764_s1 + $0x548] sm:$0xff]  ;;  %v229_v8 = vld [vmem:[%s1764_s1 + $0x658] sm:$0xff] }
  0x6a   :  { %594 = vmatpush.msrb.mxu2 %v217_v21  ;;  %549 = vmatpush.msra.mxu3 %v91_v22  ;;  %v125_v9 = vld [vmem:[%s1764_s1 + $0x318] sm:$0xff]  ;;  %v159_v10 = vld [vmem:[%s1764_s1 + $0x428] sm:$0xff] }
  0x6b   :  { %557 = vmatpush.msrb.mxu0 %v147_v23  ;;  %576 = vmatpush.msrb.mxu1 %v181_v24  ;;  %v193_v13 = vld [vmem:[%s1764_s1 + $0x538] sm:$0xff]  ;;  %v227_v14 = vld [vmem:[%s1764_s1 + $0x648] sm:$0xff] }
  0x6c   :  { %595 = vmatpush.msrb.mxu2 %v215_v25  ;;  %614 = vmatpush.msrb.mxu3 %v249_v26  ;;  %v123_v15 = vld [vmem:[%s1764_s1 + $0x308] sm:$0xff]  ;;  %v157_v16 = vld [vmem:[%s1764_s1 + $0x418] sm:$0xff] }
  0x6d   :  { %558 = vmatpush.msrb.mxu0 %v145_v27  ;;  %577 = vmatpush.msrb.mxu1 %v179_v28  ;;  %v191_v18 = vld [vmem:[%s1764_s1 + $0x528] sm:$0xff]  ;;  %v225_v19 = vld [vmem:[%s1764_s1 + $0x638] sm:$0xff] }
  0x6e   :  { %596 = vmatpush.msrb.mxu2 %v213_v29  ;;  %615 = vmatpush.msrb.mxu3 %v247_v30  ;;  %v155_v20 = vld [vmem:[%s1764_s1 + $0x408] sm:$0xff]  ;;  %v189_v21 = vld [vmem:[%s1764_s1 + $0x518] sm:$0xff] }
  0x6f   :  { %559 = vmatpush.msrb.mxu0 %v143_v31  ;;  %578 = vmatpush.msrb.mxu1 %v177_v32  ;;  %v223_v22 = vld [vmem:[%s1764_s1 + $0x628] sm:$0xff]  ;;  %v221_v25 = vld [vmem:[%s1764_s1 + $0x618] sm:$0xff] }
  0x70   :  { %597 = vmatpush.msrb.mxu2 %v211_v33  ;;  %616 = vmatpush.msrb.mxu3 %v245_v34  ;;  %v279_v23 = vld [vmem:[%s1764_s1 + $0x7e8] sm:$0xff]  ;;  %v309_v29 = vld [vmem:[%s1764_s1 + $0x8d8] sm:$0xff] }
  0x71   :  { %560 = vmatpush.msrb.mxu0 %v141_v35  ;;  %579 = vmatpush.msrb.mxu1 %v175_v36  ;;  %v187_v24 = vld [vmem:[%s1764_s1 + $0x508] sm:$0xff]  ;;  %v273_v30 = vld [vmem:[%s1764_s1 + $0x7b8] sm:$0xff] }
  0x72   :  { %598 = vmatpush.msrb.mxu2 %v209_v37  ;;  %617 = vmatpush.msrb.mxu3 %v243_v38  ;;  %v311_v26 = vld [vmem:[%s1764_s1 + $0x8e8] sm:$0xff]  ;;  %v301_v33 = vld [vmem:[%s1764_s1 + $0x898] sm:$0xff] }
  0x73   :  { %561 = vmatpush.msrb.mxu0 %v139_v39  ;;  %580 = vmatpush.msrb.mxu1 %v173_v40  ;;  %v219_v27 = vld [vmem:[%s1764_s1 + $0x608] sm:$0xff]  ;;  %v265_v34 = vld [vmem:[%s1764_s1 + $0x778] sm:$0xff] }
  0x74   :  { %599 = vmatpush.msrb.mxu2 %v207_v41  ;;  %618 = vmatpush.msrb.mxu3 %v241_v42  ;;  %v275_v28 = vld [vmem:[%s1764_s1 + $0x7c8] sm:$0xff]  ;;  %v297_v37 = vld [vmem:[%s1764_s1 + $0x878] sm:$0xff] }
  0x75   :  { %562 = vmatpush.msrb.mxu0 %v137_v43  ;;  %581 = vmatpush.msrb.mxu1 %v171_v44  ;;  %v271_v31 = vld [vmem:[%s1764_s1 + $0x7a8] sm:$0xff]  ;;  %v261_v38 = vld [vmem:[%s1764_s1 + $0x758] sm:$0xff] }
  0x76   :  { %600 = vmatpush.msrb.mxu2 %v205_v45  ;;  %619 = vmatpush.msrb.mxu3 %v239_v46  ;;  %v303_v32 = vld [vmem:[%s1764_s1 + $0x8a8] sm:$0xff]  ;;  %v293_v41 = vld [vmem:[%s1764_s1 + $0x858] sm:$0xff] }
  0x77   :  { %563 = vmatpush.msrb.mxu0 %v135_v47  ;;  %582 = vmatpush.msrb.mxu1 %v169_v48  ;;  %v299_v35 = vld [vmem:[%s1764_s1 + $0x888] sm:$0xff]  ;;  %v257_v42 = vld [vmem:[%s1764_s1 + $0x738] sm:$0xff] }
  0x78   :  { %601 = vmatpush.msrb.mxu2 %v203_v49  ;;  %620 = vmatpush.msrb.mxu3 %v237_v51  ;;  %v263_v36 = vld [vmem:[%s1764_s1 + $0x768] sm:$0xff]  ;;  %v289_v45 = vld [vmem:[%s1764_s1 + $0x838] sm:$0xff] }
  0x79   :  { %564 = vmatpush.msrb.mxu0 %v133_v52  ;;  %583 = vmatpush.msrb.mxu1 %v167_v53  ;;  %v295_v39 = vld [vmem:[%s1764_s1 + $0x868] sm:$0xff]  ;;  %v253_v46 = vld [vmem:[%s1764_s1 + $0x718] sm:$0xff] }
  0x7a   :  { %602 = vmatpush.msrb.mxu2 %v201_v54  ;;  %621 = vmatpush.msrb.mxu3 %v235_v57  ;;  %v259_v40 = vld [vmem:[%s1764_s1 + $0x748] sm:$0xff]  ;;  %v285_v49 = vld [vmem:[%s1764_s1 + $0x818] sm:$0xff] }
  0x7b   :  { %565 = vmatpush.msrb.mxu0 %v131_v58  ;;  %584 = vmatpush.msrb.mxu1 %v165_v59  ;;  %v291_v43 = vld [vmem:[%s1764_s1 + $0x848] sm:$0xff] }
  0x7c   :  { %603 = vmatpush.msrb.mxu2 %v199_v60  ;;  %622 = vmatpush.msrb.mxu3 %v233_v62  ;;  %v255_v44 = vld [vmem:[%s1764_s1 + $0x728] sm:$0xff] }
  0x7d   :  { %566 = vmatpush.msrb.mxu0 %v129_v63  ;;  %585 = vmatpush.msrb.mxu1 %v163_v0  ;;  %v287_v47 = vld [vmem:[%s1764_s1 + $0x828] sm:$0xff] }
  0x7e   :  { %604 = vmatpush.msrb.mxu2 %v197_v1  ;;  %623 = vmatpush.msrb.mxu3 %v231_v2  ;;  %v251_v48 = vld [vmem:[%s1764_s1 + $0x708] sm:$0xff] }
  0x7f   :  { %567 = vmatpush.msrb.mxu0 %v127_v3  ;;  %586 = vmatpush.msrb.mxu1 %v161_v4  ;;  %v283_v51 = vld [vmem:[%s1764_s1 + $0x808] sm:$0xff] }
  0x80   :  { %605 = vmatpush.msrb.mxu2 %v195_v5  ;;  %624 = vmatpush.msrb.mxu3 %v229_v8 }
  0x81   :  { %530 = vmatmul.f32.vlgmr.msra.gmra.mxu2 %v1205_v61  ;;  %568 = vmatpush.msrb.mxu0 %v125_v9  ;;  %v281_v61 = vld [vmem:[%s1764_s1 + $0x7f8] sm:$0xff] }
  0x82   :  { %587 = vmatpush.msrb.mxu1 %v159_v10  ;;  %606 = vmatpush.msrb.mxu2 %v193_v13 }
  0x83   :  { %625 = vmatpush.msrb.mxu3 %v227_v14  ;;  %569 = vmatpush.msrb.mxu0 %v123_v15 }
  0x84   :  { %550 = vmatmul.f32.vlgmr.msra.gmra.mxu3 %v1163_v50  ;;  %588 = vmatpush.msrb.mxu1 %v157_v16  ;;  %v313_v50 = vld [vmem:[%s1764_s1 + $0x8f8] sm:$0xff] }
  0x85   :  { %607 = vmatpush.msrb.mxu2 %v191_v18  ;;  %626 = vmatpush.msrb.mxu3 %v225_v19 }
  0x86   :  { %510 = vmatmul.f32.vlgmr.msra.gmra.mxu1 %v1181_v55  ;;  %634 = vmatpush.msra.mxu0 %v281_v61  ;;  %v277_v55 = vld [vmem:[%s1764_s1 + $0x7d8] sm:$0xff] }
  0x87   :  { %589 = vmatpush.msrb.mxu1 %v155_v20  ;;  %608 = vmatpush.msrb.mxu2 %v189_v21 }
  0x88   :  { %627 = vmatpush.msrb.mxu3 %v223_v22  ;;  %635 = vmatpush.msra.mxu0 %v279_v23 }
  0x89   :  { %654 = vmatpush.msra.mxu1 %v313_v50  ;;  %609 = vmatpush.msrb.mxu2 %v187_v24 }
  0x8a   :  { %628 = vmatpush.msrb.mxu3 %v221_v25  ;;  %610 = vmatmul.f32.vlgmr.msrb.gmra.mxu2 %v1277_v17  ;;  %v307_v17 = vld [vmem:[%s1764_s1 + $0x8c8] sm:$0xff] }
  0x8b   :  { %636 = vmatpush.msra.mxu0 %v277_v55  ;;  %655 = vmatpush.msra.mxu1 %v311_v26 }
  0x8c   :  { %629 = vmatpush.msrb.mxu3 %v219_v27  ;;  %570 = vmatmul.f32.vlgmr.msrb.gmra.mxu0 %v1186_v56  ;;  %v305_v56 = vld [vmem:[%s1764_s1 + $0x8b8] sm:$0xff] }
  0x8d   :  { %630 = vmatmul.f32.vlgmr.msrb.gmra.mxu3 %v1235_v6  ;;  %637 = vmatpush.msra.mxu0 %v275_v28  ;;  %v269_v6 = vld [vmem:[%s1764_s1 + $0x798] sm:$0xff] }
  0x8e   :  { %656 = vmatpush.msra.mxu1 %v309_v29 }
  0x8f   :  { %590 = vmatmul.f32.vlgmr.msrb.gmra.mxu1 %v1253_v11  ;;  %638 = vmatpush.msra.mxu0 %v273_v30  ;;  %v267_v11 = vld [vmem:[%s1764_s1 + $0x788] sm:$0xff] }
  0x90   :  { %657 = vmatpush.msra.mxu1 %v307_v17 }
  0x91   :  { %639 = vmatpush.msra.mxu0 %v271_v31 }
  0x92   :  { %658 = vmatpush.msra.mxu1 %v305_v56 }
  0x93   :  { %640 = vmatpush.msra.mxu0 %v269_v6 }
  0x94   :  { %659 = vmatpush.msra.mxu1 %v303_v32 }
  0x95   :  { %641 = vmatpush.msra.mxu0 %v267_v11 }
  0x96   :  { %660 = vmatpush.msra.mxu1 %v301_v33 }
  0x97   :  { %642 = vmatpush.msra.mxu0 %v265_v34 }
  0x98   :  { %661 = vmatpush.msra.mxu1 %v299_v35 }
  0x99   :  { %643 = vmatpush.msra.mxu0 %v263_v36 }
  0x9a   :  { %662 = vmatpush.msra.mxu1 %v297_v37 }
  0x9b   :  { %644 = vmatpush.msra.mxu0 %v261_v38 }
  0x9c   :  { %663 = vmatpush.msra.mxu1 %v295_v39 }
  0x9d   :  { %645 = vmatpush.msra.mxu0 %v259_v40 }
  0x9e   :  { %664 = vmatpush.msra.mxu1 %v293_v41 }
  0x9f   :  { %646 = vmatpush.msra.mxu0 %v257_v42 }
  0xa0   :  { %665 = vmatpush.msra.mxu1 %v291_v43 }
  0xa1   :  { %647 = vmatpush.msra.mxu0 %v255_v44 }
  0xa2   :  { %666 = vmatpush.msra.mxu1 %v289_v45 }
  0xa3   :  { %648 = vmatpush.msra.mxu0 %v253_v46 }
  0xa4   :  { %667 = vmatpush.msra.mxu1 %v287_v47 }
  0xa5   :  { %649 = vmatpush.msra.mxu0 %v251_v48 }
  0xa6   :  { %668 = vmatpush.msra.mxu1 %v285_v49  ;;  %650 = vmatmul.f32.vlgmr.msra.gmra.mxu0 %v1258_v12 }
  0xa8   :  { %669 = vmatpush.msra.mxu1 %v283_v51 }
  0xa9   :  { %670 = vmatmul.f32.vlgmr.msra.gmra.mxu1 %v1427_v7 }
  0xbc   :  { %v331_v53 = vpop.f32.mrf.mxu0 }
  0xbf   :  { %v351_v52 = vpop.f32.mrf.mxu1  ;;  %v371_v57 = vpop.f32.mrf.mxu2 }
  0xc0   :  { %v352_v54 = vadd.f32 %v351_v52, %v331_v53 }
  0xc2   :  { %v372_v58 = vadd.f32 %v371_v57, %v352_v54  ;;  %v391_v59 = vpop.f32.mrf.mxu3 }
  0xc4   :  { %v392_v60 = vadd.f32 %v391_v59, %v372_v58 }
  0xc6   :  { %v411_v62 = vpop.f32.mrf.mxu0 }
  0xc7   :  { %v412_v63 = vadd.f32 %v411_v62, %v392_v60 }
  0xc9   :  { %v431_v0 = vpop.f32.mrf.mxu1  ;;  %v451_v2 = vpop.f32.mrf.mxu2 }
  0xca   :  { %v432_v1 = vadd.f32 %v431_v0, %v412_v63 }
  0xcc   :  { %v452_v3 = vadd.f32 %v451_v2, %v432_v1  ;;  %v471_v4 = vpop.f32.mrf.mxu3 }
  0xce   :  { %v472_v8 = vadd.f32 %v471_v4, %v452_v3 }
  0xe1   :  { %v491_v5 = vpop.f32.mrf.mxu0 }
  0xe2   :  { %v1745_v12 = vadd.f32 %v491_v5, %v472_v8 }
  0xe4   :  { %v674_v7 = vrot.slane %v1745_v12, 4  ;;  %v688_v9 = vmul.f32 %v1745_v12, %v1745_v12 }
  0xe6   :  { %v675_v15 = vadd.f32 %v674_v7, %v1745_v12  ;;  %v690_v16 = vrot.slane %v688_v9, 4 }
  0xe8   :  { %v676_v61 = vrot.slane %v675_v15, 2  ;;  %v691_v20 = vadd.f32 %v690_v16, %v688_v9 }
  0xea   :  { %v677_v23 = vadd.f32 %v676_v61, %v675_v15  ;;  %v692_v50 = vrot.slane %v691_v20, 2 }
  0xec   :  { %v678_v55 = vrot.slane %v677_v23, 1  ;;  %v693_v26 = vadd.f32 %v692_v50, %v691_v20 }
  0xee   :  { %v679_v29 = vadd.f32 %v678_v55, %v677_v23  ;;  %v694_v30 = vrot.slane %v693_v26, 1 }
  0xf0   :  { %v686_v56 = vmul.f32 0.5, %v679_v29  ;;  %v695_v6 = vadd.f32 %v694_v30, %v693_v26 }
  0xf2   :  { %v702_v34 = vmul.f32 0.5, %v695_v6  ;;  %v704_v35 = vmul.f32 %v686_v56, %v686_v56 }
  0xf4   :  { %v706_v39 = vsub.f32 %v702_v34, %v704_v35 }
  0xf6   :  { %v709_v44 = vadd.f32 1e-05, %v706_v39 }
  0xf8   :  { %785 = vrsqrt.f32 %v709_v44  ;;  %vm717_vm4 = vweird.f32 %v709_v44 }
  0xfe   :  { %v786_v58 = vpop.eup %785 }
  0xff   :  { %v712_v62 = vmul.f32 %v786_v58, %v709_v44  ;;  %vm718_vm1 = vweird.f32 %v786_v58 }
 0x100   :  { %vm719_vm6 = vmor %vm717_vm4, %vm718_vm1 }
 0x101   :  { %v713_v63 = vmul.f32 %v786_v58, %v712_v62 }
 0x103   :  { %v511_v13 = vpop.f32.mrf.mxu1  ;;  %v714_v1 = vmul.f32 0.5, %v713_v63 }
 0x104   :  { %v531_v10 = vpop.f32.mrf.mxu2 }
 0x105   :  { %v532_v14 = vadd.f32 %v531_v10, %v511_v13  ;;  %v715_v4 = vsub.f32 1.5, %v714_v1  ;;  %v708_v13 = vld [vmem:[%s1766_s2] sm:$0x3] }
 0x107   :  { %v551_v18 = vpop.f32.mrf.mxu3  ;;  %v716_v7 = vmul.f32 %v786_v58, %v715_v4 }
 0x108   :  { %v552_v19 = vadd.f32 %v551_v18, %v532_v14 }
 0x109   :  { %v571_v21 = vpop.f32.mrf.mxu0  ;;  %v720_v15 = vsel %vm719_vm6, %v786_v58, %v716_v7 }
 0x10a   :  { %v572_v22 = vadd.f32 %v571_v21, %v552_v19  ;;  %v738_v21 = vld [vmem:[%s1767_s3] sm:$0x3] }
 0x10c   :  { %v591_v24 = vpop.f32.mrf.mxu1 }
 0x10d   :  { %v592_v25 = vadd.f32 %v591_v24, %v572_v22  ;;  %v611_v27 = vpop.f32.mrf.mxu2 }
 0x10f   :  { %v612_v28 = vadd.f32 %v611_v27, %v592_v25 }
 0x110   :  { %v631_v17 = vpop.f32.mrf.mxu3 }
 0x111   :  { %v632_v31 = vadd.f32 %v631_v17, %v612_v28 }
 0x123   :  { %v651_v32 = vpop.f32.mrf.mxu0 }
 0x124   :  { %v652_v11 = vadd.f32 %v651_v32, %v632_v31 }
 0x126   :  { %v671_v33 = vpop.f32.mrf.mxu1 }
 0x127   :  { %v672_v36 = vadd.f32 %v671_v33, %v652_v11 }
 0x129   :  { %v680_v37 = vrot.slane %v672_v36, 4  ;;  %v689_v38 = vmul.f32 %v672_v36, %v672_v36 }
 0x12b   :  { %v681_v40 = vadd.f32 %v680_v37, %v672_v36  ;;  %v696_v41 = vrot.slane %v689_v38, 4 }
 0x12d   :  { %v682_v42 = vrot.slane %v681_v40, 2  ;;  %v697_v43 = vadd.f32 %v696_v41, %v689_v38 }
 0x12f   :  { %v683_v45 = vadd.f32 %v682_v42, %v681_v40  ;;  %v698_v46 = vrot.slane %v697_v43, 2 }
 0x131   :  { %v684_v47 = vrot.slane %v683_v45, 1  ;;  %v699_v48 = vadd.f32 %v698_v46, %v697_v43 }
 0x133   :  { %v685_v49 = vadd.f32 %v684_v47, %v683_v45  ;;  %v700_v51 = vrot.slane %v699_v48, 1 }
 0x135   :  { %v687_v52 = vmul.f32 0.5, %v685_v49  ;;  %v701_v53 = vadd.f32 %v700_v51, %v699_v48 }
 0x137   :  { %v703_v54 = vmul.f32 0.5, %v701_v53  ;;  %v705_v57 = vmul.f32 %v687_v52, %v687_v52 }
 0x139   :  { %v707_v59 = vsub.f32 %v703_v54, %v705_v57 }
 0x13b   :  { %v710_v60 = vadd.f32 1e-05, %v707_v59 }
 0x13d   :  { %787 = vrsqrt.f32 %v710_v60  ;;  %vm727_vm2 = vweird.f32 %v710_v60 }
 0x143   :  { %v788_v0 = vpop.eup %787 }
 0x144   :  { %v722_v2 = vmul.f32 %v788_v0, %v710_v60  ;;  %vm728_vm0 = vweird.f32 %v788_v0 }
 0x145   :  { %vm729_vm3 = vmor %vm727_vm2, %vm728_vm0 }
 0x146   :  { %v723_v3 = vmul.f32 %v788_v0, %v722_v2 }
 0x148   :  { %v724_v5 = vmul.f32 0.5, %v723_v3 }
 0x14a   :  { %v725_v8 = vsub.f32 1.5, %v724_v5 }
 0x14c   :  { %v726_v9 = vmul.f32 %v788_v0, %v725_v8 }
 0x14e   :  { %v730_v10 = vsel %vm729_vm3, %v788_v0, %v726_v9 }
 0x14f   :  { %v733_v14 = vrot.slane %v730_v10, 7 }
 0x151   :  { %v735_v16 = vsel %vm734_vm5, %v720_v15, %v733_v14 }
 0x152   :  { %v737_v18 = vmul.f32 %v735_v16, %v708_v13 }
 0x154   :  { %v740_v19 = vperm.slane %v737_v18, 0  ;;  %v741_v61 = vperm.slane %v737_v18, 1 }
 0x156   :  { %v745_v20 = vmul.f32 %v741_v61, %v687_v52  ;;  %v744_v22 = vmul.f32 %v740_v19, %v686_v56  ;;  %v752_v25 = vmul.f32 %v740_v19, %v1745_v12  ;;  %v753_v55 = vmul.f32 %v741_v61, %v672_v36 }
 0x158   :  { %v748_v23 = vrot.slane %v745_v20, 7 }
 0x15a   :  { %v749_v50 = vsel %vm734_vm5, %v744_v22, %v748_v23 }
 0x15b   :  { %v751_v24 = vsub.f32 %v738_v21, %v749_v50 }
 0x15d   :  { %v755_v26 = vperm.slane %v751_v24, 0  ;;  %v756_v27 = vperm.slane %v751_v24, 1 }
 0x15f   :  { %v759_v28 = vadd.f32 %v755_v26, %v752_v25  ;;  %v760_v29 = vadd.f32 %v756_v27, %v753_v55 }
 0x161   :  { %v761_v30 = vmin.f32 %v759_v28, 0.0  ;;  %v762_v17 = vmin.f32 %v760_v29, 0.0  ;;  %vm771_vm7 = vcmp.gt.f32.partialorder %v759_v28, 0.0  ;;  %vm772_vm8 = vcmp.gt.f32.partialorder %v760_v29, 0.0 }
 0x163   :  { %v763_v31 = vmul.f32 1.442695, %v761_v30  ;;  %v765_v6 = vmul.f32 1.442695, %v762_v17 }
 0x165   :  { %789 = vpow2.f32 %v763_v31 }
 0x166   :  { %791 = vpow2.f32 %v765_v6 }
 0x16b   :  { %v790_v32 = vpop.eup %789 }
 0x16c   :  { %v792_v11 = vpop.eup %791  ;;  %v783_v33 = vadd.f32 -1.0, %v790_v32 }
 0x16d   :  { %v784_v56 = vadd.f32 -1.0, %v792_v11 }
 0x16e   :  { %v769_v34 = vmul.f32 1.6732632, %v783_v33 }
 0x16f   :  { %v770_v35 = vmul.f32 1.6732632, %v784_v56 }
 0x170   :  { %v773_v12 = vsel %vm771_vm7, %v759_v28, %v769_v34 }
 0x171   :  { %v774_v36 = vsel %vm772_vm8, %v760_v29, %v770_v35  ;;  %v775_v37 = vmul.f32 1.050701, %v773_v12 }
 0x172   :  { %v776_v38 = vmul.f32 1.050701, %v774_v36 }
 0x173   :  { %777 = vst [vmem:[%s1768_s4] sm:$0xff] %v775_v37 }
 0x174   :  { %778 = vst [vmem:[%s1768_s4 + $0x8] sm:$0xff] %v776_v38 }

</bundles_post_ra>
